<compile_context>
chip_gen: v7x
topology: tpu7x:2x2x1
jax: 0.10.0
libtpu: 0.0.40
codegen_flags: <defaults>
</compile_context>

<pallas_src>
import functools

import jax
import jax.numpy as jnp
import numpy as np
from jax.experimental import pallas as pl
from jax.experimental.pallas import tpu as pltpu

INV_SQRT2 = 0.7071067811865476
BN_EPS = 1e-5

_CPARAMS = pltpu.CompilerParams(
    dimension_semantics=("parallel", "parallel"),
    vmem_limit_bytes=32 * 1024 * 1024,
)


# ---------------- tiling plan ----------------

def _plan_rows(n, h, w):
    """Choose (rows-per-block rh, number of row blocks nh, padded height HP = nh*rh).

    rh is a multiple of 8 (sublane constraint on (rh, lanes) blocks).  When batch == 1 we
    prefer an even number of grid blocks so v7x's two TensorCores are both busy; blocks are
    capped so the largest per-block buffer (the 16W-wide conv output) stays ~<= 4 MiB."""
    groups = -(-h // 8)                         # number of 8-row groups needed
    nblocks = 2 if (n == 1 and groups >= 2) else 1
    gpb = -(-groups // nblocks)
    cap = max(1, (4 * 1024 * 1024) // (3 * 16 * w * 4 * 8))
    gpb = min(gpb, cap)
    rh = 8 * gpb
    nh = -(-h // rh)
    if n == 1 and nh > 1 and nh % 2 == 1:
        nh += 1                                  # v7x megacore balance (rare: only if capped)
    return rh, nh, nh * rh


# ---------------- Pallas kernels ----------------

def _convt_gelu_stats_kernel(xe_ref, wx_ref, b_ref,
                             out_ref, vsum_ref, vssq_ref, xsum_ref, xssq_ref,
                             *, h_in, w_in, rows):
    # xe: (1, 3, rh, 4W) lane-expanded input     wx: (12, 3, 4W) lane-periodic weights
    # b : (12, 1) per-(c,ki) bias
    # out: (1, 3, rh, 16W)  -- row-major identical to the uncropped (1, 3, 4*rh, 4W) output
    # vsum/vssq: (1, 3, rh, 1) masked per-row BN(v6) partial sums
    # xsum/xssq: (1, 3, rh, 1) BN(x1) partial sums
    fourw = 4 * w_in
    j = pl.program_id(1)

    # ---- factored masks: 1-D lane piece + 1-D row pieces (no full-tile integer math) ----
    lane = jax.lax.broadcasted_iota(jnp.int32, (1, fourw), 1)
    lane_keep = ((lane > 0) & (lane < fourw - 1)).astype(jnp.float32)        # crop cols 0, 4W-1
    gi = jax.lax.broadcasted_iota(jnp.int32, (rows, 1), 0) + j * rows        # global input row
    valid = gi < h_in
    r_mid = valid.astype(jnp.float32)
    r_top = (valid & (gi > 0)).astype(jnp.float32)            # ki == 0 also crops output row 0
    r_bot = (valid & (gi < h_in - 1)).astype(jnp.float32)     # ki == 3 also crops last row
    rmask = (r_top, r_mid, r_mid, r_bot)

    # ---- hoisted loads ----
    x_c0 = xe_ref[0, 0]                         # (rh, 4W)
    x_c1 = xe_ref[0, 1]
    x_c2 = xe_ref[0, 2]
    bb = b_ref[...]                             # (12, 1)

    # ---- branch-1 BatchNorm(x1) statistics (xe repeats each x element 4x along lanes) ----
    for cin, xc in enumerate((x_c0, x_c1, x_c2)):
        xsum_ref[0, cin] = xc.sum(axis=1, keepdims=True) * 0.25
        xssq_ref[0, cin] = (xc * xc).sum(axis=1, keepdims=True) * 0.25

    # ---- conv-transpose (stride == kernel -> disjoint tiles) + exact-erf GELU + v6 stats ----
    for c in range(3):
        s_acc = jnp.zeros((rows, 1), jnp.float32)
        q_acc = jnp.zeros((rows, 1), jnp.float32)
        for ki in range(4):
            ck = 4 * c + ki
            wk = wx_ref[ck]                                             # (3, 4W)
            acc = (wk[0:1, :] * x_c0 + wk[1:2, :] * x_c1 + wk[2:3, :] * x_c2
                   + bb[ck:ck + 1, :])                                  # (rh, 4W)
            # exact-erf GELU: (0.5*v1) * (erf(v1/sqrt(2)) + 1)
            g = (acc * 0.5) * (jax.lax.erf(acc * INV_SQRT2) + 1.0)
            # final-layout store: lanes [ki*4W, (ki+1)*4W) of slab row i == output row 4*i+ki
            out_ref[0, c, :, ki * fourw:(ki + 1) * fourw] = g
            gm = (g * rmask[ki]) * lane_keep
            s_acc = s_acc + gm.sum(axis=1, keepdims=True)
            q_acc = q_acc + (gm * g).sum(axis=1, keepdims=True)         # gm*g == g^2 * mask
        vsum_ref[0, c] = s_acc
        vssq_ref[0, c] = q_acc


def _bn_apply_kernel(g_ref, x_ref, sv_ref, hv_ref, sx_ref, hx_ref, ov_ref, ox_ref):
    # Purely elementwise, lane-dense: y = x * scale + shift (per channel, (3,1,1) broadcast).
    ov_ref[0] = g_ref[0] * sv_ref[...] + hv_ref[...]
    ox_ref[0] = x_ref[0] * sx_ref[...] + hx_ref[...]


# ---------------- helpers ----------------

def _affine_from_stats(s, q, count, gamma, beta):
    # Training-mode (biased, batch-statistics) BatchNorm; single-pass E[x^2]-E[x]^2 (clamped).
    mean = s / count
    var = jnp.maximum(q / count - mean * mean, 0.0)
    scale = gamma * jax.lax.rsqrt(var + BN_EPS)
    shift = beta - mean * scale
    return scale, shift


# ---------------- model ----------------

@jax.jit
def model_branches(params, x1):
    """Returns (bn(x1), bn(gelu(conv_transpose(x1)))) -- the operands of the original add."""
    w, b, gamma, beta = params
    n, cin, h, wd = x1.shape
    cout, kh, kw = w.shape[1], w.shape[2], w.shape[3]        # 3, 4, 4
    r12 = cout * kh                                          # 12 (c, ki) rows
    fourw = kw * wd
    rh, nh, hp = _plan_rows(n, h, wd)

    # Kernel-A inputs (all O(input) / O(weights), tiny):
    xe = jnp.pad(jnp.repeat(x1, kw, axis=3),
                 ((0, 0), (0, 0), (0, hp - h), (0, 0)))      # (N, 3, HP, 4W) lane-expanded
    xp = jnp.pad(x1, ((0, 0), (0, 0), (0, hp - h), (0, 0)))  # (N, 3, HP, W) for bn(x1)
    wx = jnp.tile(jnp.transpose(w, (1, 2, 0, 3)).reshape(r12, cin, kw),
                  (1, 1, wd))                                # (12, 3, 4W), 4-periodic in lanes
    b12 = jnp.repeat(b, kh).reshape(r12, 1)                  # (12, 1), b12[4c+ki] = b[c]

    kern_a = functools.partial(_convt_gelu_stats_kernel, h_in=h, w_in=wd, rows=rh)
    g_pre, vsum, vssq, xsum, xssq = pl.pallas_call(
        kern_a,
        out_shape=(
            jax.ShapeDtypeStruct((n, cout, hp, kh * fourw), jnp.float32),
            jax.ShapeDtypeStruct((n, cout, hp, 1), jnp.float32),
            jax.ShapeDtypeStruct((n, cout, hp, 1), jnp.float32),
            jax.ShapeDtypeStruct((n, cin, hp, 1), jnp.float32),
            jax.ShapeDtypeStruct((n, cin, hp, 1), jnp.float32),
        ),
        grid=(n, nh),
        in_specs=[
            pl.BlockSpec((1, cin, rh, fourw), lambda i, j: (i, 0, j, 0)),
            pl.BlockSpec((r12, cin, fourw), lambda i, j: (0, 0, 0)),
            pl.BlockSpec((r12, 1), lambda i, j: (0, 0)),
        ],
        out_specs=(
            pl.BlockSpec((1, cout, rh, kh * fourw), lambda i, j: (i, 0, j, 0)),
            pl.BlockSpec((1, cout, rh, 1), lambda i, j: (i, 0, j, 0)),
            pl.BlockSpec((1, cout, rh, 1), lambda i, j: (i, 0, j, 0)),
            pl.BlockSpec((1, cin, rh, 1), lambda i, j: (i, 0, j, 0)),
            pl.BlockSpec((1, cin, rh, 1), lambda i, j: (i, 0, j, 0)),
        ),
        compiler_params=_CPARAMS,
    )(xe, wx, b12)

    # Tiny XLA: combine masked partial sums into per-channel affine parameters.
    cnt_v = n * (kh * h - 2) * (kw * wd - 2)
    cnt_x = n * h * wd
    scale_v, shift_v = _affine_from_stats(vsum.sum(axis=(0, 2, 3)),
                                          vssq.sum(axis=(0, 2, 3)), cnt_v, gamma, beta)
    scale_x, shift_x = _affine_from_stats(xsum.sum(axis=(0, 2, 3)),
                                          xssq.sum(axis=(0, 2, 3)), cnt_x, gamma, beta)

    bn_v6u, bn_x1u = pl.pallas_call(
        _bn_apply_kernel,
        out_shape=(
            jax.ShapeDtypeStruct((n, cout, hp, kh * fourw), jnp.float32),
            jax.ShapeDtypeStruct((n, cin, hp, wd), jnp.float32),
        ),
        grid=(n, nh),
        in_specs=[
            pl.BlockSpec((1, cout, rh, kh * fourw), lambda i, j: (i, 0, j, 0)),
            pl.BlockSpec((1, cin, rh, wd), lambda i, j: (i, 0, j, 0)),
            pl.BlockSpec((cout, 1, 1), lambda i, j: (0, 0, 0)),
            pl.BlockSpec((cout, 1, 1), lambda i, j: (0, 0, 0)),
            pl.BlockSpec((cin, 1, 1), lambda i, j: (0, 0, 0)),
            pl.BlockSpec((cin, 1, 1), lambda i, j: (0, 0, 0)),
        ],
        out_specs=(
            pl.BlockSpec((1, cout, rh, kh * fourw), lambda i, j: (i, 0, j, 0)),
            pl.BlockSpec((1, cin, rh, wd), lambda i, j: (i, 0, j, 0)),
        ),
        compiler_params=_CPARAMS,
    )(g_pre, xp, scale_v.reshape(cout, 1, 1), shift_v.reshape(cout, 1, 1),
      scale_x.reshape(cin, 1, 1), shift_x.reshape(cin, 1, 1))

    # (N, 3, HP, 16W) is bit-identical to (N, 3, 4*HP, 4W): free reshape, then crop the border.
    bn_v6 = bn_v6u.reshape(n, cout, kh * hp, fourw)[:, :, 1:kh * h - 1, 1:fourw - 1]
    bn_x1 = bn_x1u[:, :, :h, :]
    return bn_x1, bn_v6


@jax.jit
def model_forward(params, x1):
    """Full forward: bn(x1) + bn(gelu(conv_transpose(x1)))."""
    bn_x1, bn_v6 = model_branches(params, x1)
    # TODO(synk): the original `self.bn(x1) + self.bn(v6)` only broadcasts when x1's spatial
    # dims are 1x1 (conv_transpose upsamples 4x); for other shapes PyTorch itself raises,
    # so no sum is defined there -- use model_branches for those shapes.
    return bn_x1 + bn_v6


# ---------------- pure-JAX reference ----------------

def _ref_branches(params, x):
    w, b, gamma, beta = params
    n, _, h, wd = x.shape
    co = w.shape[1]
    full = jnp.einsum('ncij,cokl->noikjl', x, w).reshape(n, co, 4 * h, 4 * wd)
    v1 = full[:, :, 1:-1, 1:-1] + b[None, :, None, None]
    v6 = (v1 * 0.5) * (jax.lax.erf(v1 * INV_SQRT2) + 1.0)

    def bn(t):
        mean = jnp.mean(t, axis=(0, 2, 3), keepdims=True)
        var = jnp.mean((t - mean) ** 2, axis=(0, 2, 3), keepdims=True)
        return ((t - mean) * jax.lax.rsqrt(var + BN_EPS)
                * gamma[None, :, None, None] + beta[None, :, None, None])

    return bn(x), bn(v6)


# ---------------- main ----------------

if __name__ == "__main__":
    key = jax.random.PRNGKey(0)
    kw_, kb_, ka, kb2, kc = jax.random.split(key, 5)

    w = jax.random.normal(kw_, (3, 3, 4, 4), jnp.float32) * 0.1
    b = jax.random.normal(kb_, (3,), jnp.float32) * 0.1
    gamma = jnp.ones((3,), jnp.float32)    # BatchNorm2d default weight
    beta = jnp.zeros((3,), jnp.float32)    # BatchNorm2d default bias
    params = (w, b, gamma, beta)

    # Case A: spec-shaped input (1,3,38,64) -- multi-block grid, lane-dense 1024-wide stores.
    xa = jax.random.normal(ka, (1, 3, 38, 64), jnp.float32)
    bn_xa, bn_v6a = model_branches(params, xa)
    ra_x, ra_v6 = _ref_branches(params, xa)
    np.testing.assert_allclose(np.asarray(bn_xa), np.asarray(ra_x), atol=2e-4, rtol=2e-4)
    np.testing.assert_allclose(np.asarray(bn_v6a), np.asarray(ra_v6), atol=2e-4, rtol=2e-4)

    # Case B: small, non-multiple-of-8 spatial size (row-padding + mask path), batch > 1.
    xb = jax.random.normal(kb2, (2, 3, 6, 10), jnp.float32)
    bn_xb, bn_v6b = model_branches(params, xb)
    rb_x, rb_v6 = _ref_branches(params, xb)
    np.testing.assert_allclose(np.asarray(bn_xb), np.asarray(rb_x), atol=2e-4, rtol=2e-4)
    np.testing.assert_allclose(np.asarray(bn_v6b), np.asarray(rb_v6), atol=2e-4, rtol=2e-4)

    # Case C: 1x1 spatial -- the only shape where the original final broadcast add is valid.
    xc = jax.random.normal(kc, (8, 3, 1, 1), jnp.float32)
    out_c = model_forward(params, xc)
    rc_x, rc_v6 = _ref_branches(params, xc)
    np.testing.assert_allclose(np.asarray(out_c), np.asarray(rc_x + rc_v6),
                               atol=2e-4, rtol=2e-4)

    jax.block_until_ready((bn_xa, bn_v6a, bn_xb, bn_v6b, out_c))
    print("KERNEL_OK")
</pallas_src>

<mosaic_0001>
module attributes {stable_mosaic.version = 11 : i64} {
  func.func @_bn_apply_kernel(%arg0: i32, %arg1: i32, %arg2: memref<1x3x24x1024xf32, #tpu.memory_space<vmem>>, %arg3: memref<1x3x24x64xf32, #tpu.memory_space<vmem>>, %arg4: memref<3x1x1xf32, #tpu.memory_space<vmem>>, %arg5: memref<3x1x1xf32, #tpu.memory_space<vmem>>, %arg6: memref<3x1x1xf32, #tpu.memory_space<vmem>>, %arg7: memref<3x1x1xf32, #tpu.memory_space<vmem>>, %arg8: memref<1x3x24x1024xf32, #tpu.memory_space<vmem>>, %arg9: memref<1x3x24x64xf32, #tpu.memory_space<vmem>>) attributes {dimension_semantics = [#tpu.dimension_semantics<parallel>, #tpu.dimension_semantics<parallel>], iteration_bounds = array<i64: 1, 2>, scalar_prefetch = 0 : i64, scratch_operands = 0 : i64, tpu.core_type = #tpu.core_type<tc>, window_params = [{transform_indices = @transform_0, window_bounds = array<i64: 1, 3, 24, 1024>}, {transform_indices = @transform_1, window_bounds = array<i64: 1, 3, 24, 64>}, {pipeline_mode = #tpu.pipeline_mode<synchronous>, transform_indices = @transform_2, window_bounds = array<i64: 3, 1, 1>}, {pipeline_mode = #tpu.pipeline_mode<synchronous>, transform_indices = @transform_3, window_bounds = array<i64: 3, 1, 1>}, {pipeline_mode = #tpu.pipeline_mode<synchronous>, transform_indices = @transform_4, window_bounds = array<i64: 3, 1, 1>}, {pipeline_mode = #tpu.pipeline_mode<synchronous>, transform_indices = @transform_5, window_bounds = array<i64: 3, 1, 1>}, {transform_indices = @transform_6, window_bounds = array<i64: 1, 3, 24, 1024>}, {transform_indices = @transform_7, window_bounds = array<i64: 1, 3, 24, 64>}]} {
    %c0 = arith.constant 0 : index
    %c0_0 = arith.constant 0 : index
    %c0_1 = arith.constant 0 : index
    %c0_2 = arith.constant 0 : index
    %0 = vector.load %arg2[%c0, %c0_0, %c0_1, %c0_2] : memref<1x3x24x1024xf32, #tpu.memory_space<vmem>>, vector<1x3x24x1024xf32>
    %1 = vector.shape_cast %0 : vector<1x3x24x1024xf32> to vector<3x24x1024xf32>
    %c0_3 = arith.constant 0 : index
    %c0_4 = arith.constant 0 : index
    %c0_5 = arith.constant 0 : index
    %2 = vector.load %arg4[%c0_3, %c0_4, %c0_5] : memref<3x1x1xf32, #tpu.memory_space<vmem>>, vector<3x1x1xf32>
    %3 = vector.broadcast %2 : vector<3x1x1xf32> to vector<3x24x1024xf32>
    %4 = arith.mulf %1, %3 : vector<3x24x1024xf32>
    %c0_6 = arith.constant 0 : index
    %c0_7 = arith.constant 0 : index
    %c0_8 = arith.constant 0 : index
    %5 = vector.load %arg5[%c0_6, %c0_7, %c0_8] : memref<3x1x1xf32, #tpu.memory_space<vmem>>, vector<3x1x1xf32>
    %6 = vector.broadcast %5 : vector<3x1x1xf32> to vector<3x24x1024xf32>
    %7 = arith.addf %4, %6 : vector<3x24x1024xf32>
    %c0_9 = arith.constant 0 : index
    %c0_10 = arith.constant 0 : index
    %c0_11 = arith.constant 0 : index
    %c0_12 = arith.constant 0 : index
    %8 = vector.load %arg8[%c0_9, %c0_10, %c0_11, %c0_12] : memref<1x3x24x1024xf32, #tpu.memory_space<vmem>>, vector<1x3x24x1024xf32>
    %9 = vector.shape_cast %8 : vector<1x3x24x1024xf32> to vector<3x24x1024xf32>
    %10 = vector.shape_cast %7 : vector<3x24x1024xf32> to vector<1x3x24x1024xf32>
    tpu.vector_store %arg8[%c0_9, %c0_10, %c0_11, %c0_12], %10 {strides = array<i32>} : memref<1x3x24x1024xf32, #tpu.memory_space<vmem>>, vector<1x3x24x1024xf32>,
    %c0_13 = arith.constant 0 : index
    %c0_14 = arith.constant 0 : index
    %c0_15 = arith.constant 0 : index
    %c0_16 = arith.constant 0 : index
    %11 = vector.load %arg3[%c0_13, %c0_14, %c0_15, %c0_16] : memref<1x3x24x64xf32, #tpu.memory_space<vmem>>, vector<1x3x24x64xf32>
    %12 = vector.shape_cast %11 : vector<1x3x24x64xf32> to vector<3x24x64xf32>
    %c0_17 = arith.constant 0 : index
    %c0_18 = arith.constant 0 : index
    %c0_19 = arith.constant 0 : index
    %13 = vector.load %arg6[%c0_17, %c0_18, %c0_19] : memref<3x1x1xf32, #tpu.memory_space<vmem>>, vector<3x1x1xf32>
    %14 = vector.broadcast %13 : vector<3x1x1xf32> to vector<3x24x64xf32>
    %15 = arith.mulf %12, %14 : vector<3x24x64xf32>
    %c0_20 = arith.constant 0 : index
    %c0_21 = arith.constant 0 : index
    %c0_22 = arith.constant 0 : index
    %16 = vector.load %arg7[%c0_20, %c0_21, %c0_22] : memref<3x1x1xf32, #tpu.memory_space<vmem>>, vector<3x1x1xf32>
    %17 = vector.broadcast %16 : vector<3x1x1xf32> to vector<3x24x64xf32>
    %18 = arith.addf %15, %17 : vector<3x24x64xf32>
    %c0_23 = arith.constant 0 : index
    %c0_24 = arith.constant 0 : index
    %c0_25 = arith.constant 0 : index
    %c0_26 = arith.constant 0 : index
    %19 = vector.load %arg9[%c0_23, %c0_24, %c0_25, %c0_26] : memref<1x3x24x64xf32, #tpu.memory_space<vmem>>, vector<1x3x24x64xf32>
    %20 = vector.shape_cast %19 : vector<1x3x24x64xf32> to vector<3x24x64xf32>
    %21 = vector.shape_cast %18 : vector<3x24x64xf32> to vector<1x3x24x64xf32>
    tpu.vector_store %arg9[%c0_23, %c0_24, %c0_25, %c0_26], %21 {strides = array<i32>} : memref<1x3x24x64xf32, #tpu.memory_space<vmem>>, vector<1x3x24x64xf32>,
    return
  }
  func.func @transform_0(%arg0: i32, %arg1: i32) -> (i32, i32, i32, i32) {
    %c0_i32 = arith.constant 0 : i32
    %c0_i32_0 = arith.constant 0 : i32
    %c0_i32_1 = arith.constant 0 : i32
    return %arg0, %c0_i32, %arg1, %c0_i32_0 : i32, i32, i32, i32
  }
  func.func @transform_1(%arg0: i32, %arg1: i32) -> (i32, i32, i32, i32) {
    %c0_i32 = arith.constant 0 : i32
    %c0_i32_0 = arith.constant 0 : i32
    %c0_i32_1 = arith.constant 0 : i32
    return %arg0, %c0_i32, %arg1, %c0_i32_0 : i32, i32, i32, i32
  }
  func.func @transform_2(%arg0: i32, %arg1: i32) -> (i32, i32, i32) {
    %c0_i32 = arith.constant 0 : i32
    %c0_i32_0 = arith.constant 0 : i32
    %c0_i32_1 = arith.constant 0 : i32
    %c0_i32_2 = arith.constant 0 : i32
    return %c0_i32, %c0_i32_0, %c0_i32_1 : i32, i32, i32
  }
  func.func @transform_3(%arg0: i32, %arg1: i32) -> (i32, i32, i32) {
    %c0_i32 = arith.constant 0 : i32
    %c0_i32_0 = arith.constant 0 : i32
    %c0_i32_1 = arith.constant 0 : i32
    %c0_i32_2 = arith.constant 0 : i32
    return %c0_i32, %c0_i32_0, %c0_i32_1 : i32, i32, i32
  }
  func.func @transform_4(%arg0: i32, %arg1: i32) -> (i32, i32, i32) {
    %c0_i32 = arith.constant 0 : i32
    %c0_i32_0 = arith.constant 0 : i32
    %c0_i32_1 = arith.constant 0 : i32
    %c0_i32_2 = arith.constant 0 : i32
    return %c0_i32, %c0_i32_0, %c0_i32_1 : i32, i32, i32
  }
  func.func @transform_5(%arg0: i32, %arg1: i32) -> (i32, i32, i32) {
    %c0_i32 = arith.constant 0 : i32
    %c0_i32_0 = arith.constant 0 : i32
    %c0_i32_1 = arith.constant 0 : i32
    %c0_i32_2 = arith.constant 0 : i32
    return %c0_i32, %c0_i32_0, %c0_i32_1 : i32, i32, i32
  }
  func.func @transform_6(%arg0: i32, %arg1: i32) -> (i32, i32, i32, i32) {
    %c0_i32 = arith.constant 0 : i32
    %c0_i32_0 = arith.constant 0 : i32
    %c0_i32_1 = arith.constant 0 : i32
    return %arg0, %c0_i32, %arg1, %c0_i32_0 : i32, i32, i32, i32
  }
  func.func @transform_7(%arg0: i32, %arg1: i32) -> (i32, i32, i32, i32) {
    %c0_i32 = arith.constant 0 : i32
    %c0_i32_0 = arith.constant 0 : i32
    %c0_i32_1 = arith.constant 0 : i32
    return %arg0, %c0_i32, %arg1, %c0_i32_0 : i32, i32, i32, i32
  }
}

module attributes {stable_mosaic.version = 11 : i64} {
  func.func @_convt_gelu_stats_kernel(%arg0: i32, %arg1: i32, %arg2: memref<1x3x24x256xf32, #tpu.memory_space<vmem>>, %arg3: memref<12x3x256xf32, #tpu.memory_space<vmem>>, %arg4: memref<12x1xf32, #tpu.memory_space<vmem>>, %arg5: memref<1x3x24x1024xf32, #tpu.memory_space<vmem>>, %arg6: memref<1x3x24x1xf32, #tpu.memory_space<vmem>>, %arg7: memref<1x3x24x1xf32, #tpu.memory_space<vmem>>, %arg8: memref<1x3x24x1xf32, #tpu.memory_space<vmem>>, %arg9: memref<1x3x24x1xf32, #tpu.memory_space<vmem>>) attributes {dimension_semantics = [#tpu.dimension_semantics<parallel>, #tpu.dimension_semantics<parallel>], iteration_bounds = array<i64: 1, 2>, scalar_prefetch = 0 : i64, scratch_operands = 0 : i64, tpu.core_type = #tpu.core_type<tc>, window_params = [{transform_indices = @transform_0, window_bounds = array<i64: 1, 3, 24, 256>}, {pipeline_mode = #tpu.pipeline_mode<synchronous>, transform_indices = @transform_1, window_bounds = array<i64: 12, 3, 256>}, {pipeline_mode = #tpu.pipeline_mode<synchronous>, transform_indices = @transform_2, window_bounds = array<i64: 12, 1>}, {transform_indices = @transform_3, window_bounds = array<i64: 1, 3, 24, 1024>}, {transform_indices = @transform_4, window_bounds = array<i64: 1, 3, 24, 1>}, {transform_indices = @transform_5, window_bounds = array<i64: 1, 3, 24, 1>}, {transform_indices = @transform_6, window_bounds = array<i64: 1, 3, 24, 1>}, {transform_indices = @transform_7, window_bounds = array<i64: 1, 3, 24, 1>}]} {
    %0 = tpu.iota {dimensions = array<i32: 1>} : vector<1x256xi32>
    %c0_i32 = arith.constant 0 : i32
    %1 = vector.broadcast %c0_i32 : i32 to vector<1x256xi32>
    %2 = arith.cmpi sgt, %0, %1 : vector<1x256xi32>
    %c255_i32 = arith.constant 255 : i32
    %3 = vector.broadcast %c255_i32 : i32 to vector<1x256xi32>
    %4 = arith.cmpi slt, %0, %3 : vector<1x256xi32>
    %5 = arith.andi %2, %4 : vector<1x256xi1>
    %6 = arith.extui %5 : vector<1x256xi1> to vector<1x256xi32>
    %7 = arith.sitofp %6 : vector<1x256xi32> to vector<1x256xf32>
    %8 = tpu.iota {dimensions = array<i32: 0>} : vector<24x1xi32>
    %c24_i32 = arith.constant 24 : i32
    %9 = arith.muli %arg1, %c24_i32 : i32
    %10 = vector.broadcast %9 : i32 to vector<24x1xi32>
    %11 = arith.addi %8, %10 : vector<24x1xi32>
    %c38_i32 = arith.constant 38 : i32
    %12 = vector.broadcast %c38_i32 : i32 to vector<24x1xi32>
    %13 = arith.cmpi slt, %11, %12 : vector<24x1xi32>
    %14 = arith.extui %13 : vector<24x1xi1> to vector<24x1xi32>
    %15 = arith.sitofp %14 : vector<24x1xi32> to vector<24x1xf32>
    %c0_i32_0 = arith.constant 0 : i32
    %16 = vector.broadcast %c0_i32_0 : i32 to vector<24x1xi32>
    %17 = arith.cmpi sgt, %11, %16 : vector<24x1xi32>
    %18 = arith.andi %13, %17 : vector<24x1xi1>
    %19 = arith.extui %18 : vector<24x1xi1> to vector<24x1xi32>
    %20 = arith.sitofp %19 : vector<24x1xi32> to vector<24x1xf32>
    %c37_i32 = arith.constant 37 : i32
    %21 = vector.broadcast %c37_i32 : i32 to vector<24x1xi32>
    %22 = arith.cmpi slt, %11, %21 : vector<24x1xi32>
    %23 = arith.andi %13, %22 : vector<24x1xi1>
    %24 = arith.extui %23 : vector<24x1xi1> to vector<24x1xi32>
    %25 = arith.sitofp %24 : vector<24x1xi32> to vector<24x1xf32>
    %c0 = arith.constant 0 : index
    %c0_1 = arith.constant 0 : index
    %c0_2 = arith.constant 0 : index
    %c0_3 = arith.constant 0 : index
    %26 = vector.load %arg2[%c0, %c0_1, %c0_2, %c0_3] : memref<1x3x24x256xf32, #tpu.memory_space<vmem>>, vector<1x1x24x256xf32>
    %27 = vector.shape_cast %26 : vector<1x1x24x256xf32> to vector<24x256xf32>
    %c0_4 = arith.constant 0 : index
    %c1 = arith.constant 1 : index
    %c0_5 = arith.constant 0 : index
    %c0_6 = arith.constant 0 : index
    %28 = vector.load %arg2[%c0_4, %c1, %c0_5, %c0_6] : memref<1x3x24x256xf32, #tpu.memory_space<vmem>>, vector<1x1x24x256xf32>
    %29 = vector.shape_cast %28 : vector<1x1x24x256xf32> to vector<24x256xf32>
    %c0_7 = arith.constant 0 : index
    %c2 = arith.constant 2 : index
    %c0_8 = arith.constant 0 : index
    %c0_9 = arith.constant 0 : index
    %30 = vector.load %arg2[%c0_7, %c2, %c0_8, %c0_9] : memref<1x3x24x256xf32, #tpu.memory_space<vmem>>, vector<1x1x24x256xf32>
    %31 = vector.shape_cast %30 : vector<1x1x24x256xf32> to vector<24x256xf32>
    %c0_10 = arith.constant 0 : index
    %c0_11 = arith.constant 0 : index
    %32 = vector.load %arg4[%c0_10, %c0_11] : memref<12x1xf32, #tpu.memory_space<vmem>>, vector<12x1xf32>
    %cst = arith.constant dense<0.000000e+00> : vector<24xf32>
    %33 = vector.multi_reduction <add>, %27, %cst [1] : vector<24x256xf32> to vector<24xf32>
    %34 = vector.shape_cast %33 : vector<24xf32> to vector<24x1xf32>
    %cst_12 = arith.constant 2.500000e-01 : f32
    %35 = vector.broadcast %cst_12 : f32 to vector<24x1xf32>
    %36 = arith.mulf %34, %35 : vector<24x1xf32>
    %c0_13 = arith.constant 0 : index
    %c0_14 = arith.constant 0 : index
    %c0_15 = arith.constant 0 : index
    %c0_16 = arith.constant 0 : index
    %37 = vector.load %arg8[%c0_13, %c0_14, %c0_15, %c0_16] : memref<1x3x24x1xf32, #tpu.memory_space<vmem>>, vector<1x1x24x1xf32>
    %38 = vector.shape_cast %37 : vector<1x1x24x1xf32> to vector<24x1xf32>
    %39 = vector.shape_cast %36 : vector<24x1xf32> to vector<1x1x24x1xf32>
    tpu.vector_store %arg8[%c0_13, %c0_14, %c0_15, %c0_16], %39 {strides = array<i32>} : memref<1x3x24x1xf32, #tpu.memory_space<vmem>>, vector<1x1x24x1xf32>,
    %40 = arith.mulf %27, %27 : vector<24x256xf32>
    %cst_17 = arith.constant dense<0.000000e+00> : vector<24xf32>
    %41 = vector.multi_reduction <add>, %40, %cst_17 [1] : vector<24x256xf32> to vector<24xf32>
    %42 = vector.shape_cast %41 : vector<24xf32> to vector<24x1xf32>
    %cst_18 = arith.constant 2.500000e-01 : f32
    %43 = vector.broadcast %cst_18 : f32 to vector<24x1xf32>
    %44 = arith.mulf %42, %43 : vector<24x1xf32>
    %c0_19 = arith.constant 0 : index
    %c0_20 = arith.constant 0 : index
    %c0_21 = arith.constant 0 : index
    %c0_22 = arith.constant 0 : index
    %45 = vector.load %arg9[%c0_19, %c0_20, %c0_21, %c0_22] : memref<1x3x24x1xf32, #tpu.memory_space<vmem>>, vector<1x1x24x1xf32>
    %46 = vector.shape_cast %45 : vector<1x1x24x1xf32> to vector<24x1xf32>
    %47 = vector.shape_cast %44 : vector<24x1xf32> to vector<1x1x24x1xf32>
    tpu.vector_store %arg9[%c0_19, %c0_20, %c0_21, %c0_22], %47 {strides = array<i32>} : memref<1x3x24x1xf32, #tpu.memory_space<vmem>>, vector<1x1x24x1xf32>,
    %cst_23 = arith.constant dense<0.000000e+00> : vector<24xf32>
    %48 = vector.multi_reduction <add>, %29, %cst_23 [1] : vector<24x256xf32> to vector<24xf32>
    %49 = vector.shape_cast %48 : vector<24xf32> to vector<24x1xf32>
    %cst_24 = arith.constant 2.500000e-01 : f32
    %50 = vector.broadcast %cst_24 : f32 to vector<24x1xf32>
    %51 = arith.mulf %49, %50 : vector<24x1xf32>
    %c0_25 = arith.constant 0 : index
    %c1_26 = arith.constant 1 : index
    %c0_27 = arith.constant 0 : index
    %c0_28 = arith.constant 0 : index
    %52 = vector.load %arg8[%c0_25, %c1_26, %c0_27, %c0_28] : memref<1x3x24x1xf32, #tpu.memory_space<vmem>>, vector<1x1x24x1xf32>
    %53 = vector.shape_cast %52 : vector<1x1x24x1xf32> to vector<24x1xf32>
    %54 = vector.shape_cast %51 : vector<24x1xf32> to vector<1x1x24x1xf32>
    tpu.vector_store %arg8[%c0_25, %c1_26, %c0_27, %c0_28], %54 {strides = array<i32>} : memref<1x3x24x1xf32, #tpu.memory_space<vmem>>, vector<1x1x24x1xf32>,
    %55 = arith.mulf %29, %29 : vector<24x256xf32>
    %cst_29 = arith.constant dense<0.000000e+00> : vector<24xf32>
    %56 = vector.multi_reduction <add>, %55, %cst_29 [1] : vector<24x256xf32> to vector<24xf32>
    %57 = vector.shape_cast %56 : vector<24xf32> to vector<24x1xf32>
    %cst_30 = arith.constant 2.500000e-01 : f32
    %58 = vector.broadcast %cst_30 : f32 to vector<24x1xf32>
    %59 = arith.mulf %57, %58 : vector<24x1xf32>
    %c0_31 = arith.constant 0 : index
    %c1_32 = arith.constant 1 : index
    %c0_33 = arith.constant 0 : index
    %c0_34 = arith.constant 0 : index
    %60 = vector.load %arg9[%c0_31, %c1_32, %c0_33, %c0_34] : memref<1x3x24x1xf32, #tpu.memory_space<vmem>>, vector<1x1x24x1xf32>
    %61 = vector.shape_cast %60 : vector<1x1x24x1xf32> to vector<24x1xf32>
    %62 = vector.shape_cast %59 : vector<24x1xf32> to vector<1x1x24x1xf32>
    tpu.vector_store %arg9[%c0_31, %c1_32, %c0_33, %c0_34], %62 {strides = array<i32>} : memref<1x3x24x1xf32, #tpu.memory_space<vmem>>, vector<1x1x24x1xf32>,
    %cst_35 = arith.constant dense<0.000000e+00> : vector<24xf32>
    %63 = vector.multi_reduction <add>, %31, %cst_35 [1] : vector<24x256xf32> to vector<24xf32>
    %64 = vector.shape_cast %63 : vector<24xf32> to vector<24x1xf32>
    %cst_36 = arith.constant 2.500000e-01 : f32
    %65 = vector.broadcast %cst_36 : f32 to vector<24x1xf32>
    %66 = arith.mulf %64, %65 : vector<24x1xf32>
    %c0_37 = arith.constant 0 : index
    %c2_38 = arith.constant 2 : index
    %c0_39 = arith.constant 0 : index
    %c0_40 = arith.constant 0 : index
    %67 = vector.load %arg8[%c0_37, %c2_38, %c0_39, %c0_40] : memref<1x3x24x1xf32, #tpu.memory_space<vmem>>, vector<1x1x24x1xf32>
    %68 = vector.shape_cast %67 : vector<1x1x24x1xf32> to vector<24x1xf32>
    %69 = vector.shape_cast %66 : vector<24x1xf32> to vector<1x1x24x1xf32>
    tpu.vector_store %arg8[%c0_37, %c2_38, %c0_39, %c0_40], %69 {strides = array<i32>} : memref<1x3x24x1xf32, #tpu.memory_space<vmem>>, vector<1x1x24x1xf32>,
    %70 = arith.mulf %31, %31 : vector<24x256xf32>
    %cst_41 = arith.constant dense<0.000000e+00> : vector<24xf32>
    %71 = vector.multi_reduction <add>, %70, %cst_41 [1] : vector<24x256xf32> to vector<24xf32>
    %72 = vector.shape_cast %71 : vector<24xf32> to vector<24x1xf32>
    %cst_42 = arith.constant 2.500000e-01 : f32
    %73 = vector.broadcast %cst_42 : f32 to vector<24x1xf32>
    %74 = arith.mulf %72, %73 : vector<24x1xf32>
    %c0_43 = arith.constant 0 : index
    %c2_44 = arith.constant 2 : index
    %c0_45 = arith.constant 0 : index
    %c0_46 = arith.constant 0 : index
    %75 = vector.load %arg9[%c0_43, %c2_44, %c0_45, %c0_46] : memref<1x3x24x1xf32, #tpu.memory_space<vmem>>, vector<1x1x24x1xf32>
    %76 = vector.shape_cast %75 : vector<1x1x24x1xf32> to vector<24x1xf32>
    %77 = vector.shape_cast %74 : vector<24x1xf32> to vector<1x1x24x1xf32>
    tpu.vector_store %arg9[%c0_43, %c2_44, %c0_45, %c0_46], %77 {strides = array<i32>} : memref<1x3x24x1xf32, #tpu.memory_space<vmem>>, vector<1x1x24x1xf32>,
    %cst_47 = arith.constant 0.000000e+00 : f32
    %78 = vector.broadcast %cst_47 : f32 to vector<24x1xf32>
    %cst_48 = arith.constant 0.000000e+00 : f32
    %79 = vector.broadcast %cst_48 : f32 to vector<24x1xf32>
    %c0_49 = arith.constant 0 : index
    %c0_50 = arith.constant 0 : index
    %c0_51 = arith.constant 0 : index
    %80 = vector.load %arg3[%c0_49, %c0_50, %c0_51] : memref<12x3x256xf32, #tpu.memory_space<vmem>>, vector<1x3x256xf32>
    %81 = vector.shape_cast %80 : vector<1x3x256xf32> to vector<3x256xf32>
    %82 = vector.extract_strided_slice %81 {offsets = [0, 0], sizes = [1, 256], strides = [1, 1]} : vector<3x256xf32> to vector<1x256xf32>
    %83 = vector.broadcast %82 : vector<1x256xf32> to vector<24x256xf32>
    %84 = arith.mulf %83, %27 : vector<24x256xf32>
    %85 = vector.extract_strided_slice %81 {offsets = [1, 0], sizes = [1, 256], strides = [1, 1]} : vector<3x256xf32> to vector<1x256xf32>
    %86 = vector.broadcast %85 : vector<1x256xf32> to vector<24x256xf32>
    %87 = arith.mulf %86, %29 : vector<24x256xf32>
    %88 = arith.addf %84, %87 : vector<24x256xf32>
    %89 = vector.extract_strided_slice %81 {offsets = [2, 0], sizes = [1, 256], strides = [1, 1]} : vector<3x256xf32> to vector<1x256xf32>
    %90 = vector.broadcast %89 : vector<1x256xf32> to vector<24x256xf32>
    %91 = arith.mulf %90, %31 : vector<24x256xf32>
    %92 = arith.addf %88, %91 : vector<24x256xf32>
    %93 = vector.extract_strided_slice %32 {offsets = [0, 0], sizes = [1, 1], strides = [1, 1]} : vector<12x1xf32> to vector<1x1xf32>
    %94 = vector.broadcast %93 : vector<1x1xf32> to vector<24x256xf32>
    %95 = arith.addf %92, %94 : vector<24x256xf32>
    %cst_52 = arith.constant 5.000000e-01 : f32
    %96 = vector.broadcast %cst_52 : f32 to vector<24x256xf32>
    %97 = arith.mulf %95, %96 : vector<24x256xf32>
    %cst_53 = arith.constant 0.707106769 : f32
    %98 = vector.broadcast %cst_53 : f32 to vector<24x256xf32>
    %99 = arith.mulf %95, %98 : vector<24x256xf32>
    %100 = math.erf %99 : vector<24x256xf32>
    %cst_54 = arith.constant 1.000000e+00 : f32
    %101 = vector.broadcast %cst_54 : f32 to vector<24x256xf32>
    %102 = arith.addf %100, %101 : vector<24x256xf32>
    %103 = arith.mulf %97, %102 : vector<24x256xf32>
    %c0_55 = arith.constant 0 : index
    %c0_56 = arith.constant 0 : index
    %c0_57 = arith.constant 0 : index
    %c0_58 = arith.constant 0 : index
    %104 = vector.load %arg5[%c0_55, %c0_56, %c0_57, %c0_58] : memref<1x3x24x1024xf32, #tpu.memory_space<vmem>>, vector<1x1x24x256xf32>
    %105 = vector.shape_cast %104 : vector<1x1x24x256xf32> to vector<24x256xf32>
    %106 = vector.shape_cast %103 : vector<24x256xf32> to vector<1x1x24x256xf32>
    tpu.vector_store %arg5[%c0_55, %c0_56, %c0_57, %c0_58], %106 {strides = array<i32>} : memref<1x3x24x1024xf32, #tpu.memory_space<vmem>>, vector<1x1x24x256xf32>,
    %107 = vector.broadcast %20 : vector<24x1xf32> to vector<24x256xf32>
    %108 = arith.mulf %103, %107 : vector<24x256xf32>
    %109 = vector.broadcast %7 : vector<1x256xf32> to vector<24x256xf32>
    %110 = arith.mulf %108, %109 : vector<24x256xf32>
    %cst_59 = arith.constant dense<0.000000e+00> : vector<24xf32>
    %111 = vector.multi_reduction <add>, %110, %cst_59 [1] : vector<24x256xf32> to vector<24xf32>
    %112 = vector.shape_cast %111 : vector<24xf32> to vector<24x1xf32>
    %113 = arith.addf %78, %112 : vector<24x1xf32>
    %114 = arith.mulf %110, %103 : vector<24x256xf32>
    %cst_60 = arith.constant dense<0.000000e+00> : vector<24xf32>
    %115 = vector.multi_reduction <add>, %114, %cst_60 [1] : vector<24x256xf32> to vector<24xf32>
    %116 = vector.shape_cast %115 : vector<24xf32> to vector<24x1xf32>
    %117 = arith.addf %79, %116 : vector<24x1xf32>
    %c1_61 = arith.constant 1 : index
    %c0_62 = arith.constant 0 : index
    %c0_63 = arith.constant 0 : index
    %118 = vector.load %arg3[%c1_61, %c0_62, %c0_63] : memref<12x3x256xf32, #tpu.memory_space<vmem>>, vector<1x3x256xf32>
    %119 = vector.shape_cast %118 : vector<1x3x256xf32> to vector<3x256xf32>
    %120 = vector.extract_strided_slice %119 {offsets = [0, 0], sizes = [1, 256], strides = [1, 1]} : vector<3x256xf32> to vector<1x256xf32>
    %121 = vector.broadcast %120 : vector<1x256xf32> to vector<24x256xf32>
    %122 = arith.mulf %121, %27 : vector<24x256xf32>
    %123 = vector.extract_strided_slice %119 {offsets = [1, 0], sizes = [1, 256], strides = [1, 1]} : vector<3x256xf32> to vector<1x256xf32>
    %124 = vector.broadcast %123 : vector<1x256xf32> to vector<24x256xf32>
    %125 = arith.mulf %124, %29 : vector<24x256xf32>
    %126 = arith.addf %122, %125 : vector<24x256xf32>
    %127 = vector.extract_strided_slice %119 {offsets = [2, 0], sizes = [1, 256], strides = [1, 1]} : vector<3x256xf32> to vector<1x256xf32>
    %128 = vector.broadcast %127 : vector<1x256xf32> to vector<24x256xf32>
    %129 = arith.mulf %128, %31 : vector<24x256xf32>
    %130 = arith.addf %126, %129 : vector<24x256xf32>
    %131 = vector.extract_strided_slice %32 {offsets = [1, 0], sizes = [1, 1], strides = [1, 1]} : vector<12x1xf32> to vector<1x1xf32>
    %132 = vector.broadcast %131 : vector<1x1xf32> to vector<24x256xf32>
    %133 = arith.addf %130, %132 : vector<24x256xf32>
    %cst_64 = arith.constant 5.000000e-01 : f32
    %134 = vector.broadcast %cst_64 : f32 to vector<24x256xf32>
    %135 = arith.mulf %133, %134 : vector<24x256xf32>
    %cst_65 = arith.constant 0.707106769 : f32
    %136 = vector.broadcast %cst_65 : f32 to vector<24x256xf32>
    %137 = arith.mulf %133, %136 : vector<24x256xf32>
    %138 = math.erf %137 : vector<24x256xf32>
    %cst_66 = arith.constant 1.000000e+00 : f32
    %139 = vector.broadcast %cst_66 : f32 to vector<24x256xf32>
    %140 = arith.addf %138, %139 : vector<24x256xf32>
    %141 = arith.mulf %135, %140 : vector<24x256xf32>
    %c0_67 = arith.constant 0 : index
    %c0_68 = arith.constant 0 : index
    %c0_69 = arith.constant 0 : index
    %c256 = arith.constant 256 : index
    %142 = vector.load %arg5[%c0_67, %c0_68, %c0_69, %c256] : memref<1x3x24x1024xf32, #tpu.memory_space<vmem>>, vector<1x1x24x256xf32>
    %143 = vector.shape_cast %142 : vector<1x1x24x256xf32> to vector<24x256xf32>
    %144 = vector.shape_cast %141 : vector<24x256xf32> to vector<1x1x24x256xf32>
    tpu.vector_store %arg5[%c0_67, %c0_68, %c0_69, %c256], %144 {strides = array<i32>} : memref<1x3x24x1024xf32, #tpu.memory_space<vmem>>, vector<1x1x24x256xf32>,
    %145 = vector.broadcast %15 : vector<24x1xf32> to vector<24x256xf32>
    %146 = arith.mulf %141, %145 : vector<24x256xf32>
    %147 = vector.broadcast %7 : vector<1x256xf32> to vector<24x256xf32>
    %148 = arith.mulf %146, %147 : vector<24x256xf32>
    %cst_70 = arith.constant dense<0.000000e+00> : vector<24xf32>
    %149 = vector.multi_reduction <add>, %148, %cst_70 [1] : vector<24x256xf32> to vector<24xf32>
    %150 = vector.shape_cast %149 : vector<24xf32> to vector<24x1xf32>
    %151 = arith.addf %113, %150 : vector<24x1xf32>
    %152 = arith.mulf %148, %141 : vector<24x256xf32>
    %cst_71 = arith.constant dense<0.000000e+00> : vector<24xf32>
    %153 = vector.multi_reduction <add>, %152, %cst_71 [1] : vector<24x256xf32> to vector<24xf32>
    %154 = vector.shape_cast %153 : vector<24xf32> to vector<24x1xf32>
    %155 = arith.addf %117, %154 : vector<24x1xf32>
    %c2_72 = arith.constant 2 : index
    %c0_73 = arith.constant 0 : index
    %c0_74 = arith.constant 0 : index
    %156 = vector.load %arg3[%c2_72, %c0_73, %c0_74] : memref<12x3x256xf32, #tpu.memory_space<vmem>>, vector<1x3x256xf32>
    %157 = vector.shape_cast %156 : vector<1x3x256xf32> to vector<3x256xf32>
    %158 = vector.extract_strided_slice %157 {offsets = [0, 0], sizes = [1, 256], strides = [1, 1]} : vector<3x256xf32> to vector<1x256xf32>
    %159 = vector.broadcast %158 : vector<1x256xf32> to vector<24x256xf32>
    %160 = arith.mulf %159, %27 : vector<24x256xf32>
    %161 = vector.extract_strided_slice %157 {offsets = [1, 0], sizes = [1, 256], strides = [1, 1]} : vector<3x256xf32> to vector<1x256xf32>
    %162 = vector.broadcast %161 : vector<1x256xf32> to vector<24x256xf32>
    %163 = arith.mulf %162, %29 : vector<24x256xf32>
    %164 = arith.addf %160, %163 : vector<24x256xf32>
    %165 = vector.extract_strided_slice %157 {offsets = [2, 0], sizes = [1, 256], strides = [1, 1]} : vector<3x256xf32> to vector<1x256xf32>
    %166 = vector.broadcast %165 : vector<1x256xf32> to vector<24x256xf32>
    %167 = arith.mulf %166, %31 : vector<24x256xf32>
    %168 = arith.addf %164, %167 : vector<24x256xf32>
    %169 = vector.extract_strided_slice %32 {offsets = [2, 0], sizes = [1, 1], strides = [1, 1]} : vector<12x1xf32> to vector<1x1xf32>
    %170 = vector.broadcast %169 : vector<1x1xf32> to vector<24x256xf32>
    %171 = arith.addf %168, %170 : vector<24x256xf32>
    %cst_75 = arith.constant 5.000000e-01 : f32
    %172 = vector.broadcast %cst_75 : f32 to vector<24x256xf32>
    %173 = arith.mulf %171, %172 : vector<24x256xf32>
    %cst_76 = arith.constant 0.707106769 : f32
    %174 = vector.broadcast %cst_76 : f32 to vector<24x256xf32>
    %175 = arith.mulf %171, %174 : vector<24x256xf32>
    %176 = math.erf %175 : vector<24x256xf32>
    %cst_77 = arith.constant 1.000000e+00 : f32
    %177 = vector.broadcast %cst_77 : f32 to vector<24x256xf32>
    %178 = arith.addf %176, %177 : vector<24x256xf32>
    %179 = arith.mulf %173, %178 : vector<24x256xf32>
    %c0_78 = arith.constant 0 : index
    %c0_79 = arith.constant 0 : index
    %c0_80 = arith.constant 0 : index
    %c512 = arith.constant 512 : index
    %180 = vector.load %arg5[%c0_78, %c0_79, %c0_80, %c512] : memref<1x3x24x1024xf32, #tpu.memory_space<vmem>>, vector<1x1x24x256xf32>
    %181 = vector.shape_cast %180 : vector<1x1x24x256xf32> to vector<24x256xf32>
    %182 = vector.shape_cast %179 : vector<24x256xf32> to vector<1x1x24x256xf32>
    tpu.vector_store %arg5[%c0_78, %c0_79, %c0_80, %c512], %182 {strides = array<i32>} : memref<1x3x24x1024xf32, #tpu.memory_space<vmem>>, vector<1x1x24x256xf32>,
    %183 = vector.broadcast %15 : vector<24x1xf32> to vector<24x256xf32>
    %184 = arith.mulf %179, %183 : vector<24x256xf32>
    %185 = vector.broadcast %7 : vector<1x256xf32> to vector<24x256xf32>
    %186 = arith.mulf %184, %185 : vector<24x256xf32>
    %cst_81 = arith.constant dense<0.000000e+00> : vector<24xf32>
    %187 = vector.multi_reduction <add>, %186, %cst_81 [1] : vector<24x256xf32> to vector<24xf32>
    %188 = vector.shape_cast %187 : vector<24xf32> to vector<24x1xf32>
    %189 = arith.addf %151, %188 : vector<24x1xf32>
    %190 = arith.mulf %186, %179 : vector<24x256xf32>
    %cst_82 = arith.constant dense<0.000000e+00> : vector<24xf32>
    %191 = vector.multi_reduction <add>, %190, %cst_82 [1] : vector<24x256xf32> to vector<24xf32>
    %192 = vector.shape_cast %191 : vector<24xf32> to vector<24x1xf32>
    %193 = arith.addf %155, %192 : vector<24x1xf32>
    %c3 = arith.constant 3 : index
    %c0_83 = arith.constant 0 : index
    %c0_84 = arith.constant 0 : index
    %194 = vector.load %arg3[%c3, %c0_83, %c0_84] : memref<12x3x256xf32, #tpu.memory_space<vmem>>, vector<1x3x256xf32>
    %195 = vector.shape_cast %194 : vector<1x3x256xf32> to vector<3x256xf32>
    %196 = vector.extract_strided_slice %195 {offsets = [0, 0], sizes = [1, 256], strides = [1, 1]} : vector<3x256xf32> to vector<1x256xf32>
    %197 = vector.broadcast %196 : vector<1x256xf32> to vector<24x256xf32>
    %198 = arith.mulf %197, %27 : vector<24x256xf32>
    %199 = vector.extract_strided_slice %195 {offsets = [1, 0], sizes = [1, 256], strides = [1, 1]} : vector<3x256xf32> to vector<1x256xf32>
    %200 = vector.broadcast %199 : vector<1x256xf32> to vector<24x256xf32>
    %201 = arith.mulf %200, %29 : vector<24x256xf32>
    %202 = arith.addf %198, %201 : vector<24x256xf32>
    %203 = vector.extract_strided_slice %195 {offsets = [2, 0], sizes = [1, 256], strides = [1, 1]} : vector<3x256xf32> to vector<1x256xf32>
    %204 = vector.broadcast %203 : vector<1x256xf32> to vector<24x256xf32>
    %205 = arith.mulf %204, %31 : vector<24x256xf32>
    %206 = arith.addf %202, %205 : vector<24x256xf32>
    %207 = vector.extract_strided_slice %32 {offsets = [3, 0], sizes = [1, 1], strides = [1, 1]} : vector<12x1xf32> to vector<1x1xf32>
    %208 = vector.broadcast %207 : vector<1x1xf32> to vector<24x256xf32>
    %209 = arith.addf %206, %208 : vector<24x256xf32>
    %cst_85 = arith.constant 5.000000e-01 : f32
    %210 = vector.broadcast %cst_85 : f32 to vector<24x256xf32>
    %211 = arith.mulf %209, %210 : vector<24x256xf32>
    %cst_86 = arith.constant 0.707106769 : f32
    %212 = vector.broadcast %cst_86 : f32 to vector<24x256xf32>
    %213 = arith.mulf %209, %212 : vector<24x256xf32>
    %214 = math.erf %213 : vector<24x256xf32>
    %cst_87 = arith.constant 1.000000e+00 : f32
    %215 = vector.broadcast %cst_87 : f32 to vector<24x256xf32>
    %216 = arith.addf %214, %215 : vector<24x256xf32>
    %217 = arith.mulf %211, %216 : vector<24x256xf32>
    %c0_88 = arith.constant 0 : index
    %c0_89 = arith.constant 0 : index
    %c0_90 = arith.constant 0 : index
    %c768 = arith.constant 768 : index
    %218 = vector.load %arg5[%c0_88, %c0_89, %c0_90, %c768] : memref<1x3x24x1024xf32, #tpu.memory_space<vmem>>, vector<1x1x24x256xf32>
    %219 = vector.shape_cast %218 : vector<1x1x24x256xf32> to vector<24x256xf32>
    %220 = vector.shape_cast %217 : vector<24x256xf32> to vector<1x1x24x256xf32>
    tpu.vector_store %arg5[%c0_88, %c0_89, %c0_90, %c768], %220 {strides = array<i32>} : memref<1x3x24x1024xf32, #tpu.memory_space<vmem>>, vector<1x1x24x256xf32>,
    %221 = vector.broadcast %25 : vector<24x1xf32> to vector<24x256xf32>
    %222 = arith.mulf %217, %221 : vector<24x256xf32>
    %223 = vector.broadcast %7 : vector<1x256xf32> to vector<24x256xf32>
    %224 = arith.mulf %222, %223 : vector<24x256xf32>
    %cst_91 = arith.constant dense<0.000000e+00> : vector<24xf32>
    %225 = vector.multi_reduction <add>, %224, %cst_91 [1] : vector<24x256xf32> to vector<24xf32>
    %226 = vector.shape_cast %225 : vector<24xf32> to vector<24x1xf32>
    %227 = arith.addf %189, %226 : vector<24x1xf32>
    %228 = arith.mulf %224, %217 : vector<24x256xf32>
    %cst_92 = arith.constant dense<0.000000e+00> : vector<24xf32>
    %229 = vector.multi_reduction <add>, %228, %cst_92 [1] : vector<24x256xf32> to vector<24xf32>
    %230 = vector.shape_cast %229 : vector<24xf32> to vector<24x1xf32>
    %231 = arith.addf %193, %230 : vector<24x1xf32>
    %c0_93 = arith.constant 0 : index
    %c0_94 = arith.constant 0 : index
    %c0_95 = arith.constant 0 : index
    %c0_96 = arith.constant 0 : index
    %232 = vector.load %arg6[%c0_93, %c0_94, %c0_95, %c0_96] : memref<1x3x24x1xf32, #tpu.memory_space<vmem>>, vector<1x1x24x1xf32>
    %233 = vector.shape_cast %232 : vector<1x1x24x1xf32> to vector<24x1xf32>
    %234 = vector.shape_cast %227 : vector<24x1xf32> to vector<1x1x24x1xf32>
    tpu.vector_store %arg6[%c0_93, %c0_94, %c0_95, %c0_96], %234 {strides = array<i32>} : memref<1x3x24x1xf32, #tpu.memory_space<vmem>>, vector<1x1x24x1xf32>,
    %c0_97 = arith.constant 0 : index
    %c0_98 = arith.constant 0 : index
    %c0_99 = arith.constant 0 : index
    %c0_100 = arith.constant 0 : index
    %235 = vector.load %arg7[%c0_97, %c0_98, %c0_99, %c0_100] : memref<1x3x24x1xf32, #tpu.memory_space<vmem>>, vector<1x1x24x1xf32>
    %236 = vector.shape_cast %235 : vector<1x1x24x1xf32> to vector<24x1xf32>
    %237 = vector.shape_cast %231 : vector<24x1xf32> to vector<1x1x24x1xf32>
    tpu.vector_store %arg7[%c0_97, %c0_98, %c0_99, %c0_100], %237 {strides = array<i32>} : memref<1x3x24x1xf32, #tpu.memory_space<vmem>>, vector<1x1x24x1xf32>,
    %cst_101 = arith.constant 0.000000e+00 : f32
    %238 = vector.broadcast %cst_101 : f32 to vector<24x1xf32>
    %cst_102 = arith.constant 0.000000e+00 : f32
    %239 = vector.broadcast %cst_102 : f32 to vector<24x1xf32>
    %c4 = arith.constant 4 : index
    %c0_103 = arith.constant 0 : index
    %c0_104 = arith.constant 0 : index
    %240 = vector.load %arg3[%c4, %c0_103, %c0_104] : memref<12x3x256xf32, #tpu.memory_space<vmem>>, vector<1x3x256xf32>
    %241 = vector.shape_cast %240 : vector<1x3x256xf32> to vector<3x256xf32>
    %242 = vector.extract_strided_slice %241 {offsets = [0, 0], sizes = [1, 256], strides = [1, 1]} : vector<3x256xf32> to vector<1x256xf32>
    %243 = vector.broadcast %242 : vector<1x256xf32> to vector<24x256xf32>
    %244 = arith.mulf %243, %27 : vector<24x256xf32>
    %245 = vector.extract_strided_slice %241 {offsets = [1, 0], sizes = [1, 256], strides = [1, 1]} : vector<3x256xf32> to vector<1x256xf32>
    %246 = vector.broadcast %245 : vector<1x256xf32> to vector<24x256xf32>
    %247 = arith.mulf %246, %29 : vector<24x256xf32>
    %248 = arith.addf %244, %247 : vector<24x256xf32>
    %249 = vector.extract_strided_slice %241 {offsets = [2, 0], sizes = [1, 256], strides = [1, 1]} : vector<3x256xf32> to vector<1x256xf32>
    %250 = vector.broadcast %249 : vector<1x256xf32> to vector<24x256xf32>
    %251 = arith.mulf %250, %31 : vector<24x256xf32>
    %252 = arith.addf %248, %251 : vector<24x256xf32>
    %253 = vector.extract_strided_slice %32 {offsets = [4, 0], sizes = [1, 1], strides = [1, 1]} : vector<12x1xf32> to vector<1x1xf32>
    %254 = vector.broadcast %253 : vector<1x1xf32> to vector<24x256xf32>
    %255 = arith.addf %252, %254 : vector<24x256xf32>
    %cst_105 = arith.constant 5.000000e-01 : f32
    %256 = vector.broadcast %cst_105 : f32 to vector<24x256xf32>
    %257 = arith.mulf %255, %256 : vector<24x256xf32>
    %cst_106 = arith.constant 0.707106769 : f32
    %258 = vector.broadcast %cst_106 : f32 to vector<24x256xf32>
    %259 = arith.mulf %255, %258 : vector<24x256xf32>
    %260 = math.erf %259 : vector<24x256xf32>
    %cst_107 = arith.constant 1.000000e+00 : f32
    %261 = vector.broadcast %cst_107 : f32 to vector<24x256xf32>
    %262 = arith.addf %260, %261 : vector<24x256xf32>
    %263 = arith.mulf %257, %262 : vector<24x256xf32>
    %c0_108 = arith.constant 0 : index
    %c1_109 = arith.constant 1 : index
    %c0_110 = arith.constant 0 : index
    %c0_111 = arith.constant 0 : index
    %264 = vector.load %arg5[%c0_108, %c1_109, %c0_110, %c0_111] : memref<1x3x24x1024xf32, #tpu.memory_space<vmem>>, vector<1x1x24x256xf32>
    %265 = vector.shape_cast %264 : vector<1x1x24x256xf32> to vector<24x256xf32>
    %266 = vector.shape_cast %263 : vector<24x256xf32> to vector<1x1x24x256xf32>
    tpu.vector_store %arg5[%c0_108, %c1_109, %c0_110, %c0_111], %266 {strides = array<i32>} : memref<1x3x24x1024xf32, #tpu.memory_space<vmem>>, vector<1x1x24x256xf32>,
    %267 = vector.broadcast %20 : vector<24x1xf32> to vector<24x256xf32>
    %268 = arith.mulf %263, %267 : vector<24x256xf32>
    %269 = vector.broadcast %7 : vector<1x256xf32> to vector<24x256xf32>
    %270 = arith.mulf %268, %269 : vector<24x256xf32>
    %cst_112 = arith.constant dense<0.000000e+00> : vector<24xf32>
    %271 = vector.multi_reduction <add>, %270, %cst_112 [1] : vector<24x256xf32> to vector<24xf32>
    %272 = vector.shape_cast %271 : vector<24xf32> to vector<24x1xf32>
    %273 = arith.addf %238, %272 : vector<24x1xf32>
    %274 = arith.mulf %270, %263 : vector<24x256xf32>
    %cst_113 = arith.constant dense<0.000000e+00> : vector<24xf32>
    %275 = vector.multi_reduction <add>, %274, %cst_113 [1] : vector<24x256xf32> to vector<24xf32>
    %276 = vector.shape_cast %275 : vector<24xf32> to vector<24x1xf32>
    %277 = arith.addf %239, %276 : vector<24x1xf32>
    %c5 = arith.constant 5 : index
    %c0_114 = arith.constant 0 : index
    %c0_115 = arith.constant 0 : index
    %278 = vector.load %arg3[%c5, %c0_114, %c0_115] : memref<12x3x256xf32, #tpu.memory_space<vmem>>, vector<1x3x256xf32>
    %279 = vector.shape_cast %278 : vector<1x3x256xf32> to vector<3x256xf32>
    %280 = vector.extract_strided_slice %279 {offsets = [0, 0], sizes = [1, 256], strides = [1, 1]} : vector<3x256xf32> to vector<1x256xf32>
    %281 = vector.broadcast %280 : vector<1x256xf32> to vector<24x256xf32>
    %282 = arith.mulf %281, %27 : vector<24x256xf32>
    %283 = vector.extract_strided_slice %279 {offsets = [1, 0], sizes = [1, 256], strides = [1, 1]} : vector<3x256xf32> to vector<1x256xf32>
    %284 = vector.broadcast %283 : vector<1x256xf32> to vector<24x256xf32>
    %285 = arith.mulf %284, %29 : vector<24x256xf32>
    %286 = arith.addf %282, %285 : vector<24x256xf32>
    %287 = vector.extract_strided_slice %279 {offsets = [2, 0], sizes = [1, 256], strides = [1, 1]} : vector<3x256xf32> to vector<1x256xf32>
    %288 = vector.broadcast %287 : vector<1x256xf32> to vector<24x256xf32>
    %289 = arith.mulf %288, %31 : vector<24x256xf32>
    %290 = arith.addf %286, %289 : vector<24x256xf32>
    %291 = vector.extract_strided_slice %32 {offsets = [5, 0], sizes = [1, 1], strides = [1, 1]} : vector<12x1xf32> to vector<1x1xf32>
    %292 = vector.broadcast %291 : vector<1x1xf32> to vector<24x256xf32>
    %293 = arith.addf %290, %292 : vector<24x256xf32>
    %cst_116 = arith.constant 5.000000e-01 : f32
    %294 = vector.broadcast %cst_116 : f32 to vector<24x256xf32>
    %295 = arith.mulf %293, %294 : vector<24x256xf32>
    %cst_117 = arith.constant 0.707106769 : f32
    %296 = vector.broadcast %cst_117 : f32 to vector<24x256xf32>
    %297 = arith.mulf %293, %296 : vector<24x256xf32>
    %298 = math.erf %297 : vector<24x256xf32>
    %cst_118 = arith.constant 1.000000e+00 : f32
    %299 = vector.broadcast %cst_118 : f32 to vector<24x256xf32>
    %300 = arith.addf %298, %299 : vector<24x256xf32>
    %301 = arith.mulf %295, %300 : vector<24x256xf32>
    %c0_119 = arith.constant 0 : index
    %c1_120 = arith.constant 1 : index
    %c0_121 = arith.constant 0 : index
    %c256_122 = arith.constant 256 : index
    %302 = vector.load %arg5[%c0_119, %c1_120, %c0_121, %c256_122] : memref<1x3x24x1024xf32, #tpu.memory_space<vmem>>, vector<1x1x24x256xf32>
    %303 = vector.shape_cast %302 : vector<1x1x24x256xf32> to vector<24x256xf32>
    %304 = vector.shape_cast %301 : vector<24x256xf32> to vector<1x1x24x256xf32>
    tpu.vector_store %arg5[%c0_119, %c1_120, %c0_121, %c256_122], %304 {strides = array<i32>} : memref<1x3x24x1024xf32, #tpu.memory_space<vmem>>, vector<1x1x24x256xf32>,
    %305 = vector.broadcast %15 : vector<24x1xf32> to vector<24x256xf32>
    %306 = arith.mulf %301, %305 : vector<24x256xf32>
    %307 = vector.broadcast %7 : vector<1x256xf32> to vector<24x256xf32>
    %308 = arith.mulf %306, %307 : vector<24x256xf32>
    %cst_123 = arith.constant dense<0.000000e+00> : vector<24xf32>
    %309 = vector.multi_reduction <add>, %308, %cst_123 [1] : vector<24x256xf32> to vector<24xf32>
    %310 = vector.shape_cast %309 : vector<24xf32> to vector<24x1xf32>
    %311 = arith.addf %273, %310 : vector<24x1xf32>
    %312 = arith.mulf %308, %301 : vector<24x256xf32>
    %cst_124 = arith.constant dense<0.000000e+00> : vector<24xf32>
    %313 = vector.multi_reduction <add>, %312, %cst_124 [1] : vector<24x256xf32> to vector<24xf32>
    %314 = vector.shape_cast %313 : vector<24xf32> to vector<24x1xf32>
    %315 = arith.addf %277, %314 : vector<24x1xf32>
    %c6 = arith.constant 6 : index
    %c0_125 = arith.constant 0 : index
    %c0_126 = arith.constant 0 : index
    %316 = vector.load %arg3[%c6, %c0_125, %c0_126] : memref<12x3x256xf32, #tpu.memory_space<vmem>>, vector<1x3x256xf32>
    %317 = vector.shape_cast %316 : vector<1x3x256xf32> to vector<3x256xf32>
    %318 = vector.extract_strided_slice %317 {offsets = [0, 0], sizes = [1, 256], strides = [1, 1]} : vector<3x256xf32> to vector<1x256xf32>
    %319 = vector.broadcast %318 : vector<1x256xf32> to vector<24x256xf32>
    %320 = arith.mulf %319, %27 : vector<24x256xf32>
    %321 = vector.extract_strided_slice %317 {offsets = [1, 0], sizes = [1, 256], strides = [1, 1]} : vector<3x256xf32> to vector<1x256xf32>
    %322 = vector.broadcast %321 : vector<1x256xf32> to vector<24x256xf32>
    %323 = arith.mulf %322, %29 : vector<24x256xf32>
    %324 = arith.addf %320, %323 : vector<24x256xf32>
    %325 = vector.extract_strided_slice %317 {offsets = [2, 0], sizes = [1, 256], strides = [1, 1]} : vector<3x256xf32> to vector<1x256xf32>
    %326 = vector.broadcast %325 : vector<1x256xf32> to vector<24x256xf32>
    %327 = arith.mulf %326, %31 : vector<24x256xf32>
    %328 = arith.addf %324, %327 : vector<24x256xf32>
    %329 = vector.extract_strided_slice %32 {offsets = [6, 0], sizes = [1, 1], strides = [1, 1]} : vector<12x1xf32> to vector<1x1xf32>
    %330 = vector.broadcast %329 : vector<1x1xf32> to vector<24x256xf32>
    %331 = arith.addf %328, %330 : vector<24x256xf32>
    %cst_127 = arith.constant 5.000000e-01 : f32
    %332 = vector.broadcast %cst_127 : f32 to vector<24x256xf32>
    %333 = arith.mulf %331, %332 : vector<24x256xf32>
    %cst_128 = arith.constant 0.707106769 : f32
    %334 = vector.broadcast %cst_128 : f32 to vector<24x256xf32>
    %335 = arith.mulf %331, %334 : vector<24x256xf32>
    %336 = math.erf %335 : vector<24x256xf32>
    %cst_129 = arith.constant 1.000000e+00 : f32
    %337 = vector.broadcast %cst_129 : f32 to vector<24x256xf32>
    %338 = arith.addf %336, %337 : vector<24x256xf32>
    %339 = arith.mulf %333, %338 : vector<24x256xf32>
    %c0_130 = arith.constant 0 : index
    %c1_131 = arith.constant 1 : index
    %c0_132 = arith.constant 0 : index
    %c512_133 = arith.constant 512 : index
    %340 = vector.load %arg5[%c0_130, %c1_131, %c0_132, %c512_133] : memref<1x3x24x1024xf32, #tpu.memory_space<vmem>>, vector<1x1x24x256xf32>
    %341 = vector.shape_cast %340 : vector<1x1x24x256xf32> to vector<24x256xf32>
    %342 = vector.shape_cast %339 : vector<24x256xf32> to vector<1x1x24x256xf32>
    tpu.vector_store %arg5[%c0_130, %c1_131, %c0_132, %c512_133], %342 {strides = array<i32>} : memref<1x3x24x1024xf32, #tpu.memory_space<vmem>>, vector<1x1x24x256xf32>,
    %343 = vector.broadcast %15 : vector<24x1xf32> to vector<24x256xf32>
    %344 = arith.mulf %339, %343 : vector<24x256xf32>
    %345 = vector.broadcast %7 : vector<1x256xf32> to vector<24x256xf32>
    %346 = arith.mulf %344, %345 : vector<24x256xf32>
    %cst_134 = arith.constant dense<0.000000e+00> : vector<24xf32>
    %347 = vector.multi_reduction <add>, %346, %cst_134 [1] : vector<24x256xf32> to vector<24xf32>
    %348 = vector.shape_cast %347 : vector<24xf32> to vector<24x1xf32>
    %349 = arith.addf %311, %348 : vector<24x1xf32>
    %350 = arith.mulf %346, %339 : vector<24x256xf32>
    %cst_135 = arith.constant dense<0.000000e+00> : vector<24xf32>
    %351 = vector.multi_reduction <add>, %350, %cst_135 [1] : vector<24x256xf32> to vector<24xf32>
    %352 = vector.shape_cast %351 : vector<24xf32> to vector<24x1xf32>
    %353 = arith.addf %315, %352 : vector<24x1xf32>
    %c7 = arith.constant 7 : index
    %c0_136 = arith.constant 0 : index
    %c0_137 = arith.constant 0 : index
    %354 = vector.load %arg3[%c7, %c0_136, %c0_137] : memref<12x3x256xf32, #tpu.memory_space<vmem>>, vector<1x3x256xf32>
    %355 = vector.shape_cast %354 : vector<1x3x256xf32> to vector<3x256xf32>
    %356 = vector.extract_strided_slice %355 {offsets = [0, 0], sizes = [1, 256], strides = [1, 1]} : vector<3x256xf32> to vector<1x256xf32>
    %357 = vector.broadcast %356 : vector<1x256xf32> to vector<24x256xf32>
    %358 = arith.mulf %357, %27 : vector<24x256xf32>
    %359 = vector.extract_strided_slice %355 {offsets = [1, 0], sizes = [1, 256], strides = [1, 1]} : vector<3x256xf32> to vector<1x256xf32>
    %360 = vector.broadcast %359 : vector<1x256xf32> to vector<24x256xf32>
    %361 = arith.mulf %360, %29 : vector<24x256xf32>
    %362 = arith.addf %358, %361 : vector<24x256xf32>
    %363 = vector.extract_strided_slice %355 {offsets = [2, 0], sizes = [1, 256], strides = [1, 1]} : vector<3x256xf32> to vector<1x256xf32>
    %364 = vector.broadcast %363 : vector<1x256xf32> to vector<24x256xf32>
    %365 = arith.mulf %364, %31 : vector<24x256xf32>
    %366 = arith.addf %362, %365 : vector<24x256xf32>
    %367 = vector.extract_strided_slice %32 {offsets = [7, 0], sizes = [1, 1], strides = [1, 1]} : vector<12x1xf32> to vector<1x1xf32>
    %368 = vector.broadcast %367 : vector<1x1xf32> to vector<24x256xf32>
    %369 = arith.addf %366, %368 : vector<24x256xf32>
    %cst_138 = arith.constant 5.000000e-01 : f32
    %370 = vector.broadcast %cst_138 : f32 to vector<24x256xf32>
    %371 = arith.mulf %369, %370 : vector<24x256xf32>
    %cst_139 = arith.constant 0.707106769 : f32
    %372 = vector.broadcast %cst_139 : f32 to vector<24x256xf32>
    %373 = arith.mulf %369, %372 : vector<24x256xf32>
    %374 = math.erf %373 : vector<24x256xf32>
    %cst_140 = arith.constant 1.000000e+00 : f32
    %375 = vector.broadcast %cst_140 : f32 to vector<24x256xf32>
    %376 = arith.addf %374, %375 : vector<24x256xf32>
    %377 = arith.mulf %371, %376 : vector<24x256xf32>
    %c0_141 = arith.constant 0 : index
    %c1_142 = arith.constant 1 : index
    %c0_143 = arith.constant 0 : index
    %c768_144 = arith.constant 768 : index
    %378 = vector.load %arg5[%c0_141, %c1_142, %c0_143, %c768_144] : memref<1x3x24x1024xf32, #tpu.memory_space<vmem>>, vector<1x1x24x256xf32>
    %379 = vector.shape_cast %378 : vector<1x1x24x256xf32> to vector<24x256xf32>
    %380 = vector.shape_cast %377 : vector<24x256xf32> to vector<1x1x24x256xf32>
    tpu.vector_store %arg5[%c0_141, %c1_142, %c0_143, %c768_144], %380 {strides = array<i32>} : memref<1x3x24x1024xf32, #tpu.memory_space<vmem>>, vector<1x1x24x256xf32>,
    %381 = vector.broadcast %25 : vector<24x1xf32> to vector<24x256xf32>
    %382 = arith.mulf %377, %381 : vector<24x256xf32>
    %383 = vector.broadcast %7 : vector<1x256xf32> to vector<24x256xf32>
    %384 = arith.mulf %382, %383 : vector<24x256xf32>
    %cst_145 = arith.constant dense<0.000000e+00> : vector<24xf32>
    %385 = vector.multi_reduction <add>, %384, %cst_145 [1] : vector<24x256xf32> to vector<24xf32>
    %386 = vector.shape_cast %385 : vector<24xf32> to vector<24x1xf32>
    %387 = arith.addf %349, %386 : vector<24x1xf32>
    %388 = arith.mulf %384, %377 : vector<24x256xf32>
    %cst_146 = arith.constant dense<0.000000e+00> : vector<24xf32>
    %389 = vector.multi_reduction <add>, %388, %cst_146 [1] : vector<24x256xf32> to vector<24xf32>
    %390 = vector.shape_cast %389 : vector<24xf32> to vector<24x1xf32>
    %391 = arith.addf %353, %390 : vector<24x1xf32>
    %c0_147 = arith.constant 0 : index
    %c1_148 = arith.constant 1 : index
    %c0_149 = arith.constant 0 : index
    %c0_150 = arith.constant 0 : index
    %392 = vector.load %arg6[%c0_147, %c1_148, %c0_149, %c0_150] : memref<1x3x24x1xf32, #tpu.memory_space<vmem>>, vector<1x1x24x1xf32>
    %393 = vector.shape_cast %392 : vector<1x1x24x1xf32> to vector<24x1xf32>
    %394 = vector.shape_cast %387 : vector<24x1xf32> to vector<1x1x24x1xf32>
    tpu.vector_store %arg6[%c0_147, %c1_148, %c0_149, %c0_150], %394 {strides = array<i32>} : memref<1x3x24x1xf32, #tpu.memory_space<vmem>>, vector<1x1x24x1xf32>,
    %c0_151 = arith.constant 0 : index
    %c1_152 = arith.constant 1 : index
    %c0_153 = arith.constant 0 : index
    %c0_154 = arith.constant 0 : index
    %395 = vector.load %arg7[%c0_151, %c1_152, %c0_153, %c0_154] : memref<1x3x24x1xf32, #tpu.memory_space<vmem>>, vector<1x1x24x1xf32>
    %396 = vector.shape_cast %395 : vector<1x1x24x1xf32> to vector<24x1xf32>
    %397 = vector.shape_cast %391 : vector<24x1xf32> to vector<1x1x24x1xf32>
    tpu.vector_store %arg7[%c0_151, %c1_152, %c0_153, %c0_154], %397 {strides = array<i32>} : memref<1x3x24x1xf32, #tpu.memory_space<vmem>>, vector<1x1x24x1xf32>,
    %cst_155 = arith.constant 0.000000e+00 : f32
    %398 = vector.broadcast %cst_155 : f32 to vector<24x1xf32>
    %cst_156 = arith.constant 0.000000e+00 : f32
    %399 = vector.broadcast %cst_156 : f32 to vector<24x1xf32>
    %c8 = arith.constant 8 : index
    %c0_157 = arith.constant 0 : index
    %c0_158 = arith.constant 0 : index
    %400 = vector.load %arg3[%c8, %c0_157, %c0_158] : memref<12x3x256xf32, #tpu.memory_space<vmem>>, vector<1x3x256xf32>
    %401 = vector.shape_cast %400 : vector<1x3x256xf32> to vector<3x256xf32>
    %402 = vector.extract_strided_slice %401 {offsets = [0, 0], sizes = [1, 256], strides = [1, 1]} : vector<3x256xf32> to vector<1x256xf32>
    %403 = vector.broadcast %402 : vector<1x256xf32> to vector<24x256xf32>
    %404 = arith.mulf %403, %27 : vector<24x256xf32>
    %405 = vector.extract_strided_slice %401 {offsets = [1, 0], sizes = [1, 256], strides = [1, 1]} : vector<3x256xf32> to vector<1x256xf32>
    %406 = vector.broadcast %405 : vector<1x256xf32> to vector<24x256xf32>
    %407 = arith.mulf %406, %29 : vector<24x256xf32>
    %408 = arith.addf %404, %407 : vector<24x256xf32>
    %409 = vector.extract_strided_slice %401 {offsets = [2, 0], sizes = [1, 256], strides = [1, 1]} : vector<3x256xf32> to vector<1x256xf32>
    %410 = vector.broadcast %409 : vector<1x256xf32> to vector<24x256xf32>
    %411 = arith.mulf %410, %31 : vector<24x256xf32>
    %412 = arith.addf %408, %411 : vector<24x256xf32>
    %413 = vector.extract_strided_slice %32 {offsets = [8, 0], sizes = [1, 1], strides = [1, 1]} : vector<12x1xf32> to vector<1x1xf32>
    %414 = vector.broadcast %413 : vector<1x1xf32> to vector<24x256xf32>
    %415 = arith.addf %412, %414 : vector<24x256xf32>
    %cst_159 = arith.constant 5.000000e-01 : f32
    %416 = vector.broadcast %cst_159 : f32 to vector<24x256xf32>
    %417 = arith.mulf %415, %416 : vector<24x256xf32>
    %cst_160 = arith.constant 0.707106769 : f32
    %418 = vector.broadcast %cst_160 : f32 to vector<24x256xf32>
    %419 = arith.mulf %415, %418 : vector<24x256xf32>
    %420 = math.erf %419 : vector<24x256xf32>
    %cst_161 = arith.constant 1.000000e+00 : f32
    %421 = vector.broadcast %cst_161 : f32 to vector<24x256xf32>
    %422 = arith.addf %420, %421 : vector<24x256xf32>
    %423 = arith.mulf %417, %422 : vector<24x256xf32>
    %c0_162 = arith.constant 0 : index
    %c2_163 = arith.constant 2 : index
    %c0_164 = arith.constant 0 : index
    %c0_165 = arith.constant 0 : index
    %424 = vector.load %arg5[%c0_162, %c2_163, %c0_164, %c0_165] : memref<1x3x24x1024xf32, #tpu.memory_space<vmem>>, vector<1x1x24x256xf32>
    %425 = vector.shape_cast %424 : vector<1x1x24x256xf32> to vector<24x256xf32>
    %426 = vector.shape_cast %423 : vector<24x256xf32> to vector<1x1x24x256xf32>
    tpu.vector_store %arg5[%c0_162, %c2_163, %c0_164, %c0_165], %426 {strides = array<i32>} : memref<1x3x24x1024xf32, #tpu.memory_space<vmem>>, vector<1x1x24x256xf32>,
    %427 = vector.broadcast %20 : vector<24x1xf32> to vector<24x256xf32>
    %428 = arith.mulf %423, %427 : vector<24x256xf32>
    %429 = vector.broadcast %7 : vector<1x256xf32> to vector<24x256xf32>
    %430 = arith.mulf %428, %429 : vector<24x256xf32>
    %cst_166 = arith.constant dense<0.000000e+00> : vector<24xf32>
    %431 = vector.multi_reduction <add>, %430, %cst_166 [1] : vector<24x256xf32> to vector<24xf32>
    %432 = vector.shape_cast %431 : vector<24xf32> to vector<24x1xf32>
    %433 = arith.addf %398, %432 : vector<24x1xf32>
    %434 = arith.mulf %430, %423 : vector<24x256xf32>
    %cst_167 = arith.constant dense<0.000000e+00> : vector<24xf32>
    %435 = vector.multi_reduction <add>, %434, %cst_167 [1] : vector<24x256xf32> to vector<24xf32>
    %436 = vector.shape_cast %435 : vector<24xf32> to vector<24x1xf32>
    %437 = arith.addf %399, %436 : vector<24x1xf32>
    %c9 = arith.constant 9 : index
    %c0_168 = arith.constant 0 : index
    %c0_169 = arith.constant 0 : index
    %438 = vector.load %arg3[%c9, %c0_168, %c0_169] : memref<12x3x256xf32, #tpu.memory_space<vmem>>, vector<1x3x256xf32>
    %439 = vector.shape_cast %438 : vector<1x3x256xf32> to vector<3x256xf32>
    %440 = vector.extract_strided_slice %439 {offsets = [0, 0], sizes = [1, 256], strides = [1, 1]} : vector<3x256xf32> to vector<1x256xf32>
    %441 = vector.broadcast %440 : vector<1x256xf32> to vector<24x256xf32>
    %442 = arith.mulf %441, %27 : vector<24x256xf32>
    %443 = vector.extract_strided_slice %439 {offsets = [1, 0], sizes = [1, 256], strides = [1, 1]} : vector<3x256xf32> to vector<1x256xf32>
    %444 = vector.broadcast %443 : vector<1x256xf32> to vector<24x256xf32>
    %445 = arith.mulf %444, %29 : vector<24x256xf32>
    %446 = arith.addf %442, %445 : vector<24x256xf32>
    %447 = vector.extract_strided_slice %439 {offsets = [2, 0], sizes = [1, 256], strides = [1, 1]} : vector<3x256xf32> to vector<1x256xf32>
    %448 = vector.broadcast %447 : vector<1x256xf32> to vector<24x256xf32>
    %449 = arith.mulf %448, %31 : vector<24x256xf32>
    %450 = arith.addf %446, %449 : vector<24x256xf32>
    %451 = vector.extract_strided_slice %32 {offsets = [9, 0], sizes = [1, 1], strides = [1, 1]} : vector<12x1xf32> to vector<1x1xf32>
    %452 = vector.broadcast %451 : vector<1x1xf32> to vector<24x256xf32>
    %453 = arith.addf %450, %452 : vector<24x256xf32>
    %cst_170 = arith.constant 5.000000e-01 : f32
    %454 = vector.broadcast %cst_170 : f32 to vector<24x256xf32>
    %455 = arith.mulf %453, %454 : vector<24x256xf32>
    %cst_171 = arith.constant 0.707106769 : f32
    %456 = vector.broadcast %cst_171 : f32 to vector<24x256xf32>
    %457 = arith.mulf %453, %456 : vector<24x256xf32>
    %458 = math.erf %457 : vector<24x256xf32>
    %cst_172 = arith.constant 1.000000e+00 : f32
    %459 = vector.broadcast %cst_172 : f32 to vector<24x256xf32>
    %460 = arith.addf %458, %459 : vector<24x256xf32>
    %461 = arith.mulf %455, %460 : vector<24x256xf32>
    %c0_173 = arith.constant 0 : index
    %c2_174 = arith.constant 2 : index
    %c0_175 = arith.constant 0 : index
    %c256_176 = arith.constant 256 : index
    %462 = vector.load %arg5[%c0_173, %c2_174, %c0_175, %c256_176] : memref<1x3x24x1024xf32, #tpu.memory_space<vmem>>, vector<1x1x24x256xf32>
    %463 = vector.shape_cast %462 : vector<1x1x24x256xf32> to vector<24x256xf32>
    %464 = vector.shape_cast %461 : vector<24x256xf32> to vector<1x1x24x256xf32>
    tpu.vector_store %arg5[%c0_173, %c2_174, %c0_175, %c256_176], %464 {strides = array<i32>} : memref<1x3x24x1024xf32, #tpu.memory_space<vmem>>, vector<1x1x24x256xf32>,
    %465 = vector.broadcast %15 : vector<24x1xf32> to vector<24x256xf32>
    %466 = arith.mulf %461, %465 : vector<24x256xf32>
    %467 = vector.broadcast %7 : vector<1x256xf32> to vector<24x256xf32>
    %468 = arith.mulf %466, %467 : vector<24x256xf32>
    %cst_177 = arith.constant dense<0.000000e+00> : vector<24xf32>
    %469 = vector.multi_reduction <add>, %468, %cst_177 [1] : vector<24x256xf32> to vector<24xf32>
    %470 = vector.shape_cast %469 : vector<24xf32> to vector<24x1xf32>
    %471 = arith.addf %433, %470 : vector<24x1xf32>
    %472 = arith.mulf %468, %461 : vector<24x256xf32>
    %cst_178 = arith.constant dense<0.000000e+00> : vector<24xf32>
    %473 = vector.multi_reduction <add>, %472, %cst_178 [1] : vector<24x256xf32> to vector<24xf32>
    %474 = vector.shape_cast %473 : vector<24xf32> to vector<24x1xf32>
    %475 = arith.addf %437, %474 : vector<24x1xf32>
    %c10 = arith.constant 10 : index
    %c0_179 = arith.constant 0 : index
    %c0_180 = arith.constant 0 : index
    %476 = vector.load %arg3[%c10, %c0_179, %c0_180] : memref<12x3x256xf32, #tpu.memory_space<vmem>>, vector<1x3x256xf32>
    %477 = vector.shape_cast %476 : vector<1x3x256xf32> to vector<3x256xf32>
    %478 = vector.extract_strided_slice %477 {offsets = [0, 0], sizes = [1, 256], strides = [1, 1]} : vector<3x256xf32> to vector<1x256xf32>
    %479 = vector.broadcast %478 : vector<1x256xf32> to vector<24x256xf32>
    %480 = arith.mulf %479, %27 : vector<24x256xf32>
    %481 = vector.extract_strided_slice %477 {offsets = [1, 0], sizes = [1, 256], strides = [1, 1]} : vector<3x256xf32> to vector<1x256xf32>
    %482 = vector.broadcast %481 : vector<1x256xf32> to vector<24x256xf32>
    %483 = arith.mulf %482, %29 : vector<24x256xf32>
    %484 = arith.addf %480, %483 : vector<24x256xf32>
    %485 = vector.extract_strided_slice %477 {offsets = [2, 0], sizes = [1, 256], strides = [1, 1]} : vector<3x256xf32> to vector<1x256xf32>
    %486 = vector.broadcast %485 : vector<1x256xf32> to vector<24x256xf32>
    %487 = arith.mulf %486, %31 : vector<24x256xf32>
    %488 = arith.addf %484, %487 : vector<24x256xf32>
    %489 = vector.extract_strided_slice %32 {offsets = [10, 0], sizes = [1, 1], strides = [1, 1]} : vector<12x1xf32> to vector<1x1xf32>
    %490 = vector.broadcast %489 : vector<1x1xf32> to vector<24x256xf32>
    %491 = arith.addf %488, %490 : vector<24x256xf32>
    %cst_181 = arith.constant 5.000000e-01 : f32
    %492 = vector.broadcast %cst_181 : f32 to vector<24x256xf32>
    %493 = arith.mulf %491, %492 : vector<24x256xf32>
    %cst_182 = arith.constant 0.707106769 : f32
    %494 = vector.broadcast %cst_182 : f32 to vector<24x256xf32>
    %495 = arith.mulf %491, %494 : vector<24x256xf32>
    %496 = math.erf %495 : vector<24x256xf32>
    %cst_183 = arith.constant 1.000000e+00 : f32
    %497 = vector.broadcast %cst_183 : f32 to vector<24x256xf32>
    %498 = arith.addf %496, %497 : vector<24x256xf32>
    %499 = arith.mulf %493, %498 : vector<24x256xf32>
    %c0_184 = arith.constant 0 : index
    %c2_185 = arith.constant 2 : index
    %c0_186 = arith.constant 0 : index
    %c512_187 = arith.constant 512 : index
    %500 = vector.load %arg5[%c0_184, %c2_185, %c0_186, %c512_187] : memref<1x3x24x1024xf32, #tpu.memory_space<vmem>>, vector<1x1x24x256xf32>
    %501 = vector.shape_cast %500 : vector<1x1x24x256xf32> to vector<24x256xf32>
    %502 = vector.shape_cast %499 : vector<24x256xf32> to vector<1x1x24x256xf32>
    tpu.vector_store %arg5[%c0_184, %c2_185, %c0_186, %c512_187], %502 {strides = array<i32>} : memref<1x3x24x1024xf32, #tpu.memory_space<vmem>>, vector<1x1x24x256xf32>,
    %503 = vector.broadcast %15 : vector<24x1xf32> to vector<24x256xf32>
    %504 = arith.mulf %499, %503 : vector<24x256xf32>
    %505 = vector.broadcast %7 : vector<1x256xf32> to vector<24x256xf32>
    %506 = arith.mulf %504, %505 : vector<24x256xf32>
    %cst_188 = arith.constant dense<0.000000e+00> : vector<24xf32>
    %507 = vector.multi_reduction <add>, %506, %cst_188 [1] : vector<24x256xf32> to vector<24xf32>
    %508 = vector.shape_cast %507 : vector<24xf32> to vector<24x1xf32>
    %509 = arith.addf %471, %508 : vector<24x1xf32>
    %510 = arith.mulf %506, %499 : vector<24x256xf32>
    %cst_189 = arith.constant dense<0.000000e+00> : vector<24xf32>
    %511 = vector.multi_reduction <add>, %510, %cst_189 [1] : vector<24x256xf32> to vector<24xf32>
    %512 = vector.shape_cast %511 : vector<24xf32> to vector<24x1xf32>
    %513 = arith.addf %475, %512 : vector<24x1xf32>
    %c11 = arith.constant 11 : index
    %c0_190 = arith.constant 0 : index
    %c0_191 = arith.constant 0 : index
    %514 = vector.load %arg3[%c11, %c0_190, %c0_191] : memref<12x3x256xf32, #tpu.memory_space<vmem>>, vector<1x3x256xf32>
    %515 = vector.shape_cast %514 : vector<1x3x256xf32> to vector<3x256xf32>
    %516 = vector.extract_strided_slice %515 {offsets = [0, 0], sizes = [1, 256], strides = [1, 1]} : vector<3x256xf32> to vector<1x256xf32>
    %517 = vector.broadcast %516 : vector<1x256xf32> to vector<24x256xf32>
    %518 = arith.mulf %517, %27 : vector<24x256xf32>
    %519 = vector.extract_strided_slice %515 {offsets = [1, 0], sizes = [1, 256], strides = [1, 1]} : vector<3x256xf32> to vector<1x256xf32>
    %520 = vector.broadcast %519 : vector<1x256xf32> to vector<24x256xf32>
    %521 = arith.mulf %520, %29 : vector<24x256xf32>
    %522 = arith.addf %518, %521 : vector<24x256xf32>
    %523 = vector.extract_strided_slice %515 {offsets = [2, 0], sizes = [1, 256], strides = [1, 1]} : vector<3x256xf32> to vector<1x256xf32>
    %524 = vector.broadcast %523 : vector<1x256xf32> to vector<24x256xf32>
    %525 = arith.mulf %524, %31 : vector<24x256xf32>
    %526 = arith.addf %522, %525 : vector<24x256xf32>
    %527 = vector.extract_strided_slice %32 {offsets = [11, 0], sizes = [1, 1], strides = [1, 1]} : vector<12x1xf32> to vector<1x1xf32>
    %528 = vector.broadcast %527 : vector<1x1xf32> to vector<24x256xf32>
    %529 = arith.addf %526, %528 : vector<24x256xf32>
    %cst_192 = arith.constant 5.000000e-01 : f32
    %530 = vector.broadcast %cst_192 : f32 to vector<24x256xf32>
    %531 = arith.mulf %529, %530 : vector<24x256xf32>
    %cst_193 = arith.constant 0.707106769 : f32
    %532 = vector.broadcast %cst_193 : f32 to vector<24x256xf32>
    %533 = arith.mulf %529, %532 : vector<24x256xf32>
    %534 = math.erf %533 : vector<24x256xf32>
    %cst_194 = arith.constant 1.000000e+00 : f32
    %535 = vector.broadcast %cst_194 : f32 to vector<24x256xf32>
    %536 = arith.addf %534, %535 : vector<24x256xf32>
    %537 = arith.mulf %531, %536 : vector<24x256xf32>
    %c0_195 = arith.constant 0 : index
    %c2_196 = arith.constant 2 : index
    %c0_197 = arith.constant 0 : index
    %c768_198 = arith.constant 768 : index
    %538 = vector.load %arg5[%c0_195, %c2_196, %c0_197, %c768_198] : memref<1x3x24x1024xf32, #tpu.memory_space<vmem>>, vector<1x1x24x256xf32>
    %539 = vector.shape_cast %538 : vector<1x1x24x256xf32> to vector<24x256xf32>
    %540 = vector.shape_cast %537 : vector<24x256xf32> to vector<1x1x24x256xf32>
    tpu.vector_store %arg5[%c0_195, %c2_196, %c0_197, %c768_198], %540 {strides = array<i32>} : memref<1x3x24x1024xf32, #tpu.memory_space<vmem>>, vector<1x1x24x256xf32>,
    %541 = vector.broadcast %25 : vector<24x1xf32> to vector<24x256xf32>
    %542 = arith.mulf %537, %541 : vector<24x256xf32>
    %543 = vector.broadcast %7 : vector<1x256xf32> to vector<24x256xf32>
    %544 = arith.mulf %542, %543 : vector<24x256xf32>
    %cst_199 = arith.constant dense<0.000000e+00> : vector<24xf32>
    %545 = vector.multi_reduction <add>, %544, %cst_199 [1] : vector<24x256xf32> to vector<24xf32>
    %546 = vector.shape_cast %545 : vector<24xf32> to vector<24x1xf32>
    %547 = arith.addf %509, %546 : vector<24x1xf32>
    %548 = arith.mulf %544, %537 : vector<24x256xf32>
    %cst_200 = arith.constant dense<0.000000e+00> : vector<24xf32>
    %549 = vector.multi_reduction <add>, %548, %cst_200 [1] : vector<24x256xf32> to vector<24xf32>
    %550 = vector.shape_cast %549 : vector<24xf32> to vector<24x1xf32>
    %551 = arith.addf %513, %550 : vector<24x1xf32>
    %c0_201 = arith.constant 0 : index
    %c2_202 = arith.constant 2 : index
    %c0_203 = arith.constant 0 : index
    %c0_204 = arith.constant 0 : index
    %552 = vector.load %arg6[%c0_201, %c2_202, %c0_203, %c0_204] : memref<1x3x24x1xf32, #tpu.memory_space<vmem>>, vector<1x1x24x1xf32>
    %553 = vector.shape_cast %552 : vector<1x1x24x1xf32> to vector<24x1xf32>
    %554 = vector.shape_cast %547 : vector<24x1xf32> to vector<1x1x24x1xf32>
    tpu.vector_store %arg6[%c0_201, %c2_202, %c0_203, %c0_204], %554 {strides = array<i32>} : memref<1x3x24x1xf32, #tpu.memory_space<vmem>>, vector<1x1x24x1xf32>,
    %c0_205 = arith.constant 0 : index
    %c2_206 = arith.constant 2 : index
    %c0_207 = arith.constant 0 : index
    %c0_208 = arith.constant 0 : index
    %555 = vector.load %arg7[%c0_205, %c2_206, %c0_207, %c0_208] : memref<1x3x24x1xf32, #tpu.memory_space<vmem>>, vector<1x1x24x1xf32>
    %556 = vector.shape_cast %555 : vector<1x1x24x1xf32> to vector<24x1xf32>
    %557 = vector.shape_cast %551 : vector<24x1xf32> to vector<1x1x24x1xf32>
    tpu.vector_store %arg7[%c0_205, %c2_206, %c0_207, %c0_208], %557 {strides = array<i32>} : memref<1x3x24x1xf32, #tpu.memory_space<vmem>>, vector<1x1x24x1xf32>,
    return
  }
  func.func @transform_0(%arg0: i32, %arg1: i32) -> (i32, i32, i32, i32) {
    %c0_i32 = arith.constant 0 : i32
    %c0_i32_0 = arith.constant 0 : i32
    %c0_i32_1 = arith.constant 0 : i32
    return %arg0, %c0_i32, %arg1, %c0_i32_0 : i32, i32, i32, i32
  }
  func.func @transform_1(%arg0: i32, %arg1: i32) -> (i32, i32, i32) {
    %c0_i32 = arith.constant 0 : i32
    %c0_i32_0 = arith.constant 0 : i32
    %c0_i32_1 = arith.constant 0 : i32
    %c0_i32_2 = arith.constant 0 : i32
    return %c0_i32, %c0_i32_0, %c0_i32_1 : i32, i32, i32
  }
  func.func @transform_2(%arg0: i32, %arg1: i32) -> (i32, i32) {
    %c0_i32 = arith.constant 0 : i32
    %c0_i32_0 = arith.constant 0 : i32
    %c0_i32_1 = arith.constant 0 : i32
    return %c0_i32, %c0_i32_0 : i32, i32
  }
  func.func @transform_3(%arg0: i32, %arg1: i32) -> (i32, i32, i32, i32) {
    %c0_i32 = arith.constant 0 : i32
    %c0_i32_0 = arith.constant 0 : i32
    %c0_i32_1 = arith.constant 0 : i32
    return %arg0, %c0_i32, %arg1, %c0_i32_0 : i32, i32, i32, i32
  }
  func.func @transform_4(%arg0: i32, %arg1: i32) -> (i32, i32, i32, i32) {
    %c0_i32 = arith.constant 0 : i32
    %c0_i32_0 = arith.constant 0 : i32
    %c0_i32_1 = arith.constant 0 : i32
    return %arg0, %c0_i32, %arg1, %c0_i32_0 : i32, i32, i32, i32
  }
  func.func @transform_5(%arg0: i32, %arg1: i32) -> (i32, i32, i32, i32) {
    %c0_i32 = arith.constant 0 : i32
    %c0_i32_0 = arith.constant 0 : i32
    %c0_i32_1 = arith.constant 0 : i32
    return %arg0, %c0_i32, %arg1, %c0_i32_0 : i32, i32, i32, i32
  }
  func.func @transform_6(%arg0: i32, %arg1: i32) -> (i32, i32, i32, i32) {
    %c0_i32 = arith.constant 0 : i32
    %c0_i32_0 = arith.constant 0 : i32
    %c0_i32_1 = arith.constant 0 : i32
    return %arg0, %c0_i32, %arg1, %c0_i32_0 : i32, i32, i32, i32
  }
  func.func @transform_7(%arg0: i32, %arg1: i32) -> (i32, i32, i32, i32) {
    %c0_i32 = arith.constant 0 : i32
    %c0_i32_0 = arith.constant 0 : i32
    %c0_i32_1 = arith.constant 0 : i32
    return %arg0, %c0_i32, %arg1, %c0_i32_0 : i32, i32, i32, i32
  }
}

</mosaic_0001>

<bundles_post_ra>
// kernel: model_branches.3
= control target key start
LH: loop header
LB: loop body
LE: loop exit
PB: predicated region body
PF: predicated region fallthrough
CT: control target
= control target key end

     0   :  { %s1535_s24 = smov 0   ;;  %s1537_s25 = smov 0   ;;  %s2305_s0 = inlined_call_operand.vmem [shape: f32[1,3,48,1024], index: 0, kind: input, shape index: {}]   ;;  %s2306_s1 = inlined_call_operand.vmem [shape: f32[1,3,48,64], index: 1, kind: input, shape index: {}]   ;;  %s2307_s2 = inlined_call_operand.vmem [shape: f32[3,1,1], index: 2, kind: input, shape index: {}]   ;;  %s2308_s3 = inlined_call_operand.vmem [shape: f32[3,1,1], index: 3, kind: input, shape index: {}]   ;;  %s2309_s4 = inlined_call_operand.vmem [shape: f32[3,1,1], index: 4, kind: input, shape index: {}]   ;;  %s2310_s5 = inlined_call_operand.vmem [shape: f32[3,1,1], index: 5, kind: input, shape index: {}]   ;;  %s2311_s6 = inlined_call_operand.vmem [shape: f32[1,3,48,1024], index: 6, kind: output, shape index: {0}]   ;;  %s2312_s7 = inlined_call_operand.vmem [shape: f32[1,3,48,64], index: 7, kind: output, shape index: {1}]  }
   0x1   :  { %s1539_s26 = smov 0   ;;  %s1541_s27 = smov 0  }
   0x2   :  { %s1543_s28 = smov 0  }
   0x3 LB: > { %s27_s29 = sadd.s32 1, %s1488_s27  ;;  %s1374_s30 = sadd.s32 4294967295, %s1492_s28   ;;  %s1492_s28 = sphi %s1543_s28, %s18_s28   ;;  %s1488_s27 = sphi %s1541_s27, %s2325_s27   ;;  %s1484_s26 = sphi %s1539_s26, %s2324_s26   ;;  %s1480_s25 = sphi %s1537_s25, %s2323_s25   ;;  %s1476_s24 = sphi %s1535_s24, %s2322_s24  }
   0x4   : > { %p28_p0 = scmp.ge.s32.totalorder %s27_s29, 2  ;;  %p46_p1 = scmp.ne.s32.totalorder %s1480_s25, %s1476_s24 }
   0x5   : > { %p47_p2 = scmp.eq.s32.totalorder %s1492_s28, 0  ;;  %p190_p4 = scmp.eq.s32.totalorder %s1374_s30, 1 }
   0x6   : > { %s2327_s29 = smov (%p28_p0, %s27_s29), 0  ;;  %s39_s10 = sadd.s32 1, %s1480_s25 }
   0x7   : > { %p1567_p3 = por %p47_p2, %p46_p1  ;;  %s35_s9 = ssub.s32 %s1488_s27, %s2327_s29 }
   0x8   : > { %p37_p5 = scmp.eq.s32.totalorder %s35_s9, 0  ;;  %p1574_p6 = por %p190_p4, %p46_p1 }
   0x9   : > { %p1377_p7 = scmp.ge.s32.totalorder %s1492_s28, 2 }
   0xa   : > { %s1579_s12 = scalar_select %p37_p5, %s1480_s25, %s39_s10  }
   0xb   : > { %252 = sbr.rel (%p1377_p7) target bundleno = 69 (0x45), region = 32 }
  0x12   : > { %255 = sbr.rel (!%p1567_p3) target bundleno = 59 (0x3b), region = 36  ;;  %s257_s13 = sand.u32 (%p1567_p3), 1, %s1480_s25  }
  0x13   : > { %s1405_s14 = smul.u32 (%p1567_p3), 192, %s1488_s27 }
  0x14   : > { %s1407_s15 = smul.u32 (%p1567_p3), 576, %s257_s13 }
  0x15   : > { %s1589_s18 = scalar_lea.vmem (%p1567_p3), %s2305_s0, %s1405_s14 }
  0x16   : > { %v278_v0 = vld [vmem:[%s1589_s18] sm:$0xff] (%p1567_p3)  ;;  %v280_v1 = vld [vmem:[%s1589_s18 + $0x8] sm:$0xff] (%p1567_p3)  ;;  %v282_v2 = vld [vmem:[%s1589_s18 + $0x10] sm:$0xff] (%p1567_p3)  ;;  %s1594_s19 = scalar_lea.vmem (%p1567_p3), [#allocation2], %s1407_s15 }
  0x17   : > { %279 = vst [vmem:[%s1594_s19] sm:$0xff] (%p1567_p3), %v278_v0  ;;  %281 = vst [vmem:[%s1594_s19 + $0x8] sm:$0xff] (%p1567_p3), %v280_v1  ;;  %v284_v3 = vld [vmem:[%s1589_s18 + $0x18] sm:$0xff] (%p1567_p3)  ;;  %v286_v4 = vld [vmem:[%s1589_s18 + $0x20] sm:$0xff] (%p1567_p3) }
  0x18   : > { %283 = vst [vmem:[%s1594_s19 + $0x10] sm:$0xff] (%p1567_p3), %v282_v2  ;;  %v288_v5 = vld [vmem:[%s1589_s18 + $0x28] sm:$0xff] (%p1567_p3)  ;;  %285 = vst [vmem:[%s1594_s19 + $0x18] sm:$0xff] (%p1567_p3), %v284_v3  ;;  %v290_v6 = vld [vmem:[%s1589_s18 + $0x30] sm:$0xff] (%p1567_p3) }
  0x19   : > { %287 = vst [vmem:[%s1594_s19 + $0x20] sm:$0xff] %v286_v4  ;;  %289 = vst [vmem:[%s1594_s19 + $0x28] sm:$0xff] %v288_v5  ;;  %v292_v7 = vld [vmem:[%s1589_s18 + $0x38] sm:$0xff]  ;;  %v294_v8 = vld [vmem:[%s1589_s18 + $0x40] sm:$0xff] }
  0x1a   : > { %291 = vst [vmem:[%s1594_s19 + $0x30] sm:$0xff] %v290_v6  ;;  %293 = vst [vmem:[%s1594_s19 + $0x38] sm:$0xff] %v292_v7  ;;  %v296_v9 = vld [vmem:[%s1589_s18 + $0x48] sm:$0xff]  ;;  %v298_v10 = vld [vmem:[%s1589_s18 + $0x50] sm:$0xff] }
  0x1b   : > { %295 = vst [vmem:[%s1594_s19 + $0x40] sm:$0xff] %v294_v8  ;;  %v300_v11 = vld [vmem:[%s1589_s18 + $0x58] sm:$0xff]  ;;  %297 = vst [vmem:[%s1594_s19 + $0x48] sm:$0xff] %v296_v9  ;;  %v302_v12 = vld [vmem:[%s1589_s18 + $0x60] sm:$0xff] }
  0x1c   : > { %299 = vst [vmem:[%s1594_s19 + $0x50] sm:$0xff] %v298_v10  ;;  %301 = vst [vmem:[%s1594_s19 + $0x58] sm:$0xff] %v300_v11  ;;  %v304_v13 = vld [vmem:[%s1589_s18 + $0x68] sm:$0xff]  ;;  %v306_v14 = vld [vmem:[%s1589_s18 + $0x70] sm:$0xff] }
  0x1d   : > { %303 = vst [vmem:[%s1594_s19 + $0x60] sm:$0xff] %v302_v12  ;;  %305 = vst [vmem:[%s1594_s19 + $0x68] sm:$0xff] %v304_v13  ;;  %v308_v15 = vld [vmem:[%s1589_s18 + $0x78] sm:$0xff]  ;;  %v310_v16 = vld [vmem:[%s1589_s18 + $0x80] sm:$0xff] }
  0x1e   : > { %307 = vst [vmem:[%s1594_s19 + $0x70] sm:$0xff] %v306_v14  ;;  %v312_v17 = vld [vmem:[%s1589_s18 + $0x88] sm:$0xff]  ;;  %309 = vst [vmem:[%s1594_s19 + $0x78] sm:$0xff] %v308_v15  ;;  %v314_v18 = vld [vmem:[%s1589_s18 + $0x90] sm:$0xff] }
  0x1f   : > { %311 = vst [vmem:[%s1594_s19 + $0x80] sm:$0xff] %v310_v16  ;;  %313 = vst [vmem:[%s1594_s19 + $0x88] sm:$0xff] %v312_v17  ;;  %v316_v19 = vld [vmem:[%s1589_s18 + $0x98] sm:$0xff]  ;;  %v318_v20 = vld [vmem:[%s1589_s18 + $0xa0] sm:$0xff] }
  0x20   : > { %315 = vst [vmem:[%s1594_s19 + $0x90] sm:$0xff] %v314_v18  ;;  %317 = vst [vmem:[%s1594_s19 + $0x98] sm:$0xff] %v316_v19  ;;  %v320_v21 = vld [vmem:[%s1589_s18 + $0xa8] sm:$0xff]  ;;  %v322_v22 = vld [vmem:[%s1589_s18 + $0xb0] sm:$0xff] }
  0x21   : > { %319 = vst [vmem:[%s1594_s19 + $0xa0] sm:$0xff] %v318_v20  ;;  %v324_v23 = vld [vmem:[%s1589_s18 + $0xb8] sm:$0xff]  ;;  %321 = vst [vmem:[%s1594_s19 + $0xa8] sm:$0xff] %v320_v21  ;;  %v326_v24 = vld [vmem:[%s1589_s18 + $0x180] sm:$0xff] }
  0x22   : > { %323 = vst [vmem:[%s1594_s19 + $0xb0] sm:$0xff] %v322_v22  ;;  %325 = vst [vmem:[%s1594_s19 + $0xb8] sm:$0xff] %v324_v23  ;;  %v328_v25 = vld [vmem:[%s1589_s18 + $0x188] sm:$0xff]  ;;  %v330_v26 = vld [vmem:[%s1589_s18 + $0x190] sm:$0xff] }
  0x23   : > { %327 = vst [vmem:[%s1594_s19 + $0xc0] sm:$0xff] %v326_v24  ;;  %329 = vst [vmem:[%s1594_s19 + $0xc8] sm:$0xff] %v328_v25  ;;  %v332_v27 = vld [vmem:[%s1589_s18 + $0x198] sm:$0xff]  ;;  %v334_v28 = vld [vmem:[%s1589_s18 + $0x1a0] sm:$0xff] }
  0x24   : > { %331 = vst [vmem:[%s1594_s19 + $0xd0] sm:$0xff] %v330_v26  ;;  %v336_v29 = vld [vmem:[%s1589_s18 + $0x1a8] sm:$0xff]  ;;  %333 = vst [vmem:[%s1594_s19 + $0xd8] sm:$0xff] %v332_v27  ;;  %v338_v30 = vld [vmem:[%s1589_s18 + $0x1b0] sm:$0xff] }
  0x25   : > { %335 = vst [vmem:[%s1594_s19 + $0xe0] sm:$0xff] %v334_v28  ;;  %337 = vst [vmem:[%s1594_s19 + $0xe8] sm:$0xff] %v336_v29  ;;  %v340_v31 = vld [vmem:[%s1589_s18 + $0x1b8] sm:$0xff]  ;;  %v342_v32 = vld [vmem:[%s1589_s18 + $0x1c0] sm:$0xff] }
  0x26   : > { %339 = vst [vmem:[%s1594_s19 + $0xf0] sm:$0xff] %v338_v30  ;;  %341 = vst [vmem:[%s1594_s19 + $0xf8] sm:$0xff] %v340_v31  ;;  %v344_v33 = vld [vmem:[%s1589_s18 + $0x1c8] sm:$0xff]  ;;  %v346_v34 = vld [vmem:[%s1589_s18 + $0x1d0] sm:$0xff] }
  0x27   : > { %343 = vst [vmem:[%s1594_s19 + $0x100] sm:$0xff] %v342_v32  ;;  %v348_v35 = vld [vmem:[%s1589_s18 + $0x1d8] sm:$0xff]  ;;  %345 = vst [vmem:[%s1594_s19 + $0x108] sm:$0xff] %v344_v33  ;;  %v350_v36 = vld [vmem:[%s1589_s18 + $0x1e0] sm:$0xff] }
  0x28   : > { %347 = vst [vmem:[%s1594_s19 + $0x110] sm:$0xff] %v346_v34  ;;  %349 = vst [vmem:[%s1594_s19 + $0x118] sm:$0xff] %v348_v35  ;;  %v352_v37 = vld [vmem:[%s1589_s18 + $0x1e8] sm:$0xff]  ;;  %v354_v38 = vld [vmem:[%s1589_s18 + $0x1f0] sm:$0xff] }
  0x29   : > { %351 = vst [vmem:[%s1594_s19 + $0x120] sm:$0xff] %v350_v36  ;;  %353 = vst [vmem:[%s1594_s19 + $0x128] sm:$0xff] %v352_v37  ;;  %v356_v39 = vld [vmem:[%s1589_s18 + $0x1f8] sm:$0xff]  ;;  %v358_v40 = vld [vmem:[%s1589_s18 + $0x200] sm:$0xff] }
  0x2a   : > { %355 = vst [vmem:[%s1594_s19 + $0x130] sm:$0xff] %v354_v38  ;;  %v360_v41 = vld [vmem:[%s1589_s18 + $0x208] sm:$0xff]  ;;  %357 = vst [vmem:[%s1594_s19 + $0x138] sm:$0xff] %v356_v39  ;;  %v362_v42 = vld [vmem:[%s1589_s18 + $0x210] sm:$0xff] }
  0x2b   : > { %359 = vst [vmem:[%s1594_s19 + $0x140] sm:$0xff] %v358_v40  ;;  %361 = vst [vmem:[%s1594_s19 + $0x148] sm:$0xff] %v360_v41  ;;  %v364_v43 = vld [vmem:[%s1589_s18 + $0x218] sm:$0xff]  ;;  %v366_v44 = vld [vmem:[%s1589_s18 + $0x220] sm:$0xff] }
  0x2c   : > { %363 = vst [vmem:[%s1594_s19 + $0x150] sm:$0xff] %v362_v42  ;;  %365 = vst [vmem:[%s1594_s19 + $0x158] sm:$0xff] %v364_v43  ;;  %v368_v45 = vld [vmem:[%s1589_s18 + $0x228] sm:$0xff]  ;;  %v370_v46 = vld [vmem:[%s1589_s18 + $0x230] sm:$0xff] }
  0x2d   : > { %367 = vst [vmem:[%s1594_s19 + $0x160] sm:$0xff] %v366_v44  ;;  %v372_v47 = vld [vmem:[%s1589_s18 + $0x238] sm:$0xff]  ;;  %369 = vst [vmem:[%s1594_s19 + $0x168] sm:$0xff] %v368_v45  ;;  %v374_v48 = vld [vmem:[%s1589_s18 + $0x300] sm:$0xff] }
  0x2e   : > { %371 = vst [vmem:[%s1594_s19 + $0x170] sm:$0xff] %v370_v46  ;;  %373 = vst [vmem:[%s1594_s19 + $0x178] sm:$0xff] %v372_v47  ;;  %v376_v49 = vld [vmem:[%s1589_s18 + $0x308] sm:$0xff]  ;;  %v378_v50 = vld [vmem:[%s1589_s18 + $0x310] sm:$0xff] }
  0x2f   : > { %375 = vst [vmem:[%s1594_s19 + $0x180] sm:$0xff] %v374_v48  ;;  %377 = vst [vmem:[%s1594_s19 + $0x188] sm:$0xff] %v376_v49  ;;  %v380_v51 = vld [vmem:[%s1589_s18 + $0x318] sm:$0xff]  ;;  %v382_v52 = vld [vmem:[%s1589_s18 + $0x320] sm:$0xff] }
  0x30   : > { %379 = vst [vmem:[%s1594_s19 + $0x190] sm:$0xff] %v378_v50  ;;  %v384_v53 = vld [vmem:[%s1589_s18 + $0x328] sm:$0xff]  ;;  %381 = vst [vmem:[%s1594_s19 + $0x198] sm:$0xff] %v380_v51  ;;  %v386_v54 = vld [vmem:[%s1589_s18 + $0x330] sm:$0xff] }
  0x31   : > { %383 = vst [vmem:[%s1594_s19 + $0x1a0] sm:$0xff] %v382_v52  ;;  %385 = vst [vmem:[%s1594_s19 + $0x1a8] sm:$0xff] %v384_v53  ;;  %v388_v55 = vld [vmem:[%s1589_s18 + $0x338] sm:$0xff]  ;;  %v390_v56 = vld [vmem:[%s1589_s18 + $0x340] sm:$0xff] }
  0x32   : > { %387 = vst [vmem:[%s1594_s19 + $0x1b0] sm:$0xff] %v386_v54  ;;  %389 = vst [vmem:[%s1594_s19 + $0x1b8] sm:$0xff] %v388_v55  ;;  %v392_v57 = vld [vmem:[%s1589_s18 + $0x348] sm:$0xff]  ;;  %v394_v58 = vld [vmem:[%s1589_s18 + $0x350] sm:$0xff] }
  0x33   : > { %391 = vst [vmem:[%s1594_s19 + $0x1c0] sm:$0xff] %v390_v56  ;;  %v396_v59 = vld [vmem:[%s1589_s18 + $0x358] sm:$0xff]  ;;  %393 = vst [vmem:[%s1594_s19 + $0x1c8] sm:$0xff] %v392_v57  ;;  %v398_v60 = vld [vmem:[%s1589_s18 + $0x360] sm:$0xff] }
  0x34   : > { %395 = vst [vmem:[%s1594_s19 + $0x1d0] sm:$0xff] %v394_v58  ;;  %397 = vst [vmem:[%s1594_s19 + $0x1d8] sm:$0xff] %v396_v59  ;;  %v400_v61 = vld [vmem:[%s1589_s18 + $0x368] sm:$0xff]  ;;  %v402_v62 = vld [vmem:[%s1589_s18 + $0x370] sm:$0xff] }
  0x35   : > { %399 = vst [vmem:[%s1594_s19 + $0x1e0] sm:$0xff] %v398_v60  ;;  %401 = vst [vmem:[%s1594_s19 + $0x1e8] sm:$0xff] %v400_v61  ;;  %v404_v63 = vld [vmem:[%s1589_s18 + $0x378] sm:$0xff]  ;;  %v406_v0 = vld [vmem:[%s1589_s18 + $0x380] sm:$0xff] }
  0x36   : > { %403 = vst [vmem:[%s1594_s19 + $0x1f0] sm:$0xff] %v402_v62  ;;  %v408_v1 = vld [vmem:[%s1589_s18 + $0x388] sm:$0xff]  ;;  %405 = vst [vmem:[%s1594_s19 + $0x1f8] sm:$0xff] %v404_v63  ;;  %v410_v2 = vld [vmem:[%s1589_s18 + $0x390] sm:$0xff] }
  0x37   : > { %407 = vst [vmem:[%s1594_s19 + $0x200] sm:$0xff] %v406_v0  ;;  %409 = vst [vmem:[%s1594_s19 + $0x208] sm:$0xff] %v408_v1  ;;  %v412_v3 = vld [vmem:[%s1589_s18 + $0x398] sm:$0xff]  ;;  %v414_v4 = vld [vmem:[%s1589_s18 + $0x3a0] sm:$0xff] }
  0x38   : > { %411 = vst [vmem:[%s1594_s19 + $0x210] sm:$0xff] %v410_v2  ;;  %413 = vst [vmem:[%s1594_s19 + $0x218] sm:$0xff] %v412_v3  ;;  %v416_v5 = vld [vmem:[%s1589_s18 + $0x3a8] sm:$0xff]  ;;  %v418_v6 = vld [vmem:[%s1589_s18 + $0x3b0] sm:$0xff] }
  0x39   : > { %415 = vst [vmem:[%s1594_s19 + $0x220] sm:$0xff] %v414_v4  ;;  %v420_v7 = vld [vmem:[%s1589_s18 + $0x3b8] sm:$0xff]  ;;  %417 = vst [vmem:[%s1594_s19 + $0x228] sm:$0xff] %v416_v5 }
  0x3a   : > { %419 = vst [vmem:[%s1594_s19 + $0x230] sm:$0xff] %v418_v6  ;;  %421 = vst [vmem:[%s1594_s19 + $0x238] sm:$0xff] %v420_v7 }
  0x3b PF: > { %427 = sbr.rel (!%p1567_p3) target bundleno = 69 (0x45), region = 59  ;;  %s429_s20 = sand.u32 (%p1567_p3), 1, %s1480_s25  }
  0x3c   : > { %s1401_s21 = smul.u32 (%p1567_p3), 24, %s1488_s27 }
  0x3d   : > { %s1408_s22 = smul.u32 (%p1567_p3), 72, %s429_s20 }
  0x3e   : > { %s436_s9 = scalar_lea.vmem (%p1567_p3), %s2306_s1, %s1401_s21 }
  0x3f   : > { %v480_v8 = vld [vmem:[%s436_s9] sm:$0xff] (%p1567_p3)  ;;  %v482_v9 = vld [vmem:[%s436_s9 + $0x8] sm:$0xff] (%p1567_p3)  ;;  %v484_v10 = vld [vmem:[%s436_s9 + $0x10] sm:$0xff] (%p1567_p3)  ;;  %s431_s10 = scalar_lea.vmem (%p1567_p3), [#allocation3], %s1408_s22 }
  0x40   : > { %481 = vst [vmem:[%s431_s10] sm:$0xff] (%p1567_p3), %v480_v8  ;;  %483 = vst [vmem:[%s431_s10 + $0x8] sm:$0xff] (%p1567_p3), %v482_v9  ;;  %v486_v11 = vld [vmem:[%s436_s9 + $0x30] sm:$0xff] (%p1567_p3)  ;;  %v488_v12 = vld [vmem:[%s436_s9 + $0x38] sm:$0xff] (%p1567_p3) }
  0x41   : > { %485 = vst [vmem:[%s431_s10 + $0x10] sm:$0xff] (%p1567_p3), %v484_v10  ;;  %v490_v13 = vld [vmem:[%s436_s9 + $0x40] sm:$0xff] (%p1567_p3)  ;;  %487 = vst [vmem:[%s431_s10 + $0x18] sm:$0xff] (%p1567_p3), %v486_v11  ;;  %v494_v15 = vld [vmem:[%s436_s9 + $0x68] sm:$0xff] (%p1567_p3) }
  0x42   : > { %489 = vst [vmem:[%s431_s10 + $0x20] sm:$0xff] %v488_v12  ;;  %491 = vst [vmem:[%s431_s10 + $0x28] sm:$0xff] %v490_v13  ;;  %v492_v14 = vld [vmem:[%s436_s9 + $0x60] sm:$0xff]  ;;  %v496_v16 = vld [vmem:[%s436_s9 + $0x70] sm:$0xff] }
  0x43   : > { %493 = vst [vmem:[%s431_s10 + $0x30] sm:$0xff] %v492_v14  ;;  %495 = vst [vmem:[%s431_s10 + $0x38] sm:$0xff] %v494_v15 }
  0x44   : > { %497 = vst [vmem:[%s431_s10 + $0x40] sm:$0xff] %v496_v16 }
  0x45 PF: > { %p1381_p8 = scmp.ge.s32.totalorder %s1492_s28, 1  ;;  %p502_p9 = scmp.lt.s32.totalorder %s1492_s28, 3 }
  0x47   : > { %p503_p10 = pnand %p1381_p8, %p502_p9 }
  0x49   : > { %506 = sbr.rel (%p503_p10) target bundleno = 312 (0x138), region = 97 }
  0x50   : > { %v1384_v17 = vld [vmem:[%s2307_s2 + $0x2] ss:$0 sm:$0xff]  ;;  %v1382_v18 = vld [vmem:[%s2307_s2] ss:$0 sm:$0xff]  ;;  %v1494_v19 = vmov 0   ;;  %s509_s21 = sand.u32 1, %s1476_s24  }
  0x51   : > { %1453 = vset.pattern.permute.xlu1 %v1494_v19  ;;  %1452 = vset.pattern.permute.xlu0 %v1494_v19  ;;  %v1388_v20 = vld [vmem:[%s2309_s4] ss:$0 sm:$0xff]  ;;  %v1383_v21 = vld [vmem:[%s2307_s2 + $0x1] ss:$0 sm:$0xff]  ;;  %v1390_v22 = vld [vmem:[%s2309_s4 + $0x2] ss:$0 sm:$0xff] }
  0x52   : > { %657 = vperm.xlu1 %1453, %v1384_v17   ;;  %649 = vperm.xlu0 %1452, %v1382_v18   ;;  %v1389_v23 = vld [vmem:[%s2309_s4 + $0x1] ss:$0 sm:$0xff]  ;;  %v1385_v25 = vld [vmem:[%s2308_s3] ss:$0 sm:$0xff]  ;;  %v1387_v27 = vld [vmem:[%s2308_s3 + $0x2] ss:$0 sm:$0xff] }
  0x53   : > { %v1386_v24 = vld [vmem:[%s2308_s3 + $0x1] ss:$0 sm:$0xff]  ;;  %v1391_v26 = vld [vmem:[%s2310_s5] ss:$0 sm:$0xff]  ;;  %v1393_v28 = vld [vmem:[%s2310_s5 + $0x2] ss:$0 sm:$0xff] }
  0x54   : > { %v1392_v29 = vld [vmem:[%s2310_s5 + $0x1] ss:$0 sm:$0xff]  ;;  %s1783_s22 = smul.u32 576, %s509_s21  ;;  %vm993_vm0 = vcmask 523264  }
  0x55   : > { %s1785_s23 = smul.u32 72, %s509_s21 }
  0x56   : > { %934 = vperm.xlu1 %1453, %v1388_v20   ;;  %653 = vperm.xlu0 %1452, %v1383_v21   ;;  %s1788_s30 = scalar_lea.vmem [#allocation2], %s1783_s22  ;;  %s1913_s9 = scalar_lea.vmem [#allocation4], %s1783_s22 }
  0x57   : > { %v558_v30 = vld [vmem:[%s1788_s30] sm:$0xff]  ;;  %v559_v31 = vld [vmem:[%s1788_s30 + $0x8] sm:$0xff]  ;;  %v560_v32 = vld [vmem:[%s1788_s30 + $0x10] sm:$0xff]  ;;  %s1805_s24 = scalar_lea.vmem [#allocation3], %s1785_s23  ;;  %s2047_s10 = scalar_lea.vmem [#allocation5], %s1785_s23 }
  0x58   : > { %v561_v33 = vld [vmem:[%s1788_s30 + $0x18] sm:$0xff]  ;;  %v562_v34 = vld [vmem:[%s1788_s30 + $0x20] sm:$0xff]  ;;  %v563_v35 = vld [vmem:[%s1788_s30 + $0x28] sm:$0xff]  ;;  %s1406_s8 = smul.u32 (%p1574_p6), 192, %s1484_s26 }
  0x59   : > { %v564_v36 = vld [vmem:[%s1788_s30 + $0x30] sm:$0xff]  ;;  %v565_v37 = vld [vmem:[%s1788_s30 + $0x38] sm:$0xff]  ;;  %v566_v38 = vld [vmem:[%s1788_s30 + $0x40] sm:$0xff] }
  0x5a   : > { %942 = vperm.xlu1 %1453, %v1390_v22   ;;  %938 = vperm.xlu0 %1452, %v1389_v23   ;;  %v567_v39 = vld [vmem:[%s1788_s30 + $0x48] sm:$0xff]  ;;  %v908_v44 = vld [vmem:[%s1805_s24 + $0x10] sm:$0xff]  ;;  %v582_v45 = vld [vmem:[%s1788_s30 + $0xc0] sm:$0xff]  ;;  %s2135_s15 = scalar_lea.vmem (%p1574_p6), %s2311_s6, %s1406_s8 }
  0x5b   : > { %v906_v42 = vld [vmem:[%s1805_s24] sm:$0xff]  ;;  %v907_v43 = vld [vmem:[%s1805_s24 + $0x8] sm:$0xff]  ;;  %v569_v47 = vld [vmem:[%s1788_s30 + $0x58] sm:$0xff] }
  0x5c   : > { %v568_v46 = vld [vmem:[%s1788_s30 + $0x50] sm:$0xff]  ;;  %v570_v48 = vld [vmem:[%s1788_s30 + $0x60] sm:$0xff]  ;;  %v583_v49 = vld [vmem:[%s1788_s30 + $0xc8] sm:$0xff] }
  0x5d   : > { %v584_v50 = vld [vmem:[%s1788_s30 + $0xd0] sm:$0xff]  ;;  %v585_v51 = vld [vmem:[%s1788_s30 + $0xd8] sm:$0xff]  ;;  %v586_v52 = vld [vmem:[%s1788_s30 + $0xe0] sm:$0xff] }
  0x5e   : > { %755 = vperm.xlu1 %1453, %v1386_v24   ;;  %751 = vperm.xlu0 %1452, %v1385_v25   ;;  %v571_v53 = vld [vmem:[%s1788_s30 + $0x68] sm:$0xff]  ;;  %v572_v54 = vld [vmem:[%s1788_s30 + $0x70] sm:$0xff]  ;;  %v573_v55 = vld [vmem:[%s1788_s30 + $0x78] sm:$0xff] }
  0x5f   : > { %v587_v60 = vld [vmem:[%s1788_s30 + $0xe8] sm:$0xff]  ;;  %v588_v61 = vld [vmem:[%s1788_s30 + $0xf0] sm:$0xff]  ;;  %v589_v62 = vld [vmem:[%s1788_s30 + $0xf8] sm:$0xff] }
  0x60   : > { %v590_v3 = vld [vmem:[%s1788_s30 + $0x100] sm:$0xff]  ;;  %v591_v4 = vld [vmem:[%s1788_s30 + $0x108] sm:$0xff]  ;;  %v592_v5 = vld [vmem:[%s1788_s30 + $0x110] sm:$0xff] }
  0x61   : > { %v593_v12 = vld [vmem:[%s1788_s30 + $0x118] sm:$0xff]  ;;  %v594_v13 = vld [vmem:[%s1788_s30 + $0x120] sm:$0xff]  ;;  %v595_v14 = vld [vmem:[%s1788_s30 + $0x128] sm:$0xff] }
  0x62   : > { %973 = vperm.xlu1 %1453, %v1391_v26   ;;  %759 = vperm.xlu0 %1452, %v1387_v27   ;;  %v596_v22 = vld [vmem:[%s1788_s30 + $0x130] sm:$0xff]  ;;  %v597_v23 = vld [vmem:[%s1788_s30 + $0x138] sm:$0xff]  ;;  %v598_v24 = vld [vmem:[%s1788_s30 + $0x140] sm:$0xff] }
  0x63   : > { %v599_v26 = vld [vmem:[%s1788_s30 + $0x148] sm:$0xff]  ;;  %v600_v27 = vld [vmem:[%s1788_s30 + $0x150] sm:$0xff] }
  0x66   : > { %981 = vperm.xlu1 %1453, %v1393_v28   ;;  %977 = vperm.xlu0 %1452, %v1392_v29   ;;  %v601_v28 = vld [vmem:[%s1788_s30 + $0x158] sm:$0xff] }
  0xd1   : > { %v1800_v40 = vpop.permute.xlu1 %657  ;;  %v1802_v41 = vpop.permute.xlu0 %649 }
  0xd2   : > { %2316 = vst [vmem:[#allocation6_spill] sm:$0xff] %v1800_v40  ;;  %v1822_v56 = vmul.f32 %v1802_v41, %v558_v30  ;;  %v1825_v57 = vmul.f32 %v1802_v41, %v559_v31  ;;  %v1828_v58 = vmul.f32 %v1802_v41, %v560_v32  ;;  %v1831_v59 = vmul.f32 %v1802_v41, %v561_v33  ;;  %v602_v33 = vld [vmem:[%s1788_s30 + $0x160] sm:$0xff] }
  0xd3   : > { %v1837_v63 = vmul.f32 %v1802_v41, %v562_v34  ;;  %v1840_v0 = vmul.f32 %v1802_v41, %v563_v35  ;;  %v1843_v1 = vmul.f32 %v1802_v41, %v564_v36  ;;  %v1846_v2 = vmul.f32 %v1802_v41, %v565_v37  ;;  %v603_v34 = vld [vmem:[%s1788_s30 + $0x168] sm:$0xff]  ;;  %v604_v35 = vld [vmem:[%s1788_s30 + $0x170] sm:$0xff] }
  0xd4   : > { %v1852_v6 = vmul.f32 %v1802_v41, %v566_v38  ;;  %v1855_v7 = vmul.f32 %v1802_v41, %v567_v39  ;;  %v1858_v8 = vmul.f32 %v1802_v41, %v568_v46  ;;  %v1861_v9 = vmul.f32 %v1802_v41, %v569_v47 }
  0xd5   : > { %v935_v10 = vpop.permute.xlu1 %934  ;;  %v654_v11 = vpop.permute.xlu0 %653  ;;  %v1867_v15 = vmul.f32 %v1802_v41, %v570_v48  ;;  %v1870_v16 = vmul.f32 %v1802_v41, %v571_v53  ;;  %v1873_v17 = vmul.f32 %v1802_v41, %v572_v54  ;;  %v1876_v18 = vmul.f32 %v1802_v41, %v573_v55  ;;  %v912_v48 = vld [vmem:[%s1805_s24 + $0x30] sm:$0xff]  ;;  %v914_v54 = vld [vmem:[%s1805_s24 + $0x40] sm:$0xff] }
  0xd6   : > { %v1878_v19 = vmul.f32 %v935_v10, %v906_v42  ;;  %v1880_v20 = vmul.f32 %v935_v10, %v907_v43  ;;  %v1882_v21 = vmul.f32 %v935_v10, %v908_v44  ;;  %v684_v25 = vmul.f32 %v654_v11, %v582_v45  ;;  %v605_v42 = vld [vmem:[%s1788_s30 + $0x178] sm:$0xff] }
  0xd7   : > { %v685_v29 = vmul.f32 %v654_v11, %v583_v49  ;;  %v686_v30 = vmul.f32 %v654_v11, %v584_v50  ;;  %v687_v31 = vmul.f32 %v654_v11, %v585_v51  ;;  %v688_v32 = vmul.f32 %v654_v11, %v586_v52  ;;  %v913_v49 = vld [vmem:[%s1805_s24 + $0x38] sm:$0xff] }
  0xd8   : > { %2317 = vst [vmem:[#allocation7_spill] sm:$0xff] %v1880_v20  ;;  %2318 = vst [vmem:[#allocation8_spill] sm:$0xff] %v1882_v21  ;;  %v689_v36 = vmul.f32 %v654_v11, %v587_v60  ;;  %v690_v37 = vmul.f32 %v654_v11, %v588_v61  ;;  %v691_v38 = vmul.f32 %v654_v11, %v589_v62  ;;  %v909_v60 = vld [vmem:[%s1805_s24 + $0x18] sm:$0xff]  ;;  %v910_v61 = vld [vmem:[%s1805_s24 + $0x20] sm:$0xff] }
  0xd9   : > { %v692_v39 = vmul.f32 %v654_v11, %v590_v3  ;;  %v693_v43 = vmul.f32 %v654_v11, %v591_v4  ;;  %v694_v44 = vmul.f32 %v654_v11, %v592_v5  ;;  %v695_v45 = vmul.f32 %v654_v11, %v593_v12  ;;  %v943_v47 = vpop.permute.xlu1 %942  ;;  %v939_v55 = vpop.permute.xlu0 %938  ;;  %v911_v4 = vld [vmem:[%s1805_s24 + $0x28] sm:$0xff] }
  0xda   : > { %v696_v46 = vmul.f32 %v654_v11, %v594_v13  ;;  %v697_v50 = vmul.f32 %v654_v11, %v595_v14  ;;  %v698_v51 = vmul.f32 %v654_v11, %v596_v22  ;;  %v699_v52 = vmul.f32 %v654_v11, %v597_v23 }
  0xdb   : > { %v700_v53 = vmul.f32 %v654_v11, %v598_v24  ;;  %v701_v62 = vmul.f32 %v654_v11, %v599_v26  ;;  %v702_v3 = vmul.f32 %v654_v11, %v600_v27  ;;  %v703_v10 = vmul.f32 %v654_v11, %v601_v28 }
  0xdc   : > { %v704_v40 = vmul.f32 %v654_v11, %v602_v33  ;;  %v705_v5 = vmul.f32 %v654_v11, %v603_v34  ;;  %v706_v12 = vmul.f32 %v654_v11, %v604_v35  ;;  %v707_v13 = vmul.f32 %v654_v11, %v605_v42 }
  0xdd   : > { %v1900_v21 = vmul.f32 %v943_v47, %v912_v48  ;;  %v1902_v20 = vmul.f32 %v943_v47, %v913_v49  ;;  %v1904_v14 = vmul.f32 %v943_v47, %v914_v54  ;;  %v1906_v22 = vmul.f32 %v939_v55, %v909_v60  ;;  %v756_v24 = vpop.permute.xlu1 %755 }
  0xde   : > { %v1908_v23 = vmul.f32 %v939_v55, %v910_v61  ;;  %v1910_v26 = vmul.f32 %v939_v55, %v911_v4  ;;  %v786_v27 = vadd.f32 %v756_v24, %v684_v25  ;;  %v787_v28 = vadd.f32 %v756_v24, %v685_v29  ;;  %v574_v25 = vld [vmem:[%s1788_s30 + $0x80] sm:$0xff]  ;;  %v1937_v61 = vpop.permute.xlu0 %751 }
  0xdf   : > { %v788_v33 = vadd.f32 %v756_v24, %v686_v30  ;;  %v789_v34 = vadd.f32 %v756_v24, %v687_v31  ;;  %v790_v11 = vadd.f32 %v756_v24, %v688_v32  ;;  %v791_v35 = vadd.f32 %v756_v24, %v689_v36  ;;  %v575_v36 = vld [vmem:[%s1788_s30 + $0x88] sm:$0xff] }
  0xe0   : > { %v792_v42 = vadd.f32 %v756_v24, %v690_v37  ;;  %v793_v48 = vadd.f32 %v756_v24, %v691_v38  ;;  %v794_v49 = vadd.f32 %v756_v24, %v692_v39  ;;  %v795_v47 = vadd.f32 %v756_v24, %v693_v43  ;;  %858 = vst [vmem:[%s1913_s9 + $0xc0] sm:$0xff] %v786_v27  ;;  %v576_v37 = vld [vmem:[%s1788_s30 + $0x90] sm:$0xff]  ;;  %v577_v38 = vld [vmem:[%s1788_s30 + $0x98] sm:$0xff] }
  0xe1   : > { %v796_v54 = vadd.f32 %v756_v24, %v694_v44  ;;  %859 = vst [vmem:[%s1913_s9 + $0xc8] sm:$0xff] %v787_v28  ;;  %860 = vst [vmem:[%s1913_s9 + $0xd0] sm:$0xff] %v788_v33  ;;  %v797_v29 = vadd.f32 %v756_v24, %v695_v45  ;;  %v798_v30 = vadd.f32 %v756_v24, %v696_v46  ;;  %v578_v46 = vld [vmem:[%s1788_s30 + $0xa0] sm:$0xff] }
  0xe2   : > { %v799_v31 = vadd.f32 %v756_v24, %v697_v50  ;;  %v800_v32 = vadd.f32 %v756_v24, %v698_v51  ;;  %861 = vst [vmem:[%s1913_s9 + $0xd8] sm:$0xff] %v789_v34  ;;  %862 = vst [vmem:[%s1913_s9 + $0xe0] sm:$0xff] %v790_v11  ;;  %v801_v39 = vadd.f32 %v756_v24, %v699_v52  ;;  %v579_v50 = vld [vmem:[%s1788_s30 + $0xa8] sm:$0xff]  ;;  %v580_v51 = vld [vmem:[%s1788_s30 + $0xb0] sm:$0xff] }
  0xe3   : > { %863 = vst [vmem:[%s1913_s9 + $0xe8] sm:$0xff] %v791_v35  ;;  %864 = vst [vmem:[%s1913_s9 + $0xf0] sm:$0xff] %v792_v42  ;;  %v802_v43 = vadd.f32 %v756_v24, %v700_v53  ;;  %v803_v44 = vadd.f32 %v756_v24, %v701_v62  ;;  %v804_v45 = vadd.f32 %v756_v24, %v702_v3  ;;  %v581_v62 = vld [vmem:[%s1788_s30 + $0xb8] sm:$0xff] }
  0xe4   : > { %865 = vst [vmem:[%s1913_s9 + $0xf8] sm:$0xff] %v793_v48  ;;  %866 = vst [vmem:[%s1913_s9 + $0x100] sm:$0xff] %v794_v49  ;;  %v805_v55 = vadd.f32 %v756_v24, %v703_v10  ;;  %v806_v52 = vadd.f32 %v756_v24, %v704_v40  ;;  %v807_v60 = vadd.f32 %v756_v24, %v705_v5  ;;  %v609_v48 = vld [vmem:[%s1788_s30 + $0x198] sm:$0xff]  ;;  %v610_v49 = vld [vmem:[%s1788_s30 + $0x1a0] sm:$0xff] }
  0xe5   : > { %867 = vst [vmem:[%s1913_s9 + $0x108] sm:$0xff] %v795_v47  ;;  %868 = vst [vmem:[%s1913_s9 + $0x110] sm:$0xff] %v796_v54  ;;  %v808_v53 = vadd.f32 %v756_v24, %v706_v12  ;;  %v809_v3 = vadd.f32 %v756_v24, %v707_v13  ;;  %v676_v40 = vmul.f32 %v1802_v41, %v574_v25  ;;  %v612_v25 = vld [vmem:[%s1788_s30 + $0x1b0] sm:$0xff] }
  0xe6   : > { %869 = vst [vmem:[%s1913_s9 + $0x118] sm:$0xff] %v797_v29  ;;  %870 = vst [vmem:[%s1913_s9 + $0x120] sm:$0xff] %v798_v30  ;;  %v677_v10 = vmul.f32 %v1802_v41, %v575_v36  ;;  %v678_v4 = vmul.f32 %v1802_v41, %v576_v37  ;;  %v679_v5 = vmul.f32 %v1802_v41, %v577_v38  ;;  %v614_v29 = vld [vmem:[%s1788_s30 + $0x1c0] sm:$0xff]  ;;  %v615_v37 = vld [vmem:[%s1788_s30 + $0x1c8] sm:$0xff] }
  0xe7   : > { %871 = vst [vmem:[%s1913_s9 + $0x128] sm:$0xff] %v799_v31  ;;  %872 = vst [vmem:[%s1913_s9 + $0x130] sm:$0xff] %v800_v32  ;;  %v680_v12 = vmul.f32 %v1802_v41, %v578_v46  ;;  %v681_v13 = vmul.f32 %v1802_v41, %v579_v50  ;;  %v682_v24 = vmul.f32 %v1802_v41, %v580_v51  ;;  %v616_v38 = vld [vmem:[%s1788_s30 + $0x1d0] sm:$0xff] }
  0xe8   : > { %873 = vst [vmem:[%s1913_s9 + $0x138] sm:$0xff] %v801_v39  ;;  %874 = vst [vmem:[%s1913_s9 + $0x140] sm:$0xff] %v802_v43  ;;  %v683_v27 = vmul.f32 %v1802_v41, %v581_v62  ;;  %v762_v28 = vadd.f32 %v1937_v61, %v1822_v56  ;;  %v763_v33 = vadd.f32 %v1937_v61, %v1825_v57  ;;  %v617_v39 = vld [vmem:[%s1788_s30 + $0x1d8] sm:$0xff]  ;;  %v2320_v50 = vld [vmem:[#allocation8_spill] sm:$0xff] }
  0xe9   : > { %875 = vst [vmem:[%s1913_s9 + $0x148] sm:$0xff] %v803_v44  ;;  %876 = vst [vmem:[%s1913_s9 + $0x150] sm:$0xff] %v804_v45  ;;  %v764_v34 = vadd.f32 %v1937_v61, %v1828_v58  ;;  %v765_v11 = vadd.f32 %v1937_v61, %v1831_v59  ;;  %v766_v35 = vadd.f32 %v1937_v61, %v1837_v63  ;;  %v2319_v45 = vld [vmem:[#allocation7_spill] sm:$0xff] }
  0xea   : > { %877 = vst [vmem:[%s1913_s9 + $0x158] sm:$0xff] %v805_v55  ;;  %878 = vst [vmem:[%s1913_s9 + $0x160] sm:$0xff] %v806_v52  ;;  %v767_v41 = vadd.f32 %v1937_v61, %v1840_v0  ;;  %v768_v56 = vadd.f32 %v1937_v61, %v1843_v1  ;;  %v769_v57 = vadd.f32 %v1937_v61, %v1846_v2  ;;  %v606_v0 = vld [vmem:[%s1788_s30 + $0x180] sm:$0xff]  ;;  %v607_v1 = vld [vmem:[%s1788_s30 + $0x188] sm:$0xff] }
  0xeb   : > { %879 = vst [vmem:[%s1913_s9 + $0x168] sm:$0xff] %v807_v60  ;;  %880 = vst [vmem:[%s1913_s9 + $0x170] sm:$0xff] %v808_v53  ;;  %v770_v58 = vadd.f32 %v1937_v61, %v1852_v6  ;;  %v771_v59 = vadd.f32 %v1937_v61, %v1855_v7  ;;  %v772_v63 = vadd.f32 %v1937_v61, %v1858_v8  ;;  %v608_v2 = vld [vmem:[%s1788_s30 + $0x190] sm:$0xff]  ;;  %v618_v55 = vld [vmem:[%s1788_s30 + $0x1e0] sm:$0xff] }
  0xec   : > { %881 = vst [vmem:[%s1913_s9 + $0x178] sm:$0xff] %v809_v3  ;;  %834 = vst [vmem:[%s1913_s9] sm:$0xff] %v762_v28  ;;  %v773_v42 = vadd.f32 %v1937_v61, %v1861_v9  ;;  %v774_v6 = vadd.f32 %v1937_v61, %v1867_v15  ;;  %v775_v7 = vadd.f32 %v1937_v61, %v1870_v16  ;;  %v974_v9 = vpop.permute.xlu1 %973  ;;  %v611_v15 = vld [vmem:[%s1788_s30 + $0x1a8] sm:$0xff]  ;;  %v620_v60 = vld [vmem:[%s1788_s30 + $0x1f0] sm:$0xff] }
  0xed   : > { %835 = vst [vmem:[%s1913_s9 + $0x8] sm:$0xff] %v763_v33  ;;  %836 = vst [vmem:[%s1913_s9 + $0x10] sm:$0xff] %v764_v34  ;;  %v776_v8 = vadd.f32 %v1937_v61, %v1873_v17  ;;  %v777_v16 = vadd.f32 %v1937_v61, %v1876_v18  ;;  %v778_v47 = vadd.f32 %v1937_v61, %v676_v40  ;;  %v613_v18 = vld [vmem:[%s1788_s30 + $0x1b8] sm:$0xff]  ;;  %v619_v52 = vld [vmem:[%s1788_s30 + $0x1e8] sm:$0xff] }
  0xee   : > { %837 = vst [vmem:[%s1913_s9 + $0x18] sm:$0xff] %v765_v11  ;;  %838 = vst [vmem:[%s1913_s9 + $0x20] sm:$0xff] %v766_v35  ;;  %v779_v17 = vadd.f32 %v1937_v61, %v677_v10  ;;  %v780_v54 = vadd.f32 %v1937_v61, %v678_v4  ;;  %v781_v30 = vadd.f32 %v1937_v61, %v679_v5  ;;  %v621_v53 = vld [vmem:[%s1788_s30 + $0x1f8] sm:$0xff]  ;;  %v623_v62 = vld [vmem:[%s1788_s30 + $0x208] sm:$0xff] }
  0xef   : > { %839 = vst [vmem:[%s1913_s9 + $0x28] sm:$0xff] %v767_v41  ;;  %840 = vst [vmem:[%s1913_s9 + $0x30] sm:$0xff] %v768_v56  ;;  %v782_v31 = vadd.f32 %v1937_v61, %v680_v12  ;;  %v783_v32 = vadd.f32 %v1937_v61, %v681_v13  ;;  %v784_v36 = vadd.f32 %v1937_v61, %v682_v24  ;;  %v624_v5 = vld [vmem:[%s1788_s30 + $0x210] sm:$0xff]  ;;  %v625_v12 = vld [vmem:[%s1788_s30 + $0x218] sm:$0xff] }
  0xf0   : > { %841 = vst [vmem:[%s1913_s9 + $0x38] sm:$0xff] %v769_v57  ;;  %842 = vst [vmem:[%s1913_s9 + $0x40] sm:$0xff] %v770_v58  ;;  %v785_v43 = vadd.f32 %v1937_v61, %v683_v27  ;;  %v984_v44 = vadd.f32 %v974_v9, %v1878_v19  ;;  %v985_v46 = vadd.f32 %v974_v9, %v2319_v45  ;;  %v622_v61 = vld [vmem:[%s1788_s30 + $0x200] sm:$0xff]  ;;  %v627_v34 = vld [vmem:[%s1788_s30 + $0x228] sm:$0xff]  ;;  %v982_v45 = vpop.permute.xlu1 %981 }
  0xf1   : > { %843 = vst [vmem:[%s1913_s9 + $0x48] sm:$0xff] %v771_v59  ;;  %844 = vst [vmem:[%s1913_s9 + $0x50] sm:$0xff] %v772_v63  ;;  %v986_v51 = vadd.f32 %v974_v9, %v2320_v50  ;;  %v2321_v19 = vld [vmem:[#allocation6_spill] sm:$0xff]  ;;  %v628_v11 = vld [vmem:[%s1788_s30 + $0x230] sm:$0xff]  ;;  %v760_v59 = vpop.permute.xlu0 %759 }
  0xf2   : > { %845 = vst [vmem:[%s1913_s9 + $0x58] sm:$0xff] %v773_v42  ;;  %846 = vst [vmem:[%s1913_s9 + $0x60] sm:$0xff] %v774_v6  ;;  %v708_v3 = vmul.f32 %v2321_v19, %v606_v0  ;;  %v709_v40 = vmul.f32 %v2321_v19, %v607_v1  ;;  %v710_v10 = vmul.f32 %v2321_v19, %v608_v2  ;;  %v626_v13 = vld [vmem:[%s1788_s30 + $0x220] sm:$0xff]  ;;  %v629_v35 = vld [vmem:[%s1788_s30 + $0x238] sm:$0xff] }
  0xf3   : > { %847 = vst [vmem:[%s1913_s9 + $0x68] sm:$0xff] %v775_v7  ;;  %848 = vst [vmem:[%s1913_s9 + $0x70] sm:$0xff] %v776_v8  ;;  %v711_v4 = vmul.f32 %v2321_v19, %v609_v48  ;;  %v712_v24 = vmul.f32 %v2321_v19, %v610_v49  ;;  %v713_v27 = vmul.f32 %v2321_v19, %v611_v15 }
  0xf4   : > { %849 = vst [vmem:[%s1913_s9 + $0x78] sm:$0xff] %v777_v16  ;;  %850 = vst [vmem:[%s1913_s9 + $0x80] sm:$0xff] %v778_v47  ;;  %v714_v28 = vmul.f32 %v2321_v19, %v612_v25  ;;  %v715_v33 = vmul.f32 %v2321_v19, %v613_v18  ;;  %v716_v41 = vmul.f32 %v2321_v19, %v614_v29 }
  0xf5   : > { %851 = vst [vmem:[%s1913_s9 + $0x88] sm:$0xff] %v779_v17  ;;  %852 = vst [vmem:[%s1913_s9 + $0x90] sm:$0xff] %v780_v54  ;;  %v717_v56 = vmul.f32 %v2321_v19, %v615_v37  ;;  %v718_v57 = vmul.f32 %v2321_v19, %v616_v38  ;;  %v719_v58 = vmul.f32 %v2321_v19, %v617_v39 }
  0xf6   : > { %853 = vst [vmem:[%s1913_s9 + $0x98] sm:$0xff] %v781_v30  ;;  %854 = vst [vmem:[%s1913_s9 + $0xa0] sm:$0xff] %v782_v31  ;;  %v720_v63 = vmul.f32 %v2321_v19, %v618_v55  ;;  %v721_v0 = vmul.f32 %v2321_v19, %v619_v52  ;;  %v722_v1 = vmul.f32 %v2321_v19, %v620_v60 }
  0xf7   : > { %855 = vst [vmem:[%s1913_s9 + $0xa8] sm:$0xff] %v783_v32  ;;  %856 = vst [vmem:[%s1913_s9 + $0xb0] sm:$0xff] %v784_v36  ;;  %v723_v2 = vmul.f32 %v2321_v19, %v621_v53  ;;  %v724_v42 = vmul.f32 %v2321_v19, %v622_v61  ;;  %v725_v6 = vmul.f32 %v2321_v19, %v623_v62 }
  0xf8   : > { %857 = vst [vmem:[%s1913_s9 + $0xb8] sm:$0xff] %v785_v43  ;;  %994 = vst.msk [vmem:[%s2047_s10] sm:$0xff] %vm993_vm0, %v984_v44  ;;  %v726_v7 = vmul.f32 %v2321_v19, %v624_v5  ;;  %v727_v8 = vmul.f32 %v2321_v19, %v625_v12  ;;  %v728_v9 = vmul.f32 %v2321_v19, %v626_v13  ;;  %v1044_v12 = vld [vmem:[%s1913_s9 + $0x30] sm:$0xff] (%p1574_p6)  ;;  %v1046_v13 = vld [vmem:[%s1913_s9 + $0x38] sm:$0xff] (%p1574_p6) }
  0xf9   : > { %995 = vst.msk [vmem:[%s2047_s10 + $0x8] sm:$0xff] %vm993_vm0, %v985_v46  ;;  %996 = vst.msk [vmem:[%s2047_s10 + $0x10] sm:$0xff] %vm993_vm0, %v986_v51  ;;  %v729_v48 = vmul.f32 %v2321_v19, %v627_v34  ;;  %v730_v49 = vmul.f32 %v2321_v19, %v628_v11  ;;  %v731_v15 = vmul.f32 %v2321_v19, %v629_v35  ;;  %v978_v46 = vpop.permute.xlu0 %977  ;;  %v1056_v34 = vld [vmem:[%s1913_s9 + $0x60] sm:$0xff] (%p1574_p6) }
  0xfa   : > { %v810_v16 = vadd.f32 %v760_v59, %v708_v3  ;;  %v811_v47 = vadd.f32 %v760_v59, %v709_v40  ;;  %v812_v17 = vadd.f32 %v760_v59, %v710_v10  ;;  %v813_v54 = vadd.f32 %v760_v59, %v711_v4  ;;  %1045 = vst [vmem:[%s2135_s15 + $0x30] sm:$0xff] (%p1574_p6), %v1044_v12  ;;  %v1058_v11 = vld [vmem:[%s1913_s9 + $0x68] sm:$0xff] (%p1574_p6)  ;;  %v1060_v35 = vld [vmem:[%s1913_s9 + $0x70] sm:$0xff] (%p1574_p6) }
  0xfb   : > { %v814_v25 = vadd.f32 %v760_v59, %v712_v24  ;;  %v815_v18 = vadd.f32 %v760_v59, %v713_v27  ;;  %v816_v29 = vadd.f32 %v760_v59, %v714_v28  ;;  %v817_v30 = vadd.f32 %v760_v59, %v715_v33  ;;  %v1048_v24 = vld [vmem:[%s1913_s9 + $0x40] sm:$0xff] (%p1574_p6)  ;;  %1047 = vst [vmem:[%s2135_s15 + $0x38] sm:$0xff] (%p1574_p6), %v1046_v13  ;;  %v1050_v27 = vld [vmem:[%s1913_s9 + $0x48] sm:$0xff] (%p1574_p6)  ;;  %v1052_v28 = vld [vmem:[%s1913_s9 + $0x50] sm:$0xff] (%p1574_p6) }
  0xfc   : > { %v818_v31 = vadd.f32 %v760_v59, %v716_v41  ;;  %v819_v32 = vadd.f32 %v760_v59, %v717_v56  ;;  %v820_v36 = vadd.f32 %v760_v59, %v718_v57  ;;  %v821_v37 = vadd.f32 %v760_v59, %v719_v58  ;;  %882 = vst [vmem:[%s1913_s9 + $0x180] sm:$0xff] %v810_v16  ;;  %v1054_v33 = vld [vmem:[%s1913_s9 + $0x58] sm:$0xff] (%p1574_p6)  ;;  %v1064_v56 = vld [vmem:[%s1913_s9 + $0x80] sm:$0xff] (%p1574_p6)  ;;  %v1066_v57 = vld [vmem:[%s1913_s9 + $0x88] sm:$0xff] (%p1574_p6) }
  0xfd   : > { %883 = vst [vmem:[%s1913_s9 + $0x188] sm:$0xff] %v811_v47  ;;  %884 = vst [vmem:[%s1913_s9 + $0x190] sm:$0xff] %v812_v17  ;;  %v822_v38 = vadd.f32 %v760_v59, %v720_v63  ;;  %v823_v39 = vadd.f32 %v760_v59, %v721_v0  ;;  %v824_v43 = vadd.f32 %v760_v59, %v722_v1  ;;  %v1062_v41 = vld [vmem:[%s1913_s9 + $0x78] sm:$0xff] (%p1574_p6)  ;;  %v1068_v58 = vld [vmem:[%s1913_s9 + $0x90] sm:$0xff] (%p1574_p6) }
  0xfe   : > { %885 = vst [vmem:[%s1913_s9 + $0x198] sm:$0xff] %v813_v54  ;;  %v825_v44 = vadd.f32 %v760_v59, %v723_v2  ;;  %886 = vst [vmem:[%s1913_s9 + $0x1a0] sm:$0xff] %v814_v25  ;;  %v826_v50 = vadd.f32 %v760_v59, %v724_v42  ;;  %v827_v51 = vadd.f32 %v760_v59, %v725_v6  ;;  %v1072_v63 = vld [vmem:[%s1913_s9 + $0xa0] sm:$0xff] (%p1574_p6)  ;;  %v1074_v0 = vld [vmem:[%s1913_s9 + $0xa8] sm:$0xff] (%p1574_p6) }
  0xff   : > { %887 = vst [vmem:[%s1913_s9 + $0x1a8] sm:$0xff] %v815_v18  ;;  %888 = vst [vmem:[%s1913_s9 + $0x1b0] sm:$0xff] %v816_v29  ;;  %v828_v55 = vadd.f32 %v760_v59, %v726_v7  ;;  %v829_v52 = vadd.f32 %v760_v59, %v727_v8  ;;  %v830_v60 = vadd.f32 %v760_v59, %v728_v9  ;;  %v1076_v1 = vld [vmem:[%s1913_s9 + $0xb0] sm:$0xff] (%p1574_p6)  ;;  %v1078_v2 = vld [vmem:[%s1913_s9 + $0xb8] sm:$0xff] (%p1574_p6) }
 0x100   : > { %889 = vst [vmem:[%s1913_s9 + $0x1b8] sm:$0xff] %v817_v30  ;;  %890 = vst [vmem:[%s1913_s9 + $0x1c0] sm:$0xff] %v818_v31  ;;  %v831_v53 = vadd.f32 %v760_v59, %v729_v48  ;;  %v832_v61 = vadd.f32 %v760_v59, %v730_v49  ;;  %v833_v62 = vadd.f32 %v760_v59, %v731_v15  ;;  %v1070_v59 = vld [vmem:[%s1913_s9 + $0x98] sm:$0xff] (%p1574_p6)  ;;  %v1080_v42 = vld [vmem:[%s1913_s9 + $0xc0] sm:$0xff] (%p1574_p6) }
 0x101   : > { %891 = vst [vmem:[%s1913_s9 + $0x1c8] sm:$0xff] %v819_v32  ;;  %892 = vst [vmem:[%s1913_s9 + $0x1d0] sm:$0xff] %v820_v36  ;;  %v990_v19 = vadd.f32 %v982_v45, %v1900_v21  ;;  %v991_v3 = vadd.f32 %v982_v45, %v1902_v20  ;;  %v992_v40 = vadd.f32 %v982_v45, %v1904_v14  ;;  %v1032_v20 = vld [vmem:[%s1913_s9] sm:$0xff] (%p1574_p6)  ;;  %v1034_v21 = vld [vmem:[%s1913_s9 + $0x8] sm:$0xff] (%p1574_p6) }
 0x102   : > { %893 = vst [vmem:[%s1913_s9 + $0x1d8] sm:$0xff] %v821_v37  ;;  %894 = vst [vmem:[%s1913_s9 + $0x1e0] sm:$0xff] %v822_v38  ;;  %v987_v10 = vadd.f32 %v978_v46, %v1906_v22  ;;  %v988_v4 = vadd.f32 %v978_v46, %v1908_v23  ;;  %v989_v5 = vadd.f32 %v978_v46, %v1910_v26  ;;  %v1036_v14 = vld [vmem:[%s1913_s9 + $0x10] sm:$0xff] (%p1574_p6)  ;;  %v1038_v22 = vld [vmem:[%s1913_s9 + $0x18] sm:$0xff] (%p1574_p6) }
 0x103   : > { %895 = vst [vmem:[%s1913_s9 + $0x1e8] sm:$0xff] %v823_v39  ;;  %896 = vst [vmem:[%s1913_s9 + $0x1f0] sm:$0xff] %v824_v43  ;;  %v1040_v23 = vld [vmem:[%s1913_s9 + $0x20] sm:$0xff] (%p1574_p6)  ;;  %v1042_v26 = vld [vmem:[%s1913_s9 + $0x28] sm:$0xff] (%p1574_p6) }
 0x104   : > { %897 = vst [vmem:[%s1913_s9 + $0x1f8] sm:$0xff] %v825_v44  ;;  %898 = vst [vmem:[%s1913_s9 + $0x200] sm:$0xff] %v826_v50  ;;  %v1082_v6 = vld [vmem:[%s1913_s9 + $0xc8] sm:$0xff] (%p1574_p6)  ;;  %v1084_v7 = vld [vmem:[%s1913_s9 + $0xd0] sm:$0xff] (%p1574_p6) }
 0x105   : > { %899 = vst [vmem:[%s1913_s9 + $0x208] sm:$0xff] %v827_v51  ;;  %900 = vst [vmem:[%s1913_s9 + $0x210] sm:$0xff] %v828_v55  ;;  %1013 = sbr.rel (!%p1574_p6) target bundleno = 303 (0x12f), region = 109  ;;  %v1086_v8 = vld [vmem:[%s1913_s9 + $0xd8] sm:$0xff] (%p1574_p6)  ;;  %v1088_v9 = vld [vmem:[%s1913_s9 + $0xe0] sm:$0xff] (%p1574_p6) }
 0x106   : > { %901 = vst [vmem:[%s1913_s9 + $0x218] sm:$0xff] %v829_v52  ;;  %902 = vst [vmem:[%s1913_s9 + $0x220] sm:$0xff] %v830_v60  ;;  %v1090_v48 = vld [vmem:[%s1913_s9 + $0xe8] sm:$0xff] (%p1574_p6)  ;;  %v1092_v49 = vld [vmem:[%s1913_s9 + $0xf0] sm:$0xff] (%p1574_p6) }
 0x107   : > { %903 = vst [vmem:[%s1913_s9 + $0x228] sm:$0xff] %v831_v53  ;;  %904 = vst [vmem:[%s1913_s9 + $0x230] sm:$0xff] %v832_v61  ;;  %v1094_v15 = vld [vmem:[%s1913_s9 + $0xf8] sm:$0xff] (%p1574_p6)  ;;  %v1096_v16 = vld [vmem:[%s1913_s9 + $0x100] sm:$0xff] (%p1574_p6) }
 0x108   : > { %905 = vst [vmem:[%s1913_s9 + $0x238] sm:$0xff] %v833_v62  ;;  %1000 = vst.msk [vmem:[%s2047_s10 + $0x30] sm:$0xff] %vm993_vm0, %v990_v19  ;;  %v1098_v47 = vld [vmem:[%s1913_s9 + $0x108] sm:$0xff] (%p1574_p6)  ;;  %v1100_v17 = vld [vmem:[%s1913_s9 + $0x110] sm:$0xff] (%p1574_p6) }
 0x109   : > { %1001 = vst.msk [vmem:[%s2047_s10 + $0x38] sm:$0xff] %vm993_vm0, %v991_v3  ;;  %1002 = vst.msk [vmem:[%s2047_s10 + $0x40] sm:$0xff] %vm993_vm0, %v992_v40  ;;  %v1102_v54 = vld [vmem:[%s1913_s9 + $0x118] sm:$0xff] (%p1574_p6)  ;;  %v1104_v25 = vld [vmem:[%s1913_s9 + $0x120] sm:$0xff] (%p1574_p6) }
 0x10a   : > { %997 = vst.msk [vmem:[%s2047_s10 + $0x18] sm:$0xff] %vm993_vm0, %v987_v10  ;;  %998 = vst.msk [vmem:[%s2047_s10 + $0x20] sm:$0xff] %vm993_vm0, %v988_v4  ;;  %v1106_v18 = vld [vmem:[%s1913_s9 + $0x128] sm:$0xff] (%p1574_p6)  ;;  %v1108_v29 = vld [vmem:[%s1913_s9 + $0x130] sm:$0xff] (%p1574_p6) }
 0x10b   : > { %999 = vst.msk [vmem:[%s2047_s10 + $0x28] sm:$0xff] %vm993_vm0, %v989_v5  ;;  %1033 = vst [vmem:[%s2135_s15] sm:$0xff] (%p1574_p6), %v1032_v20  ;;  %v1110_v30 = vld [vmem:[%s1913_s9 + $0x138] sm:$0xff] (%p1574_p6)  ;;  %v1112_v31 = vld [vmem:[%s1913_s9 + $0x140] sm:$0xff] (%p1574_p6) }
 0x10c   : > { %1035 = vst [vmem:[%s2135_s15 + $0x8] sm:$0xff] %v1034_v21  ;;  %1037 = vst [vmem:[%s2135_s15 + $0x10] sm:$0xff] %v1036_v14  ;;  %v1114_v32 = vld [vmem:[%s1913_s9 + $0x148] sm:$0xff]  ;;  %v1116_v36 = vld [vmem:[%s1913_s9 + $0x150] sm:$0xff] }
 0x10d   : > { %1039 = vst [vmem:[%s2135_s15 + $0x18] sm:$0xff] %v1038_v22  ;;  %1041 = vst [vmem:[%s2135_s15 + $0x20] sm:$0xff] %v1040_v23  ;;  %v1118_v37 = vld [vmem:[%s1913_s9 + $0x158] sm:$0xff]  ;;  %v1120_v38 = vld [vmem:[%s1913_s9 + $0x160] sm:$0xff] }
 0x10e   : > { %1043 = vst [vmem:[%s2135_s15 + $0x28] sm:$0xff] %v1042_v26  ;;  %1049 = vst [vmem:[%s2135_s15 + $0x40] sm:$0xff] %v1048_v24  ;;  %v1122_v39 = vld [vmem:[%s1913_s9 + $0x168] sm:$0xff]  ;;  %v1124_v43 = vld [vmem:[%s1913_s9 + $0x170] sm:$0xff] }
 0x10f   : > { %1051 = vst [vmem:[%s2135_s15 + $0x48] sm:$0xff] %v1050_v27  ;;  %1053 = vst [vmem:[%s2135_s15 + $0x50] sm:$0xff] %v1052_v28  ;;  %v1126_v44 = vld [vmem:[%s1913_s9 + $0x178] sm:$0xff]  ;;  %v1128_v45 = vld [vmem:[%s1913_s9 + $0x180] sm:$0xff] }
 0x110   : > { %1055 = vst [vmem:[%s2135_s15 + $0x58] sm:$0xff] %v1054_v33  ;;  %1057 = vst [vmem:[%s2135_s15 + $0x60] sm:$0xff] %v1056_v34  ;;  %v1130_v46 = vld [vmem:[%s1913_s9 + $0x188] sm:$0xff]  ;;  %v1132_v50 = vld [vmem:[%s1913_s9 + $0x190] sm:$0xff] }
 0x111   : > { %1059 = vst [vmem:[%s2135_s15 + $0x68] sm:$0xff] %v1058_v11  ;;  %1061 = vst [vmem:[%s2135_s15 + $0x70] sm:$0xff] %v1060_v35  ;;  %v1134_v51 = vld [vmem:[%s1913_s9 + $0x198] sm:$0xff]  ;;  %v1136_v55 = vld [vmem:[%s1913_s9 + $0x1a0] sm:$0xff] }
 0x112   : > { %1063 = vst [vmem:[%s2135_s15 + $0x78] sm:$0xff] %v1062_v41  ;;  %1065 = vst [vmem:[%s2135_s15 + $0x80] sm:$0xff] %v1064_v56  ;;  %v1138_v52 = vld [vmem:[%s1913_s9 + $0x1a8] sm:$0xff]  ;;  %v1140_v60 = vld [vmem:[%s1913_s9 + $0x1b0] sm:$0xff] }
 0x113   : > { %1067 = vst [vmem:[%s2135_s15 + $0x88] sm:$0xff] %v1066_v57  ;;  %1069 = vst [vmem:[%s2135_s15 + $0x90] sm:$0xff] %v1068_v58  ;;  %v1142_v53 = vld [vmem:[%s1913_s9 + $0x1b8] sm:$0xff]  ;;  %v1144_v61 = vld [vmem:[%s1913_s9 + $0x1c0] sm:$0xff] }
 0x114   : > { %1071 = vst [vmem:[%s2135_s15 + $0x98] sm:$0xff] %v1070_v59  ;;  %1073 = vst [vmem:[%s2135_s15 + $0xa0] sm:$0xff] %v1072_v63  ;;  %v1146_v62 = vld [vmem:[%s1913_s9 + $0x1c8] sm:$0xff]  ;;  %v1148_v19 = vld [vmem:[%s1913_s9 + $0x1d0] sm:$0xff] }
 0x115   : > { %1075 = vst [vmem:[%s2135_s15 + $0xa8] sm:$0xff] %v1074_v0  ;;  %1077 = vst [vmem:[%s2135_s15 + $0xb0] sm:$0xff] %v1076_v1  ;;  %v1150_v3 = vld [vmem:[%s1913_s9 + $0x1d8] sm:$0xff]  ;;  %v1152_v40 = vld [vmem:[%s1913_s9 + $0x1e0] sm:$0xff] }
 0x116   : > { %1079 = vst [vmem:[%s2135_s15 + $0xb8] sm:$0xff] %v1078_v2  ;;  %1081 = vst [vmem:[%s2135_s15 + $0x180] sm:$0xff] %v1080_v42  ;;  %v1154_v10 = vld [vmem:[%s1913_s9 + $0x1e8] sm:$0xff]  ;;  %v1156_v4 = vld [vmem:[%s1913_s9 + $0x1f0] sm:$0xff] }
 0x117   : > { %1083 = vst [vmem:[%s2135_s15 + $0x188] sm:$0xff] %v1082_v6  ;;  %1085 = vst [vmem:[%s2135_s15 + $0x190] sm:$0xff] %v1084_v7  ;;  %v1158_v5 = vld [vmem:[%s1913_s9 + $0x1f8] sm:$0xff]  ;;  %v1160_v20 = vld [vmem:[%s1913_s9 + $0x200] sm:$0xff] }
 0x118   : > { %1087 = vst [vmem:[%s2135_s15 + $0x198] sm:$0xff] %v1086_v8  ;;  %1089 = vst [vmem:[%s2135_s15 + $0x1a0] sm:$0xff] %v1088_v9  ;;  %v1162_v21 = vld [vmem:[%s1913_s9 + $0x208] sm:$0xff]  ;;  %v1164_v14 = vld [vmem:[%s1913_s9 + $0x210] sm:$0xff] }
 0x119   : > { %1091 = vst [vmem:[%s2135_s15 + $0x1a8] sm:$0xff] %v1090_v48  ;;  %1093 = vst [vmem:[%s2135_s15 + $0x1b0] sm:$0xff] %v1092_v49  ;;  %v1166_v22 = vld [vmem:[%s1913_s9 + $0x218] sm:$0xff]  ;;  %v1168_v23 = vld [vmem:[%s1913_s9 + $0x220] sm:$0xff] }
 0x11a   : > { %1095 = vst [vmem:[%s2135_s15 + $0x1b8] sm:$0xff] %v1094_v15  ;;  %1097 = vst [vmem:[%s2135_s15 + $0x1c0] sm:$0xff] %v1096_v16  ;;  %v1170_v26 = vld [vmem:[%s1913_s9 + $0x228] sm:$0xff]  ;;  %v1172_v12 = vld [vmem:[%s1913_s9 + $0x230] sm:$0xff] }
 0x11b   : > { %1099 = vst [vmem:[%s2135_s15 + $0x1c8] sm:$0xff] %v1098_v47  ;;  %1101 = vst [vmem:[%s2135_s15 + $0x1d0] sm:$0xff] %v1100_v17  ;;  %v1174_v13 = vld [vmem:[%s1913_s9 + $0x238] sm:$0xff] }
 0x11c   : > { %1103 = vst [vmem:[%s2135_s15 + $0x1d8] sm:$0xff] %v1102_v54  ;;  %1105 = vst [vmem:[%s2135_s15 + $0x1e0] sm:$0xff] %v1104_v25 }
 0x11d   : > { %1107 = vst [vmem:[%s2135_s15 + $0x1e8] sm:$0xff] %v1106_v18  ;;  %1109 = vst [vmem:[%s2135_s15 + $0x1f0] sm:$0xff] %v1108_v29 }
 0x11e   : > { %1111 = vst [vmem:[%s2135_s15 + $0x1f8] sm:$0xff] %v1110_v30  ;;  %1113 = vst [vmem:[%s2135_s15 + $0x200] sm:$0xff] %v1112_v31 }
 0x11f   : > { %1115 = vst [vmem:[%s2135_s15 + $0x208] sm:$0xff] %v1114_v32  ;;  %1117 = vst [vmem:[%s2135_s15 + $0x210] sm:$0xff] %v1116_v36 }
 0x120   : > { %1119 = vst [vmem:[%s2135_s15 + $0x218] sm:$0xff] %v1118_v37  ;;  %1121 = vst [vmem:[%s2135_s15 + $0x220] sm:$0xff] %v1120_v38 }
 0x121   : > { %1123 = vst [vmem:[%s2135_s15 + $0x228] sm:$0xff] %v1122_v39  ;;  %1125 = vst [vmem:[%s2135_s15 + $0x230] sm:$0xff] %v1124_v43 }
 0x122   : > { %1127 = vst [vmem:[%s2135_s15 + $0x238] sm:$0xff] %v1126_v44  ;;  %1129 = vst [vmem:[%s2135_s15 + $0x300] sm:$0xff] %v1128_v45 }
 0x123   : > { %1131 = vst [vmem:[%s2135_s15 + $0x308] sm:$0xff] %v1130_v46  ;;  %1133 = vst [vmem:[%s2135_s15 + $0x310] sm:$0xff] %v1132_v50 }
 0x124   : > { %1135 = vst [vmem:[%s2135_s15 + $0x318] sm:$0xff] %v1134_v51  ;;  %1137 = vst [vmem:[%s2135_s15 + $0x320] sm:$0xff] %v1136_v55 }
 0x125   : > { %1139 = vst [vmem:[%s2135_s15 + $0x328] sm:$0xff] %v1138_v52  ;;  %1141 = vst [vmem:[%s2135_s15 + $0x330] sm:$0xff] %v1140_v60 }
 0x126   : > { %1143 = vst [vmem:[%s2135_s15 + $0x338] sm:$0xff] %v1142_v53  ;;  %1145 = vst [vmem:[%s2135_s15 + $0x340] sm:$0xff] %v1144_v61 }
 0x127   : > { %1147 = vst [vmem:[%s2135_s15 + $0x348] sm:$0xff] %v1146_v62  ;;  %1149 = vst [vmem:[%s2135_s15 + $0x350] sm:$0xff] %v1148_v19 }
 0x128   : > { %1151 = vst [vmem:[%s2135_s15 + $0x358] sm:$0xff] %v1150_v3  ;;  %1153 = vst [vmem:[%s2135_s15 + $0x360] sm:$0xff] %v1152_v40 }
 0x129   : > { %1155 = vst [vmem:[%s2135_s15 + $0x368] sm:$0xff] %v1154_v10  ;;  %1157 = vst [vmem:[%s2135_s15 + $0x370] sm:$0xff] %v1156_v4 }
 0x12a   : > { %1159 = vst [vmem:[%s2135_s15 + $0x378] sm:$0xff] %v1158_v5  ;;  %1161 = vst [vmem:[%s2135_s15 + $0x380] sm:$0xff] %v1160_v20 }
 0x12b   : > { %1163 = vst [vmem:[%s2135_s15 + $0x388] sm:$0xff] %v1162_v21  ;;  %1165 = vst [vmem:[%s2135_s15 + $0x390] sm:$0xff] %v1164_v14 }
 0x12c   : > { %1167 = vst [vmem:[%s2135_s15 + $0x398] sm:$0xff] %v1166_v22  ;;  %1169 = vst [vmem:[%s2135_s15 + $0x3a0] sm:$0xff] %v1168_v23 }
 0x12d   : > { %1171 = vst [vmem:[%s2135_s15 + $0x3a8] sm:$0xff] %v1170_v26  ;;  %1173 = vst [vmem:[%s2135_s15 + $0x3b0] sm:$0xff] %v1172_v12 }
 0x12e   : > { %1175 = vst [vmem:[%s2135_s15 + $0x3b8] sm:$0xff] %v1174_v13 }
 0x12f PF: > { %1181 = sbr.rel (!%p1574_p6) target bundleno = 312 (0x138), region = 132  ;;  %v1230_v24 = vld [vmem:[%s2047_s10] sm:$0xff] (%p1574_p6)  ;;  %v1232_v27 = vld [vmem:[%s2047_s10 + $0x8] sm:$0xff] (%p1574_p6)  ;;  %v1234_v28 = vld [vmem:[%s2047_s10 + $0x10] sm:$0xff] (%p1574_p6) }
 0x130   : > { %s1404_s16 = smul.u32 (%p1574_p6), 24, %s1484_s26 }
 0x132   : > { %s1186_s18 = scalar_lea.vmem (%p1574_p6), %s2312_s7, %s1404_s16  ;;  %v1242_v35 = vld [vmem:[%s2047_s10 + $0x30] sm:$0xff] (%p1574_p6) }
 0x133   : > { %v1244_v41 = vld [vmem:[%s2047_s10 + $0x38] sm:$0xff] (%p1574_p6)  ;;  %v1246_v56 = vld [vmem:[%s2047_s10 + $0x40] sm:$0xff] (%p1574_p6)  ;;  %1231 = vst [vmem:[%s1186_s18] sm:$0xff] (%p1574_p6), %v1230_v24  ;;  %1233 = vst [vmem:[%s1186_s18 + $0x8] sm:$0xff] (%p1574_p6), %v1232_v27 }
 0x134   : > { %v1236_v33 = vld [vmem:[%s2047_s10 + $0x18] sm:$0xff] (%p1574_p6)  ;;  %v1238_v34 = vld [vmem:[%s2047_s10 + $0x20] sm:$0xff] (%p1574_p6)  ;;  %1235 = vst [vmem:[%s1186_s18 + $0x10] sm:$0xff] (%p1574_p6), %v1234_v28  ;;  %1243 = vst [vmem:[%s1186_s18 + $0x60] sm:$0xff] (%p1574_p6), %v1242_v35 }
 0x135   : > { %v1240_v11 = vld [vmem:[%s2047_s10 + $0x28] sm:$0xff] (%p1574_p6)  ;;  %1237 = vst [vmem:[%s1186_s18 + $0x30] sm:$0xff] (%p1574_p6), %v1236_v33  ;;  %1239 = vst [vmem:[%s1186_s18 + $0x38] sm:$0xff] (%p1574_p6), %v1238_v34 }
 0x136   : > { %1241 = vst [vmem:[%s1186_s18 + $0x40] sm:$0xff] %v1240_v11  ;;  %1245 = vst [vmem:[%s1186_s18 + $0x68] sm:$0xff] %v1244_v41 }
 0x137   : > { %1247 = vst [vmem:[%s1186_s18 + $0x70] sm:$0xff] %v1246_v56 }
 0x138 PF: > { %s18_s28 = sadd.s32 1, %s1492_s28   ;;  %s2322_s24 = smov %s1480_s25 }
 0x139   : > { %p15_p11 = scmp.ge.s32.totalorder %s18_s28, 4   ;;  %s2323_s25 = smov %s1579_s12 }
 0x13a   : > { %s2324_s26 = smov %s1488_s27  ;;  %s2325_s27 = smov %s2327_s29 }
 0x13b   :  { %17 = sbr.rel (!%p15_p11) target bundleno = 3 (0x3), region = 221 }

// kernel: model_branches.2
= control target key start
LH: loop header
LB: loop body
LE: loop exit
PB: predicated region body
PF: predicated region fallthrough
CT: control target
= control target key end

     0   :  { %s3831_s24 = smov 0   ;;  %s3833_s25 = smov 0   ;;  %s6324_s0 = inlined_call_operand.vmem [shape: f32[1,3,48,256], index: 0, kind: input, shape index: {}]   ;;  %s6325_s1 = inlined_call_operand.vmem [shape: f32[12,3,256], index: 1, kind: input, shape index: {}]   ;;  %s6326_s2 = inlined_call_operand.vmem [shape: f32[12,1], index: 2, kind: input, shape index: {}]   ;;  %s6327_s3 = inlined_call_operand.vmem [shape: f32[1,3,48,1024], index: 3, kind: output, shape index: {0}]   ;;  %s6328_s4 = inlined_call_operand.vmem [shape: f32[1,3,48,1], index: 4, kind: output, shape index: {1}]   ;;  %s6329_s5 = inlined_call_operand.vmem [shape: f32[1,3,48,1], index: 5, kind: output, shape index: {2}]   ;;  %s6330_s6 = inlined_call_operand.vmem [shape: f32[1,3,48,1], index: 6, kind: output, shape index: {3}]   ;;  %s6331_s7 = inlined_call_operand.vmem [shape: f32[1,3,48,1], index: 7, kind: output, shape index: {4}]  }
   0x1   :  { %s3835_s26 = smov 0   ;;  %s3837_s27 = smov 0  }
   0x2   :  { %s3839_s28 = smov 0  }
   0x3 LB: > { %s27_s29 = sadd.s32 1, %s3784_s27  ;;  %s3369_s30 = sadd.s32 4294967295, %s3788_s28   ;;  %s3788_s28 = sphi %s3839_s28, %s18_s28   ;;  %s3784_s27 = sphi %s3837_s27, %s6796_s27   ;;  %s3780_s26 = sphi %s3835_s26, %s6795_s26   ;;  %s3776_s25 = sphi %s3833_s25, %s6794_s25   ;;  %s3772_s24 = sphi %s3831_s24, %s6793_s24  }
   0x4   : > { %p28_p0 = scmp.ge.s32.totalorder %s27_s29, 2  ;;  %p46_p1 = scmp.ne.s32.totalorder %s3776_s25, %s3772_s24 }
   0x5   : > { %p47_p2 = scmp.eq.s32.totalorder %s3788_s28, 0  ;;  %p120_p4 = scmp.eq.s32.totalorder %s3369_s30, 1 }
   0x6   : > { %s6798_s29 = smov (%p28_p0, %s27_s29), 0  ;;  %s39_s9 = sadd.s32 1, %s3776_s25 }
   0x7   : > { %p48_p3 = por %p47_p2, %p46_p1  ;;  %s35_s8 = ssub.s32 %s3784_s27, %s6798_s29 }
   0x8   : > { %p37_p5 = scmp.eq.s32.totalorder %s35_s8, 0  ;;  %p3866_p6 = por %p120_p4, %p46_p1 }
   0x9   : > { %p3372_p7 = scmp.ge.s32.totalorder %s3788_s28, 2 }
   0xa   : > { %s3871_s11 = scalar_select %p37_p5, %s3776_s25, %s39_s9  }
   0xb   : > { %260 = sbr.rel (%p3372_p7) target bundleno = 32 (0x20), region = 24 }
  0x12   : > { %263 = sbr.rel (!%p48_p3) target bundleno = 32 (0x20), region = 28  ;;  %s265_s12 = sand.u32 (%p48_p3), 1, %s3776_s25  }
  0x13   : > { %s3498_s13 = smul.u32 (%p48_p3), 48, %s3784_s27 }
  0x14   : > { %s3500_s14 = smul.u32 (%p48_p3), 144, %s265_s12 }
  0x15   : > { %s3879_s17 = scalar_lea.vmem (%p48_p3), %s6324_s0, %s3498_s13 }
  0x16   : > { %v286_v0 = vld [vmem:[%s3879_s17] sm:$0xff] (%p48_p3)  ;;  %v288_v1 = vld [vmem:[%s3879_s17 + $0x8] sm:$0xff] (%p48_p3)  ;;  %v290_v2 = vld [vmem:[%s3879_s17 + $0x10] sm:$0xff] (%p48_p3)  ;;  %s3884_s18 = scalar_lea.vmem (%p48_p3), [#allocation2], %s3500_s14 }
  0x17   : > { %287 = vst [vmem:[%s3884_s18] sm:$0xff] (%p48_p3), %v286_v0  ;;  %289 = vst [vmem:[%s3884_s18 + $0x8] sm:$0xff] (%p48_p3), %v288_v1  ;;  %v292_v3 = vld [vmem:[%s3879_s17 + $0x18] sm:$0xff] (%p48_p3)  ;;  %v294_v4 = vld [vmem:[%s3879_s17 + $0x20] sm:$0xff] (%p48_p3) }
  0x18   : > { %291 = vst [vmem:[%s3884_s18 + $0x10] sm:$0xff] (%p48_p3), %v290_v2  ;;  %v296_v5 = vld [vmem:[%s3879_s17 + $0x28] sm:$0xff] (%p48_p3)  ;;  %293 = vst [vmem:[%s3884_s18 + $0x18] sm:$0xff] (%p48_p3), %v292_v3  ;;  %v298_v6 = vld [vmem:[%s3879_s17 + $0x60] sm:$0xff] (%p48_p3) }
  0x19   : > { %295 = vst [vmem:[%s3884_s18 + $0x20] sm:$0xff] %v294_v4  ;;  %297 = vst [vmem:[%s3884_s18 + $0x28] sm:$0xff] %v296_v5  ;;  %v300_v7 = vld [vmem:[%s3879_s17 + $0x68] sm:$0xff]  ;;  %v302_v8 = vld [vmem:[%s3879_s17 + $0x70] sm:$0xff] }
  0x1a   : > { %299 = vst [vmem:[%s3884_s18 + $0x30] sm:$0xff] %v298_v6  ;;  %301 = vst [vmem:[%s3884_s18 + $0x38] sm:$0xff] %v300_v7  ;;  %v304_v9 = vld [vmem:[%s3879_s17 + $0x78] sm:$0xff]  ;;  %v306_v10 = vld [vmem:[%s3879_s17 + $0x80] sm:$0xff] }
  0x1b   : > { %303 = vst [vmem:[%s3884_s18 + $0x40] sm:$0xff] %v302_v8  ;;  %v308_v11 = vld [vmem:[%s3879_s17 + $0x88] sm:$0xff]  ;;  %305 = vst [vmem:[%s3884_s18 + $0x48] sm:$0xff] %v304_v9  ;;  %v310_v12 = vld [vmem:[%s3879_s17 + $0xc0] sm:$0xff] }
  0x1c   : > { %307 = vst [vmem:[%s3884_s18 + $0x50] sm:$0xff] %v306_v10  ;;  %309 = vst [vmem:[%s3884_s18 + $0x58] sm:$0xff] %v308_v11  ;;  %v312_v13 = vld [vmem:[%s3879_s17 + $0xc8] sm:$0xff]  ;;  %v314_v14 = vld [vmem:[%s3879_s17 + $0xd0] sm:$0xff] }
  0x1d   : > { %311 = vst [vmem:[%s3884_s18 + $0x60] sm:$0xff] %v310_v12  ;;  %313 = vst [vmem:[%s3884_s18 + $0x68] sm:$0xff] %v312_v13  ;;  %v316_v15 = vld [vmem:[%s3879_s17 + $0xd8] sm:$0xff]  ;;  %v318_v16 = vld [vmem:[%s3879_s17 + $0xe0] sm:$0xff] }
  0x1e   : > { %315 = vst [vmem:[%s3884_s18 + $0x70] sm:$0xff] %v314_v14  ;;  %v320_v17 = vld [vmem:[%s3879_s17 + $0xe8] sm:$0xff]  ;;  %317 = vst [vmem:[%s3884_s18 + $0x78] sm:$0xff] %v316_v15 }
  0x1f   : > { %319 = vst [vmem:[%s3884_s18 + $0x80] sm:$0xff] %v318_v16  ;;  %321 = vst [vmem:[%s3884_s18 + $0x88] sm:$0xff] %v320_v17 }
  0x20 PF: > { %p3375_p8 = scmp.ge.s32.totalorder %s3788_s28, 1  ;;  %p326_p9 = scmp.lt.s32.totalorder %s3788_s28, 3 }
  0x22   : > { %p327_p10 = pnand %p3375_p8, %p326_p9 }
  0x24   : > { %330 = sbr.rel (%p327_p10) target bundleno = 572 (0x23c), region = 51 }
  0x2b   : > { %v460_v18 = vld [vmem:[%s6326_s2] sm:$0xff]  ;;  %s3925_s21 = sand.u32 1, %s3772_s24   ;;  %v385_v19 = vlaneseq  ;;  %v3996_v55 = vld [vmem:[%s6326_s2 + $0x8] sm:$0xf]  ;;  %s4343_s24 = smul.u32 24, %s3780_s26 }
  0x2c   : > { %3504 = vpush %v460_v18  ;;  %v836_v20 = vrot.slane %v460_v18, 1  ;;  %v1011_v21 = vrot.slane %v460_v18, 2  ;;  %v1186_v22 = vrot.slane %v460_v18, 3  ;;  %s3501_s22 = smul.u32 144, %s3925_s21  ;;  %v1367_v23 = vrot.slane %v460_v18, 4  ;;  %6454 = vst [vmem:[#allocation15_spill] sm:$0xff] %v3996_v55 }
  0x2d   : > { %v1543_v24 = vrot.slane %v460_v18, 5  ;;  %v3928_v25 = vshrl.u32 %v385_v19, 7  ;;  %v1718_v29 = vrot.slane %v460_v18, 6  ;;  %v1893_v35 = vrot.slane %v460_v18, 7  ;;  %v575_v40 = vld [vmem:[%s6325_s1] sm:$0x77] }
  0x2e   : > { %3506 = vpush %v836_v20  ;;  %s3930_s23 = scalar_lea.vmem [#allocation2], %s3501_s22  ;;  %v4006_v61 = vld [vmem:[%s6325_s1 + $0x8] sm:$0x77]  ;;  %v4015_v3 = vand.u32 127, %v385_v19  ;;  %s3502_s30 = smul.u32 576, %s3925_s21 }
  0x2f   : > { %6447 = vst [vmem:[#allocation8_spill] sm:$0xff] %v3928_v25  ;;  %3508 = vpush %v1011_v21  ;;  %v3933_v26 = vld [vmem:[%s3930_s23 + $0x20] sm:$0xff]  ;;  %v3936_v27 = vld [vmem:[%s3930_s23 + $0x28] sm:$0xff]  ;;  %v3972_v44 = vsub.s32 0, %v3928_v25  ;;  %v3975_v46 = vsub.s32 4, %v3928_v25  ;;  %v3978_v47 = vsub.s32 1, %v3928_v25 }
  0x30   : > { %v3939_v28 = vld [vmem:[%s3930_s23] sm:$0xff]  ;;  %3510 = vpush %v1186_v22  ;;  %v468_v30 = vadd.f32 %v3936_v27, %v3933_v26  ;;  %v3944_v31 = vld [vmem:[%s3930_s23 + $0x8] sm:$0xff]  ;;  %v3949_v33 = vld [vmem:[%s3930_s23 + $0x10] sm:$0xff]  ;;  %v482_v38 = vmul.f32 %v3933_v26, %v3933_v26  ;;  %v483_v39 = vmul.f32 %v3936_v27, %v3936_v27  ;;  %v3981_v48 = vsub.s32 5, %v3928_v25  ;;  %s4432_s12 = scalar_lea.vmem [#allocation3], %s3502_s30  ;;  %s5797_s9 = smul.u32 72, %s3925_s21 }
  0x31   : > { %v478_v32 = vmul.f32 %v3939_v28, %v3939_v28  ;;  %v3952_v34 = vld [vmem:[%s3930_s23 + $0x18] sm:$0xff]  ;;  %3512 = vpush %v1367_v23  ;;  %v462_v36 = vadd.f32 %v3944_v31, %v3939_v28  ;;  %v479_v37 = vmul.f32 %v3944_v31, %v3944_v31  ;;  %v480_v42 = vmul.f32 %v3949_v33, %v3949_v33  ;;  %v3999_v58 = vld [vmem:[%s3930_s23 + $0x30] sm:$0xff]  ;;  %v4018_v4 = vld [vmem:[%s3930_s23 + $0x40] sm:$0xff] }
  0x32   : > { %469 = vadd.xlane.f32.xlu1 %v468_v30  ;;  %3514 = vpush %v1543_v24  ;;  %v465_v41 = vadd.f32 %v3952_v34, %v3949_v33  ;;  %v481_v43 = vmul.f32 %v3952_v34, %v3952_v34  ;;  %6448 = vst [vmem:[#allocation9_spill] sm:$0xff] %v3972_v44  ;;  %v580_v49 = vrot.slane %v575_v40, %v3972_v44  ;;  %v4009_v62 = vld [vmem:[%s3930_s23 + $0x38] sm:$0xff]  ;;  %v4021_v5 = vld [vmem:[%s3930_s23 + $0x48] sm:$0xff]  ;;  %s5823_s21 = scalar_lea.vmem [#allocation6], %s5797_s9  ;;  %s6040_s14 = scalar_lea.vmem [#allocation4], %s5797_s9 }
  0x33   : > { %463 = vadd.xlane.f32.xlu0 %v462_v36  ;;  %v484_v45 = vadd.f32 %v479_v37, %v478_v32  ;;  %6449 = vst [vmem:[#allocation10_spill] sm:$0xff] %v3975_v46  ;;  %6450 = vst [vmem:[#allocation11_spill] sm:$0xff] %v3978_v47  ;;  %v3985_v50 = vsub.s32 2, %v3928_v25  ;;  %v3988_v51 = vsub.s32 6, %v3928_v25  ;;  %v584_v52 = vrot.slane %v575_v40, %v3975_v46  ;;  %v4025_v6 = vld [vmem:[%s3930_s23 + $0x50] sm:$0xff]  ;;  %v4028_v7 = vld [vmem:[%s3930_s23 + $0x58] sm:$0xff] }
  0x34   : > { %6451 = vst [vmem:[#allocation12_spill] sm:$0xff] %v3981_v48  ;;  %3516 = vpush %v1718_v29  ;;  %v604_v53 = vrot.slane %v575_v40, %v3978_v47  ;;  %v608_v54 = vrot.slane %v575_v40, %v3981_v48  ;;  %v490_v56 = vadd.f32 %v483_v39, %v482_v38  ;;  %v4036_v12 = vld [vmem:[%s3930_s23 + $0x60] sm:$0xff]  ;;  %v4044_v17 = vld [vmem:[%s3930_s23 + $0x68] sm:$0xff]  ;;  %s6057_s15 = scalar_lea.vmem [#allocation5], %s5797_s9 }
  0x35   : > { %6452 = vst [vmem:[#allocation13_spill] sm:$0xff] %v3985_v50  ;;  %6453 = vst [vmem:[#allocation14_spill] sm:$0xff] %v3988_v51  ;;  %v487_v57 = vadd.f32 %v481_v43, %v480_v42  ;;  %v590_v59 = vrot.slane %v580_v49, %v3972_v44  ;;  %v634_v60 = vrot.slane %v575_v40, %v3985_v50  ;;  %v4051_v22 = vld [vmem:[%s3930_s23 + $0x70] sm:$0xff]  ;;  %v4054_v23 = vld [vmem:[%s3930_s23 + $0x78] sm:$0xff] }
  0x36   : > { %3518 = vpush %v1893_v35  ;;  %485 = vadd.xlane.f32.xlu1 %v484_v45  ;;  %6455 = vst [vmem:[#allocation16_spill] sm:$0xff] %v3999_v58  ;;  %v594_v63 = vrot.slane %v584_v52, %v3972_v44  ;;  %v614_v0 = vrot.slane %v604_v53, %v3978_v47  ;;  %v618_v1 = vrot.slane %v608_v54, %v3978_v47  ;;  %v4062_v37 = vld [vmem:[%s3930_s23 + $0x80] sm:$0xff]  ;;  %v4065_v38 = vld [vmem:[%s3930_s23 + $0x88] sm:$0xff] }
  0x37   : > { %466 = vadd.xlane.f32.xlu0 %v465_v41  ;;  %6456 = vst [vmem:[#allocation17_spill] sm:$0xff] %v4009_v62  ;;  %v638_v2 = vrot.slane %v575_v40, %v3988_v51  ;;  %6457 = vst [vmem:[#allocation18_spill] sm:$0xff] %v4015_v3  ;;  %v595_v8 = vmul.f32 %v590_v59, %v3939_v28  ;;  %v644_v10 = vrot.slane %v634_v60, %v3985_v50 }
  0x38   : > { %3520 = vpush %v3996_v55  ;;  %v619_v9 = vmul.f32 %v3999_v58, %v614_v0  ;;  %v755_v11 = vrot.slane %v4006_v61, %v3972_v44  ;;  %v596_v13 = vmul.f32 %v594_v63, %v3944_v31  ;;  %v597_v14 = vmul.f32 %v590_v59, %v3949_v33 }
  0x39   : > { %v620_v15 = vmul.f32 %v4009_v62, %v618_v1  ;;  %v759_v16 = vrot.slane %v4006_v61, %v3975_v46  ;;  %v598_v18 = vmul.f32 %v594_v63, %v3952_v34  ;;  %v621_v19 = vmul.f32 %v4018_v4, %v614_v0 }
  0x3a   : > { %491 = vadd.xlane.f32.xlu1 %v490_v56  ;;  %v622_v20 = vmul.f32 %v4021_v5, %v618_v1  ;;  %v648_v21 = vrot.slane %v638_v2, %v3985_v50  ;;  %v599_v24 = vmul.f32 %v590_v59, %v3933_v26  ;;  %v600_v29 = vmul.f32 %v594_v63, %v3936_v27 }
  0x3b   : > { %488 = vadd.xlane.f32.xlu0 %v487_v57  ;;  %v623_v30 = vmul.f32 %v4025_v6, %v614_v0  ;;  %v624_v32 = vmul.f32 %v4028_v7, %v618_v1  ;;  %v625_v35 = vadd.f32 %v619_v9, %v595_v8  ;;  %v649_v36 = vmul.f32 %v4036_v12, %v644_v10  ;;  %v3412_v0 = vld [vmem:[%s6325_s1 + $0x10] sm:$0x77] }
  0x3c   : > { %v626_v39 = vadd.f32 %v620_v15, %v596_v13  ;;  %v650_v40 = vmul.f32 %v4044_v17, %v648_v21  ;;  %v765_v41 = vrot.slane %v755_v11, %v3972_v44  ;;  %v627_v42 = vadd.f32 %v621_v19, %v597_v14 }
  0x3d   : > { %v628_v43 = vadd.f32 %v622_v20, %v598_v18  ;;  %v651_v45 = vmul.f32 %v4051_v22, %v644_v10  ;;  %v652_v49 = vmul.f32 %v4054_v23, %v648_v21  ;;  %v4072_v52 = vadd.s32 128, %v4015_v3 }
  0x3e   : > { %v629_v53 = vadd.f32 %v623_v30, %v599_v24  ;;  %v630_v54 = vadd.f32 %v624_v32, %v600_v29  ;;  %v769_v56 = vrot.slane %v759_v16, %v3972_v44  ;;  %v653_v57 = vmul.f32 %v4062_v37, %v644_v10 }
  0x3f   : > { %6458 = vst [vmem:[#allocation19_spill] sm:$0xff] %v4072_v52  ;;  %v654_v59 = vmul.f32 %v4065_v38, %v648_v21  ;;  %v4077_v60 = vadd.f32 %v649_v36, %v625_v35  ;;  %v779_v63 = vrot.slane %v4006_v61, %v3978_v47  ;;  %v4084_v1 = vadd.f32 %v650_v40, %v626_v39 }
  0x40   : > { %v783_v2 = vrot.slane %v4006_v61, %v3981_v48  ;;  %v809_v8 = vrot.slane %v4006_v61, %v3985_v50  ;;  %v813_v9 = vrot.slane %v4006_v61, %v3988_v51  ;;  %v4092_v10 = vadd.f32 %v651_v45, %v627_v42 }
  0x41   : > { %v4094_v11 = vadd.f32 %v652_v49, %v628_v43  ;;  %v770_v13 = vmul.f32 %v765_v41, %v3939_v28  ;;  %v789_v14 = vrot.slane %v779_v63, %v3978_v47  ;;  %v771_v15 = vmul.f32 %v769_v56, %v3944_v31 }
  0x42   : > { %6459 = vst [vmem:[#allocation20_spill] sm:$0xff] %v4092_v10  ;;  %v772_v16 = vmul.f32 %v765_v41, %v3949_v33  ;;  %v793_v18 = vrot.slane %v783_v2, %v3978_v47  ;;  %v930_v19 = vrot.slane %v3412_v0, %v3972_v44  ;;  %v774_v20 = vmul.f32 %v765_v41, %v3933_v26 }
  0x43   : > { %6460 = vst [vmem:[#allocation21_spill] sm:$0xff] %v4094_v11  ;;  %v794_v61 = vmul.f32 %v3999_v58, %v789_v14  ;;  %v819_v21 = vrot.slane %v809_v8, %v3985_v50  ;;  %v934_v24 = vrot.slane %v3412_v0, %v3975_v46  ;;  %v796_v30 = vmul.f32 %v4018_v4, %v789_v14 }
  0x44   : > { %v795_v29 = vmul.f32 %v4009_v62, %v793_v18  ;;  %v798_v32 = vmul.f32 %v4025_v6, %v789_v14  ;;  %v823_v35 = vrot.slane %v813_v9, %v3985_v50  ;;  %v773_v36 = vmul.f32 %v769_v56, %v3952_v34 }
  0x45   : > { %v775_v39 = vmul.f32 %v769_v56, %v3936_v27  ;;  %v797_v40 = vmul.f32 %v4021_v5, %v793_v18  ;;  %v799_v41 = vmul.f32 %v4028_v7, %v793_v18  ;;  %v4114_v42 = vadd.f32 %v653_v57, %v629_v53 }
  0x46   : > { %v4116_v43 = vadd.f32 %v654_v59, %v630_v54  ;;  %v940_v45 = vrot.slane %v930_v19, %v3972_v44  ;;  %v954_v49 = vrot.slane %v3412_v0, %v3978_v47  ;;  %v800_v63 = vadd.f32 %v794_v61, %v770_v13 }
  0x47   : > { %6461 = vst [vmem:[#allocation22_spill] sm:$0xff] %v4114_v42  ;;  %v824_v2 = vmul.f32 %v4036_v12, %v819_v21  ;;  %v944_v8 = vrot.slane %v934_v24, %v3972_v44  ;;  %v958_v9 = vrot.slane %v3412_v0, %v3981_v48  ;;  %v801_v56 = vadd.f32 %v795_v29, %v771_v15 }
  0x48   : > { %6462 = vst [vmem:[#allocation23_spill] sm:$0xff] %v4116_v43  ;;  %v802_v14 = vadd.f32 %v796_v30, %v772_v16  ;;  %v804_v25 = vadd.f32 %v798_v32, %v774_v20  ;;  %v825_v18 = vmul.f32 %v4044_v17, %v823_v35  ;;  %v803_v53 = vadd.f32 %v797_v40, %v773_v36  ;;  %v3413_v36 = vld [vmem:[%s6325_s1 + $0x18] sm:$0x77] }
  0x49   : > { %v805_v57 = vadd.f32 %v799_v41, %v775_v39  ;;  %v826_v54 = vmul.f32 %v4051_v22, %v819_v21  ;;  %v827_v59 = vmul.f32 %v4054_v23, %v823_v35  ;;  %v828_v19 = vmul.f32 %v4062_v37, %v819_v21 }
  0x4a   : > { %v829_v13 = vmul.f32 %v4065_v38, %v823_v35  ;;  %v945_v61 = vmul.f32 %v940_v45, %v3939_v28  ;;  %v964_v24 = vrot.slane %v954_v49, %v3978_v47  ;;  %v946_v15 = vmul.f32 %v944_v8, %v3944_v31 }
  0x4b   : > { %v968_v16 = vrot.slane %v958_v9, %v3978_v47  ;;  %v984_v20 = vrot.slane %v3412_v0, %v3985_v50  ;;  %v988_v29 = vrot.slane %v3412_v0, %v3988_v51  ;;  %v947_v30 = vmul.f32 %v940_v45, %v3949_v33 }
  0x4c   : > { %v948_v32 = vmul.f32 %v944_v8, %v3952_v34  ;;  %v949_v21 = vmul.f32 %v940_v45, %v3933_v26  ;;  %v969_v35 = vmul.f32 %v3999_v58, %v964_v24  ;;  %v950_v39 = vmul.f32 %v944_v8, %v3936_v27 }
  0x4d   : > { %v971_v40 = vmul.f32 %v4018_v4, %v964_v24  ;;  %v973_v41 = vmul.f32 %v4025_v6, %v964_v24  ;;  %v994_v0 = vrot.slane %v984_v20, %v3985_v50  ;;  %v970_v49 = vmul.f32 %v4009_v62, %v968_v16 }
  0x4e   : > { %v972_v9 = vmul.f32 %v4021_v5, %v968_v16  ;;  %v974_v45 = vmul.f32 %v4028_v7, %v968_v16  ;;  %v998_v55 = vrot.slane %v988_v29, %v3985_v50  ;;  %v4149_v52 = vadd.f32 %v824_v2, %v800_v63 }
  0x4f   : > { %v4151_v3 = vadd.f32 %v825_v18, %v801_v56  ;;  %v4153_v43 = vadd.f32 %v826_v54, %v802_v14  ;;  %v1109_v8 = vrot.slane %v3413_v36, %v3975_v46  ;;  %v4156_v42 = vadd.f32 %v827_v59, %v803_v53 }
  0x50   : > { %v975_v24 = vadd.f32 %v969_v35, %v945_v61  ;;  %v999_v20 = vmul.f32 %v4036_v12, %v994_v0  ;;  %v1105_v11 = vrot.slane %v3413_v36, %v3972_v44  ;;  %v4160_v10 = vadd.f32 %v828_v19, %v804_v25 }
  0x51   : > { %v4162_v16 = vadd.f32 %v829_v13, %v805_v57  ;;  %v977_v29 = vadd.f32 %v971_v40, %v947_v30  ;;  %v979_v63 = vadd.f32 %v973_v41, %v949_v21  ;;  %v976_v2 = vadd.f32 %v970_v49, %v946_v15 }
  0x52   : > { %v978_v56 = vadd.f32 %v972_v9, %v948_v32  ;;  %v980_v18 = vadd.f32 %v974_v45, %v950_v39  ;;  %v1000_v14 = vmul.f32 %v4044_v17, %v998_v55  ;;  %v1001_v54 = vmul.f32 %v4051_v22, %v994_v0 }
  0x53   : > { %v1002_v53 = vmul.f32 %v4054_v23, %v998_v55  ;;  %v1003_v59 = vmul.f32 %v4062_v37, %v994_v0  ;;  %v1119_v61 = vrot.slane %v1109_v8, %v3972_v44  ;;  %v1004_v25 = vmul.f32 %v4065_v38, %v998_v55 }
  0x54   : > { %v4170_v19 = vadd.f32 %v999_v20, %v975_v24  ;;  %v1115_v57 = vrot.slane %v1105_v11, %v3972_v44  ;;  %v1129_v13 = vrot.slane %v3413_v36, %v3978_v47  ;;  %v1133_v15 = vrot.slane %v3413_v36, %v3981_v48 }
  0x55   : > { %v1159_v30 = vrot.slane %v3413_v36, %v3985_v50  ;;  %v1163_v32 = vrot.slane %v3413_v36, %v3988_v51  ;;  %v502_v21 = vadd.f32 %v4021_v5, %v4018_v4  ;;  %v499_v55 = vadd.f32 %v4009_v62, %v3999_v58 }
  0x56   : > { %v1139_v35 = vrot.slane %v1129_v13, %v3978_v47  ;;  %v515_v39 = vmul.f32 %v3999_v58, %v3999_v58  ;;  %v516_v11 = vmul.f32 %v4009_v62, %v4009_v62  ;;  %v4186_v40 = vadd.f32 %v1000_v14, %v976_v2 }
  0x57   : > { %v4188_v41 = vadd.f32 %v1001_v54, %v977_v29  ;;  %v1125_v36 = vmul.f32 %v1119_v61, %v3936_v27  ;;  %v1143_v0 = vrot.slane %v1133_v15, %v3978_v47  ;;  %503 = vadd.xlane.f32.xlu1 %v502_v21  ;;  %v1120_v49 = vmul.f32 %v1115_v57, %v3939_v28 }
  0x58   : > { %v1121_v9 = vmul.f32 %v1119_v61, %v3944_v31  ;;  %500 = vadd.xlane.f32.xlu0 %v499_v55  ;;  %v521_v45 = vadd.f32 %v516_v11, %v515_v39  ;;  %v505_v8 = vadd.f32 %v4028_v7, %v4025_v6  ;;  %v1122_v24 = vmul.f32 %v1115_v57, %v3949_v33 }
  0x59   : > { %v1144_v20 = vmul.f32 %v3999_v58, %v1139_v35  ;;  %v1149_v29 = vmul.f32 %v4028_v7, %v1143_v0  ;;  %v1169_v2 = vrot.slane %v1159_v30, %v3985_v50  ;;  %v1124_v14 = vmul.f32 %v1115_v57, %v3933_v26 }
  0x5a   : > { %v1146_v54 = vmul.f32 %v4018_v4, %v1139_v35  ;;  %v1148_v13 = vmul.f32 %v4025_v6, %v1139_v35  ;;  %v1173_v15 = vrot.slane %v1163_v32, %v3985_v50  ;;  %v1123_v21 = vmul.f32 %v1119_v61, %v3952_v34 }
  0x5b   : > { %v1145_v55 = vmul.f32 %v4009_v62, %v1143_v0  ;;  %v1147_v39 = vmul.f32 %v4021_v5, %v1143_v0  ;;  %v4207_v11 = vadd.f32 %v1149_v29, %v1125_v36  ;;  %522 = vadd.xlane.f32.xlu1 %v521_v45  ;;  %v4209_v30 = vadd.f32 %v1002_v53, %v978_v56  ;;  %v6463_v0 = vld [vmem:[#allocation20_spill] sm:$0xff] }
  0x5c   : > { %v4211_v57 = vadd.f32 %v1003_v59, %v979_v63  ;;  %v4213_v51 = vadd.f32 %v1004_v25, %v980_v18  ;;  %506 = vadd.xlane.f32.xlu0 %v505_v8  ;;  %v1150_v61 = vadd.f32 %v1144_v20, %v1120_v49  ;;  %v1174_v62 = vmul.f32 %v4036_v12, %v1169_v2  ;;  %v6464_v63 = vld [vmem:[#allocation21_spill] sm:$0xff]  ;;  %v6465_v18 = vld [vmem:[#allocation22_spill] sm:$0xff] }
  0x5d   : > { %s3505_s18 = spop %3504  ;;  %v1152_v29 = vadd.f32 %v1146_v54, %v1122_v24  ;;  %v4219_v45 = vadd.f32 %v1148_v13, %v1124_v14  ;;  %v1175_v56 = vmul.f32 %v4044_v17, %v1173_v15  ;;  %v1151_v25 = vadd.f32 %v1145_v55, %v1121_v9 }
  0x5e   : > { %v663_v58 = vstv %s3505_s18  ;;  %v4224_v8 = vadd.f32 %v1147_v39, %v1123_v21  ;;  %v1176_v20 = vmul.f32 %v4051_v22, %v1169_v2  ;;  %v4229_v24 = vmul.f32 %v4054_v23, %v1173_v15 }
  0x5f   : > { %v665_v32 = vadd.f32 %v663_v58, %v4077_v60  ;;  %v666_v35 = vadd.f32 %v663_v58, %v4084_v1  ;;  %s3507_s19 = spop %3506  ;;  %v667_v36 = vadd.f32 %v663_v58, %v6463_v0  ;;  %v668_v53 = vadd.f32 %v663_v58, %v6464_v63  ;;  %v6466_v60 = vld [vmem:[#allocation23_spill] sm:$0xff] }
  0x60   : > { %v669_v59 = vadd.f32 %v663_v58, %v6465_v18  ;;  %v670_v1 = vadd.f32 %v663_v58, %v6466_v60  ;;  %v838_v49 = vstv %s3507_s19  ;;  %v4232_v14 = vmul.f32 %v4062_v37, %v1169_v2  ;;  %s3509_s20 = spop %3508 }
  0x61   : > { %v677_v50 = vmul.f32 0.70710677, %v665_v32  ;;  %v678_v48 = vmul.f32 0.70710677, %v666_v35  ;;  %v1179_v54 = vmul.f32 %v4065_v38, %v1173_v15  ;;  %v4235_v13 = vmul.f32 0.5, %v665_v32  ;;  %s3511_s22 = spop %3510 }
  0x62   : > { %v4237_v9 = vmul.f32 0.5, %v666_v35  ;;  %v679_v21 = vmul.f32 0.70710677, %v667_v36  ;;  %v4239_v55 = vadd.f32 %v1174_v62, %v1150_v61  ;;  %v4241_v58 = vmul.f32 0.5, %v667_v36  ;;  %s3513_s13 = spop %3512 }
  0x63   : > { %v4243_v39 = vmul.f32 0.5, %v668_v53  ;;  %v4245_v0 = vmul.f32 0.5, %v669_v59  ;;  %v840_v63 = vadd.f32 %v838_v49, %v4149_v52  ;;  %v4248_v18 = vmul.f32 0.5, %v670_v1  ;;  %s3515_s16 = spop %3514 }
  0x64   : > { %v680_v2 = vmul.f32 0.70710677, %v668_v53  ;;  %3569 = verf.f32 %v677_v50  ;;  %v841_v15 = vadd.f32 %v838_v49, %v4151_v3  ;;  %v681_v32 = vmul.f32 0.70710677, %v669_v59 }
  0x65   : > { %6467 = vst [vmem:[#allocation20_spill] sm:$0xff] %v4248_v18  ;;  %v682_v35 = vmul.f32 0.70710677, %v670_v1  ;;  %3571 = verf.f32 %v678_v48  ;;  %v842_v62 = vadd.f32 %v838_v49, %v4153_v43  ;;  %v843_v61 = vadd.f32 %v838_v49, %v4156_v42  ;;  %s3517_s19 = spop %3516 }
  0x66   : > { %3573 = verf.f32 %v679_v21  ;;  %v844_v36 = vadd.f32 %v838_v49, %v4160_v10  ;;  %v845_v60 = vadd.f32 %v838_v49, %v4162_v16  ;;  %v4255_v52 = vmul.f32 0.5, %v840_v63 }
  0x67   : > { %v4257_v18 = vmul.f32 0.5, %v841_v15  ;;  %v4259_v50 = vmul.f32 0.5, %v842_v62  ;;  %v852_v3 = vmul.f32 0.70710677, %v840_v63  ;;  %3575 = verf.f32 %v680_v2  ;;  %s3519_s30 = spop %3518 }
  0x68   : > { %6468 = vst [vmem:[#allocation21_spill] sm:$0xff] %v4255_v52  ;;  %v4261_v53 = vmul.f32 0.5, %v843_v61  ;;  %v853_v48 = vmul.f32 0.70710677, %v841_v15  ;;  %v1013_v43 = vstv %s3509_s20  ;;  %3577 = verf.f32 %v681_v32 }
  0x69   : > { %6469 = vst [vmem:[#allocation22_spill] sm:$0xff] %v4257_v18  ;;  %6470 = vst [vmem:[#allocation23_spill] sm:$0xff] %v4259_v50  ;;  %v4263_v59 = vmul.f32 0.5, %v844_v36  ;;  %v854_v42 = vmul.f32 0.70710677, %v842_v62  ;;  %v1015_v10 = vadd.f32 %v1013_v43, %v4170_v19  ;;  %3579 = verf.f32 %v682_v35 }
  0x6a   : > { %6471 = vst [vmem:[#allocation24_spill] sm:$0xff] %v4261_v53  ;;  %v4266_v16 = vmul.f32 0.5, %v845_v60  ;;  %v855_v1 = vmul.f32 0.70710677, %v843_v61  ;;  %v1016_v49 = vadd.f32 %v1013_v43, %v4186_v40  ;;  %v856_v21 = vmul.f32 0.70710677, %v844_v36 }
  0x6b   : > { %6472 = vst [vmem:[#allocation25_spill] sm:$0xff] %v4263_v59  ;;  %v857_v18 = vmul.f32 0.70710677, %v845_v60  ;;  %3581 = verf.f32 %v852_v3  ;;  %v1017_v63 = vadd.f32 %v1013_v43, %v4188_v41  ;;  %v1018_v2 = vadd.f32 %v1013_v43, %v4209_v30  ;;  %v6476_v3 = vld [vmem:[#allocation18_spill] sm:$0xff]  ;;  %v6507_v53 = vld [vmem:[#allocation17_spill] sm:$0xff] }
  0x6c   : > { %6473 = vst [vmem:[#allocation26_spill] sm:$0xff] %v4266_v16  ;;  %3583 = verf.f32 %v853_v48  ;;  %v1181_v15 = vadd.f32 %v1175_v56, %v1151_v25  ;;  %v1182_v32 = vadd.f32 %v1176_v20, %v1152_v29  ;;  %v1019_v19 = vadd.f32 %v1013_v43, %v4211_v57  ;;  %v6477_v48 = vld [vmem:[#allocation19_spill] sm:$0xff] }
  0x6d   : > { %3585 = verf.f32 %v854_v42  ;;  %v1020_v35 = vadd.f32 %v1013_v43, %v4213_v51  ;;  %v1027_v62 = vmul.f32 0.70710677, %v1015_v10  ;;  %v4275_v40 = vmul.f32 0.5, %v1015_v10 }
  0x6e   : > { %v4273_v61 = vpop.eup %3569  ;;  %3587 = verf.f32 %v855_v1  ;;  %v4277_v36 = vmul.f32 0.5, %v1016_v49  ;;  %v1028_v41 = vmul.f32 0.70710677, %v1016_v49  ;;  %v1029_v30 = vmul.f32 0.70710677, %v1017_v63 }
  0x6f   : > { %6474 = vst [vmem:[#allocation27_spill] sm:$0xff] %v4275_v40  ;;  %v4279_v60 = vpop.eup %3571  ;;  %3589 = verf.f32 %v856_v21  ;;  %v1185_v29 = vadd.f32 %v1179_v54, %v4207_v11  ;;  %v1188_v56 = vstv %s3511_s22  ;;  %v1030_v51 = vmul.f32 0.70710677, %v1018_v2 }
  0x70   : > { %6475 = vst [vmem:[#allocation28_spill] sm:$0xff] %v4277_v36  ;;  %v4282_v25 = vpop.eup %3573  ;;  %3591 = verf.f32 %v857_v18  ;;  %v1183_v57 = vadd.f32 %v4229_v24, %v4224_v8  ;;  %v1184_v20 = vadd.f32 %v4232_v14, %v4219_v45  ;;  %vm388_vm0 = vcmp.gt.s32.totalorder %v6476_v3, 0 }
  0x71   : > { %vm391_vm1 = vcmp.lt.s32.totalorder %v6477_v48, 255  ;;  %v4290_v43 = vmul.f32 0.5, %v1017_v63  ;;  %v1031_v42 = vmul.f32 0.70710677, %v1019_v19  ;;  %3593 = verf.f32 %v1027_v62  ;;  %v4293_v54 = vpop.eup %3575 }
  0x72   : > { %v1190_v11 = vadd.f32 %v1188_v56, %v4239_v55  ;;  %v4295_v18 = vmul.f32 0.5, %v1018_v2  ;;  %v4297_v10 = vmul.f32 0.5, %v1019_v19  ;;  %3595 = verf.f32 %v1028_v41  ;;  %v4299_v24 = vpop.eup %3577 }
  0x73   : > { %6478 = vst [vmem:[#allocation18_spill] sm:$0xff] %v4290_v43  ;;  %v1191_v8 = vadd.f32 %v1188_v56, %v1181_v15  ;;  %v4301_v45 = vmul.f32 0.5, %v1020_v35  ;;  %v1032_v14 = vmul.f32 0.70710677, %v1020_v35  ;;  %3597 = verf.f32 %v1029_v30  ;;  %v4305_v49 = vpop.eup %3579 }
  0x74   : > { %6479 = vst [vmem:[#allocation19_spill] sm:$0xff] %v4295_v18  ;;  %6480 = vst [vmem:[#allocation29_spill] sm:$0xff] %v4297_v10  ;;  %v4303_v1 = vadd.f32 %v1188_v56, %v1182_v32  ;;  %3599 = verf.f32 %v1030_v51  ;;  %v4307_v55 = vadd.f32 %v1188_v56, %v1183_v57  ;;  %v4309_v21 = vadd.f32 %v1188_v56, %v1184_v20  ;;  %v6485_v20 = vld [vmem:[#allocation15_spill] sm:$0xff] }
  0x75   : > { %6481 = vst [vmem:[#allocation30_spill] sm:$0xff] %v4301_v45  ;;  %v4311_v63 = vadd.f32 %v1188_v56, %v1185_v29  ;;  %v4313_v2 = vpop.eup %3581  ;;  %3601 = verf.f32 %v1031_v42  ;;  %v4315_v15 = vmul.f32 0.5, %v1190_v11  ;;  %v1202_v19 = vmul.f32 0.70710677, %v1190_v11 }
  0x76   : > { %v519_v35 = vmul.f32 %v4025_v6, %v4025_v6  ;;  %v4319_v32 = vpop.eup %3583  ;;  %v1203_v62 = vmul.f32 0.70710677, %v1191_v8  ;;  %v520_v41 = vmul.f32 %v4028_v7, %v4028_v7  ;;  %v517_v30 = vmul.f32 %v4018_v4, %v4018_v4 }
  0x77   : > { %6482 = vst [vmem:[#allocation31_spill] sm:$0xff] %v4315_v15  ;;  %6483 = vst [vmem:[#allocation32_spill] sm:$0xff] %v4319_v32  ;;  %v518_v29 = vmul.f32 %v4021_v5, %v4021_v5  ;;  %v4327_v56 = vpop.eup %3585  ;;  %3603 = verf.f32 %v1032_v14  ;;  %v4329_v51 = vmul.f32 0.5, %v1191_v8  ;;  %v4332_v57 = vmul.f32 0.70710677, %v4303_v1 }
  0x78   : > { %v2252_v42 = vrot.slane %v6485_v20, 1  ;;  %v4335_v11 = vpop.eup %3587  ;;  %v4338_v15 = vmul.f32 0.70710677, %v4307_v55  ;;  %v527_v45 = vadd.f32 %v520_v41, %v519_v35  ;;  %v553_v36 = vmul.f32 %v4036_v12, %v4036_v12 }
  0x79   : > { %6484 = vst [vmem:[#allocation33_spill] sm:$0xff] %v4329_v51  ;;  %v524_v10 = vadd.f32 %v518_v29, %v517_v30  ;;  %v4345_v8 = vpop.eup %3589  ;;  %v4348_v14 = vmul.f32 0.70710677, %v4309_v21  ;;  %3605 = verf.f32 %v1202_v19  ;;  %v540_v51 = vadd.f32 %v4054_v23, %v4051_v22 }
  0x7a   : > { %6486 = vst [vmem:[#allocation34_spill] sm:$0xff] %v4345_v8  ;;  %3522 = vpush %v2252_v42  ;;  %v554_v40 = vmul.f32 %v4044_v17, %v4044_v17  ;;  %v4354_v35 = vpop.eup %3591  ;;  %3607 = verf.f32 %v1203_v62  ;;  %528 = vadd.xlane.f32.xlu1 %v527_v45  ;;  %v537_v41 = vadd.f32 %v4044_v17, %v4036_v12  ;;  %v4374_v62 = vld [vmem:[%s6325_s1 + $0x20] sm:$0x77]  ;;  %v4390_v18 = vstv %s4343_s24 }
  0x7b   : > { %6487 = vst [vmem:[#allocation35_spill] sm:$0xff] %v4354_v35  ;;  %525 = vadd.xlane.f32.xlu0 %v524_v10  ;;  %v543_v19 = vadd.f32 %v4065_v38, %v4062_v37  ;;  %v557_v30 = vmul.f32 %v4062_v37, %v4062_v37  ;;  %v4363_v29 = vpop.eup %3593  ;;  %v558_v16 = vmul.f32 %v4065_v38, %v4065_v38  ;;  %v6347_v35 = vmov 0.0  }
  0x7c   : > { %6488 = vst [vmem:[#allocation36_spill] sm:$0xff] %v4363_v29  ;;  %v559_v42 = vadd.f32 %v554_v40, %v553_v36  ;;  %v555_v45 = vmul.f32 %v4051_v22, %v4051_v22  ;;  %v556_v10 = vmul.f32 %v4054_v23, %v4054_v23  ;;  %v4376_v59 = vpop.eup %3595  ;;  %v4381_v40 = vsel %vm388_vm0, 1.0, %v6347_v35  ;;  %v6492_v29 = vld [vmem:[#allocation8_spill] sm:$0xff] }
  0x7d   : > { %6489 = vst [vmem:[#allocation37_spill] sm:$0xff] %v4376_v59  ;;  %6490 = vst [vmem:[#allocation38_spill] sm:$0xff] %v4381_v40  ;;  %v4386_v36 = vsel %vm391_vm1, 1.0, %v6347_v35  ;;  %v400_v8 = vadd.s32 8, %v6492_v29  ;;  %v4392_v43 = vpop.eup %3597  ;;  %v691_v20 = vadd.f32 1.0, %v4282_v25  ;;  %v692_v59 = vadd.f32 1.0, %v4293_v54 }
  0x7e   : > { %6491 = vst [vmem:[#allocation39_spill] sm:$0xff] %v4386_v36  ;;  %6493 = vst [vmem:[#allocation8_spill] sm:$0xff] %v4392_v43  ;;  %v4398_v3 = vadd.s32 %v4390_v18, %v6492_v29  ;;  %v689_v52 = vadd.f32 1.0, %v4273_v61  ;;  %v4401_v32 = vpop.eup %3599  ;;  %541 = vadd.xlane.f32.xlu1 %v540_v51  ;;  %v690_v35 = vadd.f32 1.0, %v4279_v60  ;;  %v1286_v25 = vrot.slane %v4374_v62, %v3972_v44 }
  0x7f   : > { %6495 = vst [vmem:[#allocation41_spill] sm:$0xff] %v4401_v32  ;;  %538 = vadd.xlane.f32.xlu0 %v537_v41  ;;  %v4404_v48 = vadd.s32 %v4390_v18, %v400_v8  ;;  %v1290_v54 = vrot.slane %v4374_v62, %v3975_v46  ;;  %v4411_v43 = vpop.eup %3601  ;;  %v4414_v61 = vmul.f32 %v691_v20, %v4241_v58  ;;  %3609 = verf.f32 %v4332_v57 }
  0x80   : > { %6494 = vst [vmem:[#allocation40_spill] sm:$0xff] %v4398_v3  ;;  %6496 = vst [vmem:[#allocation42_spill] sm:$0xff] %v4411_v43  ;;  %v4417_v51 = vmul.f32 %v692_v59, %v4243_v39  ;;  %vm407_vm2 = vcmp.lt.s32.totalorder %v4398_v3, 38  ;;  %vm416_vm3 = vcmp.gt.s32.totalorder %v4398_v3, 0  ;;  %v565_v60 = vadd.f32 %v558_v16, %v557_v30 }
  0x81   : > { %vm408_vm4 = vcmp.lt.s32.totalorder %v4404_v48, 38  ;;  %vm417_vm5 = vcmp.gt.s32.totalorder %v4404_v48, 0  ;;  %vm419_vm6 = vmand %vm407_vm2, %vm416_vm3  ;;  %v695_v8 = vmul.f32 %v689_v52, %v4235_v13  ;;  %v4426_v41 = vpop.eup %3603  ;;  %v562_v58 = vadd.f32 %v556_v10, %v555_v45  ;;  %703 = vst [vmem:[%s4432_s12 + $0x40] sm:$0xff] %v4414_v61 }
  0x82   : > { %6497 = vst [vmem:[#allocation43_spill] sm:$0xff] %v4426_v41  ;;  %vm420_vm7 = vmand %vm408_vm4, %vm417_vm5  ;;  %v6498_v39 = vmov 0.0   ;;  %v696_v13 = vmul.f32 %v690_v35, %v4237_v9  ;;  %v1296_v52 = vrot.slane %v1286_v25, %v3972_v44  ;;  %560 = vadd.xlane.f32.xlu1 %v559_v42  ;;  %v1300_v30 = vrot.slane %v1290_v54, %v3972_v44 }
  0x83   : > { %704 = vst [vmem:[%s4432_s12 + $0x48] sm:$0xff] %v4417_v51  ;;  %v4439_v59 = vsel %vm419_vm6, 1.0, %v6498_v39  ;;  %544 = vadd.xlane.f32.xlu0 %v543_v19  ;;  %v4444_v16 = vsel %vm420_vm7, 1.0, %v6498_v39  ;;  %701 = vst [vmem:[%s4432_s12] sm:$0xff] %v695_v8  ;;  %v1310_v45 = vrot.slane %v4374_v62, %v3978_v47  ;;  %v4451_v10 = vpop.eup %3605  ;;  %3611 = verf.f32 %v4338_v15 }
  0x84   : > { %6499 = vst [vmem:[#allocation44_spill] sm:$0xff] %v4439_v59  ;;  %6500 = vst [vmem:[#allocation45_spill] sm:$0xff] %v4444_v16  ;;  %v707_v20 = vmul.f32 %v4439_v59, %v695_v8  ;;  %v709_v9 = vmul.f32 %v4444_v16, %v4414_v61  ;;  %v710_v35 = vmul.f32 %v4444_v16, %v4417_v51  ;;  %v4460_v25 = vpop.eup %3607  ;;  %3613 = verf.f32 %v4348_v14 }
  0x85   : > { %6501 = vst [vmem:[#allocation46_spill] sm:$0xff] %v4451_v10  ;;  %702 = vst [vmem:[%s4432_s12 + $0x8] sm:$0xff] %v696_v13  ;;  %v708_v19 = vmul.f32 %v4439_v59, %v696_v13  ;;  %v1301_v42 = vmul.f32 %v1296_v52, %v3939_v28  ;;  %v1302_v41 = vmul.f32 %v1300_v30, %v3944_v31  ;;  %v4519_v15 = vmul.f32 0.5, %v4311_v63 }
  0x86   : > { %6502 = vst [vmem:[#allocation47_spill] sm:$0xff] %v4460_v25  ;;  %v713_v54 = vmul.f32 %v4381_v40, %v707_v20  ;;  %v1303_v10 = vmul.f32 %v1296_v52, %v3949_v33  ;;  %v1304_v43 = vmul.f32 %v1300_v30, %v3952_v34  ;;  %v4467_v32 = vmul.f32 %v4381_v40, %v709_v9  ;;  %v6503_v25 = vld [vmem:[#allocation12_spill] sm:$0xff] }
  0x87   : > { %v4470_v16 = vmul.f32 %v4386_v36, %v710_v35  ;;  %v714_v59 = vmul.f32 %v4386_v36, %v708_v19  ;;  %v1305_v28 = vmul.f32 %v1296_v52, %v3933_v26  ;;  %566 = vadd.xlane.f32.xlu1 %v565_v60  ;;  %563 = vadd.xlane.f32.xlu0 %v562_v58  ;;  %v1369_v34 = vstv %s3513_s13  ;;  %v6504_v35 = vld [vmem:[#allocation13_spill] sm:$0xff]  ;;  %v6505_v19 = vld [vmem:[#allocation14_spill] sm:$0xff]  ;;  %v6506_v58 = vld [vmem:[#allocation16_spill] sm:$0xff]  ;;  %s3521_s13 = spop %3520 }
  0x88   : > { %v1306_v20 = vmul.f32 %v1300_v30, %v3936_v27  ;;  %v1314_v31 = vrot.slane %v4374_v62, %v6503_v25  ;;  %v1320_v33 = vrot.slane %v1310_v45, %v3978_v47  ;;  %v1340_v40 = vrot.slane %v4374_v62, %v6504_v35  ;;  %6510 = vst [vmem:[#allocation48_spill] sm:$0xff] %v4519_v15  ;;  %v4701_v15 = vld [vmem:[%s3930_s23 + $0x48] sm:$0xff] }
  0x89   : > { %v722_v9 = vadd.f32 %v4470_v16, %v4467_v32  ;;  %v719_v46 = vadd.f32 %v714_v59, %v713_v54  ;;  %v1344_v26 = vrot.slane %v4374_v62, %v6505_v19  ;;  %v731_v36 = vmul.f32 %v713_v54, %v695_v8  ;;  %6546 = vst [vmem:[#allocation56_spill] sm:$0xff] %v4701_v15 }
  0x8a   : > { %v1324_v60 = vrot.slane %v1314_v31, %v3978_v47  ;;  %v1325_v27 = vmul.f32 %v6506_v58, %v1320_v33  ;;  %v1327_v52 = vmul.f32 %v4018_v4, %v1320_v33  ;;  %v1329_v30 = vmul.f32 %v4025_v6, %v1320_v33 }
  0x8b   : > { %v1350_v45 = vrot.slane %v1340_v40, %v6504_v35  ;;  %v1354_v25 = vrot.slane %v1344_v26, %v6504_v35  ;;  %v732_v44 = vmul.f32 %v714_v59, %v696_v13  ;;  %723 = vadd.xlane.f32.xlu1 %v722_v9  ;;  %720 = vadd.xlane.f32.xlu0 %v719_v46  ;;  %v401_v58 = vadd.s32 16, %v6492_v29 }
  0x8c   : > { %v1326_v50 = vmul.f32 %v6507_v53, %v1324_v60  ;;  %v1328_v62 = vmul.f32 %v4021_v5, %v1324_v60  ;;  %v1330_v31 = vmul.f32 %v4028_v7, %v1324_v60  ;;  %v1331_v19 = vadd.f32 %v1325_v27, %v1301_v42 }
  0x8d   : > { %v1333_v4 = vadd.f32 %v1327_v52, %v1303_v10  ;;  %v1335_v47 = vadd.f32 %v1329_v30, %v1305_v28  ;;  %v1355_v6 = vmul.f32 %v4036_v12, %v1350_v45  ;;  %v1356_v8 = vmul.f32 %v4044_v17, %v1354_v25 }
  0x8e   : > { %v1332_v40 = vadd.f32 %v1326_v50, %v1302_v41  ;;  %v1334_v33 = vadd.f32 %v1328_v62, %v1304_v43  ;;  %v1336_v26 = vadd.f32 %v1330_v31, %v1306_v20  ;;  %v1357_v46 = vmul.f32 %v4051_v22, %v1350_v45  ;;  %v4569_v62 = vld [vmem:[%s6325_s1 + $0x28] sm:$0x77]  ;;  %v4571_v31 = vpop.eup %3609 }
  0x8f   : > { %v1358_v53 = vmul.f32 %v4054_v23, %v1354_v25  ;;  %v1359_v5 = vmul.f32 %v4062_v37, %v1350_v45  ;;  %v1360_v7 = vmul.f32 %v4065_v38, %v1354_v25  ;;  %v1361_v59 = vadd.f32 %v1355_v6, %v1331_v19  ;;  %v6518_v45 = vld [vmem:[#allocation20_spill] sm:$0xff] }
  0x90   : > { %v1362_v29 = vadd.f32 %v1356_v8, %v1332_v40  ;;  %v737_v13 = vadd.f32 %v732_v44, %v731_v36  ;;  %v4501_v10 = vadd.s32 %v4390_v18, %v401_v58  ;;  %v1207_v12 = vmul.f32 0.70710677, %v4311_v63 }
  0x91   : > { %v1363_v50 = vadd.f32 %v1357_v46, %v1333_v4  ;;  %v1364_v17 = vadd.f32 %v1358_v53, %v1334_v33  ;;  %v4506_v22 = vmul.f32 0.5, %v4303_v1  ;;  %v1365_v23 = vadd.f32 %v1359_v5, %v1335_v47  ;;  %v6521_v4 = vld [vmem:[#allocation24_spill] sm:$0xff]  ;;  %v6525_v46 = vld [vmem:[#allocation15_spill] sm:$0xff]  ;;  %v6526_v5 = vld [vmem:[#allocation9_spill] sm:$0xff] }
  0x92   : > { %6508 = vst [vmem:[#allocation16_spill] sm:$0xff] %v4501_v10  ;;  %v1366_v37 = vadd.f32 %v1360_v7, %v1336_v26  ;;  %738 = vadd.xlane.f32.xlu1 %v737_v13  ;;  %v1371_v38 = vadd.f32 %v1369_v34, %v1361_v59  ;;  %v1372_v43 = vadd.f32 %v1369_v34, %v1362_v29  ;;  %vm409_vm8 = vcmp.lt.s32.totalorder %v4501_v10, 38  ;;  %v6523_v26 = vld [vmem:[#allocation32_spill] sm:$0xff]  ;;  %v6528_v29 = vld [vmem:[#allocation38_spill] sm:$0xff] }
  0x93   : > { %vm418_vm9 = vcmp.gt.s32.totalorder %v4501_v10, 0  ;;  %v4512_v44 = vmul.f32 0.5, %v4307_v55  ;;  %v4515_v18 = vmul.f32 0.5, %v4309_v21  ;;  %v1373_v1 = vadd.f32 %v1369_v34, %v1363_v50 }
  0x94   : > { %3615 = verf.f32 %v1207_v12  ;;  %v4524_v47 = vsel %vm407_vm2, 1.0, %v6498_v39  ;;  %v1374_v57 = vadd.f32 %v1369_v34, %v1364_v17  ;;  %v4529_v55 = vsel %vm408_vm4, 1.0, %v6498_v39  ;;  %vm421_vm10 = vmand %vm409_vm8, %vm418_vm9  ;;  %v6529_v12 = vld [vmem:[#allocation39_spill] sm:$0xff]  ;;  %v6530_v17 = vld [vmem:[#allocation22_spill] sm:$0xff] }
  0x95   : > { %6509 = vst [vmem:[#allocation17_spill] sm:$0xff] %v4515_v18  ;;  %6511 = vst [vmem:[#allocation49_spill] sm:$0xff] %v4524_v47  ;;  %v4531_v21 = vadd.f32 %v1369_v34, %v1365_v23  ;;  %v4533_v36 = vadd.f32 %v1369_v34, %v1366_v37  ;;  %v4535_v14 = vmul.f32 0.5, %v1371_v38  ;;  %v4539_v63 = vmul.f32 0.5, %v1372_v43 }
  0x96   : > { %6512 = vst [vmem:[#allocation50_spill] sm:$0xff] %v4529_v55  ;;  %v4541_v41 = vmul.f32 0.5, %v1373_v1  ;;  %v4543_v42 = vmul.f32 0.70710677, %v1371_v38  ;;  %v4545_v25 = vmul.f32 0.70710677, %v1372_v43  ;;  %v1462_v7 = vrot.slane %v4569_v62, %v6526_v5 }
  0x97   : > { %6513 = vst [vmem:[#allocation51_spill] sm:$0xff] %v4535_v14  ;;  %6514 = vst [vmem:[#allocation52_spill] sm:$0xff] %v4539_v63  ;;  %v4547_v54 = vmul.f32 0.5, %v1374_v57  ;;  %v4549_v28 = vmul.f32 0.70710677, %v1373_v1  ;;  %v693_v20 = vadd.f32 1.0, %v4299_v24 }
  0x98   : > { %6515 = vst [vmem:[#allocation53_spill] sm:$0xff] %v4541_v41  ;;  %v694_v34 = vadd.f32 1.0, %v4305_v49  ;;  %v4553_v9 = vmul.f32 0.70710677, %v1374_v57  ;;  %v4556_v19 = vsel %vm421_vm10, 1.0, %v6498_v39  ;;  %v866_v60 = vadd.f32 1.0, %v4327_v56 }
  0x99   : > { %6516 = vst [vmem:[#allocation54_spill] sm:$0xff] %v4547_v54  ;;  %6517 = vst [vmem:[#allocation55_spill] sm:$0xff] %v4556_v19  ;;  %v867_v27 = vadd.f32 1.0, %v4335_v11  ;;  %v4561_v52 = vmul.f32 0.70710677, %v4531_v21  ;;  %v699_v30 = vmul.f32 %v693_v20, %v4245_v0  ;;  %v864_v49 = vadd.f32 1.0, %v4313_v2  ;;  %v4583_v2 = vpop.eup %3611 }
  0x9a   : > { %v700_v24 = vmul.f32 %v694_v34, %v6518_v45  ;;  %v733_v56 = vmul.f32 %v4467_v32, %v4414_v61  ;;  %v734_v11 = vmul.f32 %v4470_v16, %v4417_v51  ;;  %v6519_v0 = vld [vmem:[#allocation23_spill] sm:$0xff]  ;;  %v865_v32 = vadd.f32 1.0, %v6523_v26  ;;  %v6524_v61 = vld [vmem:[#allocation21_spill] sm:$0xff]  ;;  %v4604_v59 = vpop.eup %3613  ;;  %v6534_v57 = vld [vmem:[#allocation10_spill] sm:$0xff] }
  0x9b   : > { %v4578_v58 = vmul.f32 %v866_v60, %v6519_v0  ;;  %v4581_v6 = vmul.f32 %v867_v27, %v6521_v4  ;;  %705 = vst [vmem:[%s4432_s12 + $0x80] sm:$0xff] %v699_v30  ;;  %v711_v40 = vmul.f32 %v4556_v19, %v699_v30  ;;  %v4591_v8 = vmul.f32 %v864_v49, %v6524_v61  ;;  %v4640_v26 = vld [vmem:[%s3930_s23] sm:$0xff]  ;;  %v4648_v61 = vld [vmem:[%s3930_s23 + $0x8] sm:$0xff] }
  0x9c   : > { %706 = vst [vmem:[%s4432_s12 + $0x88] sm:$0xff] %v700_v24  ;;  %v712_v33 = vmul.f32 %v4556_v19, %v700_v24  ;;  %v2427_v53 = vrot.slane %v6525_v46, 2  ;;  %6527 = vst [vmem:[#allocation24_spill] sm:$0xff] %v4604_v59  ;;  %v4609_v23 = vmul.f32 %v865_v32, %v6530_v17  ;;  %v1466_v20 = vrot.slane %v4569_v62, %v6534_v57  ;;  %v4662_v17 = vld [vmem:[%s3930_s23 + $0x28] sm:$0xff]  ;;  %v6538_v63 = vld [vmem:[#allocation8_spill] sm:$0xff] }
  0x9d   : > { %6520 = vst [vmem:[#allocation20_spill] sm:$0xff] %v4578_v58  ;;  %6522 = vst [vmem:[#allocation23_spill] sm:$0xff] %v4581_v6  ;;  %v884_v51 = vmul.f32 %v4529_v55, %v4578_v58  ;;  %v885_v16 = vmul.f32 %v4529_v55, %v4581_v6  ;;  %v717_v13 = vmul.f32 %v6528_v29, %v711_v40  ;;  %v4674_v19 = vstv %s3515_s16 }
  0x9e   : > { %878 = vst [vmem:[%s4432_s12 + $0x50] sm:$0xff] %v4578_v58  ;;  %879 = vst [vmem:[%s4432_s12 + $0x58] sm:$0xff] %v4581_v6  ;;  %v718_v50 = vmul.f32 %v6529_v12, %v712_v33  ;;  %v882_v37 = vmul.f32 %v4524_v47, %v4591_v8  ;;  %v4615_v38 = vpop.eup %3615  ;;  %v1472_v34 = vrot.slane %v1462_v7, %v6526_v5  ;;  %v4682_v6 = vld [vmem:[%s3930_s23 + $0x30] sm:$0xff]  ;;  %3617 = verf.f32 %v4543_v42 }
  0x9f   : > { %876 = vst [vmem:[%s4432_s12 + $0x10] sm:$0xff] %v4591_v8  ;;  %6531 = vst [vmem:[#allocation32_spill] sm:$0xff] %v4615_v38  ;;  %v4618_v43 = vmul.f32 %v6528_v29, %v884_v51  ;;  %v4621_v1 = vmul.f32 %v6529_v12, %v885_v16  ;;  %v735_v27 = vmul.f32 %v717_v13, %v699_v30  ;;  %v4652_v16 = vld [vmem:[%s3930_s23 + $0x18] sm:$0xff]  ;;  %v6543_v58 = vld [vmem:[#allocation18_spill] sm:$0xff]  ;;  %3619 = verf.f32 %v4545_v25 }
  0xa0   : > { %3524 = vpush %v2427_v53  ;;  %v725_v60 = vadd.f32 %v718_v50, %v717_v13  ;;  %v736_v45 = vmul.f32 %v718_v50, %v700_v24  ;;  %877 = vst [vmem:[%s4432_s12 + $0x18] sm:$0xff] %v4609_v23  ;;  %v883_v49 = vmul.f32 %v4524_v47, %v4609_v23  ;;  %v4656_v53 = vld [vmem:[%s3930_s23 + $0x20] sm:$0xff]  ;;  %v6535_v13 = vld [vmem:[#allocation11_spill] sm:$0xff]  ;;  %3621 = verf.f32 %v4549_v28 }
  0xa1   : > { %6532 = vst [vmem:[#allocation21_spill] sm:$0xff] %v4618_v43  ;;  %6533 = vst [vmem:[#allocation15_spill] sm:$0xff] %v4621_v1  ;;  %v740_v0 = vadd.f32 %v734_v11, %v733_v56  ;;  %v897_v4 = vadd.f32 %v4621_v1, %v4618_v43  ;;  %v4633_v40 = vmul.f32 %v6528_v29, %v882_v37  ;;  %v4644_v56 = vld [vmem:[%s3930_s23 + $0x10] sm:$0xff]  ;;  %v4686_v43 = vld [vmem:[%s3930_s23 + $0x40] sm:$0xff]  ;;  %3623 = verf.f32 %v4553_v9 }
  0xa2   : > { %v1476_v33 = vrot.slane %v1466_v20, %v6526_v5  ;;  %726 = vadd.xlane.f32.xlu0 %v725_v60  ;;  %v743_v30 = vadd.f32 %v736_v45, %v735_v27  ;;  %v4637_v24 = vmul.f32 %v6529_v12, %v883_v49  ;;  %v1477_v32 = vmul.f32 %v4640_v26, %v1472_v34  ;;  %v6536_v20 = vld [vmem:[#allocation12_spill] sm:$0xff]  ;;  %v6537_v45 = vld [vmem:[#allocation14_spill] sm:$0xff]  ;;  %v4705_v38 = vld [vmem:[%s3930_s23 + $0x58] sm:$0xff] }
  0xa3   : > { %v1479_v11 = vmul.f32 %v4644_v56, %v1472_v34  ;;  %v1481_v7 = vmul.f32 %v4656_v53, %v1472_v34  ;;  %v1486_v50 = vrot.slane %v4569_v62, %v6535_v13  ;;  %v1490_v60 = vrot.slane %v4569_v62, %v6536_v20  ;;  %6540 = vst [vmem:[#allocation9_spill] sm:$0xff] %v4682_v6  ;;  %v6552_v25 = vld [vmem:[#allocation34_spill] sm:$0xff] }
  0xa4   : > { %v1478_v51 = vmul.f32 %v4648_v61, %v1476_v33  ;;  %v1480_v46 = vmul.f32 %v4652_v16, %v1476_v33  ;;  %744 = vadd.xlane.f32.xlu1 %v743_v30  ;;  %v1482_v37 = vmul.f32 %v4662_v17, %v1476_v33  ;;  %v1516_v27 = vrot.slane %v4569_v62, %v6504_v35 }
  0xa5   : > { %v1520_v34 = vrot.slane %v4569_v62, %v6537_v45  ;;  %v894_v49 = vadd.f32 %v4637_v24, %v4633_v40  ;;  %v1496_v30 = vrot.slane %v1486_v50, %v6535_v13  ;;  %v1041_v33 = vadd.f32 1.0, %v6538_v63  ;;  %v6539_v62 = vld [vmem:[#allocation41_spill] sm:$0xff]  ;;  %6541 = vst [vmem:[#allocation22_spill] sm:$0xff] %v4686_v43  ;;  %6547 = vst [vmem:[#allocation57_spill] sm:$0xff] %v4705_v38 }
  0xa6   : > { %741 = vadd.xlane.f32.xlu0 %v740_v0  ;;  %v1500_v14 = vrot.slane %v1490_v60, %v6535_v13  ;;  %v1526_v54 = vrot.slane %v1516_v27, %v6504_v35  ;;  %v1042_v1 = vadd.f32 1.0, %v6539_v62  ;;  %v4690_v0 = vld [vmem:[%s3930_s23 + $0x50] sm:$0xff]  ;;  %3625 = verf.f32 %v4561_v52 }
  0xa7   : > { %v1530_v41 = vrot.slane %v1520_v34, %v6504_v35  ;;  %v1501_v50 = vmul.f32 %v4682_v6, %v1496_v30  ;;  %v1503_v63 = vmul.f32 %v4686_v43, %v1496_v30  ;;  %6542 = vst [vmem:[#allocation8_spill] sm:$0xff] %v4690_v0  ;;  %v1505_v60 = vmul.f32 %v4690_v0, %v1496_v30  ;;  %v4697_v34 = vld [vmem:[%s3930_s23 + $0x38] sm:$0xff]  ;;  %v4709_v30 = vld [vmem:[%s3930_s23 + $0x60] sm:$0xff] }
  0xa8   : > { %v4694_v27 = vmul.f32 %v1041_v33, %v6543_v58  ;;  %898 = vadd.xlane.f32.xlu1 %v897_v4  ;;  %6545 = vst [vmem:[#allocation18_spill] sm:$0xff] %v4697_v34  ;;  %v1502_v62 = vmul.f32 %v4697_v34, %v1500_v14  ;;  %v1504_v18 = vmul.f32 %v4701_v15, %v1500_v14  ;;  %6548 = vst [vmem:[#allocation58_spill] sm:$0xff] %v4709_v30  ;;  %v4713_v34 = vld [vmem:[%s3930_s23 + $0x68] sm:$0xff]  ;;  %v4723_v6 = vld [vmem:[%s3930_s23 + $0x78] sm:$0xff]  ;;  %vm474_vm1 = vcmask 7168  }
  0xa9   : > { %v1506_v59 = vmul.f32 %v4705_v38, %v1500_v14  ;;  %v1531_v58 = vmul.f32 %v4709_v30, %v1526_v54  ;;  %v1507_v4 = vadd.f32 %v1501_v50, %v1477_v32  ;;  %v1509_v33 = vadd.f32 %v1503_v63, %v1479_v11  ;;  %6549 = vst [vmem:[#allocation59_spill] sm:$0xff] %v4713_v34  ;;  %v4719_v14 = vld [vmem:[%s3930_s23 + $0x70] sm:$0xff]  ;;  %v4727_v11 = vld [vmem:[%s3930_s23 + $0x80] sm:$0xff]  ;;  %v4731_v50 = vld [vmem:[%s3930_s23 + $0x88] sm:$0xff] }
  0xaa   : > { %6544 = vst [vmem:[#allocation41_spill] sm:$0xff] %v4694_v27  ;;  %v1511_v3 = vadd.f32 %v1505_v60, %v1481_v7  ;;  %v1532_v45 = vmul.f32 %v4713_v34, %v1530_v41  ;;  %1053 = vst [vmem:[%s4432_s12 + $0x60] sm:$0xff] %v4694_v27  ;;  %895 = vadd.xlane.f32.xlu0 %v894_v49  ;;  %v1508_v15 = vadd.f32 %v1502_v62, %v1478_v51 }
  0xab   : > { %v1510_v0 = vadd.f32 %v1504_v18, %v1480_v46  ;;  %v1512_v43 = vadd.f32 %v1506_v59, %v1482_v37  ;;  %v1533_v38 = vmul.f32 %v4719_v14, %v1526_v54  ;;  %v1534_v32 = vmul.f32 %v4723_v6, %v1530_v41  ;;  %v6550_v46 = vld [vmem:[#allocation19_spill] sm:$0xff]  ;;  %s3523_s16 = spop %3522 }
  0xac   : > { %v1535_v7 = vmul.f32 %v4727_v11, %v1526_v54  ;;  %v1536_v49 = vmul.f32 %v4731_v50, %v1530_v41  ;;  %v1537_v51 = vadd.f32 %v1531_v58, %v1507_v4  ;;  %v1538_v18 = vadd.f32 %v1532_v45, %v1508_v15  ;;  %v6598_v10 = vld [vmem:[#allocation57_spill] sm:$0xff] }
  0xad   : > { %v1539_v59 = vadd.f32 %v1533_v38, %v1509_v33  ;;  %v4736_v37 = vmul.f32 %v1042_v1, %v6550_v46  ;;  %v1388_v63 = vmul.f32 0.70710677, %v4533_v36  ;;  %v1540_v60 = vadd.f32 %v1534_v32, %v1510_v0  ;;  %v6559_v32 = vld [vmem:[#allocation35_spill] sm:$0xff] }
  0xae   : > { %v1059_v54 = vmul.f32 %v4529_v55, %v4694_v27  ;;  %v1541_v62 = vadd.f32 %v1535_v7, %v1511_v3  ;;  %v1542_v41 = vadd.f32 %v1536_v49, %v1512_v43  ;;  %v1547_v58 = vadd.f32 %v4674_v19, %v1537_v51  ;;  %v6560_v49 = vld [vmem:[#allocation25_spill] sm:$0xff]  ;;  %v6594_v27 = vld [vmem:[#allocation8_spill] sm:$0xff] }
  0xaf   : > { %6551 = vst [vmem:[#allocation19_spill] sm:$0xff] %v4736_v37  ;;  %1054 = vst [vmem:[%s4432_s12 + $0x68] sm:$0xff] %v4736_v37  ;;  %v4748_v15 = vadd.f32 %v4674_v19, %v1538_v18  ;;  %v1060_v42 = vmul.f32 %v4529_v55, %v4736_v37  ;;  %v868_v38 = vadd.f32 1.0, %v6552_v25  ;;  %v4754_v1 = vmul.f32 0.5, %v4531_v21  ;;  %v6575_v55 = vld [vmem:[#allocation42_spill] sm:$0xff] }
  0xb0   : > { %v4757_v3 = vmul.f32 0.5, %v4533_v36  ;;  %v4761_v28 = vadd.f32 %v4674_v19, %v1539_v59  ;;  %3627 = verf.f32 %v1388_v63  ;;  %v4766_v9 = vsel %vm409_vm8, 1.0, %v6498_v39 }
  0xb1   : > { %6553 = vst [vmem:[#allocation34_spill] sm:$0xff] %v4754_v1  ;;  %6555 = vst [vmem:[#allocation61_spill] sm:$0xff] %v4766_v9  ;;  %v4769_v43 = vadd.f32 %v4674_v19, %v1540_v60  ;;  %v4772_v21 = vmul.f32 %v6528_v29, %v1059_v54  ;;  %v4775_v36 = vadd.f32 %v4674_v19, %v1541_v62  ;;  %v4780_v45 = vmul.f32 0.5, %v1547_v58  ;;  %v6561_v60 = vld [vmem:[#allocation26_spill] sm:$0xff] }
  0xb2   : > { %6554 = vst [vmem:[#allocation60_spill] sm:$0xff] %v4757_v3  ;;  %v4778_v52 = vadd.f32 %v4674_v19, %v1542_v41  ;;  %v1559_v0 = vmul.f32 0.70710677, %v1547_v58  ;;  %v4783_v4 = vmul.f32 0.70710677, %v4748_v15  ;;  %v4786_v33 = vmul.f32 %v6529_v12, %v1060_v42 }
  0xb3   : > { %6556 = vst [vmem:[#allocation62_spill] sm:$0xff] %v4772_v21  ;;  %6557 = vst [vmem:[#allocation63_spill] sm:$0xff] %v4780_v45  ;;  %v869_v7 = vadd.f32 1.0, %v6559_v32  ;;  %v4790_v51 = vmul.f32 %v868_v38, %v6560_v49  ;;  %v4793_v18 = vmul.f32 0.70710677, %v4761_v28  ;;  %vm429_vm11 = vcmp.lt.s32.totalorder %v4404_v48, 37 }
  0xb4   : > { %6558 = vst [vmem:[#allocation64_spill] sm:$0xff] %v4786_v33  ;;  %v1216_v19 = vadd.f32 1.0, %v4571_v31  ;;  %v1217_v59 = vadd.f32 1.0, %v4583_v2  ;;  %v4799_v46 = vmul.f32 0.70710677, %v4769_v43  ;;  %v1072_v63 = vadd.f32 %v4786_v33, %v4772_v21  ;;  %vm432_vm12 = vmand %vm408_vm4, %vm429_vm11  ;;  %v4812_v31 = vpop.eup %3617  ;;  %v6568_v32 = vld [vmem:[#allocation36_spill] sm:$0xff] }
  0xb5   : > { %v4804_v54 = vmul.f32 %v869_v7, %v6561_v60  ;;  %880 = vst [vmem:[%s4432_s12 + $0x90] sm:$0xff] %v4790_v51  ;;  %v886_v62 = vmul.f32 %v4766_v9, %v4790_v51  ;;  %6563 = vst [vmem:[#allocation25_spill] sm:$0xff] %v4812_v31  ;;  %v4815_v2 = vmul.f32 0.70710677, %v4775_v36  ;;  %v4818_v41 = vsel %vm432_vm12, 1.0, %v6498_v39  ;;  %v4826_v25 = vpop.eup %3619  ;;  %v6593_v21 = vld [vmem:[#allocation22_spill] sm:$0xff] }
  0xb6   : > { %6564 = vst [vmem:[#allocation26_spill] sm:$0xff] %v4818_v41  ;;  %v4821_v58 = vmul.f32 %v1216_v19, %v4506_v22  ;;  %v4824_v42 = vmul.f32 %v1217_v59, %v4512_v44  ;;  %6567 = vst [vmem:[#allocation67_spill] sm:$0xff] %v4826_v25  ;;  %3629 = verf.f32 %v1559_v0  ;;  %1073 = vadd.xlane.f32.xlu1 %v1072_v63  ;;  %v1039_v7 = vadd.f32 1.0, %v6568_v32  ;;  %v4836_v49 = vpop.eup %3621  ;;  %v6570_v0 = vld [vmem:[#allocation37_spill] sm:$0xff] }
  0xb7   : > { %6562 = vst [vmem:[#allocation35_spill] sm:$0xff] %v4804_v54  ;;  %881 = vst [vmem:[%s4432_s12 + $0x98] sm:$0xff] %v4804_v54  ;;  %v887_v48 = vmul.f32 %v4766_v9, %v4804_v54  ;;  %v4833_v38 = vmul.f32 %v6528_v29, %v886_v62  ;;  %v1040_v19 = vadd.f32 1.0, %v6570_v0  ;;  %v906_v59 = vmul.f32 %v4633_v40, %v4591_v8  ;;  %v4849_v63 = vpop.eup %3623  ;;  %v6573_v62 = vld [vmem:[#allocation27_spill] sm:$0xff]  ;;  %v3428_v0 = vld [vmem:[%s6325_s1 + $0x30] sm:$0x77] }
  0xb8   : > { %6565 = vst [vmem:[#allocation65_spill] sm:$0xff] %v4821_v58  ;;  %6566 = vst [vmem:[#allocation66_spill] sm:$0xff] %v4824_v42  ;;  %v1234_v22 = vmul.f32 %v4818_v41, %v4821_v58  ;;  %v1235_v44 = vmul.f32 %v4818_v41, %v4824_v42  ;;  %v4855_v32 = vmul.f32 %v1039_v7, %v6573_v62  ;;  %v1043_v41 = vadd.f32 1.0, %v6575_v55  ;;  %v4863_v3 = vpop.eup %3625  ;;  %v6581_v62 = vld [vmem:[#allocation43_spill] sm:$0xff] }
  0xb9   : > { %6569 = vst [vmem:[#allocation36_spill] sm:$0xff] %v4836_v49  ;;  %1228 = vst [vmem:[%s4432_s12 + $0x70] sm:$0xff] %v4821_v58  ;;  %v4852_v60 = vmul.f32 %v6529_v12, %v887_v48  ;;  %v907_v45 = vmul.f32 %v4637_v24, %v4609_v23  ;;  %v6579_v48 = vld [vmem:[#allocation28_spill] sm:$0xff]  ;;  %v1044_v23 = vadd.f32 1.0, %v6581_v62  ;;  %v6585_v62 = vld [vmem:[#allocation30_spill] sm:$0xff]  ;;  %v1637_v25 = vrot.slane %v3428_v0, %v6526_v5 }
  0xba   : > { %1229 = vst [vmem:[%s4432_s12 + $0x78] sm:$0xff] %v4824_v42  ;;  %6571 = vst [vmem:[#allocation37_spill] sm:$0xff] %v4849_v63  ;;  %v4866_v8 = vmul.f32 %v6528_v29, %v1234_v22  ;;  %v4869_v40 = vmul.f32 %v6529_v12, %v1235_v44  ;;  %v4872_v7 = vmul.f32 %v1040_v19, %v6579_v48  ;;  %v4875_v24 = vpop.eup %3627  ;;  %v6583_v44 = vld [vmem:[#allocation29_spill] sm:$0xff]  ;;  %v1720_v37 = vstv %s3517_s19 }
  0xbb   : > { %6572 = vst [vmem:[#allocation68_spill] sm:$0xff] %v4852_v60  ;;  %6574 = vst [vmem:[#allocation27_spill] sm:$0xff] %v4855_v32  ;;  %v900_v55 = vadd.f32 %v4852_v60, %v4833_v38  ;;  %v1057_v22 = vmul.f32 %v4524_v47, %v4855_v32  ;;  %v912_v1 = vadd.f32 %v907_v45, %v906_v59  ;;  %v6592_v58 = vld [vmem:[#allocation9_spill] sm:$0xff]  ;;  %3631 = verf.f32 %v4783_v4 }
  0xbc   : > { %6576 = vst [vmem:[#allocation42_spill] sm:$0xff] %v4863_v3  ;;  %6577 = vst [vmem:[#allocation69_spill] sm:$0xff] %v4866_v8  ;;  %v4884_v3 = vmul.f32 %v1043_v41, %v6583_v44  ;;  %v1247_v19 = vadd.f32 %v4869_v40, %v4866_v8  ;;  %v1058_v48 = vmul.f32 %v4524_v47, %v4872_v7  ;;  %3633 = verf.f32 %v4793_v18 }
  0xbd   : > { %6578 = vst [vmem:[#allocation70_spill] sm:$0xff] %v4869_v40  ;;  %6580 = vst [vmem:[#allocation28_spill] sm:$0xff] %v4872_v7  ;;  %901 = vadd.xlane.f32.xlu0 %v900_v55  ;;  %v4897_v31 = vmul.f32 %v6528_v29, %v1057_v22  ;;  %v1641_v41 = vrot.slane %v3428_v0, %v6534_v57  ;;  %v1661_v59 = vrot.slane %v3428_v0, %v6535_v13 }
  0xbe   : > { %6582 = vst [vmem:[#allocation43_spill] sm:$0xff] %v4875_v24  ;;  %1051 = vst [vmem:[%s4432_s12 + $0x20] sm:$0xff] %v4855_v32  ;;  %v4893_v24 = vmul.f32 %v1044_v23, %v6585_v62  ;;  %v1061_v45 = vmul.f32 %v4766_v9, %v4884_v3  ;;  %1248 = vadd.xlane.f32.xlu1 %v1247_v19  ;;  %v4906_v44 = vmul.f32 %v6529_v12, %v1058_v48 }
  0xbf   : > { %6584 = vst [vmem:[#allocation29_spill] sm:$0xff] %v4884_v3  ;;  %1052 = vst [vmem:[%s4432_s12 + $0x28] sm:$0xff] %v4872_v7  ;;  %v1647_v55 = vrot.slane %v1637_v25, %v6526_v5  ;;  %v1665_v22 = vrot.slane %v3428_v0, %v6536_v20  ;;  %v1651_v47 = vrot.slane %v1641_v41, %v6526_v5  ;;  %3635 = verf.f32 %v4799_v46 }
  0xc0   : > { %6586 = vst [vmem:[#allocation30_spill] sm:$0xff] %v4893_v24  ;;  %6587 = vst [vmem:[#allocation71_spill] sm:$0xff] %v4897_v31  ;;  %v1062_v23 = vmul.f32 %v4766_v9, %v4893_v24  ;;  %v4915_v62 = vmul.f32 %v6528_v29, %v1061_v45  ;;  %v1671_v63 = vrot.slane %v1661_v59, %v6535_v13  ;;  %v4927_v40 = vpop.eup %3629  ;;  %v6595_v29 = vld [vmem:[#allocation14_spill] sm:$0xff]  ;;  %v4978_v18 = vmul.f32 0.5, %v4769_v43 }
  0xc1   : > { %1055 = vst [vmem:[%s4432_s12 + $0xa0] sm:$0xff] %v4884_v3  ;;  %6588 = vst [vmem:[#allocation72_spill] sm:$0xff] %v4906_v44  ;;  %v1691_v19 = vrot.slane %v3428_v0, %v6504_v35  ;;  %v1069_v48 = vadd.f32 %v4906_v44, %v4897_v31  ;;  %v1652_v25 = vmul.f32 %v4640_v26, %v1647_v55  ;;  %v6596_v3 = vld [vmem:[#allocation18_spill] sm:$0xff]  ;;  %3637 = verf.f32 %v4815_v2 }
  0xc2   : > { %1056 = vst [vmem:[%s4432_s12 + $0xa8] sm:$0xff] %v4893_v24  ;;  %6589 = vst [vmem:[#allocation73_spill] sm:$0xff] %v4915_v62  ;;  %v4923_v49 = vmul.f32 %v6529_v12, %v1062_v23  ;;  %v1654_v9 = vmul.f32 %v4644_v56, %v1647_v55  ;;  %v1653_v45 = vmul.f32 %v4648_v61, %v1651_v47  ;;  %913 = vadd.xlane.f32.xlu1 %v912_v1 }
  0xc3   : > { %6591 = vst [vmem:[#allocation75_spill] sm:$0xff] %v4927_v40  ;;  %v1655_v41 = vmul.f32 %v4652_v16, %v1651_v47  ;;  %v1656_v59 = vmul.f32 %v4656_v53, %v1647_v55  ;;  %v1657_v42 = vmul.f32 %v4662_v17, %v1651_v47  ;;  %1070 = vadd.xlane.f32.xlu0 %v1069_v48  ;;  %v6597_v48 = vld [vmem:[#allocation56_spill] sm:$0xff]  ;;  %6601 = vst [vmem:[#allocation8_spill] sm:$0xff] %v4978_v18 }
  0xc4   : > { %6590 = vst [vmem:[#allocation74_spill] sm:$0xff] %v4923_v49  ;;  %v1075_v23 = vadd.f32 %v4923_v49, %v4915_v62  ;;  %v1675_v8 = vrot.slane %v1665_v22, %v6535_v13  ;;  %v1676_v33 = vmul.f32 %v6592_v58, %v1671_v63  ;;  %v1678_v40 = vmul.f32 %v6593_v21, %v1671_v63 }
  0xc5   : > { %v1680_v12 = vmul.f32 %v6594_v27, %v1671_v63  ;;  %v1695_v24 = vrot.slane %v3428_v0, %v6595_v29  ;;  %v1701_v55 = vrot.slane %v1691_v19, %v6504_v35  ;;  %v4949_v63 = vld [vmem:[%s6325_s1 + $0x38] sm:$0x77]  ;;  %v4983_v46 = vmul.f32 0.5, %v4775_v36 }
  0xc6   : > { %v1677_v47 = vmul.f32 %v6596_v3, %v1675_v8  ;;  %v1679_v1 = vmul.f32 %v6597_v48, %v1675_v8  ;;  %v1681_v44 = vmul.f32 %v6598_v10, %v1675_v8  ;;  %v1682_v49 = vadd.f32 %v1676_v33, %v1652_v25 }
  0xc7   : > { %v1684_v62 = vadd.f32 %v1678_v40, %v1654_v9  ;;  %v1686_v22 = vadd.f32 %v1680_v12, %v1656_v59  ;;  %v1705_v7 = vrot.slane %v1695_v24, %v6504_v35  ;;  %v1706_v31 = vmul.f32 %v4709_v30, %v1701_v55  ;;  %1076 = vadd.xlane.f32.xlu0 %v1075_v23 }
  0xc8   : > { %v1683_v0 = vadd.f32 %v1677_v47, %v1653_v45  ;;  %v1685_v19 = vadd.f32 %v1679_v1, %v1655_v41  ;;  %v1687_v32 = vadd.f32 %v1681_v44, %v1657_v42  ;;  %v1708_v39 = vmul.f32 %v4719_v14, %v1701_v55  ;;  %6602 = vst [vmem:[#allocation18_spill] sm:$0xff] %v4983_v46 }
  0xc9   : > { %v1707_v8 = vmul.f32 %v4713_v34, %v1705_v7  ;;  %v1709_v9 = vmul.f32 %v4723_v6, %v1705_v7  ;;  %v1710_v12 = vmul.f32 %v4727_v11, %v1701_v55  ;;  %v1711_v33 = vmul.f32 %v4731_v50, %v1705_v7 }
  0xca   : > { %v1712_v40 = vadd.f32 %v1706_v31, %v1682_v49  ;;  %v1714_v24 = vadd.f32 %v1708_v39, %v1684_v62  ;;  %v1812_v25 = vrot.slane %v4949_v63, %v6526_v5  ;;  %v1816_v44 = vrot.slane %v4949_v63, %v6534_v57 }
  0xcb   : > { %v1713_v45 = vadd.f32 %v1707_v8, %v1683_v0  ;;  %v1715_v41 = vadd.f32 %v1709_v9, %v1685_v19  ;;  %v1716_v42 = vadd.f32 %v1710_v12, %v1686_v22  ;;  %v1564_v59 = vmul.f32 0.70710677, %v4778_v52 }
  0xcc   : > { %v1717_v23 = vadd.f32 %v1711_v33, %v1687_v32  ;;  %v1722_v55 = vadd.f32 %v1720_v37, %v1712_v40  ;;  %v4964_v7 = vmul.f32 0.5, %v4748_v15  ;;  %v1724_v4 = vadd.f32 %v1720_v37, %v1714_v24  ;;  %v5009_v33 = vld [vmem:[%s6325_s1 + $0x40] sm:$0x77]  ;;  %v5011_v40 = vpop.eup %3631 }
  0xcd   : > { %v4967_v39 = vadd.f32 %v1720_v37, %v1713_v45  ;;  %v4969_v31 = vadd.f32 %v1720_v37, %v1715_v41  ;;  %v4971_v49 = vadd.f32 %v1720_v37, %v1716_v42  ;;  %v1822_v47 = vrot.slane %v1812_v25, %v6526_v5  ;;  %6606 = vst [vmem:[#allocation79_spill] sm:$0xff] %v5011_v40 }
  0xce   : > { %6599 = vst [vmem:[#allocation9_spill] sm:$0xff] %v4964_v7  ;;  %v1734_v62 = vmul.f32 0.70710677, %v1722_v55  ;;  %v4975_v1 = vmul.f32 0.5, %v4761_v28  ;;  %v1826_v15 = vrot.slane %v1816_v44, %v6526_v5  ;;  %v4986_v32 = vmul.f32 0.5, %v4778_v52 }
  0xcf   : > { %3639 = verf.f32 %v1564_v59  ;;  %v4988_v22 = vadd.f32 %v1720_v37, %v1717_v23  ;;  %v4990_v0 = vmul.f32 0.5, %v1722_v55  ;;  %v4992_v28 = vmul.f32 0.5, %v1724_v4  ;;  %v5022_v55 = vpop.eup %3633 }
  0xd0   : > { %6600 = vst [vmem:[#allocation22_spill] sm:$0xff] %v4975_v1  ;;  %6603 = vst [vmem:[#allocation76_spill] sm:$0xff] %v4986_v32  ;;  %v1735_v43 = vmul.f32 0.70710677, %v4967_v39  ;;  %v1736_v19 = vmul.f32 0.70710677, %v1724_v4  ;;  %3641 = verf.f32 %v1734_v62  ;;  %v1827_v36 = vmul.f32 %v4640_v26, %v1822_v47 }
  0xd1   : > { %6604 = vst [vmem:[#allocation77_spill] sm:$0xff] %v4990_v0  ;;  %6605 = vst [vmem:[#allocation78_spill] sm:$0xff] %v4992_v28  ;;  %v1737_v2 = vmul.f32 0.70710677, %v4969_v31  ;;  %v4997_v8 = vmul.f32 0.70710677, %v4971_v49  ;;  %v1828_v52 = vmul.f32 %v4648_v61, %v1826_v15  ;;  %v1829_v37 = vmul.f32 %v4644_v56, %v1822_v47  ;;  %s3525_s22 = spop %3524 }
  0xd2   : > { %v1836_v9 = vrot.slane %v4949_v63, %v6535_v13  ;;  %v1840_v12 = vrot.slane %v4949_v63, %v6536_v20  ;;  %v1830_v24 = vmul.f32 %v4652_v16, %v1826_v15  ;;  %v1831_v25 = vmul.f32 %v4656_v53, %v1822_v47  ;;  %6607 = vst [vmem:[#allocation80_spill] sm:$0xff] %v5022_v55 }
  0xd3   : > { %v1866_v45 = vrot.slane %v4949_v63, %v6504_v35  ;;  %v1870_v41 = vrot.slane %v4949_v63, %v6595_v29  ;;  %v1832_v42 = vmul.f32 %v4662_v17, %v1826_v15  ;;  %v1895_v23 = vstv %s3519_s30  ;;  %v5030_v63 = vpop.eup %3635 }
  0xd4   : > { %v1846_v44 = vrot.slane %v1836_v9, %v6535_v13  ;;  %v1850_v59 = vrot.slane %v1840_v12, %v6535_v13  ;;  %v1995_v47 = vrot.slane %v5009_v33, %v6526_v5  ;;  %v1999_v0 = vrot.slane %v5009_v33, %v6534_v57  ;;  %6608 = vst [vmem:[#allocation81_spill] sm:$0xff] %v5030_v63  ;;  %v5040_v7 = vpop.eup %3637 }
  0xd5   : > { %v1876_v4 = vrot.slane %v1866_v45, %v6504_v35  ;;  %v1880_v62 = vrot.slane %v1870_v41, %v6504_v35  ;;  %3643 = verf.f32 %v1736_v19 }
  0xd6   : > { %v1851_v15 = vmul.f32 %v6592_v58, %v1846_v44  ;;  %v1852_v9 = vmul.f32 %v6596_v3, %v1850_v59  ;;  %v1853_v12 = vmul.f32 %v6593_v21, %v1846_v44  ;;  %v1854_v28 = vmul.f32 %v6597_v48, %v1850_v59 }
  0xd7   : > { %v1855_v45 = vmul.f32 %v6594_v27, %v1846_v44  ;;  %v1856_v41 = vmul.f32 %v6598_v10, %v1850_v59  ;;  %v1881_v32 = vmul.f32 %v4709_v30, %v1876_v4  ;;  %v1882_v46 = vmul.f32 %v4713_v34, %v1880_v62 }
  0xd8   : > { %v1857_v40 = vadd.f32 %v1851_v15, %v1827_v36  ;;  %v1858_v18 = vadd.f32 %v1852_v9, %v1828_v52  ;;  %v1859_v1 = vadd.f32 %v1853_v12, %v1829_v37  ;;  %v1860_v63 = vadd.f32 %v1854_v28, %v1830_v24 }
  0xd9   : > { %v5042_v55 = vpop.eup %3639  ;;  %v1861_v57 = vadd.f32 %v1855_v45, %v1831_v25  ;;  %v1862_v60 = vadd.f32 %v1856_v41, %v1832_v42  ;;  %v1883_v54 = vmul.f32 %v4719_v14, %v1876_v4  ;;  %v1884_v44 = vmul.f32 %v4723_v6, %v1880_v62 }
  0xda   : > { %v1885_v59 = vmul.f32 %v4727_v11, %v1876_v4  ;;  %v1886_v30 = vmul.f32 %v4731_v50, %v1880_v62  ;;  %v1887_v10 = vadd.f32 %v1881_v32, %v1857_v40  ;;  %v1888_v34 = vadd.f32 %v1882_v46, %v1858_v18  ;;  %v5048_v48 = vpop.eup %3641 }
  0xdb   : > { %6609 = vst [vmem:[#allocation82_spill] sm:$0xff] %v5048_v48  ;;  %v1739_v36 = vmul.f32 0.70710677, %v4988_v22  ;;  %v1889_v28 = vadd.f32 %v1883_v54, %v1859_v1  ;;  %v1890_v52 = vadd.f32 %v1884_v44, %v1860_v63  ;;  %3645 = verf.f32 %v1735_v43 }
  0xdc   : > { %v1891_v37 = vadd.f32 %v1885_v59, %v1861_v57  ;;  %v5051_v24 = vadd.f32 %v1895_v23, %v1887_v10  ;;  %v5053_v25 = vadd.f32 %v1895_v23, %v1888_v34  ;;  %v1892_v42 = vadd.f32 %v1886_v30, %v1862_v60 }
  0xdd   : > { %v5055_v15 = vadd.f32 %v1895_v23, %v1889_v28  ;;  %v2005_v4 = vrot.slane %v1995_v47, %v6526_v5  ;;  %v2009_v18 = vrot.slane %v1999_v0, %v6526_v5  ;;  %v5060_v46 = vmul.f32 0.5, %v4967_v39 }
  0xde   : > { %3647 = verf.f32 %v1737_v2  ;;  %v5062_v32 = vadd.f32 %v1895_v23, %v1890_v52  ;;  %v5064_v54 = vadd.f32 %v1895_v23, %v1891_v37  ;;  %v1909_v10 = vmul.f32 0.70710677, %v5051_v24 }
  0xdf   : > { %6610 = vst [vmem:[#allocation83_spill] sm:$0xff] %v5060_v46  ;;  %3649 = verf.f32 %v4997_v8  ;;  %v1910_v57 = vmul.f32 0.70710677, %v5053_v25  ;;  %v2019_v34 = vrot.slane %v5009_v33, %v6535_v13  ;;  %v5072_v30 = vmul.f32 0.5, %v4969_v31  ;;  %v5098_v9 = vpop.eup %3643  ;;  %v6620_v46 = vld [vmem:[#allocation59_spill] sm:$0xff] }
  0xe0   : > { %v5075_v60 = vmul.f32 0.5, %v4971_v49  ;;  %v5078_v39 = vmul.f32 0.5, %v4988_v22  ;;  %3651 = verf.f32 %v1739_v36  ;;  %v5080_v1 = vadd.f32 %v1895_v23, %v1892_v42  ;;  %6614 = vst [vmem:[#allocation87_spill] sm:$0xff] %v5098_v9  ;;  %v6616_v42 = vld [vmem:[#allocation56_spill] sm:$0xff] }
  0xe1   : > { %6611 = vst [vmem:[#allocation84_spill] sm:$0xff] %v5072_v30  ;;  %v1911_v0 = vmul.f32 0.70710677, %v5055_v15  ;;  %v2010_v43 = vmul.f32 %v4640_v26, %v2005_v4  ;;  %v2011_v19 = vmul.f32 %v4648_v61, %v2009_v18  ;;  %v1912_v2 = vmul.f32 0.70710677, %v5062_v32 }
  0xe2   : > { %6612 = vst [vmem:[#allocation85_spill] sm:$0xff] %v5075_v60  ;;  %6613 = vst [vmem:[#allocation86_spill] sm:$0xff] %v5078_v39  ;;  %v1913_v31 = vmul.f32 0.70710677, %v5064_v54  ;;  %3653 = verf.f32 %v1909_v10  ;;  %v2012_v49 = vmul.f32 %v4644_v56, %v2005_v4  ;;  %v2023_v22 = vrot.slane %v5009_v33, %v6536_v20  ;;  %v6619_v60 = vld [vmem:[#allocation58_spill] sm:$0xff] }
  0xe3   : > { %3655 = verf.f32 %v1910_v57  ;;  %v2029_v8 = vrot.slane %v2019_v34, %v6535_v13  ;;  %v2049_v40 = vrot.slane %v5009_v33, %v6504_v35  ;;  %v2013_v23 = vmul.f32 %v4652_v16, %v2009_v18 }
  0xe4   : > { %v2014_v62 = vmul.f32 %v4656_v53, %v2005_v4  ;;  %v2015_v47 = vmul.f32 %v4662_v17, %v2009_v18  ;;  %v2053_v63 = vrot.slane %v5009_v33, %v6595_v29  ;;  %v2033_v12 = vrot.slane %v2023_v22, %v6535_v13  ;;  %v6617_v18 = vld [vmem:[#allocation57_spill] sm:$0xff] }
  0xe5   : > { %v2034_v45 = vmul.f32 %v6592_v58, %v2029_v8  ;;  %v2036_v41 = vmul.f32 %v6593_v21, %v2029_v8  ;;  %v2078_v44 = vstv %s3521_s13  ;;  %v5103_v59 = vpop.eup %3645  ;;  %v2038_v36 = vmul.f32 %v6594_v27, %v2029_v8  ;;  %s5848_s13 = scalar_lea.vmem [#allocation7], %s5797_s9 }
  0xe6   : > { %6615 = vst [vmem:[#allocation88_spill] sm:$0xff] %v5103_v59  ;;  %v2059_v28 = vrot.slane %v2049_v40, %v6504_v35  ;;  %v2063_v52 = vrot.slane %v2053_v63, %v6504_v35  ;;  %v910_v33 = vmul.f32 %v4833_v38, %v4790_v51  ;;  %v2035_v37 = vmul.f32 %v6596_v3, %v2033_v12 }
  0xe7   : > { %v2037_v4 = vmul.f32 %v6616_v42, %v2033_v12  ;;  %v2039_v10 = vmul.f32 %v6617_v18, %v2033_v12  ;;  %v2040_v57 = vadd.f32 %v2034_v45, %v2010_v43  ;;  %v2042_v22 = vadd.f32 %v2036_v41, %v2012_v49 }
  0xe8   : > { %v5113_v34 = vpop.eup %3647  ;;  %v2044_v39 = vadd.f32 %v2038_v36, %v2014_v62  ;;  %v2064_v8 = vmul.f32 %v6619_v60, %v2059_v28  ;;  %v2065_v40 = vmul.f32 %v6620_v46, %v2063_v52  ;;  %v2041_v63 = vadd.f32 %v2035_v37, %v2011_v19  ;;  %v6623_v36 = vld [vmem:[#allocation35_spill] sm:$0xff] }
  0xe9   : > { %6618 = vst [vmem:[#allocation56_spill] sm:$0xff] %v5113_v34  ;;  %v5117_v59 = vpop.eup %3649  ;;  %v2043_v30 = vadd.f32 %v2037_v4, %v2013_v23  ;;  %v2045_v51 = vadd.f32 %v2039_v10, %v2015_v47  ;;  %v2066_v38 = vmul.f32 %v4719_v14, %v2059_v28  ;;  %v2067_v12 = vmul.f32 %v4723_v6, %v2063_v52  ;;  %v6624_v34 = vld [vmem:[#allocation68_spill] sm:$0xff] }
  0xea   : > { %6621 = vst [vmem:[#allocation57_spill] sm:$0xff] %v5117_v59  ;;  %v5120_v48 = vpop.eup %3651  ;;  %v2068_v43 = vmul.f32 %v4727_v11, %v2059_v28  ;;  %v2069_v49 = vmul.f32 %v4731_v50, %v2063_v52  ;;  %v2070_v62 = vadd.f32 %v2064_v8, %v2040_v57  ;;  %v2071_v45 = vadd.f32 %v2065_v40, %v2041_v63  ;;  %v6625_v59 = vld [vmem:[#allocation40_spill] sm:$0xff]  ;;  %v6637_v63 = vld [vmem:[#allocation47_spill] sm:$0xff] }
  0xeb   : > { %6622 = vst [vmem:[#allocation58_spill] sm:$0xff] %v5120_v48  ;;  %v2072_v41 = vadd.f32 %v2066_v38, %v2042_v22  ;;  %v911_v9 = vmul.f32 %v6624_v34, %v6623_v36  ;;  %vm428_vm13 = vcmp.lt.s32.totalorder %v6625_v59, 37  ;;  %v1914_v23 = vmul.f32 0.70710677, %v5080_v1  ;;  %v6639_v38 = vld [vmem:[#allocation71_spill] sm:$0xff] }
  0xec   : > { %v5128_v19 = vpop.eup %3653  ;;  %3657 = verf.f32 %v1911_v0  ;;  %v2073_v47 = vadd.f32 %v2067_v12, %v2043_v30  ;;  %v2074_v37 = vadd.f32 %v2068_v43, %v2044_v39  ;;  %v2075_v28 = vadd.f32 %v2069_v49, %v2045_v51  ;;  %vm431_vm14 = vmand %vm407_vm2, %vm428_vm13  ;;  %v6638_v51 = vld [vmem:[#allocation27_spill] sm:$0xff]  ;;  %v6640_v43 = vld [vmem:[#allocation28_spill] sm:$0xff] }
  0xed   : > { %6626 = vst [vmem:[#allocation59_spill] sm:$0xff] %v5128_v19  ;;  %v5131_v4 = vpop.eup %3655  ;;  %v5133_v10 = vadd.f32 %v2078_v44, %v2070_v62  ;;  %v5135_v52 = vadd.f32 %v2078_v44, %v2071_v45  ;;  %v918_v57 = vadd.f32 %v911_v9, %v910_v33  ;;  %v5138_v22 = vmul.f32 0.5, %v5051_v24  ;;  %v6641_v49 = vld [vmem:[#allocation72_spill] sm:$0xff] }
  0xee   : > { %6627 = vst [vmem:[#allocation35_spill] sm:$0xff] %v5131_v4  ;;  %v5141_v34 = vmul.f32 0.5, %v5053_v25  ;;  %3659 = verf.f32 %v1912_v2  ;;  %v5143_v8 = vadd.f32 %v2078_v44, %v2072_v41  ;;  %v5150_v30 = vmul.f32 0.5, %v5055_v15  ;;  %v6642_v45 = vld [vmem:[#allocation16_spill] sm:$0xff]  ;;  %v6660_v4 = vld [vmem:[#allocation23_spill] sm:$0xff] }
  0xef   : > { %6628 = vst [vmem:[#allocation68_spill] sm:$0xff] %v5138_v22  ;;  %v5153_v39 = vmul.f32 0.5, %v5062_v32  ;;  %3661 = verf.f32 %v1913_v31  ;;  %v5155_v24 = vadd.f32 %v2078_v44, %v2073_v47  ;;  %919 = vadd.xlane.f32.xlu1 %v918_v57  ;;  %v5158_v25 = vmul.f32 0.5, %v5064_v54  ;;  %v6636_v54 = vld [vmem:[#allocation46_spill] sm:$0xff]  ;;  %v6643_v41 = vld [vmem:[#allocation24_spill] sm:$0xff]  ;;  %v6644_v47 = vld [vmem:[#allocation31_spill] sm:$0xff] }
  0xf0   : > { %6629 = vst [vmem:[#allocation40_spill] sm:$0xff] %v5141_v34  ;;  %6630 = vst [vmem:[#allocation89_spill] sm:$0xff] %v5150_v30  ;;  %v5161_v0 = vmul.f32 0.5, %v5080_v1  ;;  %3663 = verf.f32 %v1914_v23  ;;  %v5163_v2 = vadd.f32 %v2078_v44, %v2074_v37  ;;  %v5165_v9 = vadd.f32 %v2078_v44, %v2075_v28  ;;  %v6645_v28 = vld [vmem:[#allocation33_spill] sm:$0xff]  ;;  %v6659_v34 = vld [vmem:[#allocation39_spill] sm:$0xff] }
  0xf1   : > { %6631 = vst [vmem:[#allocation90_spill] sm:$0xff] %v5153_v39  ;;  %6632 = vst [vmem:[#allocation91_spill] sm:$0xff] %v5158_v25  ;;  %v2092_v15 = vmul.f32 0.70710677, %v5133_v10  ;;  %v2093_v32 = vmul.f32 0.70710677, %v5135_v52  ;;  %v1081_v12 = vmul.f32 %v6639_v38, %v6638_v51  ;;  %v1082_v62 = vmul.f32 %v6641_v49, %v6640_v43 }
  0xf2   : > { %6633 = vst [vmem:[#allocation92_spill] sm:$0xff] %v5161_v0  ;;  %v6634_v59 = vmov 0.0   ;;  %v5173_v33 = vmul.f32 0.70710677, %v5143_v8  ;;  %v1214_v40 = vadd.f32 1.0, %v6636_v54  ;;  %v1215_v1 = vadd.f32 1.0, %v6637_v63 }
  0xf3   : > { %v5170_v31 = vsel %vm431_vm14, 1.0, %v6634_v59  ;;  %v5180_v44 = vmul.f32 0.70710677, %v5155_v24  ;;  %vm430_vm15 = vcmp.lt.s32.totalorder %v6642_v45, 37  ;;  %v1218_v36 = vadd.f32 1.0, %v6643_v41  ;;  %v6646_v54 = vld [vmem:[#allocation32_spill] sm:$0xff] }
  0xf4   : > { %6635 = vst [vmem:[#allocation93_spill] sm:$0xff] %v5170_v31  ;;  %v5187_v23 = vmul.f32 0.70710677, %v5163_v2  ;;  %v5190_v37 = vmul.f32 %v1214_v40, %v6644_v47  ;;  %v5193_v57 = vmul.f32 %v1215_v1, %v6645_v28  ;;  %vm433_vm0 = vmand %vm409_vm8, %vm430_vm15  ;;  %v1219_v63 = vadd.f32 1.0, %v6646_v54  ;;  %v6648_v43 = vld [vmem:[#allocation17_spill] sm:$0xff]  ;;  %v6650_v1 = vld [vmem:[#allocation48_spill] sm:$0xff] }
  0xf5   : > { %3665 = verf.f32 %v2092_v15  ;;  %v1087_v51 = vadd.f32 %v1082_v62, %v1081_v12  ;;  %v5199_v38 = vsel %vm433_vm0, 1.0, %v6634_v59  ;;  %v5202_v49 = vmul.f32 %v1218_v36, %v6648_v43  ;;  %v3455_v12 = vld [vmem:[%s6325_s1 + $0x48] sm:$0x77]  ;;  %v6653_v47 = vld [vmem:[#allocation30_spill] sm:$0xff]  ;;  %v6655_v43 = vld [vmem:[#allocation20_spill] sm:$0xff] }
  0xf6   : > { %6647 = vst [vmem:[#allocation46_spill] sm:$0xff] %v5199_v38  ;;  %v5204_v41 = vpop.eup %3657  ;;  %3667 = verf.f32 %v2093_v32  ;;  %1226 = vst [vmem:[%s4432_s12 + $0x30] sm:$0xff] %v5190_v37  ;;  %v1232_v40 = vmul.f32 %v5170_v31, %v5190_v37  ;;  %v1233_v15 = vmul.f32 %v5170_v31, %v5193_v57  ;;  %v5215_v59 = vmul.f32 %v1219_v63, %v6650_v1  ;;  %v6651_v62 = vld [vmem:[#allocation29_spill] sm:$0xff]  ;;  %v6654_v28 = vld [vmem:[#allocation74_spill] sm:$0xff] }
  0xf7   : > { %6649 = vst [vmem:[#allocation47_spill] sm:$0xff] %v5204_v41  ;;  %1227 = vst [vmem:[%s4432_s12 + $0x38] sm:$0xff] %v5193_v57  ;;  %1088 = vadd.xlane.f32.xlu1 %v1087_v51  ;;  %v1236_v32 = vmul.f32 %v5199_v38, %v5202_v49  ;;  %v6652_v45 = vld [vmem:[#allocation73_spill] sm:$0xff]  ;;  %v1086_v54 = vmul.f32 %v6654_v28, %v6653_v47  ;;  %v6658_v25 = vld [vmem:[#allocation38_spill] sm:$0xff]  ;;  %v2171_v28 = vrot.slane %v3455_v12, %v6526_v5 }
  0xf8   : > { %1230 = vst [vmem:[%s4432_s12 + $0xb0] sm:$0xff] %v5202_v49  ;;  %v1085_v36 = vmul.f32 %v6652_v45, %v6651_v62  ;;  %v6656_v0 = vld [vmem:[#allocation21_spill] sm:$0xff]  ;;  %v5230_v1 = vpop.eup %3659  ;;  %v1238_v31 = vmul.f32 %v6658_v25, %v1232_v40  ;;  %v1239_v51 = vmul.f32 %v6659_v34, %v1233_v15  ;;  %1231 = vst [vmem:[%s4432_s12 + $0xb8] sm:$0xff] %v5215_v59  ;;  %v6661_v39 = vld [vmem:[#allocation15_spill] sm:$0xff]  ;;  %3669 = verf.f32 %v5173_v33 }
  0xf9   : > { %v908_v63 = vmul.f32 %v6656_v0, %v6655_v43  ;;  %6657 = vst [vmem:[#allocation27_spill] sm:$0xff] %v5230_v1  ;;  %v1237_v22 = vmul.f32 %v5199_v38, %v5215_v59  ;;  %v909_v62 = vmul.f32 %v6661_v39, %v6660_v4  ;;  %v5240_v45 = vpop.eup %3661  ;;  %v5243_v47 = vmul.f32 %v6658_v25, %v1236_v32  ;;  %v3731_v40 = vld [vmem:[%s6326_s2 + $0x8] sm:$0xf]  ;;  %v6664_v39 = vld [vmem:[#allocation10_spill] sm:$0xff] }
  0xfa   : > { %6662 = vst [vmem:[#allocation71_spill] sm:$0xff] %v5240_v45  ;;  %v1093_v0 = vadd.f32 %v1086_v54, %v1085_v36  ;;  %v2602_v15 = vrot.slane %v3731_v40, 3  ;;  %v5249_v43 = vpop.eup %3663  ;;  %v1244_v38 = vadd.f32 %v1239_v51, %v1238_v31  ;;  %v2175_v45 = vrot.slane %v3455_v12, %v6664_v39 }
  0xfb   : > { %6663 = vst [vmem:[#allocation28_spill] sm:$0xff] %v5249_v43  ;;  %v5252_v19 = vmul.f32 %v6659_v34, %v1237_v22  ;;  %v915_v4 = vadd.f32 %v909_v62, %v908_v63  ;;  %v2181_v32 = vrot.slane %v2171_v28, %v6526_v5  ;;  %v2195_v36 = vrot.slane %v3455_v12, %v6535_v13 }
  0xfc   : > { %1094 = vadd.xlane.f32.xlu1 %v1093_v0  ;;  %3526 = vpush %v2602_v15  ;;  %v2199_v54 = vrot.slane %v3455_v12, %v6536_v20  ;;  %v5258_v40 = vstv %s3523_s16  ;;  %1245 = vadd.xlane.f32.xlu0 %v1244_v38  ;;  %v2185_v22 = vrot.slane %v2175_v45, %v6526_v5  ;;  %3671 = verf.f32 %v5180_v44  ;;  %v6666_v44 = vld [vmem:[#allocation41_spill] sm:$0xff]  ;;  %s3499_s16 = smul.u32 (%p3866_p6), 192, %s3780_s26 }
  0xfd   : > { %v1250_v43 = vadd.f32 %v5252_v19, %v5243_v47  ;;  %v2225_v63 = vrot.slane %v3455_v12, %v6504_v35  ;;  %v2229_v62 = vrot.slane %v3455_v12, %v6595_v29  ;;  %v2186_v0 = vmul.f32 %v4640_v26, %v2181_v32 }
  0xfe   : > { %v2188_v15 = vmul.f32 %v4644_v56, %v2181_v32  ;;  %v2190_v28 = vmul.f32 %v4656_v53, %v2181_v32  ;;  %v2205_v30 = vrot.slane %v2195_v36, %v6535_v13  ;;  %v2187_v1 = vmul.f32 %v4648_v61, %v2185_v22  ;;  %s6109_s19 = scalar_lea.vmem (%p3866_p6), %s6327_s3, %s3499_s16 }
  0xff   : > { %v2189_v38 = vmul.f32 %v4652_v16, %v2185_v22  ;;  %v2191_v41 = vmul.f32 %v4662_v17, %v2185_v22  ;;  %v2209_v45 = vrot.slane %v2199_v54, %v6535_v13  ;;  %v5273_v48 = vpop.eup %3665  ;;  %v2235_v53 = vrot.slane %v2225_v63, %v6504_v35 }
 0x100   : > { %6665 = vst [vmem:[#allocation72_spill] sm:$0xff] %v5273_v48  ;;  %v2210_v12 = vmul.f32 %v6592_v58, %v2205_v30  ;;  %v2212_v26 = vmul.f32 %v6593_v21, %v2205_v30  ;;  %v2214_v56 = vmul.f32 %v6594_v27, %v2205_v30  ;;  %v5279_v32 = vpop.eup %3667  ;;  %1251 = vadd.xlane.f32.xlu0 %v1250_v43  ;;  %v5310_v33 = vmul.f32 0.5, %v5163_v2 }
 0x101   : > { %v2211_v61 = vmul.f32 %v6596_v3, %v2209_v45  ;;  %v2213_v16 = vmul.f32 %v6616_v42, %v2209_v45  ;;  %v2215_v17 = vmul.f32 %v6617_v18, %v2209_v45  ;;  %v2239_v36 = vrot.slane %v2229_v62, %v6504_v35  ;;  %v6669_v45 = vld [vmem:[#allocation19_spill] sm:$0xff] }
 0x102   : > { %v2216_v54 = vadd.f32 %v2210_v12, %v2186_v0  ;;  %v2218_v22 = vadd.f32 %v2212_v26, %v2188_v15  ;;  %v2220_v58 = vadd.f32 %v2214_v56, %v2190_v28  ;;  %v2240_v21 = vmul.f32 %v6619_v60, %v2235_v53  ;;  %v6670_v12 = vld [vmem:[#allocation64_spill] sm:$0xff] }
 0x103   : > { %v2217_v48 = vadd.f32 %v2211_v61, %v2187_v1  ;;  %v2219_v27 = vadd.f32 %v2213_v16, %v2189_v38  ;;  %v2221_v30 = vadd.f32 %v2215_v17, %v2191_v41  ;;  %v2241_v63 = vmul.f32 %v6620_v46, %v2239_v36  ;;  %v6671_v16 = vld [vmem:[#allocation65_spill] sm:$0xff] }
 0x104   : > { %v2242_v43 = vmul.f32 %v4719_v14, %v2235_v53  ;;  %v2243_v3 = vmul.f32 %v4723_v6, %v2239_v36  ;;  %v2244_v42 = vmul.f32 %v4727_v11, %v2235_v53  ;;  %v2245_v18 = vmul.f32 %v4731_v50, %v2239_v36  ;;  %916 = vadd.xlane.f32.xlu0 %v915_v4  ;;  %v6673_v36 = vld [vmem:[#allocation66_spill] sm:$0xff] }
 0x105   : > { %v2246_v62 = vadd.f32 %v2240_v21, %v2216_v54  ;;  %v2247_v0 = vadd.f32 %v2241_v63, %v2217_v48  ;;  %v1256_v15 = vmul.f32 %v1238_v31, %v5190_v37  ;;  %v1257_v60 = vmul.f32 %v1239_v51, %v5193_v57  ;;  %v6667_v57 = vld [vmem:[#allocation62_spill] sm:$0xff]  ;;  %v6676_v63 = vld [vmem:[#allocation37_spill] sm:$0xff] }
 0x106   : > { %v5294_v1 = vmul.f32 0.5, %v5133_v10  ;;  %v2097_v46 = vmul.f32 0.70710677, %v5165_v9  ;;  %v2248_v14 = vadd.f32 %v2242_v43, %v2218_v22  ;;  %v2249_v6 = vadd.f32 %v2243_v3, %v2219_v27  ;;  %v6674_v54 = vld [vmem:[#allocation70_spill] sm:$0xff]  ;;  %v6675_v27 = vld [vmem:[#allocation36_spill] sm:$0xff] }
 0x107   : > { %v2250_v41 = vadd.f32 %v2244_v42, %v2220_v58  ;;  %v2251_v11 = vadd.f32 %v2245_v18, %v2221_v30  ;;  %v1262_v28 = vadd.f32 %v1257_v60, %v1256_v15  ;;  %v5299_v50 = vmul.f32 0.5, %v5135_v52  ;;  %v5357_v42 = vpop.eup %3669  ;;  %v6679_v15 = vld [vmem:[#allocation54_spill] sm:$0xff] }
 0x108   : > { %v5302_v48 = vmul.f32 0.5, %v5143_v8  ;;  %v2256_v10 = vadd.f32 %v5258_v40, %v2246_v62  ;;  %v5307_v31 = vmul.f32 0.5, %v5155_v24  ;;  %3673 = verf.f32 %v5187_v23  ;;  %v6678_v62 = vld [vmem:[#allocation53_spill] sm:$0xff] }
 0x109   : > { %v2257_v37 = vadd.f32 %v5258_v40, %v2247_v0  ;;  %1263 = vadd.xlane.f32.xlu1 %v1262_v28  ;;  %v5315_v52 = vmul.f32 0.5, %v5165_v9  ;;  %3675 = verf.f32 %v2097_v46  ;;  %v2258_v8 = vadd.f32 %v5258_v40, %v2248_v14  ;;  %v6680_v46 = vld [vmem:[#allocation67_spill] sm:$0xff] }
 0x10a   : > { %v1083_v51 = vmul.f32 %v6667_v57, %v6666_v44  ;;  %v5321_v24 = vadd.f32 %v5258_v40, %v2249_v6  ;;  %v5324_v2 = vadd.f32 %v5258_v40, %v2250_v41  ;;  %v5327_v23 = vadd.f32 %v5258_v40, %v2251_v11  ;;  %v6672_v40 = vld [vmem:[#allocation69_spill] sm:$0xff]  ;;  %v6681_v6 = vld [vmem:[#allocation51_spill] sm:$0xff]  ;;  %v6682_v11 = vld [vmem:[#allocation42_spill] sm:$0xff]  ;;  %v5366_v57 = vpop.eup %3671 }
 0x10b   : > { %v5329_v4 = vmul.f32 0.5, %v2256_v10  ;;  %v5331_v38 = vmul.f32 0.5, %v2257_v37  ;;  %v5333_v9 = vmul.f32 0.70710677, %v2256_v10  ;;  %v1084_v26 = vmul.f32 %v6670_v12, %v6669_v45  ;;  %v6683_v10 = vld [vmem:[#allocation43_spill] sm:$0xff] }
 0x10c   : > { %v1260_v56 = vmul.f32 %v5243_v47, %v5202_v49  ;;  %v5339_v53 = vmul.f32 0.70710677, %v2257_v37  ;;  %v1261_v61 = vmul.f32 %v5252_v19, %v5215_v59  ;;  %v1258_v17 = vmul.f32 %v6672_v40, %v6671_v16  ;;  %v6677_v59 = vld [vmem:[#allocation25_spill] sm:$0xff] }
 0x10d   : > { %6668 = vst [vmem:[#allocation16_spill] sm:$0xff] %v5331_v38  ;;  %v1259_v22 = vmul.f32 %v6674_v54, %v6673_v36  ;;  %v5347_v58 = vmul.f32 0.5, %v2258_v8  ;;  %v1090_v21 = vadd.f32 %v1084_v26, %v1083_v51  ;;  %v1397_v30 = vadd.f32 1.0, %v6675_v27  ;;  %v6685_v51 = vld [vmem:[#allocation45_spill] sm:$0xff]  ;;  %v6686_v26 = vld [vmem:[#allocation52_spill] sm:$0xff]  ;;  %v6689_v54 = vld [vmem:[#allocation34_spill] sm:$0xff] }
 0x10e   : > { %v1398_v43 = vadd.f32 1.0, %v6676_v63  ;;  %v5351_v3 = vmul.f32 0.70710677, %v2258_v8  ;;  %v5354_v49 = vmul.f32 0.70710677, %v5321_v24  ;;  %v1268_v19 = vadd.f32 %v1261_v61, %v1260_v56  ;;  %v6684_v8 = vld [vmem:[#allocation80_spill] sm:$0xff] }
 0x10f   : > { %v1395_v47 = vadd.f32 1.0, %v6677_v59  ;;  %1091 = vadd.xlane.f32.xlu0 %v1090_v21  ;;  %v1265_v18 = vadd.f32 %v1259_v22, %v1258_v17  ;;  %v1403_v0 = vmul.f32 %v1397_v30, %v6678_v62  ;;  %v1396_v14 = vadd.f32 1.0, %v6680_v46  ;;  %v6687_v61 = vld [vmem:[#allocation81_spill] sm:$0xff]  ;;  %v6688_v17 = vld [vmem:[#allocation44_spill] sm:$0xff]  ;;  %v6691_v30 = vld [vmem:[#allocation22_spill] sm:$0xff] }
 0x110   : > { %v1404_v60 = vmul.f32 %v1398_v43, %v6679_v15  ;;  %1269 = vadd.xlane.f32.xlu1 %v1268_v19  ;;  %v1399_v28 = vadd.f32 1.0, %v6682_v11  ;;  %v1400_v37 = vadd.f32 1.0, %v6683_v10  ;;  %v1573_v44 = vadd.f32 1.0, %v6684_v8  ;;  %v6690_v21 = vld [vmem:[#allocation60_spill] sm:$0xff]  ;;  %v5502_v38 = vld [vmem:[%s3930_s23 + $0x68] sm:$0xff] }
 0x111   : > { %v1401_v41 = vmul.f32 %v1395_v47, %v6681_v6  ;;  %3417 = vst [vmem:[%s4432_s12 + $0x100] sm:$0xff] %v1403_v0  ;;  %v1416_v45 = vmul.f32 %v6685_v51, %v1403_v0  ;;  %v1402_v56 = vmul.f32 %v1396_v14, %v6686_v26  ;;  %v1574_v16 = vadd.f32 1.0, %v6687_v61  ;;  %v6692_v62 = vld [vmem:[#allocation8_spill] sm:$0xff]  ;;  %v6693_v14 = vld [vmem:[#allocation55_spill] sm:$0xff]  ;;  %6711 = vst [vmem:[#allocation21_spill] sm:$0xff] %v5502_v38 }
 0x112   : > { %3418 = vst [vmem:[%s4432_s12 + $0x108] sm:$0xff] %v1404_v60  ;;  %v1417_v12 = vmul.f32 %v6685_v51, %v1404_v60  ;;  %v5374_v40 = vpop.eup %3673  ;;  %v1405_v22 = vmul.f32 %v1399_v28, %v6689_v54  ;;  %v1406_v27 = vmul.f32 %v1400_v37, %v6690_v21  ;;  %v5381_v63 = vmul.f32 %v1573_v44, %v6691_v30 }
 0x113   : > { %3415 = vst [vmem:[%s4432_s12 + $0xc0] sm:$0xff] %v1401_v41  ;;  %v1414_v36 = vmul.f32 %v6688_v17, %v1401_v41  ;;  %v5383_v43 = vpop.eup %3675  ;;  %1266 = vadd.xlane.f32.xlu0 %v1265_v18  ;;  %v1422_v19 = vmul.f32 %v6658_v25, %v1416_v45  ;;  %3416 = vst [vmem:[%s4432_s12 + $0xc8] sm:$0xff] %v1402_v56  ;;  %v1415_v47 = vmul.f32 %v6688_v17, %v1402_v56  ;;  %v6694_v18 = vld [vmem:[#allocation50_spill] sm:$0xff] }
 0x114   : > { %v1423_v59 = vmul.f32 %v6659_v34, %v1417_v12  ;;  %v5390_v15 = vmul.f32 %v1574_v16, %v6692_v62  ;;  %3419 = vst [vmem:[%s4432_s12 + $0x140] sm:$0xff] %v1405_v22  ;;  %3420 = vst [vmem:[%s4432_s12 + $0x148] sm:$0xff] %v1406_v27  ;;  %v1418_v6 = vmul.f32 %v6693_v14, %v1405_v22  ;;  %v3462_v16 = vld [vmem:[%s6325_s1 + $0x50] sm:$0x77]  ;;  %3677 = verf.f32 %v5333_v9 }
 0x115   : > { %v1420_v46 = vmul.f32 %v6658_v25, %v1414_v36  ;;  %v1419_v11 = vmul.f32 %v6693_v14, %v1406_v27  ;;  %3424 = vst [vmem:[%s4432_s12 + $0x110] sm:$0xff] %v5381_v63  ;;  %v1591_v28 = vmul.f32 %v6694_v18, %v5381_v63  ;;  %v1421_v37 = vmul.f32 %v6659_v34, %v1415_v47  ;;  %v6695_v47 = vld [vmem:[#allocation75_spill] sm:$0xff] }
 0x116   : > { %v1429_v10 = vadd.f32 %v1423_v59, %v1422_v19  ;;  %v1440_v8 = vmul.f32 %v1422_v19, %v1403_v0  ;;  %v1441_v44 = vmul.f32 %v1423_v59, %v1404_v60  ;;  %3425 = vst [vmem:[%s4432_s12 + $0x118] sm:$0xff] %v5390_v15  ;;  %v1424_v12 = vmul.f32 %v6658_v25, %v1418_v6  ;;  %v6696_v6 = vld [vmem:[#allocation79_spill] sm:$0xff] }
 0x117   : > { %v1438_v45 = vmul.f32 %v1420_v46, %v1401_v41  ;;  %v1425_v26 = vmul.f32 %v6659_v34, %v1419_v11  ;;  %v1592_v61 = vmul.f32 %v6694_v18, %v5390_v15  ;;  %v1426_v36 = vadd.f32 %v1421_v37, %v1420_v46 }
 0x118   : > { %1430 = vadd.xlane.f32.xlu1 %v1429_v10  ;;  %v1439_v54 = vmul.f32 %v1421_v37, %v1402_v56  ;;  %v1447_v21 = vadd.f32 %v1441_v44, %v1440_v8  ;;  %v5412_v0 = vmul.f32 %v6658_v25, %v1591_v28  ;;  %v1442_v41 = vmul.f32 %v1424_v12, %v1405_v22  ;;  %v6697_v10 = vld [vmem:[#allocation63_spill] sm:$0xff]  ;;  %v6698_v8 = vld [vmem:[#allocation9_spill] sm:$0xff] }
 0x119   : > { %v1432_v60 = vadd.f32 %v1425_v26, %v1424_v12  ;;  %v1443_v30 = vmul.f32 %v1425_v26, %v1406_v27  ;;  %v5415_v19 = vmul.f32 %v6659_v34, %v1592_v61  ;;  %1427 = vadd.xlane.f32.xlu0 %v1426_v36  ;;  %v1571_v62 = vadd.f32 1.0, %v6695_v47  ;;  %v5445_v47 = vld [vmem:[%s3930_s23] sm:$0xff] }
 0x11a   : > { %v1444_v59 = vadd.f32 %v1439_v54, %v1438_v45  ;;  %v1572_v11 = vadd.f32 1.0, %v6696_v6  ;;  %v2346_v46 = vrot.slane %v3462_v16, %v6526_v5  ;;  %v2350_v22 = vrot.slane %v3462_v16, %v6664_v39  ;;  %6700 = vst [vmem:[#allocation24_spill] sm:$0xff] %v5445_v47  ;;  %v5449_v6 = vld [vmem:[%s3930_s23 + $0x10] sm:$0xff]  ;;  %v5476_v39 = vld [vmem:[%s3930_s23 + $0x40] sm:$0xff] }
 0x11b   : > { %v1450_v56 = vadd.f32 %v1443_v30, %v1442_v41  ;;  %v1604_v28 = vadd.f32 %v5415_v19, %v5412_v0  ;;  %v2370_v27 = vrot.slane %v3462_v16, %v6535_v13  ;;  %v5425_v37 = vmul.f32 %v1571_v62, %v6697_v10  ;;  %v6699_v41 = vld [vmem:[#allocation49_spill] sm:$0xff]  ;;  %6701 = vst [vmem:[#allocation31_spill] sm:$0xff] %v5449_v6 }
 0x11c   : > { %1445 = vadd.xlane.f32.xlu1 %v1444_v59  ;;  %v5428_v44 = vmul.f32 %v1572_v11, %v6698_v8  ;;  %v2356_v45 = vrot.slane %v2346_v46, %v6526_v5  ;;  %v2374_v12 = vrot.slane %v3462_v16, %v6536_v20  ;;  %v2360_v26 = vrot.slane %v2350_v22, %v6526_v5  ;;  %v5457_v46 = vld [vmem:[%s3930_s23 + $0x18] sm:$0xff]  ;;  %v5465_v8 = vld [vmem:[%s3930_s23 + $0x28] sm:$0xff] }
 0x11d   : > { %v2380_v61 = vrot.slane %v2370_v27, %v6535_v13  ;;  %v2400_v36 = vrot.slane %v3462_v16, %v6504_v35  ;;  %v2404_v54 = vrot.slane %v3462_v16, %v6595_v29  ;;  %1433 = vadd.xlane.f32.xlu0 %v1432_v60  ;;  %3422 = vst [vmem:[%s4432_s12 + $0xd0] sm:$0xff] %v5425_v37  ;;  %v5453_v60 = vld [vmem:[%s3930_s23 + $0x8] sm:$0xff]  ;;  %6703 = vst [vmem:[#allocation32_spill] sm:$0xff] %v5457_v46  ;;  %v5461_v27 = vld [vmem:[%s3930_s23 + $0x20] sm:$0xff] }
 0x11e   : > { %3423 = vst [vmem:[%s4432_s12 + $0xd8] sm:$0xff] %v5428_v44  ;;  %v1589_v30 = vmul.f32 %v6699_v41, %v5425_v37  ;;  %v1590_v59 = vmul.f32 %v6699_v41, %v5428_v44  ;;  %v2361_v62 = vmul.f32 %v5445_v47, %v2356_v45  ;;  %v2363_v16 = vmul.f32 %v5449_v6, %v2356_v45  ;;  %v5472_v47 = vld [vmem:[%s3930_s23 + $0x30] sm:$0xff] }
 0x11f   : > { %6702 = vst [vmem:[#allocation33_spill] sm:$0xff] %v5453_v60  ;;  %v2362_v11 = vmul.f32 %v5453_v60, %v2360_v26  ;;  %v2364_v22 = vmul.f32 %v5457_v46, %v2360_v26  ;;  %6704 = vst [vmem:[#allocation17_spill] sm:$0xff] %v5461_v27  ;;  %v2365_v10 = vmul.f32 %v5461_v27, %v2356_v45  ;;  %v5480_v27 = vld [vmem:[%s3930_s23 + $0x50] sm:$0xff]  ;;  %3679 = verf.f32 %v5339_v53 }
 0x120   : > { %6705 = vst [vmem:[#allocation48_spill] sm:$0xff] %v5465_v8  ;;  %v2366_v29 = vmul.f32 %v5465_v8, %v2360_v26  ;;  %1451 = vadd.xlane.f32.xlu1 %v1450_v56  ;;  %v1595_v20 = vmul.f32 %v6658_v25, %v1589_v30  ;;  %v1596_v6 = vmul.f32 %v6659_v34, %v1590_v59  ;;  %6706 = vst [vmem:[#allocation29_spill] sm:$0xff] %v5472_v47  ;;  %v5490_v8 = vld [vmem:[%s3930_s23 + $0x48] sm:$0xff] }
 0x121   : > { %v2384_v60 = vrot.slane %v2374_v12, %v6535_v13  ;;  %v2385_v46 = vmul.f32 %v5472_v47, %v2380_v61  ;;  %6707 = vst [vmem:[#allocation73_spill] sm:$0xff] %v5476_v39  ;;  %v2387_v45 = vmul.f32 %v5476_v39, %v2380_v61  ;;  %6708 = vst [vmem:[#allocation30_spill] sm:$0xff] %v5480_v27  ;;  %1448 = vadd.xlane.f32.xlu0 %v1447_v21  ;;  %v5486_v12 = vld [vmem:[%s3930_s23 + $0x38] sm:$0xff] }
 0x122   : > { %v2389_v56 = vmul.f32 %v5480_v27, %v2380_v61  ;;  %v2410_v26 = vrot.slane %v2400_v36, %v6504_v35  ;;  %v2414_v30 = vrot.slane %v2404_v54, %v6504_v35  ;;  %v1601_v59 = vadd.f32 %v1596_v6, %v1595_v20  ;;  %6709 = vst [vmem:[#allocation74_spill] sm:$0xff] %v5486_v12  ;;  %v5494_v13 = vld [vmem:[%s3930_s23 + $0x58] sm:$0xff]  ;;  %v5498_v54 = vld [vmem:[%s3930_s23 + $0x60] sm:$0xff] }
 0x123   : > { %v2386_v47 = vmul.f32 %v5486_v12, %v2384_v60  ;;  %6710 = vst [vmem:[#allocation20_spill] sm:$0xff] %v5490_v8  ;;  %v2388_v39 = vmul.f32 %v5490_v8, %v2384_v60  ;;  %v2390_v61 = vmul.f32 %v5494_v13, %v2384_v60  ;;  %v2391_v36 = vadd.f32 %v2385_v46, %v2361_v62  ;;  %v5505_v60 = vpop.xlane.xlu1 %469  ;;  %v5508_v62 = vld [vmem:[%s3930_s23 + $0x70] sm:$0xff]  ;;  %v5512_v46 = vld [vmem:[%s3930_s23 + $0x78] sm:$0xff] }
 0x124   : > { %v2393_v27 = vadd.f32 %v2387_v45, %v2363_v16  ;;  %v2395_v21 = vadd.f32 %v2389_v56, %v2365_v10  ;;  %v2415_v35 = vmul.f32 %v5498_v54, %v2410_v26  ;;  %1605 = vadd.xlane.f32.xlu1 %v1604_v28  ;;  %v2416_v18 = vmul.f32 %v5502_v38, %v2414_v30  ;;  %v5516_v45 = vld [vmem:[%s3930_s23 + $0x80] sm:$0xff] }
 0x125   : > { %v2392_v12 = vadd.f32 %v2386_v47, %v2362_v11  ;;  %v2394_v41 = vadd.f32 %v2388_v39, %v2364_v22  ;;  %v2396_v8 = vadd.f32 %v2390_v61, %v2366_v29  ;;  %6712 = vst [vmem:[#allocation38_spill] sm:$0xff] %v5505_v60  ;;  %v2417_v16 = vmul.f32 %v5508_v62, %v2410_v26  ;;  %v5520_v39 = vld [vmem:[%s3930_s23 + $0x88] sm:$0xff] }
 0x126   : > { %6713 = vst [vmem:[#allocation39_spill] sm:$0xff] %v5512_v46  ;;  %v2418_v10 = vmul.f32 %v5512_v46, %v2414_v30  ;;  %6714 = vst [vmem:[#allocation23_spill] sm:$0xff] %v5516_v45  ;;  %v2419_v28 = vmul.f32 %v5516_v45, %v2410_v26  ;;  %v2420_v29 = vmul.f32 %v5520_v39, %v2414_v30  ;;  %v2272_v47 = vmul.f32 0.70710677, %v5324_v2 }
 0x127   : > { %1602 = vadd.xlane.f32.xlu0 %v1601_v59  ;;  %v2421_v11 = vadd.f32 %v2415_v35, %v2391_v36  ;;  %v2422_v22 = vadd.f32 %v2416_v18, %v2392_v12  ;;  %v2429_v56 = vstv %s3525_s22  ;;  %v2273_v61 = vmul.f32 0.70710677, %v5327_v23  ;;  %v6718_v12 = vld [vmem:[#allocation18_spill] sm:$0xff] }
 0x128   : > { %v2423_v60 = vadd.f32 %v2417_v16, %v2393_v27  ;;  %v2424_v46 = vadd.f32 %v2418_v10, %v2394_v41  ;;  %v2425_v38 = vadd.f32 %v2419_v28, %v2395_v21  ;;  %v2426_v26 = vadd.f32 %v2420_v29, %v2396_v8  ;;  %v5539_v41 = vpop.xlane.xlu0 %463  ;;  %v5541_v27 = vpop.xlane.xlu1 %485  ;;  %v6719_v16 = vld [vmem:[#allocation76_spill] sm:$0xff]  ;;  %v6720_v28 = vld [vmem:[#allocation61_spill] sm:$0xff] }
 0x129   : > { %v2431_v45 = vadd.f32 %v2429_v56, %v2421_v11  ;;  %3681 = verf.f32 %v5351_v3  ;;  %v5528_v30 = vadd.f32 %v2429_v56, %v2422_v22  ;;  %v1613_v59 = vmul.f32 %v1595_v20, %v5425_v37  ;;  %6715 = vst [vmem:[#allocation15_spill] sm:$0xff] %v5539_v41  ;;  %6716 = vst [vmem:[#allocation41_spill] sm:$0xff] %v5541_v27 }
 0x12a   : > { %v1614_v35 = vmul.f32 %v1596_v6, %v5428_v44  ;;  %v5533_v18 = vmul.f32 0.5, %v5321_v24  ;;  %3683 = verf.f32 %v5354_v49  ;;  %v5536_v9 = vadd.f32 %v2429_v56, %v2423_v60 }
 0x12b   : > { %v1575_v53 = vadd.f32 1.0, %v5040_v7  ;;  %v5544_v3 = vmul.f32 0.5, %v5324_v2  ;;  %v5547_v20 = vmul.f32 0.5, %v5327_v23  ;;  %3685 = verf.f32 %v2272_v47  ;;  %v3678_v47 = vpop.eup %3677 }
 0x12c   : > { %v5549_v37 = vadd.f32 %v2429_v56, %v2424_v46  ;;  %3687 = verf.f32 %v2273_v61  ;;  %v5551_v24 = vadd.f32 %v2429_v56, %v2425_v38  ;;  %v5553_v49 = vadd.f32 %v2429_v56, %v2426_v26  ;;  %v3680_v56 = vpop.eup %3679 }
 0x12d   : > { %v2443_v44 = vmul.f32 0.70710677, %v2431_v45  ;;  %v5555_v7 = vmul.f32 0.5, %v2431_v45  ;;  %v5558_v6 = vmul.f32 0.70710677, %v5528_v30  ;;  %v1619_v2 = vadd.f32 %v1614_v35, %v1613_v59  ;;  %s3527_s8 = spop %3526  ;;  %v6752_v41 = vld [vmem:[#allocation23_spill] sm:$0xff] }
 0x12e   : > { %v1576_v8 = vadd.f32 1.0, %v5042_v55  ;;  %v5562_v23 = vmul.f32 0.70710677, %v5536_v9  ;;  %v1581_v36 = vmul.f32 %v1575_v53, %v6718_v12  ;;  %v1615_v38 = vmul.f32 %v5412_v0, %v5381_v63  ;;  %v6721_v0 = vld [vmem:[#allocation72_spill] sm:$0xff] }
 0x12f   : > { %6717 = vst [vmem:[#allocation62_spill] sm:$0xff] %v5555_v7  ;;  %v1616_v21 = vmul.f32 %v5415_v19, %v5390_v15  ;;  %v5570_v60 = vmul.f32 0.70710677, %v5549_v37  ;;  %1620 = vadd.xlane.f32.xlu1 %v1619_v2  ;;  %v2106_v55 = vadd.f32 1.0, %v5357_v42  ;;  %v2107_v10 = vadd.f32 1.0, %v5366_v57  ;;  %v5581_v15 = vpop.xlane.xlu0 %466  ;;  %v5583_v19 = vpop.xlane.xlu1 %491 }
 0x130   : > { %v1582_v46 = vmul.f32 %v1576_v8, %v6719_v16  ;;  %v5576_v45 = vmul.f32 0.70710677, %v5551_v24  ;;  %3689 = verf.f32 %v2443_v44  ;;  %3426 = vst [vmem:[%s4432_s12 + $0x150] sm:$0xff] %v1581_v36  ;;  %v1593_v63 = vmul.f32 %v6720_v28, %v1581_v36  ;;  %6722 = vst [vmem:[#allocation19_spill] sm:$0xff] %v5581_v15 }
 0x131   : > { %v2104_v29 = vadd.f32 1.0, %v6721_v0  ;;  %6723 = vst [vmem:[#allocation64_spill] sm:$0xff] %v5583_v19  ;;  %v1622_v57 = vadd.f32 %v1616_v21, %v1615_v38  ;;  %v2112_v11 = vmul.f32 %v2106_v55, %v5302_v48  ;;  %v2113_v22 = vmul.f32 %v2107_v10, %v5307_v31 }
 0x132   : > { %3427 = vst [vmem:[%s4432_s12 + $0x158] sm:$0xff] %v1582_v46  ;;  %v1594_v42 = vmul.f32 %v6720_v28, %v1582_v46  ;;  %v1599_v61 = vmul.f32 %v6658_v25, %v1593_v63  ;;  %v2105_v26 = vadd.f32 1.0, %v5279_v32  ;;  %v2108_v35 = vadd.f32 1.0, %v5374_v40 }
 0x133   : > { %v2110_v59 = vmul.f32 %v2104_v29, %v5294_v1  ;;  %v3682_v53 = vpop.eup %3681  ;;  %3451 = vst [vmem:[%s4432_s12 + $0x1c0] sm:$0xff] %v2112_v11  ;;  %3452 = vst [vmem:[%s4432_s12 + $0x1c8] sm:$0xff] %v2113_v22  ;;  %v2125_v48 = vmul.f32 %v6685_v51, %v2112_v11  ;;  %v2126_v31 = vmul.f32 %v6685_v51, %v2113_v22  ;;  %v2109_v2 = vadd.f32 1.0, %v5383_v43  ;;  %v5615_v63 = vpop.xlane.xlu0 %488 }
 0x134   : > { %v1600_v44 = vmul.f32 %v6659_v34, %v1594_v42  ;;  %v3684_v8 = vpop.eup %3683  ;;  %v1617_v12 = vmul.f32 %v1599_v61, %v1581_v36  ;;  %v2111_v32 = vmul.f32 %v2105_v26, %v5299_v50  ;;  %v2114_v40 = vmul.f32 %v2108_v35, %v5310_v33  ;;  %6724 = vst [vmem:[#allocation65_spill] sm:$0xff] %v5615_v63 }
 0x135   : > { %3449 = vst [vmem:[%s4432_s12 + $0x180] sm:$0xff] %v2110_v59  ;;  %v2123_v1 = vmul.f32 %v6688_v17, %v2110_v59  ;;  %v5603_v38 = vpop.eup %3685  ;;  %v2131_v55 = vmul.f32 %v6658_v25, %v2125_v48  ;;  %v2132_v51 = vmul.f32 %v6659_v34, %v2126_v31  ;;  %v2115_v36 = vmul.f32 %v2109_v2, %v5315_v52 }
 0x136   : > { %v1607_v21 = vadd.f32 %v1600_v44, %v1599_v61  ;;  %v1618_v16 = vmul.f32 %v1600_v44, %v1582_v46  ;;  %v5607_v10 = vpop.eup %3687  ;;  %3450 = vst [vmem:[%s4432_s12 + $0x188] sm:$0xff] %v2111_v32  ;;  %v2124_v43 = vmul.f32 %v6688_v17, %v2111_v32  ;;  %3453 = vst [vmem:[%s4432_s12 + $0x200] sm:$0xff] %v2114_v40  ;;  %v5617_v46 = vpop.xlane.xlu1 %503  ;;  %v2282_v48 = vadd.f32 1.0, %v3682_v53 }
 0x137   : > { %v2129_v50 = vmul.f32 %v6658_v25, %v2123_v1  ;;  %v2127_v33 = vmul.f32 %v6693_v14, %v2114_v40  ;;  %6725 = vst [vmem:[#allocation69_spill] sm:$0xff] %v5617_v46  ;;  %v2138_v29 = vadd.f32 %v2132_v51, %v2131_v55  ;;  %v2149_v42 = vmul.f32 %v2131_v55, %v2112_v11  ;;  %v6745_v46 = vld [vmem:[#allocation73_spill] sm:$0xff] }
 0x138   : > { %1608 = vadd.xlane.f32.xlu0 %v1607_v21  ;;  %v1625_v0 = vadd.f32 %v1618_v16, %v1617_v12  ;;  %v2150_v61 = vmul.f32 %v2132_v51, %v2113_v22  ;;  %v2130_v26 = vmul.f32 %v6659_v34, %v2124_v43  ;;  %3454 = vst [vmem:[%s4432_s12 + $0x208] sm:$0xff] %v2115_v36  ;;  %v2283_v31 = vadd.f32 1.0, %v3684_v8  ;;  %v5628_v12 = vld [vmem:[%s6325_s1 + $0x58] sm:$0x77]  ;;  %v5644_v43 = vpop.xlane.xlu0 %500 }
 0x139   : > { %v2147_v35 = vmul.f32 %v2129_v50, %v2110_v59  ;;  %v2128_v17 = vmul.f32 %v6693_v14, %v2115_v36  ;;  %v2133_v52 = vmul.f32 %v6658_v25, %v2127_v33  ;;  %v2280_v2 = vadd.f32 1.0, %v3678_v47  ;;  %6727 = vst [vmem:[#allocation70_spill] sm:$0xff] %v5644_v43  ;;  %v6744_v43 = vld [vmem:[#allocation29_spill] sm:$0xff] }
 0x13a   : > { %1626 = vadd.xlane.f32.xlu1 %v1625_v0  ;;  %v5623_v44 = vadd.f32 %v2150_v61, %v2149_v42  ;;  %v5630_v11 = vpop.eup %3689  ;;  %v2135_v22 = vadd.f32 %v2130_v26, %v2129_v50  ;;  %v2148_v59 = vmul.f32 %v2130_v26, %v2111_v32  ;;  %v5634_v21 = vmul.f32 %v2282_v48, %v5347_v58  ;;  %v6729_v58 = vld [vmem:[#allocation50_spill] sm:$0xff]  ;;  %v6731_v50 = vld [vmem:[#allocation49_spill] sm:$0xff]  ;;  %v6733_v61 = vld [vmem:[#allocation11_spill] sm:$0xff] }
 0x13b   : > { %6726 = vst [vmem:[#allocation66_spill] sm:$0xff] %v5630_v11  ;;  %v2134_v14 = vmul.f32 %v6659_v34, %v2128_v17  ;;  %v2151_v1 = vmul.f32 %v2133_v52, %v2114_v40  ;;  %v5637_v47 = vmul.f32 %v2283_v31, %v5533_v18  ;;  %v2281_v53 = vadd.f32 1.0, %v3680_v56  ;;  %v6730_v56 = vld [vmem:[#allocation16_spill] sm:$0xff]  ;;  %v6732_v0 = vld [vmem:[#allocation10_spill] sm:$0xff]  ;;  %v6751_v11 = vld [vmem:[#allocation39_spill] sm:$0xff] }
 0x13c   : > { %1623 = vadd.xlane.f32.xlu0 %v1622_v57  ;;  %v5640_v8 = vmul.f32 %v2280_v2, %v5329_v4  ;;  %v2153_v16 = vadd.f32 %v2148_v59, %v2147_v35  ;;  %v2521_v32 = vrot.slane %v5628_v12, %v6526_v5  ;;  %v5646_v57 = vpop.xlane.xlu1 %522  ;;  %3458 = vst [vmem:[%s4432_s12 + $0x1d0] sm:$0xff] %v5634_v21  ;;  %v6734_v2 = vld [vmem:[#allocation24_spill] sm:$0xff]  ;;  %v2604_v15 = vstv %s3527_s8 }
 0x13d   : > { %v2141_v55 = vadd.f32 %v2134_v14, %v2133_v52  ;;  %v2152_v51 = vmul.f32 %v2134_v14, %v2115_v36  ;;  %6728 = vst [vmem:[#allocation36_spill] sm:$0xff] %v5646_v57  ;;  %3459 = vst [vmem:[%s4432_s12 + $0x1d8] sm:$0xff] %v5637_v47  ;;  %v2300_v4 = vmul.f32 %v6729_v58, %v5634_v21  ;;  %v6735_v14 = vld [vmem:[#allocation31_spill] sm:$0xff]  ;;  %v6741_v57 = vld [vmem:[#allocation13_spill] sm:$0xff]  ;;  %3691 = verf.f32 %v5558_v6 }
 0x13e   : > { %2139 = vadd.xlane.f32.xlu1 %v2138_v29  ;;  %v2301_v18 = vmul.f32 %v6729_v58, %v5637_v47  ;;  %v2287_v40 = vmul.f32 %v2281_v53, %v6730_v56  ;;  %3456 = vst [vmem:[%s4432_s12 + $0x190] sm:$0xff] %v5640_v8  ;;  %v2298_v36 = vmul.f32 %v6731_v50, %v5640_v8  ;;  %v6736_v53 = vld [vmem:[#allocation17_spill] sm:$0xff]  ;;  %3693 = verf.f32 %v5562_v23 }
 0x13f   : > { %v2159_v33 = vadd.f32 %v2152_v51, %v2151_v1  ;;  %v2525_v29 = vrot.slane %v5628_v12, %v6732_v0  ;;  %v2531_v42 = vrot.slane %v2521_v32, %v6526_v5  ;;  %v2545_v26 = vrot.slane %v5628_v12, %v6733_v61  ;;  %v6739_v0 = vld [vmem:[#allocation32_spill] sm:$0xff] }
 0x140   : > { %2136 = vadd.xlane.f32.xlu0 %v2135_v22  ;;  %v5667_v35 = vmul.f32 %v6658_v25, %v2300_v4  ;;  %v5670_v17 = vmul.f32 %v6659_v34, %v2301_v18  ;;  %3457 = vst [vmem:[%s4432_s12 + $0x198] sm:$0xff] %v2287_v40  ;;  %v2299_v52 = vmul.f32 %v6731_v50, %v2287_v40  ;;  %v6737_v4 = vld [vmem:[#allocation12_spill] sm:$0xff]  ;;  %3695 = verf.f32 %v5570_v60 }
 0x141   : > { %v2304_v48 = vmul.f32 %v6658_v25, %v2298_v36  ;;  %v2535_v31 = vrot.slane %v2525_v29, %v6526_v5  ;;  %v2536_v59 = vmul.f32 %v6734_v2, %v2531_v42  ;;  %v2538_v1 = vmul.f32 %v6735_v14, %v2531_v42  ;;  %v6738_v36 = vld [vmem:[#allocation33_spill] sm:$0xff]  ;;  %v6740_v2 = vld [vmem:[#allocation48_spill] sm:$0xff] }
 0x142   : > { %v2540_v51 = vmul.f32 %v6736_v53, %v2531_v42  ;;  %2154 = vadd.xlane.f32.xlu1 %v2153_v16  ;;  %v2313_v22 = vadd.f32 %v5670_v17, %v5667_v35  ;;  %v2305_v32 = vmul.f32 %v6659_v34, %v2299_v52  ;;  %v2549_v18 = vrot.slane %v5628_v12, %v6737_v4  ;;  %v5690_v42 = vpop.xlane.xlu0 %506  ;;  %v5692_v53 = vpop.xlane.xlu1 %528 }
 0x143   : > { %v2555_v56 = vrot.slane %v2545_v26, %v6733_v61  ;;  %v2537_v5 = vmul.f32 %v6738_v36, %v2535_v31  ;;  %v2539_v29 = vmul.f32 %v6739_v0, %v2535_v31  ;;  %v2541_v14 = vmul.f32 %v6740_v2, %v2535_v31  ;;  %6742 = vst [vmem:[#allocation37_spill] sm:$0xff] %v5690_v42  ;;  %v6746_v36 = vld [vmem:[#allocation30_spill] sm:$0xff] }
 0x144   : > { %v2575_v16 = vrot.slane %v5628_v12, %v6741_v57  ;;  %6743 = vst [vmem:[#allocation25_spill] sm:$0xff] %v5692_v53  ;;  %2142 = vadd.xlane.f32.xlu0 %v2141_v55  ;;  %v2310_v52 = vadd.f32 %v2305_v32, %v2304_v48  ;;  %v2559_v4 = vrot.slane %v2549_v18, %v6733_v61  ;;  %v6747_v0 = vld [vmem:[#allocation14_spill] sm:$0xff]  ;;  %v6749_v53 = vld [vmem:[#allocation20_spill] sm:$0xff]  ;;  %3697 = verf.f32 %v5576_v45 }
 0x145   : > { %v2560_v26 = vmul.f32 %v6744_v43, %v2555_v56  ;;  %v2562_v63 = vmul.f32 %v6745_v46, %v2555_v56  ;;  %v2564_v19 = vmul.f32 %v6746_v36, %v2555_v56  ;;  %v2579_v31 = vrot.slane %v5628_v12, %v6747_v0  ;;  %v6748_v42 = vld [vmem:[#allocation74_spill] sm:$0xff]  ;;  %v6750_v0 = vld [vmem:[#allocation21_spill] sm:$0xff] }
 0x146   : > { %v2585_v2 = vrot.slane %v2575_v16, %v6741_v57  ;;  %2160 = vadd.xlane.f32.xlu1 %v2159_v33  ;;  %v2561_v7 = vmul.f32 %v6748_v42, %v2559_v4  ;;  %v2563_v55 = vmul.f32 %v6749_v53, %v2559_v4  ;;  %v2565_v27 = vmul.f32 %v5494_v13, %v2559_v4 }
 0x147   : > { %v2566_v61 = vadd.f32 %v2560_v26, %v2536_v59  ;;  %v2568_v18 = vadd.f32 %v2562_v63, %v2538_v1  ;;  %v2570_v43 = vadd.f32 %v2564_v19, %v2540_v51  ;;  %v2589_v46 = vrot.slane %v2579_v31, %v6741_v57  ;;  %v5712_v19 = vpop.xlane.xlu0 %525  ;;  %v5714_v57 = vpop.xlane.xlu1 %541  ;;  %v6753_v31 = vld [vmem:[#allocation87_spill] sm:$0xff] }
 0x148   : > { %v2590_v56 = vmul.f32 %v5498_v54, %v2585_v2  ;;  %2157 = vadd.xlane.f32.xlu0 %v5623_v44  ;;  %v2567_v12 = vadd.f32 %v2561_v7, %v2537_v5  ;;  %v2569_v36 = vadd.f32 %v2563_v55, %v2539_v29  ;;  %v2571_v16 = vadd.f32 %v2565_v27, %v2541_v14 }
 0x149   : > { %v2592_v33 = vmul.f32 %v5508_v62, %v2585_v2  ;;  %v2591_v42 = vmul.f32 %v6750_v0, %v2589_v46  ;;  %v2593_v53 = vmul.f32 %v6751_v11, %v2589_v46  ;;  %v2594_v13 = vmul.f32 %v6752_v41, %v2585_v2  ;;  %v6757_v0 = vld [vmem:[#allocation84_spill] sm:$0xff] }
 0x14a   : > { %v2595_v63 = vmul.f32 %v5520_v39, %v2589_v46  ;;  %2314 = vadd.xlane.f32.xlu1 %v2313_v22  ;;  %v2596_v54 = vadd.f32 %v2590_v56, %v2566_v61  ;;  %v2322_v7 = vmul.f32 %v2304_v48, %v5640_v8  ;;  %v2323_v27 = vmul.f32 %v2305_v32, %v2287_v40  ;;  %v6756_v56 = vld [vmem:[#allocation82_spill] sm:$0xff] }
 0x14b   : > { %v2598_v44 = vadd.f32 %v2592_v33, %v2568_v18  ;;  %v2448_v62 = vmul.f32 0.70710677, %v5553_v49  ;;  %v2597_v59 = vadd.f32 %v2591_v42, %v2567_v12  ;;  %v2599_v11 = vadd.f32 %v2593_v53, %v2569_v36  ;;  %v5740_v23 = vpop.xlane.xlu0 %538  ;;  %v6754_v18 = vld [vmem:[#allocation56_spill] sm:$0xff]  ;;  %v5769_v36 = vpop.eup %3691 }
 0x14c   : > { %2311 = vadd.xlane.f32.xlu0 %v2310_v52  ;;  %v2600_v41 = vadd.f32 %v2594_v13, %v2570_v43  ;;  %v2601_v1 = vadd.f32 %v2595_v63, %v2571_v16  ;;  %v2606_v39 = vadd.f32 %v2604_v15, %v2596_v54  ;;  %v2328_v51 = vadd.f32 %v2323_v27, %v2322_v7  ;;  %v6758_v54 = vld [vmem:[#allocation88_spill] sm:$0xff]  ;;  %v6759_v7 = vld [vmem:[#allocation77_spill] sm:$0xff] }
 0x14d   : > { %v5720_v5 = vmul.f32 0.5, %v5528_v30  ;;  %v5723_v22 = vmul.f32 0.5, %v5536_v9  ;;  %v2284_v8 = vadd.f32 1.0, %v5603_v38  ;;  %v5728_v40 = vmul.f32 0.5, %v5549_v37  ;;  %v5742_v37 = vpop.xlane.xlu1 %560 }
 0x14e   : > { %v2607_v6 = vadd.f32 %v2604_v15, %v2597_v59  ;;  %v2608_v48 = vadd.f32 %v2604_v15, %v2598_v44  ;;  %2329 = vadd.xlane.f32.xlu1 %v2328_v51  ;;  %v5732_v32 = vmul.f32 0.5, %v5551_v24  ;;  %v5735_v30 = vmul.f32 0.5, %v5553_v49 }
 0x14f   : > { %v5738_v9 = vadd.f32 %v2604_v15, %v2599_v11  ;;  %3699 = verf.f32 %v2448_v62  ;;  %v5744_v60 = vadd.f32 %v2604_v15, %v2600_v41  ;;  %v5746_v38 = vadd.f32 %v2604_v15, %v2601_v1  ;;  %v5777_v53 = vpop.xlane.xlu0 %544  ;;  %v6760_v62 = vld [vmem:[#allocation57_spill] sm:$0xff]  ;;  %v3694_v11 = vpop.eup %3693  ;;  %v6761_v1 = vld [vmem:[#allocation58_spill] sm:$0xff] }
 0x150   : > { %v2618_v29 = vmul.f32 0.70710677, %v2606_v39  ;;  %v5748_v24 = vmul.f32 0.5, %v2606_v39  ;;  %v5750_v14 = vmul.f32 0.5, %v2608_v48  ;;  %v2285_v49 = vadd.f32 1.0, %v5607_v10  ;;  %v3696_v51 = vpop.eup %3695 }
 0x151   : > { %v2290_v45 = vmul.f32 %v2284_v8, %v5544_v3  ;;  %v5754_v52 = vmul.f32 0.5, %v2607_v6  ;;  %v5756_v4 = vmul.f32 0.70710677, %v2607_v6  ;;  %v2620_v26 = vmul.f32 0.70710677, %v2608_v48  ;;  %v6755_v3 = vld [vmem:[#allocation78_spill] sm:$0xff]  ;;  %v5779_v13 = vpop.xlane.xlu1 %566 }
 0x152   : > { %v1748_v2 = vadd.f32 1.0, %v6753_v31  ;;  %v2621_v15 = vmul.f32 0.70710677, %v5738_v9  ;;  %v2291_v55 = vmul.f32 %v2285_v49, %v5547_v20  ;;  %v1749_v10 = vadd.f32 1.0, %v6754_v18  ;;  %v6762_v6 = vld [vmem:[#allocation83_spill] sm:$0xff]  ;;  %v6763_v49 = vld [vmem:[#allocation85_spill] sm:$0xff] }
 0x153   : > { %3460 = vst [vmem:[%s4432_s12 + $0x210] sm:$0xff] %v2290_v45  ;;  %v2302_v61 = vmul.f32 %v6720_v28, %v2290_v45  ;;  %v5765_v43 = vmul.f32 0.70710677, %v5744_v60  ;;  %3701 = verf.f32 %v2618_v29  ;;  %v1746_v12 = vadd.f32 1.0, %v6756_v56 }
 0x154   : > { %v1754_v46 = vmul.f32 %v1748_v2, %v6755_v3  ;;  %3461 = vst [vmem:[%s4432_s12 + $0x218] sm:$0xff] %v2291_v55  ;;  %v2303_v20 = vmul.f32 %v6720_v28, %v2291_v55  ;;  %v2324_v33 = vmul.f32 %v5667_v35, %v5634_v21  ;;  %v1755_v42 = vmul.f32 %v1749_v10, %v6757_v0  ;;  %v6764_v10 = vld [vmem:[#allocation86_spill] sm:$0xff]  ;;  %v5809_v0 = vpop.xlane.xlu0 %563 }
 0x155   : > { %v2308_v16 = vmul.f32 %v6658_v25, %v2302_v61  ;;  %v1747_v44 = vadd.f32 1.0, %v6758_v54  ;;  %v1752_v27 = vmul.f32 %v1746_v12, %v6759_v7  ;;  %v1750_v59 = vadd.f32 1.0, %v6760_v62  ;;  %v6765_v62 = vld [vmem:[#allocation38_spill] sm:$0xff] }
 0x156   : > { %3431 = vst [vmem:[%s4432_s12 + $0x120] sm:$0xff] %v1754_v46  ;;  %v1766_v63 = vmul.f32 %v6729_v58, %v1754_v46  ;;  %v2309_v21 = vmul.f32 %v6659_v34, %v2303_v20  ;;  %3432 = vst [vmem:[%s4432_s12 + $0x128] sm:$0xff] %v1755_v42  ;;  %v1767_v41 = vmul.f32 %v6729_v58, %v1755_v42  ;;  %v1751_v39 = vadd.f32 1.0, %v6761_v1 }
 0x157   : > { %v2326_v35 = vmul.f32 %v2308_v16, %v2290_v45  ;;  %v2325_v8 = vmul.f32 %v5670_v17, %v5637_v47  ;;  %v1753_v48 = vmul.f32 %v1747_v44, %v6762_v6  ;;  %3429 = vst [vmem:[%s4432_s12 + $0xe0] sm:$0xff] %v1752_v27  ;;  %v1764_v29 = vmul.f32 %v6731_v50, %v1752_v27  ;;  %v3698_v45 = vpop.eup %3697 }
 0x158   : > { %v1756_v31 = vmul.f32 %v1750_v59, %v6763_v49  ;;  %v2316_v2 = vadd.f32 %v2309_v21, %v2308_v16  ;;  %v2327_v61 = vmul.f32 %v2309_v21, %v2291_v55  ;;  %v1772_v18 = vmul.f32 %v6658_v25, %v1766_v63  ;;  %v5811_v63 = vpop.xlane.xlu1 %723  ;;  %v6766_v21 = vld [vmem:[#allocation15_spill] sm:$0xff]  ;;  %v6767_v49 = vld [vmem:[#allocation66_spill] sm:$0xff] }
 0x159   : > { %v1757_v3 = vmul.f32 %v1751_v39, %v6764_v10  ;;  %v3700_v56 = vpop.eup %3699  ;;  %3703 = verf.f32 %v2620_v26  ;;  %3430 = vst [vmem:[%s4432_s12 + $0xe8] sm:$0xff] %v1753_v48  ;;  %v1765_v47 = vmul.f32 %v6731_v50, %v1753_v48  ;;  %v1770_v17 = vmul.f32 %v6658_v25, %v1764_v29 }
 0x15a   : > { %3433 = vst [vmem:[%s4432_s12 + $0x160] sm:$0xff] %v1756_v31  ;;  %v1768_v12 = vmul.f32 %v6720_v28, %v1756_v31  ;;  %3705 = verf.f32 %v2621_v15  ;;  %2317 = vadd.xlane.f32.xlu0 %v2316_v2  ;;  %v2334_v20 = vadd.f32 %v2327_v61, %v2326_v35  ;;  %v1773_v16 = vmul.f32 %v6659_v34, %v1767_v41 }
 0x15b   : > { %3434 = vst [vmem:[%s4432_s12 + $0x168] sm:$0xff] %v1757_v3  ;;  %v1769_v55 = vmul.f32 %v6720_v28, %v1757_v3  ;;  %v2331_v26 = vadd.f32 %v2325_v8, %v2324_v33  ;;  %v1771_v54 = vmul.f32 %v6659_v34, %v1765_v47  ;;  %v5816_v7 = vmul.f32 %v1772_v18, %v1754_v46  ;;  %v6769_v47 = vld [vmem:[#allocation62_spill] sm:$0xff] }
 0x15c   : > { %v1774_v44 = vmul.f32 %v6658_v25, %v1768_v12  ;;  %2335 = vadd.xlane.f32.xlu1 %v2334_v20  ;;  %v473_v59 = vmul.f32 0.25, %v6765_v62  ;;  %v471_v35 = vmul.f32 0.25, %v6766_v21  ;;  %v1779_v1 = vadd.f32 %v1773_v16, %v1772_v18 }
 0x15d   : > { %v1775_v15 = vmul.f32 %v6659_v34, %v1769_v55  ;;  %v5820_v41 = vpop.eup %3701  ;;  %v1788_v39 = vmul.f32 %v1770_v17, %v1752_v27  ;;  %v1789_v33 = vmul.f32 %v1771_v54, %v1753_v48  ;;  %v2457_v8 = vadd.f32 1.0, %v3694_v11 }
 0x15e   : > { %2332 = vadd.xlane.f32.xlu0 %v2331_v26  ;;  %v1776_v6 = vadd.f32 %v1771_v54, %v1770_v17  ;;  %v1791_v29 = vmul.f32 %v1773_v16, %v1755_v42  ;;  %477 = vst.msk [vmem:[%s5823_s21 + $0x10] sm:$0xff] %vm474_vm1, %v473_v59  ;;  %475 = vst.msk [vmem:[%s5823_s21] sm:$0xff] %vm474_vm1, %v471_v35  ;;  %v2458_v46 = vadd.f32 1.0, %v3696_v51  ;;  %v2455_v2 = vadd.f32 1.0, %v6767_v49  ;;  %v6768_v42 = vld [vmem:[#allocation41_spill] sm:$0xff]  ;;  %v6770_v17 = vld [vmem:[#allocation19_spill] sm:$0xff] }
 0x15f   : > { %v1792_v61 = vmul.f32 %v1774_v44, %v1756_v31  ;;  %v5831_v27 = vmul.f32 %v2457_v8, %v5723_v22  ;;  %v2456_v11 = vadd.f32 1.0, %v5769_v36  ;;  %v493_v48 = vmul.f32 0.25, %v6768_v42  ;;  %v5840_v31 = vpop.xlane.xlu0 %720  ;;  %v5842_v22 = vpop.xlane.xlu1 %738  ;;  %v6772_v54 = vld [vmem:[#allocation65_spill] sm:$0xff]  ;;  %v6774_v8 = vld [vmem:[#allocation70_spill] sm:$0xff] }
 0x160   : > { %1780 = vadd.xlane.f32.xlu1 %v1779_v1  ;;  %v1793_v18 = vmul.f32 %v1775_v15, %v1757_v3  ;;  %v5836_v10 = vmul.f32 %v2458_v46, %v5728_v40  ;;  %v2461_v51 = vmul.f32 %v2455_v2, %v6769_v47  ;;  %v472_v12 = vmul.f32 0.25, %v6770_v17  ;;  %v6777_v17 = vld [vmem:[#allocation89_spill] sm:$0xff] }
 0x161   : > { %v1794_v20 = vadd.f32 %v1789_v33, %v1788_v39  ;;  %3465 = vst [vmem:[%s4432_s12 + $0x1e0] sm:$0xff] %v5831_v27  ;;  %v2462_v36 = vmul.f32 %v2456_v11, %v5720_v5  ;;  %496 = vst.msk [vmem:[%s5848_s13] sm:$0xff] %vm474_vm1, %v493_v48  ;;  %v2459_v40 = vadd.f32 1.0, %v3698_v45  ;;  %v2460_v3 = vadd.f32 1.0, %v3700_v56  ;;  %v6771_v5 = vld [vmem:[#allocation64_spill] sm:$0xff] }
 0x162   : > { %1777 = vadd.xlane.f32.xlu0 %v1776_v6  ;;  %3466 = vst [vmem:[%s4432_s12 + $0x1e8] sm:$0xff] %v5836_v10  ;;  %v2475_v16 = vmul.f32 %v6729_v58, %v5831_v27  ;;  %3463 = vst [vmem:[%s4432_s12 + $0x1a0] sm:$0xff] %v2461_v51  ;;  %v2473_v55 = vmul.f32 %v6731_v50, %v2461_v51  ;;  %v495_v26 = vmul.f32 0.25, %v6771_v5  ;;  %v494_v62 = vmul.f32 0.25, %v6772_v54 }
 0x163   : > { %476 = vst.msk [vmem:[%s5823_s21 + $0x8] sm:$0xff] %vm474_vm1, %v472_v12  ;;  %v5862_v59 = vpop.eup %3703  ;;  %v2476_v45 = vmul.f32 %v6729_v58, %v5836_v10  ;;  %3464 = vst [vmem:[%s4432_s12 + $0x1a8] sm:$0xff] %v2462_v36  ;;  %v2474_v56 = vmul.f32 %v6731_v50, %v2462_v36  ;;  %v5869_v21 = vmul.f32 %v2459_v40, %v5732_v32  ;;  %v6773_v58 = vld [vmem:[#allocation69_spill] sm:$0xff]  ;;  %v508_v32 = vmul.f32 0.25, %v6774_v8  ;;  %v5900_v2 = vpop.xlane.xlu0 %726 }
 0x164   : > { %v5872_v35 = vmul.f32 %v2460_v3, %v5735_v30  ;;  %v5874_v1 = vpop.eup %3705  ;;  %1795 = vadd.xlane.f32.xlu1 %v1794_v20  ;;  %v1782_v39 = vadd.f32 %v1775_v15, %v1774_v44  ;;  %v2479_v33 = vmul.f32 %v6658_v25, %v2473_v55  ;;  %498 = vst.msk [vmem:[%s5848_s13 + $0x10] sm:$0xff] %vm474_vm1, %v495_v26  ;;  %497 = vst.msk [vmem:[%s5848_s13 + $0x8] sm:$0xff] %vm474_vm1, %v494_v62  ;;  %v5902_v11 = vpop.xlane.xlu1 %744  ;;  %v6778_v20 = vld [vmem:[#allocation59_spill] sm:$0xff]  ;;  %v6781_v26 = vld [vmem:[#allocation68_spill] sm:$0xff] }
 0x165   : > { %v509_v50 = vmul.f32 0.25, %v6773_v58  ;;  %v2623_v6 = vmul.f32 0.70710677, %v5746_v38  ;;  %3707 = verf.f32 %v5756_v4  ;;  %v2480_v30 = vmul.f32 %v6659_v34, %v2474_v56  ;;  %3467 = vst [vmem:[%s4432_s12 + $0x220] sm:$0xff] %v5869_v21  ;;  %3399 = vst.msk [vmem:[%s5823_s21 + $0x18] sm:$0xff] %vm474_vm1, %v508_v32  ;;  %v6775_v4 = vld [vmem:[#allocation47_spill] sm:$0xff] }
 0x166   : > { %3468 = vst [vmem:[%s4432_s12 + $0x228] sm:$0xff] %v5872_v35  ;;  %v2477_v44 = vmul.f32 %v6720_v28, %v5869_v21  ;;  %3709 = verf.f32 %v5765_v43  ;;  %1783 = vadd.xlane.f32.xlu0 %v1782_v39  ;;  %v1800_v15 = vadd.f32 %v1793_v18, %v1792_v61  ;;  %v2478_v46 = vmul.f32 %v6720_v28, %v5872_v35  ;;  %v6776_v18 = vld [vmem:[#allocation27_spill] sm:$0xff]  ;;  %v6782_v62 = vld [vmem:[#allocation36_spill] sm:$0xff]  ;;  %v6783_v56 = vld [vmem:[#allocation37_spill] sm:$0xff] }
 0x167   : > { %3400 = vst.msk [vmem:[%s5823_s21 + $0x20] sm:$0xff] %vm474_vm1, %v509_v50  ;;  %v1923_v49 = vadd.f32 1.0, %v6775_v4  ;;  %v1797_v42 = vadd.f32 %v1791_v29, %v5816_v7  ;;  %v2481_v43 = vmul.f32 %v6658_v25, %v2475_v16  ;;  %v2482_v61 = vmul.f32 %v6659_v34, %v2476_v45  ;;  %v6780_v55 = vld [vmem:[#allocation35_spill] sm:$0xff] }
 0x168   : > { %v2497_v48 = vmul.f32 %v2479_v33, %v2461_v51  ;;  %1801 = vadd.xlane.f32.xlu1 %v1800_v15  ;;  %v2498_v28 = vmul.f32 %v2480_v30, %v2462_v36  ;;  %v1924_v47 = vadd.f32 1.0, %v6776_v18  ;;  %v1921_v40 = vadd.f32 1.0, %v6778_v20  ;;  %v6779_v36 = vld [vmem:[#allocation90_spill] sm:$0xff]  ;;  %v6784_v58 = vld [vmem:[#allocation71_spill] sm:$0xff]  ;;  %v6786_v15 = vld [vmem:[#allocation93_spill] sm:$0xff]  ;;  %v5941_v4 = vpop.xlane.xlu1 %898 }
 0x169   : > { %v5909_v12 = vmul.f32 %v1923_v49, %v6777_v17  ;;  %v5913_v3 = vmul.f32 0.5, %v5738_v9  ;;  %3711 = verf.f32 %v2623_v6  ;;  %v2488_v7 = vadd.f32 %v2482_v61, %v2481_v43  ;;  %v6785_v6 = vld [vmem:[#allocation40_spill] sm:$0xff]  ;;  %v6788_v49 = vld [vmem:[#allocation91_spill] sm:$0xff]  ;;  %v6790_v20 = vld [vmem:[#allocation26_spill] sm:$0xff] }
 0x16a   : > { %v2483_v29 = vmul.f32 %v6658_v25, %v2477_v44  ;;  %1798 = vadd.xlane.f32.xlu0 %v1797_v42  ;;  %v2484_v51 = vmul.f32 %v6659_v34, %v2478_v46  ;;  %v5918_v16 = vmul.f32 %v1924_v47, %v6779_v36  ;;  %v1922_v5 = vadd.f32 1.0, %v6780_v55  ;;  %v5939_v46 = vpop.xlane.xlu0 %741 }
 0x16b   : > { %3438 = vst [vmem:[%s4432_s12 + $0x130] sm:$0xff] %v5909_v12  ;;  %v5924_v9 = vmul.f32 %v1921_v40, %v6781_v26  ;;  %v5927_v54 = vmul.f32 0.5, %v5744_v60  ;;  %v530_v45 = vmul.f32 0.25, %v6782_v62  ;;  %v510_v39 = vmul.f32 0.25, %v6783_v56 }
 0x16c   : > { %v1925_v50 = vadd.f32 1.0, %v6784_v58  ;;  %2489 = vadd.xlane.f32.xlu1 %v2488_v7  ;;  %v2485_v8 = vadd.f32 %v2480_v30, %v2479_v33  ;;  %v2503_v32 = vadd.f32 %v2498_v28, %v2497_v48  ;;  %3439 = vst [vmem:[%s4432_s12 + $0x138] sm:$0xff] %v5918_v16  ;;  %v1928_v44 = vmul.f32 %v1922_v5, %v6785_v6  ;;  %v6787_v33 = vld [vmem:[#allocation28_spill] sm:$0xff]  ;;  %v6789_v48 = vld [vmem:[#allocation25_spill] sm:$0xff]  ;;  %v6792_v58 = vld [vmem:[#allocation46_spill] sm:$0xff] }
 0x16d   : > { %3436 = vst [vmem:[%s4432_s12 + $0xf0] sm:$0xff] %v5924_v9  ;;  %v1939_v60 = vmul.f32 %v6786_v15, %v5924_v9  ;;  %3402 = vst.msk [vmem:[%s5848_s13 + $0x18] sm:$0xff] %vm474_vm1, %v530_v45  ;;  %v1926_v30 = vadd.f32 1.0, %v6787_v33  ;;  %v532_v28 = vmul.f32 0.25, %v6789_v48  ;;  %v531_v18 = vmul.f32 0.25, %v5712_v19  ;;  %v6791_v5 = vld [vmem:[#allocation92_spill] sm:$0xff] }
 0x16e   : > { %3401 = vst.msk [vmem:[%s5823_s21 + $0x28] sm:$0xff] %vm474_vm1, %v510_v39  ;;  %v5949_v42 = vmul.f32 %v1925_v50, %v6788_v49  ;;  %2486 = vadd.xlane.f32.xlu0 %v2485_v8  ;;  %v2501_v47 = vmul.f32 %v2483_v29, %v5869_v21  ;;  %v2502_v17 = vmul.f32 %v2484_v51, %v5872_v35  ;;  %3437 = vst [vmem:[%s4432_s12 + $0xf8] sm:$0xff] %v1928_v44 }
 0x16f   : > { %v1941_v40 = vmul.f32 %v6790_v20, %v5909_v12  ;;  %v1940_v7 = vmul.f32 %v6786_v15, %v1928_v44  ;;  %v3708_v36 = vpop.eup %3707  ;;  %v1942_v55 = vmul.f32 %v6790_v20, %v5918_v16  ;;  %v1932_v26 = vmul.f32 %v1926_v30, %v6791_v5  ;;  %3404 = vst.msk [vmem:[%s5848_s13 + $0x28] sm:$0xff] %vm474_vm1, %v532_v28 }
 0x170   : > { %3440 = vst [vmem:[%s4432_s12 + $0x170] sm:$0xff] %v5949_v42  ;;  %3403 = vst.msk [vmem:[%s5848_s13 + $0x20] sm:$0xff] %vm474_vm1, %v531_v18  ;;  %v547_v19 = vmul.f32 0.25, %v5714_v57  ;;  %v546_v21 = vmul.f32 0.25, %v5740_v23  ;;  %v3710_v35 = vpop.eup %3709  ;;  %2504 = vadd.xlane.f32.xlu1 %v2503_v32  ;;  %v2491_v62 = vadd.f32 %v2484_v51, %v2483_v29  ;;  %v2499_v45 = vmul.f32 %v2481_v43, %v5831_v27  ;;  %v5986_v29 = vpop.xlane.xlu0 %895 }
 0x171   : > { %v2500_v56 = vmul.f32 %v2482_v61, %v5836_v10  ;;  %v1945_v39 = vmul.f32 %v6658_v25, %v1939_v60  ;;  %3441 = vst [vmem:[%s4432_s12 + $0x178] sm:$0xff] %v1932_v26  ;;  %v1943_v50 = vmul.f32 %v6792_v58, %v5949_v42  ;;  %v1944_v8 = vmul.f32 %v6792_v58, %v1932_v26  ;;  %v1074_v51 = vpop.xlane.xlu1 %1073 }
 0x172   : > { %3406 = vst.msk [vmem:[%s5823_s21 + $0x38] sm:$0xff] %vm474_vm1, %v547_v19  ;;  %3405 = vst.msk [vmem:[%s5823_s21 + $0x30] sm:$0xff] %vm474_vm1, %v546_v21  ;;  %v2632_v57 = vadd.f32 1.0, %v5862_v59  ;;  %v2633_v23 = vadd.f32 1.0, %v5874_v1  ;;  %v2617_v27 = vmul.f32 0.5, %v5746_v38  ;;  %2492 = vadd.xlane.f32.xlu0 %v2491_v62  ;;  %v2509_v10 = vadd.f32 %v2502_v17, %v2501_v47 }
 0x173   : > { %v1946_v43 = vmul.f32 %v6659_v34, %v1940_v7  ;;  %v2630_v61 = vadd.f32 1.0, %v5820_v41  ;;  %v3712_v32 = vpop.eup %3711  ;;  %v1947_v6 = vmul.f32 %v6658_v25, %v1941_v40  ;;  %v1948_v59 = vmul.f32 %v6659_v34, %v1942_v55 }
 0x174   : > { %v5991_v1 = vmul.f32 %v2632_v57, %v5750_v14  ;;  %v5994_v38 = vmul.f32 %v2633_v23, %v5913_v3  ;;  %2510 = vadd.xlane.f32.xlu1 %v2509_v10  ;;  %v2506_v41 = vadd.f32 %v2500_v56, %v2499_v45  ;;  %v2631_v60 = vadd.f32 1.0, %v3708_v36 }
 0x175   : > { %v2636_v33 = vmul.f32 %v2630_v61, %v5748_v24  ;;  %v568_v30 = vmul.f32 0.25, %v5742_v37  ;;  %v1954_v49 = vadd.f32 %v1948_v59, %v1947_v6  ;;  %v1963_v48 = vmul.f32 %v1945_v39, %v5924_v9  ;;  %v1249_v40 = vpop.xlane.xlu1 %1248 }
 0x176   : > { %v1949_v14 = vmul.f32 %v6658_v25, %v1943_v50  ;;  %v1950_v28 = vmul.f32 %v6659_v34, %v1944_v8  ;;  %3472 = vst [vmem:[%s4432_s12 + $0x1f0] sm:$0xff] %v5991_v1  ;;  %3473 = vst [vmem:[%s4432_s12 + $0x1f8] sm:$0xff] %v5994_v38  ;;  %2507 = vadd.xlane.f32.xlu0 %v2506_v41  ;;  %v1964_v3 = vmul.f32 %v1946_v43, %v1928_v44 }
 0x177   : > { %v2637_v18 = vmul.f32 %v2631_v60, %v5754_v52  ;;  %3470 = vst [vmem:[%s4432_s12 + $0x1b0] sm:$0xff] %v2636_v33  ;;  %3408 = vst.msk [vmem:[%s5848_s13 + $0x30] sm:$0xff] %vm474_vm1, %v568_v30  ;;  %v548_v37 = vmul.f32 0.25, %v5777_v53  ;;  %v2634_v24 = vadd.f32 1.0, %v3710_v35  ;;  %v2635_v9 = vadd.f32 1.0, %v3712_v32  ;;  %v902_v52 = vpop.xlane.xlu0 %901 }
 0x178   : > { %1955 = vadd.xlane.f32.xlu1 %v1954_v49  ;;  %v1951_v47 = vadd.f32 %v1946_v43, %v1945_v39  ;;  %v570_v44 = vmul.f32 0.25, %v5779_v13  ;;  %v1967_v7 = vmul.f32 %v1949_v14, %v5949_v42  ;;  %v1968_v53 = vmul.f32 %v1950_v28, %v1932_v26 }
 0x179   : > { %3471 = vst [vmem:[%s4432_s12 + $0x1b8] sm:$0xff] %v2637_v18  ;;  %3407 = vst.msk [vmem:[%s5823_s21 + $0x40] sm:$0xff] %vm474_vm1, %v548_v37  ;;  %v2640_v17 = vmul.f32 %v2634_v24, %v5927_v54  ;;  %v2641_v36 = vmul.f32 %v2635_v9, %v2617_v27  ;;  %v569_v55 = vmul.f32 0.25, %v5809_v0  ;;  %v1969_v5 = vadd.f32 %v1964_v3, %v1963_v48 }
 0x17a   : > { %1952 = vadd.xlane.f32.xlu0 %v1951_v47  ;;  %v2648_v19 = vmul.f32 %v6786_v15, %v2636_v33  ;;  %v2649_v21 = vmul.f32 %v6786_v15, %v2637_v18  ;;  %3410 = vst.msk [vmem:[%s5848_s13 + $0x40] sm:$0xff] %vm474_vm1, %v570_v44  ;;  %v2650_v13 = vmul.f32 %v6790_v20, %v5991_v1 }
 0x17b   : > { %3474 = vst [vmem:[%s4432_s12 + $0x230] sm:$0xff] %v2640_v17  ;;  %v2651_v54 = vmul.f32 %v6790_v20, %v5994_v38  ;;  %3475 = vst [vmem:[%s4432_s12 + $0x238] sm:$0xff] %v2641_v36  ;;  %v904_v0 = vadd.f32 %v5941_v4, %v5811_v63  ;;  %v1957_v42 = vadd.f32 %v1950_v28, %v1949_v14  ;;  %v1071_v50 = vpop.xlane.xlu0 %1070  ;;  %v914_v63 = vpop.xlane.xlu1 %913 }
 0x17c   : > { %3409 = vst.msk [vmem:[%s5848_s13 + $0x38] sm:$0xff] %vm474_vm1, %v569_v55  ;;  %1970 = vadd.xlane.f32.xlu1 %v1969_v5  ;;  %v1965_v26 = vmul.f32 %v1947_v6, %v5909_v12  ;;  %v1966_v15 = vmul.f32 %v1948_v59, %v5918_v16  ;;  %v1975_v35 = vadd.f32 %v1968_v53, %v1967_v7 }
 0x17d   : > { %v1079_v62 = vadd.f32 %v1074_v51, %v904_v0  ;;  %v2654_v45 = vmul.f32 %v6658_v25, %v2648_v19  ;;  %v2655_v20 = vmul.f32 %v6659_v34, %v2649_v21  ;;  %v2652_v56 = vmul.f32 %v6792_v58, %v2640_v17 }
 0x17e   : > { %1958 = vadd.xlane.f32.xlu0 %v1957_v42  ;;  %v2653_v39 = vmul.f32 %v6792_v58, %v2641_v36  ;;  %v2656_v4 = vmul.f32 %v6658_v25, %v2650_v13  ;;  %v2657_v12 = vmul.f32 %v6659_v34, %v2651_v54  ;;  %v1972_v16 = vadd.f32 %v1966_v15, %v1965_v26 }
 0x17f   : > { %v1254_v8 = vadd.f32 %v1249_v40, %v1079_v62  ;;  %v2672_v23 = vmul.f32 %v2654_v45, %v2636_v33  ;;  %v2673_v27 = vmul.f32 %v2655_v20, %v2637_v18  ;;  %v2658_v58 = vmul.f32 %v6658_v25, %v2652_v56  ;;  %v1077_v61 = vpop.xlane.xlu0 %1076  ;;  %v920_v51 = vpop.xlane.xlu1 %919 }
 0x180   : > { %1976 = vadd.xlane.f32.xlu1 %v1975_v35  ;;  %v2663_v57 = vadd.f32 %v2657_v12, %v2656_v4  ;;  %v2659_v10 = vmul.f32 %v6659_v34, %v2653_v39  ;;  %v2660_v43 = vadd.f32 %v2655_v20, %v2654_v45  ;;  %v903_v41 = vadd.f32 %v5986_v29, %v5840_v31 }
 0x181   : > { %1275 = vst.msk [vmem:[%s6040_s14 + $0x8] sm:$0xff] %vm474_vm1, %v1254_v8  ;;  %v2678_v32 = vadd.f32 %v2673_v27, %v2672_v23  ;;  %v2676_v6 = vmul.f32 %v2658_v58, %v2640_v17  ;;  %v2674_v33 = vmul.f32 %v2656_v4, %v5991_v1  ;;  %v2675_v25 = vmul.f32 %v2657_v12, %v5994_v38 }
 0x182   : > { %1973 = vadd.xlane.f32.xlu0 %v1972_v16  ;;  %v2677_v59 = vmul.f32 %v2659_v10, %v2641_v36  ;;  %v2666_v60 = vadd.f32 %v2659_v10, %v2658_v58  ;;  %v1078_v34 = vadd.f32 %v1071_v50, %v903_v41  ;;  %v905_v14 = vadd.f32 %v902_v52, %v5900_v2 }
 0x183   : > { %v2681_v3 = vadd.f32 %v2675_v25, %v2674_v33  ;;  %v921_v38 = vadd.f32 %v914_v63, %v5842_v22  ;;  %v923_v2 = vadd.f32 %v920_v51, %v5902_v11 }
 0x184   : > { %2664 = vadd.xlane.f32.xlu1 %v2663_v57  ;;  %v2684_v30 = vadd.f32 %v2677_v59, %v2676_v6  ;;  %v1089_v48 = vpop.xlane.xlu1 %1088  ;;  %v1080_v18 = vadd.f32 %v1077_v61, %v905_v14 }
 0x185   : > { %v1096_v37 = vadd.f32 %v1089_v48, %v921_v38 }
 0x186   : > { %2661 = vadd.xlane.f32.xlu0 %v2660_v43 }
 0x188   : > { %2679 = vadd.xlane.f32.xlu1 %v2678_v32 }
 0x189   : > { %v1246_v49 = vpop.xlane.xlu0 %1245  ;;  %v1095_v1 = vpop.xlane.xlu1 %1094 }
 0x18a   : > { %2667 = vadd.xlane.f32.xlu0 %v2666_v60  ;;  %v1253_v28 = vadd.f32 %v1246_v49, %v1078_v34  ;;  %v1098_v17 = vadd.f32 %v1095_v1, %v923_v2 }
 0x18c   : > { %2685 = vadd.xlane.f32.xlu1 %v2684_v30  ;;  %1274 = vst.msk [vmem:[%s6040_s14] sm:$0xff] %vm474_vm1, %v1253_v28 }
 0x18d   : > { %v1252_v31 = vpop.xlane.xlu0 %1251 }
 0x18e   : > { %2682 = vadd.xlane.f32.xlu0 %v2681_v3  ;;  %v1255_v29 = vadd.f32 %v1252_v31, %v1080_v18 }
 0x190   : > { %1276 = vst.msk [vmem:[%s6040_s14 + $0x10] sm:$0xff] %vm474_vm1, %v1255_v29 }
 0x191   : > { %v917_v9 = vpop.xlane.xlu0 %916 }
 0x192   : > { %v922_v52 = vadd.f32 %v917_v9, %v5939_v46 }
 0x196   : > { %v1264_v24 = vpop.xlane.xlu1 %1263 }
 0x197   : > { %v1271_v47 = vadd.f32 %v1264_v24, %v1096_v37 }
 0x199   : > { %1277 = vst.msk [vmem:[%s6057_s15] sm:$0xff] %vm474_vm1, %v1271_v47 }
 0x19c   : > { %v1092_v44 = vpop.xlane.xlu0 %1091 }
 0x19d   : > { %v1270_v40 = vpop.xlane.xlu1 %1269  ;;  %v1097_v22 = vadd.f32 %v1092_v44, %v922_v52 }
 0x19e   : > { %v1273_v7 = vadd.f32 %v1270_v40, %v1098_v17 }
 0x1a0   : > { %1279 = vst.msk [vmem:[%s6057_s15 + $0x10] sm:$0xff] %vm474_vm1, %v1273_v7  ;;  %v1267_v53 = vpop.xlane.xlu0 %1266 }
 0x1a1   : > { %v1272_v36 = vadd.f32 %v1267_v53, %v1097_v22 }
 0x1a3   : > { %1278 = vst.msk [vmem:[%s6057_s15 + $0x8] sm:$0xff] %vm474_vm1, %v1272_v36 }
 0x1a5   : > { %v1431_v55 = vpop.xlane.xlu1 %1430 }
 0x1a6   : > { %v1428_v5 = vpop.xlane.xlu0 %1427 }
 0x1a9   : > { %v1446_v19 = vpop.xlane.xlu1 %1445 }
 0x1aa   : > { %v1434_v21 = vpop.xlane.xlu0 %1433 }
 0x1ad   : > { %v1452_v13 = vpop.xlane.xlu1 %1451 }
 0x1ae   : > { %v1449_v54 = vpop.xlane.xlu0 %1448 }
 0x1b1   : > { %v1606_v11 = vpop.xlane.xlu1 %1605 }
 0x1b2   : > { %v1611_v41 = vadd.f32 %v1606_v11, %v1431_v55 }
 0x1b4   : > { %v1603_v0 = vpop.xlane.xlu0 %1602 }
 0x1b5   : > { %v1610_v33 = vadd.f32 %v1603_v0, %v1428_v5 }
 0x1bc   : > { %v1621_v42 = vpop.xlane.xlu1 %1620 }
 0x1bd   : > { %v1628_v30 = vadd.f32 %v1621_v42, %v1446_v19 }
 0x1c5   : > { %v1609_v26 = vpop.xlane.xlu0 %1608 }
 0x1c6   : > { %v1612_v28 = vadd.f32 %v1609_v26, %v1434_v21 }
 0x1c7   : > { %v1627_v46 = vpop.xlane.xlu1 %1626 }
 0x1c8   : > { %v1630_v29 = vadd.f32 %v1627_v46, %v1452_v13 }
 0x1c9   : > { %v1624_v15 = vpop.xlane.xlu0 %1623 }
 0x1ca   : > { %v1629_v24 = vadd.f32 %v1624_v15, %v1449_v54 }
 0x1cb   : > { %v2140_v35 = vpop.xlane.xlu1 %2139 }
 0x1cd   : > { %v2137_v62 = vpop.xlane.xlu0 %2136 }
 0x1cf   : > { %v2155_v45 = vpop.xlane.xlu1 %2154 }
 0x1d1   : > { %v2143_v20 = vpop.xlane.xlu0 %2142 }
 0x1d3   : > { %v6067_v56 = vpop.xlane.xlu1 %2160 }
 0x1d5   : > { %v6069_v39 = vpop.xlane.xlu0 %2157 }
 0x1d7   : > { %v2315_v50 = vpop.xlane.xlu1 %2314 }
 0x1d8   : > { %v2320_v17 = vadd.f32 %v2315_v50, %v2140_v35 }
 0x1d9   : > { %v2312_v63 = vpop.xlane.xlu0 %2311 }
 0x1da   : > { %v2319_v7 = vadd.f32 %v2312_v63, %v2137_v62 }
 0x1db   : > { %v2330_v4 = vpop.xlane.xlu1 %2329 }
 0x1dc   : > { %v2337_v55 = vadd.f32 %v2330_v4, %v2155_v45 }
 0x1e7   : > { %v2318_v12 = vpop.xlane.xlu0 %2317 }
 0x1e8   : > { %v2321_v13 = vadd.f32 %v2318_v12, %v2143_v20  ;;  %v2741_v12 = vld [vmem:[%s4432_s12 + $0x8] sm:$0xff] (%p3866_p6) }
 0x1e9   : > { %v2336_v8 = vpop.xlane.xlu1 %2335  ;;  %2742 = vst [vmem:[%s6109_s19 + $0x8] sm:$0xff] (%p3866_p6), %v2741_v12  ;;  %v2869_v12 = vld [vmem:[%s4432_s12 + $0x208] sm:$0xff] (%p3866_p6) }
 0x1ea   : > { %v2339_v42 = vadd.f32 %v2336_v8, %v6067_v56  ;;  %v2743_v8 = vld [vmem:[%s4432_s12 + $0x10] sm:$0xff] (%p3866_p6)  ;;  %2870 = vst [vmem:[%s6109_s19 + $0x388] sm:$0xff] (%p3866_p6), %v2869_v12 }
 0x1eb   : > { %v2333_v16 = vpop.xlane.xlu0 %2332  ;;  %2744 = vst [vmem:[%s6109_s19 + $0x10] sm:$0xff] (%p3866_p6), %v2743_v8  ;;  %v2871_v8 = vld [vmem:[%s4432_s12 + $0x210] sm:$0xff] (%p3866_p6) }
 0x1ec   : > { %v2338_v35 = vadd.f32 %v2333_v16, %v6069_v39  ;;  %v2739_v39 = vld [vmem:[%s4432_s12] sm:$0xff] (%p3866_p6)  ;;  %v2745_v16 = vld [vmem:[%s4432_s12 + $0x18] sm:$0xff] (%p3866_p6)  ;;  %2872 = vst [vmem:[%s6109_s19 + $0x390] sm:$0xff] (%p3866_p6), %v2871_v8 }
 0x1ed   : > { %v1781_v57 = vpop.xlane.xlu1 %1780  ;;  %2740 = vst [vmem:[%s6109_s19] sm:$0xff] (%p3866_p6), %v2739_v39  ;;  %2746 = vst [vmem:[%s6109_s19 + $0x18] sm:$0xff] (%p3866_p6), %v2745_v16  ;;  %v2867_v39 = vld [vmem:[%s4432_s12 + $0x200] sm:$0xff] (%p3866_p6)  ;;  %v2873_v16 = vld [vmem:[%s4432_s12 + $0x218] sm:$0xff] (%p3866_p6) }
 0x1ee   : > { %v1786_v25 = vadd.f32 %v1781_v57, %v1611_v41  ;;  %v2747_v57 = vld [vmem:[%s4432_s12 + $0x20] sm:$0xff] (%p3866_p6)  ;;  %v2769_v41 = vld [vmem:[%s4432_s12 + $0x78] sm:$0xff] (%p3866_p6)  ;;  %2868 = vst [vmem:[%s6109_s19 + $0x380] sm:$0xff] (%p3866_p6), %v2867_v39  ;;  %2874 = vst [vmem:[%s6109_s19 + $0x398] sm:$0xff] (%p3866_p6), %v2873_v16 }
 0x1ef   : > { %v1778_v23 = vpop.xlane.xlu0 %1777  ;;  %2748 = vst [vmem:[%s6109_s19 + $0x20] sm:$0xff] (%p3866_p6), %v2747_v57  ;;  %2770 = vst [vmem:[%s6109_s19 + $0x78] sm:$0xff] (%p3866_p6), %v2769_v41  ;;  %v2875_v57 = vld [vmem:[%s4432_s12 + $0x220] sm:$0xff] (%p3866_p6) }
 0x1f0   : > { %v1785_v49 = vadd.f32 %v1778_v23, %v1610_v33  ;;  %v2749_v23 = vld [vmem:[%s4432_s12 + $0x28] sm:$0xff] (%p3866_p6)  ;;  %2876 = vst [vmem:[%s6109_s19 + $0x3a0] sm:$0xff] (%p3866_p6), %v2875_v57 }
 0x1f1   : > { %v1796_v27 = vpop.xlane.xlu1 %1795  ;;  %2750 = vst [vmem:[%s6109_s19 + $0x28] sm:$0xff] (%p3866_p6), %v2749_v23  ;;  %v2773_v33 = vld [vmem:[%s4432_s12 + $0x88] sm:$0xff] (%p3866_p6) }
 0x1f2   : > { %v1803_v3 = vadd.f32 %v1796_v27, %v1628_v30  ;;  %v2751_v27 = vld [vmem:[%s4432_s12 + $0x30] sm:$0xff] (%p3866_p6)  ;;  %2774 = vst [vmem:[%s6109_s19 + $0x88] sm:$0xff] (%p3866_p6), %v2773_v33  ;;  %v2779_v30 = vld [vmem:[%s4432_s12 + $0xa0] sm:$0xff] (%p3866_p6)  ;;  %v2877_v23 = vld [vmem:[%s4432_s12 + $0x228] sm:$0xff] (%p3866_p6) }
 0x1f3   : > { %v1784_v58 = vpop.xlane.xlu0 %1783  ;;  %2752 = vst [vmem:[%s6109_s19 + $0x30] sm:$0xff] (%p3866_p6), %v2751_v27  ;;  %2780 = vst [vmem:[%s6109_s19 + $0xa0] sm:$0xff] (%p3866_p6), %v2779_v30  ;;  %v2879_v27 = vld [vmem:[%s4432_s12 + $0x230] sm:$0xff] (%p3866_p6) }
 0x1f4   : > { %v1787_v1 = vadd.f32 %v1784_v58, %v1612_v28  ;;  %v2753_v58 = vld [vmem:[%s4432_s12 + $0x38] sm:$0xff] (%p3866_p6)  ;;  %v2787_v28 = vld [vmem:[%s4432_s12 + $0xc0] sm:$0xff] (%p3866_p6)  ;;  %2878 = vst [vmem:[%s6109_s19 + $0x3a8] sm:$0xff] (%p3866_p6), %v2877_v23  ;;  %2880 = vst [vmem:[%s6109_s19 + $0x3b0] sm:$0xff] (%p3866_p6), %v2879_v27 }
 0x1f5   : > { %v1802_v10 = vpop.xlane.xlu1 %1801  ;;  %2754 = vst [vmem:[%s6109_s19 + $0x38] sm:$0xff] (%p3866_p6), %v2753_v58  ;;  %2788 = vst [vmem:[%s6109_s19 + $0x180] sm:$0xff] (%p3866_p6), %v2787_v28  ;;  %v2881_v58 = vld [vmem:[%s4432_s12 + $0x238] sm:$0xff] (%p3866_p6) }
 0x1f6   : > { %v1805_v9 = vadd.f32 %v1802_v10, %v1630_v29  ;;  %v2755_v10 = vld [vmem:[%s4432_s12 + $0x40] sm:$0xff] (%p3866_p6)  ;;  %2882 = vst [vmem:[%s6109_s19 + $0x3b8] sm:$0xff] (%p3866_p6), %v2881_v58 }
 0x1f7   : > { %v1799_v43 = vpop.xlane.xlu0 %1798  ;;  %2756 = vst [vmem:[%s6109_s19 + $0x40] sm:$0xff] (%p3866_p6), %v2755_v10  ;;  %v2795_v29 = vld [vmem:[%s4432_s12 + $0xe0] sm:$0xff] (%p3866_p6) }
 0x1f8   : > { %v1804_v44 = vadd.f32 %v1799_v43, %v1629_v24  ;;  %v2757_v43 = vld [vmem:[%s4432_s12 + $0x48] sm:$0xff] (%p3866_p6)  ;;  %2796 = vst [vmem:[%s6109_s19 + $0x1a0] sm:$0xff] (%p3866_p6), %v2795_v29  ;;  %v2803_v24 = vld [vmem:[%s4432_s12 + $0x100] sm:$0xff] (%p3866_p6) }
 0x1f9   : > { %v2490_v61 = vpop.xlane.xlu1 %2489  ;;  %2758 = vst [vmem:[%s6109_s19 + $0x48] sm:$0xff] (%p3866_p6), %v2757_v43  ;;  %2804 = vst [vmem:[%s6109_s19 + $0x1c0] sm:$0xff] (%p3866_p6), %v2803_v24 }
 0x1fa   : > { %v2495_v22 = vadd.f32 %v2490_v61, %v2320_v17  ;;  %v2759_v61 = vld [vmem:[%s4432_s12 + $0x50] sm:$0xff] (%p3866_p6)  ;;  %v2811_v17 = vld [vmem:[%s4432_s12 + $0x120] sm:$0xff] (%p3866_p6) }
 0x1fb   : > { %v2487_v51 = vpop.xlane.xlu0 %2486  ;;  %2760 = vst [vmem:[%s6109_s19 + $0x50] sm:$0xff] (%p3866_p6), %v2759_v61  ;;  %2812 = vst [vmem:[%s6109_s19 + $0x1e0] sm:$0xff] (%p3866_p6), %v2811_v17 }
 0x1fc   : > { %v2494_v5 = vadd.f32 %v2487_v51, %v2319_v7  ;;  %v2761_v51 = vld [vmem:[%s4432_s12 + $0x58] sm:$0xff] (%p3866_p6)  ;;  %v2819_v7 = vld [vmem:[%s4432_s12 + $0x140] sm:$0xff] (%p3866_p6) }
 0x1fd   : > { %v2505_v32 = vpop.xlane.xlu1 %2504  ;;  %2762 = vst [vmem:[%s6109_s19 + $0x58] sm:$0xff] (%p3866_p6), %v2761_v51  ;;  %2820 = vst [vmem:[%s6109_s19 + $0x200] sm:$0xff] (%p3866_p6), %v2819_v7 }
 0x1fe   : > { %v2512_v54 = vadd.f32 %v2505_v32, %v2337_v55  ;;  %v2763_v32 = vld [vmem:[%s4432_s12 + $0x60] sm:$0xff] (%p3866_p6) }
 0x1ff   : > { %v2493_v6 = vpop.xlane.xlu0 %2492  ;;  %2764 = vst [vmem:[%s6109_s19 + $0x60] sm:$0xff] (%p3866_p6), %v2763_v32  ;;  %v2827_v55 = vld [vmem:[%s4432_s12 + $0x160] sm:$0xff] (%p3866_p6) }
 0x200   : > { %v2496_v26 = vadd.f32 %v2493_v6, %v2321_v13  ;;  %v2765_v6 = vld [vmem:[%s4432_s12 + $0x68] sm:$0xff] (%p3866_p6)  ;;  %2828 = vst [vmem:[%s6109_s19 + $0x220] sm:$0xff] (%p3866_p6), %v2827_v55  ;;  %v2835_v13 = vld [vmem:[%s4432_s12 + $0x180] sm:$0xff] (%p3866_p6) }
 0x201   : > { %v2511_v59 = vpop.xlane.xlu1 %2510  ;;  %2766 = vst [vmem:[%s6109_s19 + $0x68] sm:$0xff] (%p3866_p6), %v2765_v6  ;;  %2836 = vst [vmem:[%s6109_s19 + $0x300] sm:$0xff] (%p3866_p6), %v2835_v13 }
 0x202   : > { %v2514_v62 = vadd.f32 %v2511_v59, %v2339_v42  ;;  %v2767_v59 = vld [vmem:[%s4432_s12 + $0x70] sm:$0xff] (%p3866_p6)  ;;  %v2843_v42 = vld [vmem:[%s4432_s12 + $0x1a0] sm:$0xff] (%p3866_p6) }
 0x203   : > { %v2508_v60 = vpop.xlane.xlu0 %2507  ;;  %2768 = vst [vmem:[%s6109_s19 + $0x70] sm:$0xff] (%p3866_p6), %v2767_v59  ;;  %2844 = vst [vmem:[%s6109_s19 + $0x320] sm:$0xff] (%p3866_p6), %v2843_v42 }
 0x204   : > { %v2513_v50 = vadd.f32 %v2508_v60, %v2338_v35  ;;  %v2771_v60 = vld [vmem:[%s4432_s12 + $0x80] sm:$0xff] (%p3866_p6) }
 0x205   : > { %v1956_v34 = vpop.xlane.xlu1 %1955  ;;  %2772 = vst [vmem:[%s6109_s19 + $0x80] sm:$0xff] (%p3866_p6), %v2771_v60  ;;  %v2851_v35 = vld [vmem:[%s4432_s12 + $0x1c0] sm:$0xff] (%p3866_p6) }
 0x206   : > { %v1961_v48 = vadd.f32 %v1956_v34, %v1786_v25  ;;  %v2775_v25 = vld [vmem:[%s4432_s12 + $0x90] sm:$0xff] (%p3866_p6)  ;;  %v2777_v34 = vld [vmem:[%s4432_s12 + $0x98] sm:$0xff] (%p3866_p6)  ;;  %2852 = vst [vmem:[%s6109_s19 + $0x340] sm:$0xff] (%p3866_p6), %v2851_v35 }
 0x207   : > { %v1953_v14 = vpop.xlane.xlu0 %1952  ;;  %2776 = vst [vmem:[%s6109_s19 + $0x90] sm:$0xff] (%p3866_p6), %v2775_v25  ;;  %2778 = vst [vmem:[%s6109_s19 + $0x98] sm:$0xff] (%p3866_p6), %v2777_v34 }
 0x208   : > { %3443 = vst.msk [vmem:[%s6040_s14 + $0x20] sm:$0xff] %vm474_vm1, %v1961_v48  ;;  %v1960_v18 = vadd.f32 %v1953_v14, %v1785_v49  ;;  %v2781_v49 = vld [vmem:[%s4432_s12 + $0xa8] sm:$0xff] (%p3866_p6)  ;;  %v2783_v48 = vld [vmem:[%s4432_s12 + $0xb0] sm:$0xff] (%p3866_p6)  ;;  %v2785_v14 = vld [vmem:[%s4432_s12 + $0xb8] sm:$0xff] (%p3866_p6) }
 0x209   : > { %v1971_v31 = vpop.xlane.xlu1 %1970  ;;  %2782 = vst [vmem:[%s6109_s19 + $0xa8] sm:$0xff] (%p3866_p6), %v2781_v49  ;;  %2784 = vst [vmem:[%s6109_s19 + $0xb0] sm:$0xff] (%p3866_p6), %v2783_v48 }
 0x20a   : > { %3442 = vst.msk [vmem:[%s6040_s14 + $0x18] sm:$0xff] %vm474_vm1, %v1960_v18  ;;  %v1978_v38 = vadd.f32 %v1971_v31, %v1803_v3  ;;  %2786 = vst [vmem:[%s6109_s19 + $0xb8] sm:$0xff] (%p3866_p6), %v2785_v14  ;;  %v2789_v3 = vld [vmem:[%s4432_s12 + $0xc8] sm:$0xff] (%p3866_p6)  ;;  %v2791_v18 = vld [vmem:[%s4432_s12 + $0xd0] sm:$0xff] (%p3866_p6) }
 0x20b   : > { %v1959_v37 = vpop.xlane.xlu0 %1958  ;;  %2790 = vst [vmem:[%s6109_s19 + $0x188] sm:$0xff] (%p3866_p6), %v2789_v3  ;;  %2792 = vst [vmem:[%s6109_s19 + $0x190] sm:$0xff] (%p3866_p6), %v2791_v18  ;;  %v2793_v31 = vld [vmem:[%s4432_s12 + $0xd8] sm:$0xff] (%p3866_p6) }
 0x20c   : > { %3445 = vst.msk [vmem:[%s6057_s15 + $0x18] sm:$0xff] %vm474_vm1, %v1978_v38  ;;  %v1962_v47 = vadd.f32 %v1959_v37, %v1787_v1  ;;  %v2797_v1 = vld [vmem:[%s4432_s12 + $0xe8] sm:$0xff] (%p3866_p6)  ;;  %2794 = vst [vmem:[%s6109_s19 + $0x198] sm:$0xff] (%p3866_p6), %v2793_v31  ;;  %v2799_v38 = vld [vmem:[%s4432_s12 + $0xf0] sm:$0xff] (%p3866_p6) }
 0x20d   : > { %v1977_v2 = vpop.xlane.xlu1 %1976  ;;  %2798 = vst [vmem:[%s6109_s19 + $0x1a8] sm:$0xff] (%p3866_p6), %v2797_v1  ;;  %v2801_v37 = vld [vmem:[%s4432_s12 + $0xf8] sm:$0xff] (%p3866_p6)  ;;  %2800 = vst [vmem:[%s6109_s19 + $0x1b0] sm:$0xff] (%p3866_p6), %v2799_v38 }
 0x20e   : > { %3444 = vst.msk [vmem:[%s6040_s14 + $0x28] sm:$0xff] %vm474_vm1, %v1962_v47  ;;  %v1980_v52 = vadd.f32 %v1977_v2, %v1805_v9  ;;  %2802 = vst [vmem:[%s6109_s19 + $0x1b8] sm:$0xff] (%p3866_p6), %v2801_v37  ;;  %v2805_v9 = vld [vmem:[%s4432_s12 + $0x108] sm:$0xff] (%p3866_p6)  ;;  %v2807_v47 = vld [vmem:[%s4432_s12 + $0x110] sm:$0xff] (%p3866_p6) }
 0x20f   : > { %v1974_v40 = vpop.xlane.xlu0 %1973  ;;  %v2809_v2 = vld [vmem:[%s4432_s12 + $0x118] sm:$0xff] (%p3866_p6)  ;;  %2806 = vst [vmem:[%s6109_s19 + $0x1c8] sm:$0xff] (%p3866_p6), %v2805_v9  ;;  %2808 = vst [vmem:[%s6109_s19 + $0x1d0] sm:$0xff] (%p3866_p6), %v2807_v47 }
 0x210   : > { %3447 = vst.msk [vmem:[%s6057_s15 + $0x28] sm:$0xff] %vm474_vm1, %v1980_v52  ;;  %v1979_v53 = vadd.f32 %v1974_v40, %v1804_v44  ;;  %2810 = vst [vmem:[%s6109_s19 + $0x1d8] sm:$0xff] (%p3866_p6), %v2809_v2  ;;  %v2813_v44 = vld [vmem:[%s4432_s12 + $0x128] sm:$0xff] (%p3866_p6)  ;;  %v2815_v52 = vld [vmem:[%s4432_s12 + $0x130] sm:$0xff] (%p3866_p6) }
 0x211   : > { %v2665_v36 = vpop.xlane.xlu1 %2664  ;;  %2814 = vst [vmem:[%s6109_s19 + $0x1e8] sm:$0xff] (%p3866_p6), %v2813_v44  ;;  %2816 = vst [vmem:[%s6109_s19 + $0x1f0] sm:$0xff] (%p3866_p6), %v2815_v52  ;;  %v2817_v40 = vld [vmem:[%s4432_s12 + $0x138] sm:$0xff] (%p3866_p6) }
 0x212   : > { %3446 = vst.msk [vmem:[%s6057_s15 + $0x20] sm:$0xff] %vm474_vm1, %v1979_v53  ;;  %v2670_v19 = vadd.f32 %v2665_v36, %v2495_v22  ;;  %v2821_v22 = vld [vmem:[%s4432_s12 + $0x148] sm:$0xff] (%p3866_p6)  ;;  %2818 = vst [vmem:[%s6109_s19 + $0x1f8] sm:$0xff] (%p3866_p6), %v2817_v40  ;;  %v2823_v53 = vld [vmem:[%s4432_s12 + $0x150] sm:$0xff] (%p3866_p6) }
 0x213   : > { %v2662_v21 = vpop.xlane.xlu0 %2661  ;;  %2822 = vst [vmem:[%s6109_s19 + $0x208] sm:$0xff] (%p3866_p6), %v2821_v22  ;;  %v2825_v36 = vld [vmem:[%s4432_s12 + $0x158] sm:$0xff] (%p3866_p6)  ;;  %2824 = vst [vmem:[%s6109_s19 + $0x210] sm:$0xff] (%p3866_p6), %v2823_v53 }
 0x214   : > { %3477 = vst.msk [vmem:[%s6040_s14 + $0x38] sm:$0xff] %vm474_vm1, %v2670_v19  ;;  %v2669_v11 = vadd.f32 %v2662_v21, %v2494_v5  ;;  %2826 = vst [vmem:[%s6109_s19 + $0x218] sm:$0xff] (%p3866_p6), %v2825_v36  ;;  %v2829_v5 = vld [vmem:[%s4432_s12 + $0x168] sm:$0xff] (%p3866_p6)  ;;  %v2831_v19 = vld [vmem:[%s4432_s12 + $0x170] sm:$0xff] (%p3866_p6) }
 0x215   : > { %v2680_v0 = vpop.xlane.xlu1 %2679  ;;  %v2833_v21 = vld [vmem:[%s4432_s12 + $0x178] sm:$0xff] (%p3866_p6)  ;;  %2830 = vst [vmem:[%s6109_s19 + $0x228] sm:$0xff] (%p3866_p6), %v2829_v5  ;;  %2832 = vst [vmem:[%s6109_s19 + $0x230] sm:$0xff] (%p3866_p6), %v2831_v19 }
 0x216   : > { %3476 = vst.msk [vmem:[%s6040_s14 + $0x30] sm:$0xff] %vm474_vm1, %v2669_v11  ;;  %v2687_v46 = vadd.f32 %v2680_v0, %v2512_v54  ;;  %2834 = vst [vmem:[%s6109_s19 + $0x238] sm:$0xff] (%p3866_p6), %v2833_v21  ;;  %v2837_v54 = vld [vmem:[%s4432_s12 + $0x188] sm:$0xff] (%p3866_p6)  ;;  %v2839_v11 = vld [vmem:[%s4432_s12 + $0x190] sm:$0xff] (%p3866_p6) }
 0x217   : > { %v2668_v15 = vpop.xlane.xlu0 %2667  ;;  %2838 = vst [vmem:[%s6109_s19 + $0x308] sm:$0xff] (%p3866_p6), %v2837_v54  ;;  %2840 = vst [vmem:[%s6109_s19 + $0x310] sm:$0xff] (%p3866_p6), %v2839_v11  ;;  %v2841_v0 = vld [vmem:[%s4432_s12 + $0x198] sm:$0xff] (%p3866_p6) }
 0x218   : > { %3479 = vst.msk [vmem:[%s6057_s15 + $0x30] sm:$0xff] %vm474_vm1, %v2687_v46  ;;  %v2671_v45 = vadd.f32 %v2668_v15, %v2496_v26  ;;  %2720 = sbr.rel (!%p3866_p6) target bundleno = 544 (0x220), region = 59  ;;  %v2845_v26 = vld [vmem:[%s4432_s12 + $0x1a8] sm:$0xff] (%p3866_p6)  ;;  %2842 = vst [vmem:[%s6109_s19 + $0x318] sm:$0xff] (%p3866_p6), %v2841_v0  ;;  %v2847_v46 = vld [vmem:[%s4432_s12 + $0x1b0] sm:$0xff] (%p3866_p6) }
 0x219   : > { %v2686_v20 = vpop.xlane.xlu1 %2685  ;;  %2846 = vst [vmem:[%s6109_s19 + $0x328] sm:$0xff] (%p3866_p6), %v2845_v26  ;;  %v2849_v15 = vld [vmem:[%s4432_s12 + $0x1b8] sm:$0xff] (%p3866_p6)  ;;  %2848 = vst [vmem:[%s6109_s19 + $0x330] sm:$0xff] (%p3866_p6), %v2847_v46 }
 0x21a   : > { %3478 = vst.msk [vmem:[%s6040_s14 + $0x40] sm:$0xff] %vm474_vm1, %v2671_v45  ;;  %v2689_v63 = vadd.f32 %v2686_v20, %v2514_v62  ;;  %2850 = vst [vmem:[%s6109_s19 + $0x338] sm:$0xff] (%p3866_p6), %v2849_v15  ;;  %v2853_v62 = vld [vmem:[%s4432_s12 + $0x1c8] sm:$0xff] (%p3866_p6)  ;;  %v2855_v45 = vld [vmem:[%s4432_s12 + $0x1d0] sm:$0xff] (%p3866_p6) }
 0x21b   : > { %v2683_v4 = vpop.xlane.xlu0 %2682  ;;  %v2857_v20 = vld [vmem:[%s4432_s12 + $0x1d8] sm:$0xff] (%p3866_p6)  ;;  %2854 = vst [vmem:[%s6109_s19 + $0x348] sm:$0xff] (%p3866_p6), %v2853_v62  ;;  %2856 = vst [vmem:[%s6109_s19 + $0x350] sm:$0xff] (%p3866_p6), %v2855_v45 }
 0x21c   : > { %3481 = vst.msk [vmem:[%s6057_s15 + $0x40] sm:$0xff] %vm474_vm1, %v2689_v63  ;;  %v2688_v56 = vadd.f32 %v2683_v4, %v2513_v50  ;;  %2858 = vst [vmem:[%s6109_s19 + $0x358] sm:$0xff] (%p3866_p6), %v2857_v20  ;;  %v2859_v50 = vld [vmem:[%s4432_s12 + $0x1e0] sm:$0xff] (%p3866_p6)  ;;  %v2861_v63 = vld [vmem:[%s4432_s12 + $0x1e8] sm:$0xff] (%p3866_p6) }
 0x21d   : > { %v2863_v4 = vld [vmem:[%s4432_s12 + $0x1f0] sm:$0xff] (%p3866_p6)  ;;  %2860 = vst [vmem:[%s6109_s19 + $0x360] sm:$0xff] (%p3866_p6), %v2859_v50  ;;  %2862 = vst [vmem:[%s6109_s19 + $0x368] sm:$0xff] (%p3866_p6), %v2861_v63 }
 0x21e   : > { %3480 = vst.msk [vmem:[%s6057_s15 + $0x38] sm:$0xff] %vm474_vm1, %v2688_v56  ;;  %2864 = vst [vmem:[%s6109_s19 + $0x370] sm:$0xff] (%p3866_p6), %v2863_v4  ;;  %v2865_v56 = vld [vmem:[%s4432_s12 + $0x1f8] sm:$0xff] (%p3866_p6) }
 0x21f   : > { %2866 = vst [vmem:[%s6109_s19 + $0x378] sm:$0xff] %v2865_v56 }
 0x220 PF: > { %2888 = sbr.rel (!%p3866_p6) target bundleno = 551 (0x227), region = 82  ;;  %s2893_s12 = scalar_lea.vmem (%p3866_p6), %s6328_s4, %s4343_s24  ;;  %v2937_v10 = vld [vmem:[%s6040_s14] sm:$0xff] (%p3866_p6)  ;;  %v2939_v43 = vld [vmem:[%s6040_s14 + $0x8] sm:$0xff] (%p3866_p6)  ;;  %v2941_v61 = vld [vmem:[%s6040_s14 + $0x10] sm:$0xff] (%p3866_p6) }
 0x221   : > { %2938 = vst [vmem:[%s2893_s12] sm:$0xff] (%p3866_p6), %v2937_v10  ;;  %2940 = vst [vmem:[%s2893_s12 + $0x8] sm:$0xff] (%p3866_p6), %v2939_v43  ;;  %v2943_v51 = vld [vmem:[%s6040_s14 + $0x18] sm:$0xff] (%p3866_p6)  ;;  %v2945_v32 = vld [vmem:[%s6040_s14 + $0x20] sm:$0xff] (%p3866_p6) }
 0x222   : > { %2942 = vst [vmem:[%s2893_s12 + $0x10] sm:$0xff] (%p3866_p6), %v2941_v61  ;;  %v2947_v6 = vld [vmem:[%s6040_s14 + $0x28] sm:$0xff] (%p3866_p6)  ;;  %2944 = vst [vmem:[%s2893_s12 + $0x30] sm:$0xff] (%p3866_p6), %v2943_v51  ;;  %v2949_v59 = vld [vmem:[%s6040_s14 + $0x30] sm:$0xff] (%p3866_p6) }
 0x223   : > { %2946 = vst [vmem:[%s2893_s12 + $0x38] sm:$0xff] (%p3866_p6), %v2945_v32  ;;  %2948 = vst [vmem:[%s2893_s12 + $0x40] sm:$0xff] (%p3866_p6), %v2947_v6  ;;  %v2951_v41 = vld [vmem:[%s6040_s14 + $0x38] sm:$0xff] (%p3866_p6)  ;;  %v2953_v60 = vld [vmem:[%s6040_s14 + $0x40] sm:$0xff] (%p3866_p6) }
 0x224   : > { %2950 = vst [vmem:[%s2893_s12 + $0x60] sm:$0xff] (%p3866_p6), %v2949_v59  ;;  %2952 = vst [vmem:[%s2893_s12 + $0x68] sm:$0xff] (%p3866_p6), %v2951_v41 }
 0x225   : > { %2954 = vst [vmem:[%s2893_s12 + $0x70] sm:$0xff] (%p3866_p6), %v2953_v60 }
 0x227 PF: > { %2960 = sbr.rel (!%p3866_p6) target bundleno = 558 (0x22e), region = 120  ;;  %s2965_s30 = scalar_lea.vmem (%p3866_p6), %s6329_s5, %s4343_s24  ;;  %v3009_v33 = vld [vmem:[%s6057_s15] sm:$0xff] (%p3866_p6)  ;;  %v3011_v25 = vld [vmem:[%s6057_s15 + $0x8] sm:$0xff] (%p3866_p6)  ;;  %v3013_v34 = vld [vmem:[%s6057_s15 + $0x10] sm:$0xff] (%p3866_p6) }
 0x228   : > { %3010 = vst [vmem:[%s2965_s30] sm:$0xff] (%p3866_p6), %v3009_v33  ;;  %3012 = vst [vmem:[%s2965_s30 + $0x8] sm:$0xff] (%p3866_p6), %v3011_v25  ;;  %v3015_v30 = vld [vmem:[%s6057_s15 + $0x18] sm:$0xff] (%p3866_p6)  ;;  %v3017_v49 = vld [vmem:[%s6057_s15 + $0x20] sm:$0xff] (%p3866_p6) }
 0x229   : > { %3014 = vst [vmem:[%s2965_s30 + $0x10] sm:$0xff] (%p3866_p6), %v3013_v34  ;;  %v3019_v48 = vld [vmem:[%s6057_s15 + $0x28] sm:$0xff] (%p3866_p6)  ;;  %3016 = vst [vmem:[%s2965_s30 + $0x30] sm:$0xff] (%p3866_p6), %v3015_v30  ;;  %v3021_v14 = vld [vmem:[%s6057_s15 + $0x30] sm:$0xff] (%p3866_p6) }
 0x22a   : > { %3018 = vst [vmem:[%s2965_s30 + $0x38] sm:$0xff] (%p3866_p6), %v3017_v49  ;;  %3020 = vst [vmem:[%s2965_s30 + $0x40] sm:$0xff] (%p3866_p6), %v3019_v48  ;;  %v3023_v28 = vld [vmem:[%s6057_s15 + $0x38] sm:$0xff] (%p3866_p6)  ;;  %v3025_v3 = vld [vmem:[%s6057_s15 + $0x40] sm:$0xff] (%p3866_p6) }
 0x22b   : > { %3022 = vst [vmem:[%s2965_s30 + $0x60] sm:$0xff] (%p3866_p6), %v3021_v14  ;;  %3024 = vst [vmem:[%s2965_s30 + $0x68] sm:$0xff] (%p3866_p6), %v3023_v28 }
 0x22c   : > { %3026 = vst [vmem:[%s2965_s30 + $0x70] sm:$0xff] (%p3866_p6), %v3025_v3 }
 0x22e PF: > { %3032 = sbr.rel (!%p3866_p6) target bundleno = 565 (0x235), region = 158  ;;  %s3037_s14 = scalar_lea.vmem (%p3866_p6), %s6330_s6, %s4343_s24  ;;  %v3081_v18 = vld [vmem:[%s5823_s21] sm:$0xff] (%p3866_p6)  ;;  %v3083_v31 = vld [vmem:[%s5823_s21 + $0x8] sm:$0xff] (%p3866_p6)  ;;  %v3085_v29 = vld [vmem:[%s5823_s21 + $0x10] sm:$0xff] (%p3866_p6) }
 0x22f   : > { %3082 = vst [vmem:[%s3037_s14] sm:$0xff] (%p3866_p6), %v3081_v18  ;;  %3084 = vst [vmem:[%s3037_s14 + $0x8] sm:$0xff] (%p3866_p6), %v3083_v31  ;;  %v3087_v1 = vld [vmem:[%s5823_s21 + $0x18] sm:$0xff] (%p3866_p6)  ;;  %v3089_v38 = vld [vmem:[%s5823_s21 + $0x20] sm:$0xff] (%p3866_p6) }
 0x230   : > { %3086 = vst [vmem:[%s3037_s14 + $0x10] sm:$0xff] (%p3866_p6), %v3085_v29  ;;  %v3091_v37 = vld [vmem:[%s5823_s21 + $0x28] sm:$0xff] (%p3866_p6)  ;;  %3088 = vst [vmem:[%s3037_s14 + $0x30] sm:$0xff] (%p3866_p6), %v3087_v1  ;;  %v3093_v24 = vld [vmem:[%s5823_s21 + $0x30] sm:$0xff] (%p3866_p6) }
 0x231   : > { %3090 = vst [vmem:[%s3037_s14 + $0x38] sm:$0xff] (%p3866_p6), %v3089_v38  ;;  %3092 = vst [vmem:[%s3037_s14 + $0x40] sm:$0xff] (%p3866_p6), %v3091_v37  ;;  %v3095_v9 = vld [vmem:[%s5823_s21 + $0x38] sm:$0xff] (%p3866_p6)  ;;  %v3097_v47 = vld [vmem:[%s5823_s21 + $0x40] sm:$0xff] (%p3866_p6) }
 0x232   : > { %3094 = vst [vmem:[%s3037_s14 + $0x60] sm:$0xff] (%p3866_p6), %v3093_v24  ;;  %3096 = vst [vmem:[%s3037_s14 + $0x68] sm:$0xff] (%p3866_p6), %v3095_v9 }
 0x233   : > { %3098 = vst [vmem:[%s3037_s14 + $0x70] sm:$0xff] (%p3866_p6), %v3097_v47 }
 0x235 PF: > { %3104 = sbr.rel (!%p3866_p6) target bundleno = 572 (0x23c), region = 196  ;;  %s3109_s21 = scalar_lea.vmem (%p3866_p6), %s6331_s7, %s4343_s24  ;;  %v3153_v2 = vld [vmem:[%s5848_s13] sm:$0xff] (%p3866_p6)  ;;  %v3155_v17 = vld [vmem:[%s5848_s13 + $0x8] sm:$0xff] (%p3866_p6)  ;;  %v3157_v44 = vld [vmem:[%s5848_s13 + $0x10] sm:$0xff] (%p3866_p6) }
 0x236   : > { %3154 = vst [vmem:[%s3109_s21] sm:$0xff] (%p3866_p6), %v3153_v2  ;;  %3156 = vst [vmem:[%s3109_s21 + $0x8] sm:$0xff] (%p3866_p6), %v3155_v17  ;;  %v3159_v52 = vld [vmem:[%s5848_s13 + $0x18] sm:$0xff] (%p3866_p6)  ;;  %v3161_v40 = vld [vmem:[%s5848_s13 + $0x20] sm:$0xff] (%p3866_p6) }
 0x237   : > { %3158 = vst [vmem:[%s3109_s21 + $0x10] sm:$0xff] (%p3866_p6), %v3157_v44  ;;  %v3163_v7 = vld [vmem:[%s5848_s13 + $0x28] sm:$0xff] (%p3866_p6)  ;;  %3160 = vst [vmem:[%s3109_s21 + $0x30] sm:$0xff] (%p3866_p6), %v3159_v52  ;;  %v3165_v22 = vld [vmem:[%s5848_s13 + $0x30] sm:$0xff] (%p3866_p6) }
 0x238   : > { %3162 = vst [vmem:[%s3109_s21 + $0x38] sm:$0xff] (%p3866_p6), %v3161_v40  ;;  %3164 = vst [vmem:[%s3109_s21 + $0x40] sm:$0xff] (%p3866_p6), %v3163_v7  ;;  %v3167_v53 = vld [vmem:[%s5848_s13 + $0x38] sm:$0xff] (%p3866_p6)  ;;  %v3169_v36 = vld [vmem:[%s5848_s13 + $0x40] sm:$0xff] (%p3866_p6) }
 0x239   : > { %3166 = vst [vmem:[%s3109_s21 + $0x60] sm:$0xff] (%p3866_p6), %v3165_v22  ;;  %3168 = vst [vmem:[%s3109_s21 + $0x68] sm:$0xff] (%p3866_p6), %v3167_v53 }
 0x23a   : > { %3170 = vst [vmem:[%s3109_s21 + $0x70] sm:$0xff] (%p3866_p6), %v3169_v36 }
 0x23c PF: > { %s18_s28 = sadd.s32 1, %s3788_s28   ;;  %s6793_s24 = smov %s3776_s25 }
 0x23d   : > { %p15_p11 = scmp.ge.s32.totalorder %s18_s28, 4   ;;  %s6794_s25 = smov %s3871_s11 }
 0x23e   : > { %s6795_s26 = smov %s3784_s27  ;;  %s6796_s27 = smov %s6798_s29 }
 0x23f   :  { %17 = sbr.rel (!%p15_p11) target bundleno = 3 (0x3), region = 336 }

</bundles_post_ra>
